<compile_context>
chip_gen: v6e
topology: v6e:2x2x1
jax: 0.10.0
libtpu: 0.0.40
codegen_flags: <defaults>
</compile_context>

<pallas_src>
import jax
import jax.numpy as jnp
from jax.experimental import pallas as pl
from jax.experimental.pallas import tpu as pltpu


# ------------------------------ GRU step (fused gates) ------------------------------ #
def _gru_step(gx, h, whh, bhh, H):
    """One GRU step.  gx = x @ Wih + bih with gates concatenated [r | z | n].
    whh: (H, 3H) gate-concatenated; bhh: (1, 3H).  PyTorch gate equations."""
    gh = jnp.dot(h, whh, preferred_element_type=jnp.float32) + bhh
    r = jax.nn.sigmoid(gx[:, :H] + gh[:, :H])
    z = jax.nn.sigmoid(gx[:, H:2 * H] + gh[:, H:2 * H])
    n = jnp.tanh(gx[:, 2 * H:] + r * gh[:, 2 * H:])
    return (1.0 - z) * n + z * h


# --------------------------------- fused kernel ------------------------------------- #
def evaluation_kernel(
        eff_ref,        # (T, B, R, E)
        eff_flat_ref,   # (T*R*B, E)   rows ordered (t, relation, batch)
        wih1_ref, whh1_ref, bih1_ref, bhh1_ref,     # GRU2_1
        wih2_ref, whh2_ref, bih2_ref, bhh2_ref,     # GRU2_2
        wih3_ref, whh3_ref, bih3_ref, bhh3_ref,     # GRU2_3
        wih4_ref, whh4_ref, bih4_ref, bhh4_ref,     # GRU2_4
        w1_ref, b1_ref, w2_ref, b2_ref,             # out2_1 / out2_2
        mask_ref,                                    # (B, Hidden) pre-scaled dropout mask
        outs_ref,       # (1, B, OUT)
        probs1_ref,     # (T, B, R)
        probs2_ref,     # (T, B)
        seq_sc,         # VMEM (T*B, E)
        out1_sc,        # VMEM (T*B, HID)
        scores_sc):     # VMEM (B, T)
    T, B, R, E = eff_ref.shape
    HID = whh2_ref.shape[0]

    # ---- GRU2_1 over relations (hidden carried across time, like the torch loop) ----
    whh1 = whh1_ref[...]
    bhh1 = bhh1_ref[...]
    # hoisted x projection: one matmul for every (t, relation, batch) step
    gx1 = jnp.dot(eff_flat_ref[...], wih1_ref[...],
                  preferred_element_type=jnp.float32) + bih1_ref[...]     # (T*R*B, 3E)

    h1 = jnp.zeros((B, E), jnp.float32)
    for t in range(T):
        x_t = eff_ref[t]                                         # (B, R, E)
        for j in range(R):
            row0 = (t * R + j) * B
            h1 = _gru_step(gx1[row0:row0 + B, :], h1, whh1, bhh1, E)
        # spatial attention: Dot attention, 10 * tanh, softmax over relations
        logits = jnp.sum(x_t * h1[:, None, :], axis=-1)          # (B, R)
        probs = jax.nn.softmax(10.0 * jnp.tanh(logits), axis=1)
        probs1_ref[t] = probs
        # wei_sum: probability-weighted sum over relations
        seq_sc[t * B:(t + 1) * B, :] = jnp.sum(x_t * probs[:, :, None], axis=1)

    # ---- GRU2_2 over time ----
    whh2 = whh2_ref[...]
    bhh2 = bhh2_ref[...]
    gx2 = jnp.dot(seq_sc[...], wih2_ref[...],
                  preferred_element_type=jnp.float32) + bih2_ref[...]     # (T*B, 3*HID)
    h2 = jnp.zeros((B, HID), jnp.float32)
    for t in range(T):
        h2 = _gru_step(gx2[t * B:(t + 1) * B, :], h2, whh2, bhh2, HID)
        out1_sc[t * B:(t + 1) * B, :] = h2

    out1_all = out1_sc[...]                                      # (T*B, HID)

    # ---- GRU2_4 (hidden size 1) -> temporal attention scores ----
    gx4 = jnp.dot(out1_all, wih4_ref[...],
                  preferred_element_type=jnp.float32) + bih4_ref[...]     # (T*B, 3)
    whh4 = whh4_ref[...]                                         # (1, 3)
    bhh4 = bhh4_ref[...]                                         # (1, 3)
    h4 = jnp.zeros((B, 1), jnp.float32)
    for t in range(T):
        gx = gx4[t * B:(t + 1) * B, :]                           # (B, 3)
        gh = h4 * whh4 + bhh4                                    # (B, 3)
        r = jax.nn.sigmoid(gx[:, 0:1] + gh[:, 0:1])
        z = jax.nn.sigmoid(gx[:, 1:2] + gh[:, 1:2])
        n = jnp.tanh(gx[:, 2:3] + r * gh[:, 2:3])
        h4 = (1.0 - z) * n + z * h4
        scores_sc[:, t:t + 1] = h4

    probs_bt = jax.nn.softmax(scores_sc[...], axis=1)            # (B, T): softmax over time
    probs2_ref[...] = probs_bt.T                                 # emit time-major (T, B)

    # ---- GRU2_3 over out_1 * probs (per-row scaling commutes with the x matmul) ----
    whh3 = whh3_ref[...]
    bhh3 = bhh3_ref[...]
    bih3 = bih3_ref[...]
    gx3_base = jnp.dot(out1_all, wih3_ref[...],
                       preferred_element_type=jnp.float32)       # (T*B, 3E), bias later
    h3 = jnp.zeros((B, E), jnp.float32)
    for t in range(T):
        p_t = probs_bt[:, t:t + 1]                               # (B, 1)
        gx3 = gx3_base[t * B:(t + 1) * B, :] * p_t + bih3
        h3 = _gru_step(gx3, h3, whh3, bhh3, E)

    # ---- head: Linear -> dropout(p=0.2, pre-scaled mask) -> ReLU -> Linear ----
    out_3 = jnp.dot(h3, w1_ref[...], preferred_element_type=jnp.float32) + b1_ref[...]
    out_5 = jnp.maximum(out_3 * mask_ref[...], 0.0)
    outs_ref[0] = jnp.dot(out_5, w2_ref[...],
                          preferred_element_type=jnp.float32) + b2_ref[...]


# ----------------------------------- wrapper ---------------------------------------- #
def _full_spec(shape):
    nd = len(shape)
    return pl.BlockSpec(shape, lambda i, nd=nd: (0,) * nd)


@jax.jit
def evaluation_forward(effect_n, params, dropout_mask):
    """effect_n: (R, T, B, E). Returns (outs (1,B,OUT), probs_1 (T,B,R), probs_2 (T,B))."""
    R, T, B, E = effect_n.shape
    eff = jnp.transpose(effect_n, (1, 2, 0, 3))                  # (T, B, R, E)
    # same data, rows ordered (t, relation, batch): per-(t,j) GRU steps are contiguous
    eff_flat = jnp.transpose(effect_n, (1, 0, 2, 3)).reshape(T * R * B, E)

    g1, g2, g3, g4 = params["gru1"], params["gru2"], params["gru3"], params["gru4"]
    HID = g2["whh_t"].shape[0]
    OUT = params["w2"].shape[1]

    inputs = [
        eff, eff_flat,
        g1["wih_t"], g1["whh_t"], g1["bih"], g1["bhh"],
        g2["wih_t"], g2["whh_t"], g2["bih"], g2["bhh"],
        g3["wih_t"], g3["whh_t"], g3["bih"], g3["bhh"],
        g4["wih_t"], g4["whh_t"], g4["bih"], g4["bhh"],
        params["w1"], params["b1"], params["w2"], params["b2"],
        dropout_mask,
    ]

    outs, probs_1, probs_2 = pl.pallas_call(
        evaluation_kernel,
        out_shape=(
            jax.ShapeDtypeStruct((1, B, OUT), jnp.float32),
            jax.ShapeDtypeStruct((T, B, R), jnp.float32),
            jax.ShapeDtypeStruct((T, B), jnp.float32),
        ),
        grid=(1,),
        in_specs=[_full_spec(x.shape) for x in inputs],
        out_specs=(
            _full_spec((1, B, OUT)),
            _full_spec((T, B, R)),
            _full_spec((T, B)),
        ),
        scratch_shapes=[
            pltpu.VMEM((T * B, E), jnp.float32),     # seq_effect
            pltpu.VMEM((T * B, HID), jnp.float32),   # out_1
            pltpu.VMEM((B, T), jnp.float32),         # temporal attention scores
        ],
        compiler_params=pltpu.CompilerParams(dimension_semantics=("arbitrary",)),
    )(*inputs)
    return outs, probs_1, probs_2


# ----------------------------- parameter construction -------------------------------- #
def _init_gru(key, in_size, h_size, scale=0.1):
    """PyTorch nn.GRU parameter layout (gate order r, z, n), pre-transposed for kernel."""
    k1, k2, k3, k4 = jax.random.split(key, 4)
    wih = scale * jax.random.normal(k1, (3 * h_size, in_size), jnp.float32)
    whh = scale * jax.random.normal(k2, (3 * h_size, h_size), jnp.float32)
    bih = scale * jax.random.normal(k3, (3 * h_size,), jnp.float32)
    bhh = scale * jax.random.normal(k4, (3 * h_size,), jnp.float32)
    return dict(
        wih_t=wih.T,                          # (in, 3H), columns [r | z | n]
        whh_t=whh.T,                          # (H, 3H)
        bih=bih.reshape(1, 3 * h_size),
        bhh=bhh.reshape(1, 3 * h_size),
    )


def init_params(key, effect_size, output_size, hidden_size, hid=20, scale=0.1):
    k1, k2, k3, k4, k5, k6, k7, k8 = jax.random.split(key, 8)
    w1 = scale * jax.random.normal(k5, (hidden_size, effect_size), jnp.float32)
    b1 = scale * jax.random.normal(k6, (hidden_size,), jnp.float32)
    w2 = scale * jax.random.normal(k7, (output_size, hidden_size), jnp.float32)
    b2 = scale * jax.random.normal(k8, (output_size,), jnp.float32)
    return dict(
        gru1=_init_gru(k1, effect_size, effect_size, scale),   # GRU2_1
        gru2=_init_gru(k2, effect_size, hid, scale),           # GRU2_2
        gru3=_init_gru(k3, hid, effect_size, scale),           # GRU2_3
        gru4=_init_gru(k4, hid, 1, scale),                     # GRU2_4
        w1=w1.T, b1=b1.reshape(1, hidden_size),                # out2_1
        w2=w2.T, b2=b2.reshape(1, output_size),                # out2_2
    )


def make_dropout_mask(key, shape, p=0.2):
    keep = jax.random.bernoulli(key, 1.0 - p, shape)
    return keep.astype(jnp.float32) / (1.0 - p)


# ------------------------------ pure-JAX reference ----------------------------------- #
def _reference_forward(effect_n, p, drop_mask):
    """Pure-JAX mirror of Evaluation.forward (same parameters / same dropout mask)."""
    R, T, B, E = effect_n.shape
    eff = jnp.transpose(effect_n, (1, 2, 0, 3))

    def gru_cell(x, h, g, H):
        gx = x @ g["wih_t"] + g["bih"]
        gh = h @ g["whh_t"] + g["bhh"]
        r = jax.nn.sigmoid(gx[:, :H] + gh[:, :H])
        z = jax.nn.sigmoid(gx[:, H:2 * H] + gh[:, H:2 * H])
        n = jnp.tanh(gx[:, 2 * H:] + r * gh[:, 2 * H:])
        return (1.0 - z) * n + z * h

    g1, g2, g3, g4 = p["gru1"], p["gru2"], p["gru3"], p["gru4"]
    HID = g2["whh_t"].shape[0]

    h1 = jnp.zeros((B, E), jnp.float32)
    seq, probs1 = [], []
    for t in range(T):
        x_t = eff[t]
        for j in range(R):
            h1 = gru_cell(x_t[:, j, :], h1, g1, E)
        logits = 10.0 * jnp.tanh(jnp.einsum("bre,be->br", x_t, h1))
        pr = jax.nn.softmax(logits, axis=1)
        probs1.append(pr)
        seq.append(jnp.einsum("bre,br->be", x_t, pr))
    probs1 = jnp.stack(probs1)

    h2 = jnp.zeros((B, HID), jnp.float32)
    out1 = []
    for t in range(T):
        h2 = gru_cell(seq[t], h2, g2, HID)
        out1.append(h2)

    h4 = jnp.zeros((B, 1), jnp.float32)
    scores = []
    for t in range(T):
        h4 = gru_cell(out1[t], h4, g4, 1)
        scores.append(h4[:, 0])
    probs2 = jax.nn.softmax(jnp.stack(scores), axis=0)           # (T, B), softmax over time

    h3 = jnp.zeros((B, E), jnp.float32)
    for t in range(T):
        h3 = gru_cell(out1[t] * probs2[t][:, None], h3, g3, E)

    out_3 = h3 @ p["w1"] + p["b1"]
    out_5 = jnp.maximum(out_3 * drop_mask, 0.0)
    outs = (out_5 @ p["w2"] + p["b2"])[None]
    return outs, probs1, probs2


if __name__ == "__main__":
    # nlayers_2 = 1 (required by the PyTorch code's hidden.squeeze(0)); hid = 20.
    R, T, B = 5, 6, 4
    effect_size, output_size, hidden_size = 8, 4, 16

    key = jax.random.PRNGKey(0)
    kx, kp, kd = jax.random.split(key, 3)
    effect_n = jax.random.normal(kx, (R, T, B, effect_size), jnp.float32)
    params = init_params(kp, effect_size, output_size, hidden_size)
    drop_mask = make_dropout_mask(kd, (B, hidden_size), p=0.2)

    outs, probs_1, probs_2 = evaluation_forward(effect_n, params, drop_mask)
    jax.block_until_ready((outs, probs_1, probs_2))

    assert outs.shape == (1, B, output_size)
    assert probs_1.shape == (T, B, R)
    assert probs_2.shape == (T, B)
    assert bool(jnp.all(jnp.isfinite(outs)))
    # probabilities sum to 1 along the softmaxed axes
    assert bool(jnp.allclose(jnp.sum(probs_1, axis=-1), 1.0, atol=1e-4))
    assert bool(jnp.allclose(jnp.sum(probs_2, axis=0), 1.0, atol=1e-4))

    # cross-check against a pure-JAX reference of the same forward pass / same mask
    r_outs, r_p1, r_p2 = _reference_forward(effect_n, params, drop_mask)
    assert bool(jnp.allclose(outs, r_outs, atol=2e-2, rtol=2e-2))
    assert bool(jnp.allclose(probs_1, r_p1, atol=2e-2, rtol=2e-2))
    assert bool(jnp.allclose(probs_2, r_p2, atol=2e-2, rtol=2e-2))

    print("KERNEL_OK")
</pallas_src>

<mosaic_0001>
module attributes {stable_mosaic.version = 11 : i64} {
  func.func @evaluation_kernel(%arg0: i32, %arg1: memref<6x4x5x8xf32, #tpu.memory_space<vmem>>, %arg2: memref<120x8xf32, #tpu.memory_space<vmem>>, %arg3: memref<8x24xf32, #tpu.memory_space<vmem>>, %arg4: memref<8x24xf32, #tpu.memory_space<vmem>>, %arg5: memref<1x24xf32, #tpu.memory_space<vmem>>, %arg6: memref<1x24xf32, #tpu.memory_space<vmem>>, %arg7: memref<8x60xf32, #tpu.memory_space<vmem>>, %arg8: memref<20x60xf32, #tpu.memory_space<vmem>>, %arg9: memref<1x60xf32, #tpu.memory_space<vmem>>, %arg10: memref<1x60xf32, #tpu.memory_space<vmem>>, %arg11: memref<20x24xf32, #tpu.memory_space<vmem>>, %arg12: memref<8x24xf32, #tpu.memory_space<vmem>>, %arg13: memref<1x24xf32, #tpu.memory_space<vmem>>, %arg14: memref<1x24xf32, #tpu.memory_space<vmem>>, %arg15: memref<20x3xf32, #tpu.memory_space<vmem>>, %arg16: memref<1x3xf32, #tpu.memory_space<vmem>>, %arg17: memref<1x3xf32, #tpu.memory_space<vmem>>, %arg18: memref<1x3xf32, #tpu.memory_space<vmem>>, %arg19: memref<8x16xf32, #tpu.memory_space<vmem>>, %arg20: memref<1x16xf32, #tpu.memory_space<vmem>>, %arg21: memref<16x4xf32, #tpu.memory_space<vmem>>, %arg22: memref<1x4xf32, #tpu.memory_space<vmem>>, %arg23: memref<4x16xf32, #tpu.memory_space<vmem>>, %arg24: memref<1x4x4xf32, #tpu.memory_space<vmem>>, %arg25: memref<6x4x5xf32, #tpu.memory_space<vmem>>, %arg26: memref<6x4xf32, #tpu.memory_space<vmem>>, %arg27: memref<24x8xf32, #tpu.memory_space<vmem>>, %arg28: memref<24x20xf32, #tpu.memory_space<vmem>>, %arg29: memref<4x6xf32, #tpu.memory_space<vmem>>) attributes {dimension_semantics = [#tpu.dimension_semantics<arbitrary>], iteration_bounds = array<i64: 1>, scalar_prefetch = 0 : i64, scratch_operands = 3 : i64, tpu.core_type = #tpu.core_type<tc>, window_params = [{pipeline_mode = #tpu.pipeline_mode<synchronous>, transform_indices = @transform_0, window_bounds = array<i64: 6, 4, 5, 8>}, {pipeline_mode = #tpu.pipeline_mode<synchronous>, transform_indices = @transform_1, window_bounds = array<i64: 120, 8>}, {pipeline_mode = #tpu.pipeline_mode<synchronous>, transform_indices = @transform_2, window_bounds = array<i64: 8, 24>}, {pipeline_mode = #tpu.pipeline_mode<synchronous>, transform_indices = @transform_3, window_bounds = array<i64: 8, 24>}, {pipeline_mode = #tpu.pipeline_mode<synchronous>, transform_indices = @transform_4, window_bounds = array<i64: 1, 24>}, {pipeline_mode = #tpu.pipeline_mode<synchronous>, transform_indices = @transform_5, window_bounds = array<i64: 1, 24>}, {pipeline_mode = #tpu.pipeline_mode<synchronous>, transform_indices = @transform_6, window_bounds = array<i64: 8, 60>}, {pipeline_mode = #tpu.pipeline_mode<synchronous>, transform_indices = @transform_7, window_bounds = array<i64: 20, 60>}, {pipeline_mode = #tpu.pipeline_mode<synchronous>, transform_indices = @transform_8, window_bounds = array<i64: 1, 60>}, {pipeline_mode = #tpu.pipeline_mode<synchronous>, transform_indices = @transform_9, window_bounds = array<i64: 1, 60>}, {pipeline_mode = #tpu.pipeline_mode<synchronous>, transform_indices = @transform_10, window_bounds = array<i64: 20, 24>}, {pipeline_mode = #tpu.pipeline_mode<synchronous>, transform_indices = @transform_11, window_bounds = array<i64: 8, 24>}, {pipeline_mode = #tpu.pipeline_mode<synchronous>, transform_indices = @transform_12, window_bounds = array<i64: 1, 24>}, {pipeline_mode = #tpu.pipeline_mode<synchronous>, transform_indices = @transform_13, window_bounds = array<i64: 1, 24>}, {pipeline_mode = #tpu.pipeline_mode<synchronous>, transform_indices = @transform_14, window_bounds = array<i64: 20, 3>}, {pipeline_mode = #tpu.pipeline_mode<synchronous>, transform_indices = @transform_15, window_bounds = array<i64: 1, 3>}, {pipeline_mode = #tpu.pipeline_mode<synchronous>, transform_indices = @transform_16, window_bounds = array<i64: 1, 3>}, {pipeline_mode = #tpu.pipeline_mode<synchronous>, transform_indices = @transform_17, window_bounds = array<i64: 1, 3>}, {pipeline_mode = #tpu.pipeline_mode<synchronous>, transform_indices = @transform_18, window_bounds = array<i64: 8, 16>}, {pipeline_mode = #tpu.pipeline_mode<synchronous>, transform_indices = @transform_19, window_bounds = array<i64: 1, 16>}, {pipeline_mode = #tpu.pipeline_mode<synchronous>, transform_indices = @transform_20, window_bounds = array<i64: 16, 4>}, {pipeline_mode = #tpu.pipeline_mode<synchronous>, transform_indices = @transform_21, window_bounds = array<i64: 1, 4>}, {pipeline_mode = #tpu.pipeline_mode<synchronous>, transform_indices = @transform_22, window_bounds = array<i64: 4, 16>}, {pipeline_mode = #tpu.pipeline_mode<synchronous>, transform_indices = @transform_23, window_bounds = array<i64: 1, 4, 4>}, {pipeline_mode = #tpu.pipeline_mode<synchronous>, transform_indices = @transform_24, window_bounds = array<i64: 6, 4, 5>}, {pipeline_mode = #tpu.pipeline_mode<synchronous>, transform_indices = @transform_25, window_bounds = array<i64: 6, 4>}]} {
    %c0 = arith.constant 0 : index
    %c0_0 = arith.constant 0 : index
    %0 = vector.load %arg4[%c0, %c0_0] : memref<8x24xf32, #tpu.memory_space<vmem>>, vector<8x24xf32>
    %c0_1 = arith.constant 0 : index
    %c0_2 = arith.constant 0 : index
    %1 = vector.load %arg6[%c0_1, %c0_2] : memref<1x24xf32, #tpu.memory_space<vmem>>, vector<1x24xf32>
    %c0_3 = arith.constant 0 : index
    %c0_4 = arith.constant 0 : index
    %2 = vector.load %arg2[%c0_3, %c0_4] : memref<120x8xf32, #tpu.memory_space<vmem>>, vector<120x8xf32>
    %c0_5 = arith.constant 0 : index
    %c0_6 = arith.constant 0 : index
    %3 = vector.load %arg3[%c0_5, %c0_6] : memref<8x24xf32, #tpu.memory_space<vmem>>, vector<8x24xf32>
    %cst = arith.constant dense<0.000000e+00> : vector<120x24xf32>
    %4 = tpu.matmul %2, %3, %cst {dimension_numbers = #tpu.dot_dimension_numbers<[1], [0], [0], [1], [0, 0, 1, 1], [], []>} : vector<120x8xf32>, vector<8x24xf32>, vector<120x24xf32> -> vector<120x24xf32>
    %c0_7 = arith.constant 0 : index
    %c0_8 = arith.constant 0 : index
    %5 = vector.load %arg5[%c0_7, %c0_8] : memref<1x24xf32, #tpu.memory_space<vmem>>, vector<1x24xf32>
    %6 = vector.broadcast %5 : vector<1x24xf32> to vector<120x24xf32>
    %7 = arith.addf %4, %6 : vector<120x24xf32>
    %cst_9 = arith.constant 0.000000e+00 : f32
    %8 = vector.broadcast %cst_9 : f32 to vector<4x8xf32>
    %c0_10 = arith.constant 0 : index
    %c0_11 = arith.constant 0 : index
    %c0_12 = arith.constant 0 : index
    %c0_13 = arith.constant 0 : index
    %9 = vector.load %arg1[%c0_10, %c0_11, %c0_12, %c0_13] : memref<6x4x5x8xf32, #tpu.memory_space<vmem>>, vector<1x4x5x8xf32>
    %10 = vector.shape_cast %9 : vector<1x4x5x8xf32> to vector<4x5x8xf32>
    %11 = vector.extract_strided_slice %7 {offsets = [0, 0], sizes = [4, 24], strides = [1, 1]} : vector<120x24xf32> to vector<4x24xf32>
    %cst_14 = arith.constant dense<0.000000e+00> : vector<4x24xf32>
    %12 = tpu.matmul %8, %0, %cst_14 {dimension_numbers = #tpu.dot_dimension_numbers<[1], [0], [0], [1], [0, 0, 1, 1], [], []>} : vector<4x8xf32>, vector<8x24xf32>, vector<4x24xf32> -> vector<4x24xf32>
    %13 = vector.broadcast %1 : vector<1x24xf32> to vector<4x24xf32>
    %14 = arith.addf %12, %13 : vector<4x24xf32>
    %15 = vector.extract_strided_slice %11 {offsets = [0, 0], sizes = [4, 8], strides = [1, 1]} : vector<4x24xf32> to vector<4x8xf32>
    %16 = vector.extract_strided_slice %14 {offsets = [0, 0], sizes = [4, 8], strides = [1, 1]} : vector<4x24xf32> to vector<4x8xf32>
    %17 = arith.addf %15, %16 : vector<4x8xf32>
    %18 = arith.negf %17 : vector<4x8xf32>
    %19 = math.exp %18 : vector<4x8xf32>
    %cst_15 = arith.constant 1.000000e+00 : f32
    %20 = vector.broadcast %cst_15 : f32 to vector<4x8xf32>
    %21 = arith.addf %20, %19 : vector<4x8xf32>
    %22 = arith.divf %20, %21 : vector<4x8xf32>
    %23 = vector.extract_strided_slice %11 {offsets = [0, 8], sizes = [4, 8], strides = [1, 1]} : vector<4x24xf32> to vector<4x8xf32>
    %24 = vector.extract_strided_slice %14 {offsets = [0, 8], sizes = [4, 8], strides = [1, 1]} : vector<4x24xf32> to vector<4x8xf32>
    %25 = arith.addf %23, %24 : vector<4x8xf32>
    %26 = arith.negf %25 : vector<4x8xf32>
    %27 = math.exp %26 : vector<4x8xf32>
    %cst_16 = arith.constant 1.000000e+00 : f32
    %28 = vector.broadcast %cst_16 : f32 to vector<4x8xf32>
    %29 = arith.addf %28, %27 : vector<4x8xf32>
    %30 = arith.divf %28, %29 : vector<4x8xf32>
    %31 = vector.extract_strided_slice %11 {offsets = [0, 16], sizes = [4, 8], strides = [1, 1]} : vector<4x24xf32> to vector<4x8xf32>
    %32 = vector.extract_strided_slice %14 {offsets = [0, 16], sizes = [4, 8], strides = [1, 1]} : vector<4x24xf32> to vector<4x8xf32>
    %33 = arith.mulf %22, %32 : vector<4x8xf32>
    %34 = arith.addf %31, %33 : vector<4x8xf32>
    %35 = math.tanh %34 : vector<4x8xf32>
    %cst_17 = arith.constant 1.000000e+00 : f32
    %36 = vector.broadcast %cst_17 : f32 to vector<4x8xf32>
    %37 = arith.subf %36, %30 : vector<4x8xf32>
    %38 = arith.mulf %37, %35 : vector<4x8xf32>
    %39 = arith.mulf %30, %8 : vector<4x8xf32>
    %40 = arith.addf %38, %39 : vector<4x8xf32>
    %41 = vector.extract_strided_slice %7 {offsets = [4, 0], sizes = [4, 24], strides = [1, 1]} : vector<120x24xf32> to vector<4x24xf32>
    %cst_18 = arith.constant dense<0.000000e+00> : vector<4x24xf32>
    %42 = tpu.matmul %40, %0, %cst_18 {dimension_numbers = #tpu.dot_dimension_numbers<[1], [0], [0], [1], [0, 0, 1, 1], [], []>} : vector<4x8xf32>, vector<8x24xf32>, vector<4x24xf32> -> vector<4x24xf32>
    %43 = vector.broadcast %1 : vector<1x24xf32> to vector<4x24xf32>
    %44 = arith.addf %42, %43 : vector<4x24xf32>
    %45 = vector.extract_strided_slice %41 {offsets = [0, 0], sizes = [4, 8], strides = [1, 1]} : vector<4x24xf32> to vector<4x8xf32>
    %46 = vector.extract_strided_slice %44 {offsets = [0, 0], sizes = [4, 8], strides = [1, 1]} : vector<4x24xf32> to vector<4x8xf32>
    %47 = arith.addf %45, %46 : vector<4x8xf32>
    %48 = arith.negf %47 : vector<4x8xf32>
    %49 = math.exp %48 : vector<4x8xf32>
    %cst_19 = arith.constant 1.000000e+00 : f32
    %50 = vector.broadcast %cst_19 : f32 to vector<4x8xf32>
    %51 = arith.addf %50, %49 : vector<4x8xf32>
    %52 = arith.divf %50, %51 : vector<4x8xf32>
    %53 = vector.extract_strided_slice %41 {offsets = [0, 8], sizes = [4, 8], strides = [1, 1]} : vector<4x24xf32> to vector<4x8xf32>
    %54 = vector.extract_strided_slice %44 {offsets = [0, 8], sizes = [4, 8], strides = [1, 1]} : vector<4x24xf32> to vector<4x8xf32>
    %55 = arith.addf %53, %54 : vector<4x8xf32>
    %56 = arith.negf %55 : vector<4x8xf32>
    %57 = math.exp %56 : vector<4x8xf32>
    %cst_20 = arith.constant 1.000000e+00 : f32
    %58 = vector.broadcast %cst_20 : f32 to vector<4x8xf32>
    %59 = arith.addf %58, %57 : vector<4x8xf32>
    %60 = arith.divf %58, %59 : vector<4x8xf32>
    %61 = vector.extract_strided_slice %41 {offsets = [0, 16], sizes = [4, 8], strides = [1, 1]} : vector<4x24xf32> to vector<4x8xf32>
    %62 = vector.extract_strided_slice %44 {offsets = [0, 16], sizes = [4, 8], strides = [1, 1]} : vector<4x24xf32> to vector<4x8xf32>
    %63 = arith.mulf %52, %62 : vector<4x8xf32>
    %64 = arith.addf %61, %63 : vector<4x8xf32>
    %65 = math.tanh %64 : vector<4x8xf32>
    %cst_21 = arith.constant 1.000000e+00 : f32
    %66 = vector.broadcast %cst_21 : f32 to vector<4x8xf32>
    %67 = arith.subf %66, %60 : vector<4x8xf32>
    %68 = arith.mulf %67, %65 : vector<4x8xf32>
    %69 = arith.mulf %60, %40 : vector<4x8xf32>
    %70 = arith.addf %68, %69 : vector<4x8xf32>
    %71 = vector.extract_strided_slice %7 {offsets = [8, 0], sizes = [4, 24], strides = [1, 1]} : vector<120x24xf32> to vector<4x24xf32>
    %cst_22 = arith.constant dense<0.000000e+00> : vector<4x24xf32>
    %72 = tpu.matmul %70, %0, %cst_22 {dimension_numbers = #tpu.dot_dimension_numbers<[1], [0], [0], [1], [0, 0, 1, 1], [], []>} : vector<4x8xf32>, vector<8x24xf32>, vector<4x24xf32> -> vector<4x24xf32>
    %73 = vector.broadcast %1 : vector<1x24xf32> to vector<4x24xf32>
    %74 = arith.addf %72, %73 : vector<4x24xf32>
    %75 = vector.extract_strided_slice %71 {offsets = [0, 0], sizes = [4, 8], strides = [1, 1]} : vector<4x24xf32> to vector<4x8xf32>
    %76 = vector.extract_strided_slice %74 {offsets = [0, 0], sizes = [4, 8], strides = [1, 1]} : vector<4x24xf32> to vector<4x8xf32>
    %77 = arith.addf %75, %76 : vector<4x8xf32>
    %78 = arith.negf %77 : vector<4x8xf32>
    %79 = math.exp %78 : vector<4x8xf32>
    %cst_23 = arith.constant 1.000000e+00 : f32
    %80 = vector.broadcast %cst_23 : f32 to vector<4x8xf32>
    %81 = arith.addf %80, %79 : vector<4x8xf32>
    %82 = arith.divf %80, %81 : vector<4x8xf32>
    %83 = vector.extract_strided_slice %71 {offsets = [0, 8], sizes = [4, 8], strides = [1, 1]} : vector<4x24xf32> to vector<4x8xf32>
    %84 = vector.extract_strided_slice %74 {offsets = [0, 8], sizes = [4, 8], strides = [1, 1]} : vector<4x24xf32> to vector<4x8xf32>
    %85 = arith.addf %83, %84 : vector<4x8xf32>
    %86 = arith.negf %85 : vector<4x8xf32>
    %87 = math.exp %86 : vector<4x8xf32>
    %cst_24 = arith.constant 1.000000e+00 : f32
    %88 = vector.broadcast %cst_24 : f32 to vector<4x8xf32>
    %89 = arith.addf %88, %87 : vector<4x8xf32>
    %90 = arith.divf %88, %89 : vector<4x8xf32>
    %91 = vector.extract_strided_slice %71 {offsets = [0, 16], sizes = [4, 8], strides = [1, 1]} : vector<4x24xf32> to vector<4x8xf32>
    %92 = vector.extract_strided_slice %74 {offsets = [0, 16], sizes = [4, 8], strides = [1, 1]} : vector<4x24xf32> to vector<4x8xf32>
    %93 = arith.mulf %82, %92 : vector<4x8xf32>
    %94 = arith.addf %91, %93 : vector<4x8xf32>
    %95 = math.tanh %94 : vector<4x8xf32>
    %cst_25 = arith.constant 1.000000e+00 : f32
    %96 = vector.broadcast %cst_25 : f32 to vector<4x8xf32>
    %97 = arith.subf %96, %90 : vector<4x8xf32>
    %98 = arith.mulf %97, %95 : vector<4x8xf32>
    %99 = arith.mulf %90, %70 : vector<4x8xf32>
    %100 = arith.addf %98, %99 : vector<4x8xf32>
    %101 = vector.extract_strided_slice %7 {offsets = [12, 0], sizes = [4, 24], strides = [1, 1]} : vector<120x24xf32> to vector<4x24xf32>
    %cst_26 = arith.constant dense<0.000000e+00> : vector<4x24xf32>
    %102 = tpu.matmul %100, %0, %cst_26 {dimension_numbers = #tpu.dot_dimension_numbers<[1], [0], [0], [1], [0, 0, 1, 1], [], []>} : vector<4x8xf32>, vector<8x24xf32>, vector<4x24xf32> -> vector<4x24xf32>
    %103 = vector.broadcast %1 : vector<1x24xf32> to vector<4x24xf32>
    %104 = arith.addf %102, %103 : vector<4x24xf32>
    %105 = vector.extract_strided_slice %101 {offsets = [0, 0], sizes = [4, 8], strides = [1, 1]} : vector<4x24xf32> to vector<4x8xf32>
    %106 = vector.extract_strided_slice %104 {offsets = [0, 0], sizes = [4, 8], strides = [1, 1]} : vector<4x24xf32> to vector<4x8xf32>
    %107 = arith.addf %105, %106 : vector<4x8xf32>
    %108 = arith.negf %107 : vector<4x8xf32>
    %109 = math.exp %108 : vector<4x8xf32>
    %cst_27 = arith.constant 1.000000e+00 : f32
    %110 = vector.broadcast %cst_27 : f32 to vector<4x8xf32>
    %111 = arith.addf %110, %109 : vector<4x8xf32>
    %112 = arith.divf %110, %111 : vector<4x8xf32>
    %113 = vector.extract_strided_slice %101 {offsets = [0, 8], sizes = [4, 8], strides = [1, 1]} : vector<4x24xf32> to vector<4x8xf32>
    %114 = vector.extract_strided_slice %104 {offsets = [0, 8], sizes = [4, 8], strides = [1, 1]} : vector<4x24xf32> to vector<4x8xf32>
    %115 = arith.addf %113, %114 : vector<4x8xf32>
    %116 = arith.negf %115 : vector<4x8xf32>
    %117 = math.exp %116 : vector<4x8xf32>
    %cst_28 = arith.constant 1.000000e+00 : f32
    %118 = vector.broadcast %cst_28 : f32 to vector<4x8xf32>
    %119 = arith.addf %118, %117 : vector<4x8xf32>
    %120 = arith.divf %118, %119 : vector<4x8xf32>
    %121 = vector.extract_strided_slice %101 {offsets = [0, 16], sizes = [4, 8], strides = [1, 1]} : vector<4x24xf32> to vector<4x8xf32>
    %122 = vector.extract_strided_slice %104 {offsets = [0, 16], sizes = [4, 8], strides = [1, 1]} : vector<4x24xf32> to vector<4x8xf32>
    %123 = arith.mulf %112, %122 : vector<4x8xf32>
    %124 = arith.addf %121, %123 : vector<4x8xf32>
    %125 = math.tanh %124 : vector<4x8xf32>
    %cst_29 = arith.constant 1.000000e+00 : f32
    %126 = vector.broadcast %cst_29 : f32 to vector<4x8xf32>
    %127 = arith.subf %126, %120 : vector<4x8xf32>
    %128 = arith.mulf %127, %125 : vector<4x8xf32>
    %129 = arith.mulf %120, %100 : vector<4x8xf32>
    %130 = arith.addf %128, %129 : vector<4x8xf32>
    %131 = vector.extract_strided_slice %7 {offsets = [16, 0], sizes = [4, 24], strides = [1, 1]} : vector<120x24xf32> to vector<4x24xf32>
    %cst_30 = arith.constant dense<0.000000e+00> : vector<4x24xf32>
    %132 = tpu.matmul %130, %0, %cst_30 {dimension_numbers = #tpu.dot_dimension_numbers<[1], [0], [0], [1], [0, 0, 1, 1], [], []>} : vector<4x8xf32>, vector<8x24xf32>, vector<4x24xf32> -> vector<4x24xf32>
    %133 = vector.broadcast %1 : vector<1x24xf32> to vector<4x24xf32>
    %134 = arith.addf %132, %133 : vector<4x24xf32>
    %135 = vector.extract_strided_slice %131 {offsets = [0, 0], sizes = [4, 8], strides = [1, 1]} : vector<4x24xf32> to vector<4x8xf32>
    %136 = vector.extract_strided_slice %134 {offsets = [0, 0], sizes = [4, 8], strides = [1, 1]} : vector<4x24xf32> to vector<4x8xf32>
    %137 = arith.addf %135, %136 : vector<4x8xf32>
    %138 = arith.negf %137 : vector<4x8xf32>
    %139 = math.exp %138 : vector<4x8xf32>
    %cst_31 = arith.constant 1.000000e+00 : f32
    %140 = vector.broadcast %cst_31 : f32 to vector<4x8xf32>
    %141 = arith.addf %140, %139 : vector<4x8xf32>
    %142 = arith.divf %140, %141 : vector<4x8xf32>
    %143 = vector.extract_strided_slice %131 {offsets = [0, 8], sizes = [4, 8], strides = [1, 1]} : vector<4x24xf32> to vector<4x8xf32>
    %144 = vector.extract_strided_slice %134 {offsets = [0, 8], sizes = [4, 8], strides = [1, 1]} : vector<4x24xf32> to vector<4x8xf32>
    %145 = arith.addf %143, %144 : vector<4x8xf32>
    %146 = arith.negf %145 : vector<4x8xf32>
    %147 = math.exp %146 : vector<4x8xf32>
    %cst_32 = arith.constant 1.000000e+00 : f32
    %148 = vector.broadcast %cst_32 : f32 to vector<4x8xf32>
    %149 = arith.addf %148, %147 : vector<4x8xf32>
    %150 = arith.divf %148, %149 : vector<4x8xf32>
    %151 = vector.extract_strided_slice %131 {offsets = [0, 16], sizes = [4, 8], strides = [1, 1]} : vector<4x24xf32> to vector<4x8xf32>
    %152 = vector.extract_strided_slice %134 {offsets = [0, 16], sizes = [4, 8], strides = [1, 1]} : vector<4x24xf32> to vector<4x8xf32>
    %153 = arith.mulf %142, %152 : vector<4x8xf32>
    %154 = arith.addf %151, %153 : vector<4x8xf32>
    %155 = math.tanh %154 : vector<4x8xf32>
    %cst_33 = arith.constant 1.000000e+00 : f32
    %156 = vector.broadcast %cst_33 : f32 to vector<4x8xf32>
    %157 = arith.subf %156, %150 : vector<4x8xf32>
    %158 = arith.mulf %157, %155 : vector<4x8xf32>
    %159 = arith.mulf %150, %130 : vector<4x8xf32>
    %160 = arith.addf %158, %159 : vector<4x8xf32>
    %161 = vector.shape_cast %160 : vector<4x8xf32> to vector<4x1x8xf32>
    %162 = vector.broadcast %161 : vector<4x1x8xf32> to vector<4x5x8xf32>
    %163 = arith.mulf %10, %162 : vector<4x5x8xf32>
    %cst_34 = arith.constant dense<0.000000e+00> : vector<4x5xf32>
    %164 = vector.multi_reduction <add>, %163, %cst_34 [2] : vector<4x5x8xf32> to vector<4x5xf32>
    %165 = math.tanh %164 : vector<4x5xf32>
    %cst_35 = arith.constant 1.000000e+01 : f32
    %166 = vector.broadcast %cst_35 : f32 to vector<4x5xf32>
    %167 = arith.mulf %166, %165 : vector<4x5xf32>
    %cst_36 = arith.constant dense<0xFF800000> : vector<4xf32>
    %168 = vector.multi_reduction <maximumf>, %167, %cst_36 [1] : vector<4x5xf32> to vector<4xf32>
    %cst_37 = arith.constant 0xFF800000 : f32
    %169 = vector.broadcast %cst_37 : f32 to vector<4xf32>
    %170 = arith.maximumf %169, %168 : vector<4xf32>
    %171 = vector.shape_cast %170 : vector<4xf32> to vector<4x1xf32>
    %172 = vector.broadcast %171 : vector<4x1xf32> to vector<4x5xf32>
    %173 = arith.subf %167, %172 : vector<4x5xf32>
    %174 = math.exp %173 : vector<4x5xf32>
    %cst_38 = arith.constant dense<0.000000e+00> : vector<4xf32>
    %175 = vector.multi_reduction <add>, %174, %cst_38 [1] : vector<4x5xf32> to vector<4xf32>
    %176 = vector.shape_cast %175 : vector<4xf32> to vector<4x1xf32>
    %177 = vector.broadcast %176 : vector<4x1xf32> to vector<4x5xf32>
    %178 = arith.divf %174, %177 : vector<4x5xf32>
    %c0_39 = arith.constant 0 : index
    %c0_40 = arith.constant 0 : index
    %c0_41 = arith.constant 0 : index
    %179 = vector.load %arg25[%c0_39, %c0_40, %c0_41] : memref<6x4x5xf32, #tpu.memory_space<vmem>>, vector<1x4x5xf32>
    %180 = vector.shape_cast %179 : vector<1x4x5xf32> to vector<4x5xf32>
    %181 = vector.shape_cast %178 : vector<4x5xf32> to vector<1x4x5xf32>
    tpu.vector_store %arg25[%c0_39, %c0_40, %c0_41], %181 {strides = array<i32>} : memref<6x4x5xf32, #tpu.memory_space<vmem>>, vector<1x4x5xf32>,
    %182 = vector.shape_cast %178 : vector<4x5xf32> to vector<4x5x1xf32>
    %183 = vector.broadcast %182 : vector<4x5x1xf32> to vector<4x5x8xf32>
    %184 = arith.mulf %10, %183 : vector<4x5x8xf32>
    %cst_42 = arith.constant dense<0.000000e+00> : vector<4x8xf32>
    %185 = vector.multi_reduction <add>, %184, %cst_42 [1] : vector<4x5x8xf32> to vector<4x8xf32>
    %c0_43 = arith.constant 0 : index
    %c0_44 = arith.constant 0 : index
    %186 = vector.load %arg27[%c0_43, %c0_44] : memref<24x8xf32, #tpu.memory_space<vmem>>, vector<4x8xf32>
    tpu.vector_store %arg27[%c0_43, %c0_44], %185 {strides = array<i32>} : memref<24x8xf32, #tpu.memory_space<vmem>>, vector<4x8xf32>,
    %c1 = arith.constant 1 : index
    %c0_45 = arith.constant 0 : index
    %c0_46 = arith.constant 0 : index
    %c0_47 = arith.constant 0 : index
    %187 = vector.load %arg1[%c1, %c0_45, %c0_46, %c0_47] : memref<6x4x5x8xf32, #tpu.memory_space<vmem>>, vector<1x4x5x8xf32>
    %188 = vector.shape_cast %187 : vector<1x4x5x8xf32> to vector<4x5x8xf32>
    %189 = vector.extract_strided_slice %7 {offsets = [20, 0], sizes = [4, 24], strides = [1, 1]} : vector<120x24xf32> to vector<4x24xf32>
    %cst_48 = arith.constant dense<0.000000e+00> : vector<4x24xf32>
    %190 = tpu.matmul %160, %0, %cst_48 {dimension_numbers = #tpu.dot_dimension_numbers<[1], [0], [0], [1], [0, 0, 1, 1], [], []>} : vector<4x8xf32>, vector<8x24xf32>, vector<4x24xf32> -> vector<4x24xf32>
    %191 = vector.broadcast %1 : vector<1x24xf32> to vector<4x24xf32>
    %192 = arith.addf %190, %191 : vector<4x24xf32>
    %193 = vector.extract_strided_slice %189 {offsets = [0, 0], sizes = [4, 8], strides = [1, 1]} : vector<4x24xf32> to vector<4x8xf32>
    %194 = vector.extract_strided_slice %192 {offsets = [0, 0], sizes = [4, 8], strides = [1, 1]} : vector<4x24xf32> to vector<4x8xf32>
    %195 = arith.addf %193, %194 : vector<4x8xf32>
    %196 = arith.negf %195 : vector<4x8xf32>
    %197 = math.exp %196 : vector<4x8xf32>
    %cst_49 = arith.constant 1.000000e+00 : f32
    %198 = vector.broadcast %cst_49 : f32 to vector<4x8xf32>
    %199 = arith.addf %198, %197 : vector<4x8xf32>
    %200 = arith.divf %198, %199 : vector<4x8xf32>
    %201 = vector.extract_strided_slice %189 {offsets = [0, 8], sizes = [4, 8], strides = [1, 1]} : vector<4x24xf32> to vector<4x8xf32>
    %202 = vector.extract_strided_slice %192 {offsets = [0, 8], sizes = [4, 8], strides = [1, 1]} : vector<4x24xf32> to vector<4x8xf32>
    %203 = arith.addf %201, %202 : vector<4x8xf32>
    %204 = arith.negf %203 : vector<4x8xf32>
    %205 = math.exp %204 : vector<4x8xf32>
    %cst_50 = arith.constant 1.000000e+00 : f32
    %206 = vector.broadcast %cst_50 : f32 to vector<4x8xf32>
    %207 = arith.addf %206, %205 : vector<4x8xf32>
    %208 = arith.divf %206, %207 : vector<4x8xf32>
    %209 = vector.extract_strided_slice %189 {offsets = [0, 16], sizes = [4, 8], strides = [1, 1]} : vector<4x24xf32> to vector<4x8xf32>
    %210 = vector.extract_strided_slice %192 {offsets = [0, 16], sizes = [4, 8], strides = [1, 1]} : vector<4x24xf32> to vector<4x8xf32>
    %211 = arith.mulf %200, %210 : vector<4x8xf32>
    %212 = arith.addf %209, %211 : vector<4x8xf32>
    %213 = math.tanh %212 : vector<4x8xf32>
    %cst_51 = arith.constant 1.000000e+00 : f32
    %214 = vector.broadcast %cst_51 : f32 to vector<4x8xf32>
    %215 = arith.subf %214, %208 : vector<4x8xf32>
    %216 = arith.mulf %215, %213 : vector<4x8xf32>
    %217 = arith.mulf %208, %160 : vector<4x8xf32>
    %218 = arith.addf %216, %217 : vector<4x8xf32>
    %219 = vector.extract_strided_slice %7 {offsets = [24, 0], sizes = [4, 24], strides = [1, 1]} : vector<120x24xf32> to vector<4x24xf32>
    %cst_52 = arith.constant dense<0.000000e+00> : vector<4x24xf32>
    %220 = tpu.matmul %218, %0, %cst_52 {dimension_numbers = #tpu.dot_dimension_numbers<[1], [0], [0], [1], [0, 0, 1, 1], [], []>} : vector<4x8xf32>, vector<8x24xf32>, vector<4x24xf32> -> vector<4x24xf32>
    %221 = vector.broadcast %1 : vector<1x24xf32> to vector<4x24xf32>
    %222 = arith.addf %220, %221 : vector<4x24xf32>
    %223 = vector.extract_strided_slice %219 {offsets = [0, 0], sizes = [4, 8], strides = [1, 1]} : vector<4x24xf32> to vector<4x8xf32>
    %224 = vector.extract_strided_slice %222 {offsets = [0, 0], sizes = [4, 8], strides = [1, 1]} : vector<4x24xf32> to vector<4x8xf32>
    %225 = arith.addf %223, %224 : vector<4x8xf32>
    %226 = arith.negf %225 : vector<4x8xf32>
    %227 = math.exp %226 : vector<4x8xf32>
    %cst_53 = arith.constant 1.000000e+00 : f32
    %228 = vector.broadcast %cst_53 : f32 to vector<4x8xf32>
    %229 = arith.addf %228, %227 : vector<4x8xf32>
    %230 = arith.divf %228, %229 : vector<4x8xf32>
    %231 = vector.extract_strided_slice %219 {offsets = [0, 8], sizes = [4, 8], strides = [1, 1]} : vector<4x24xf32> to vector<4x8xf32>
    %232 = vector.extract_strided_slice %222 {offsets = [0, 8], sizes = [4, 8], strides = [1, 1]} : vector<4x24xf32> to vector<4x8xf32>
    %233 = arith.addf %231, %232 : vector<4x8xf32>
    %234 = arith.negf %233 : vector<4x8xf32>
    %235 = math.exp %234 : vector<4x8xf32>
    %cst_54 = arith.constant 1.000000e+00 : f32
    %236 = vector.broadcast %cst_54 : f32 to vector<4x8xf32>
    %237 = arith.addf %236, %235 : vector<4x8xf32>
    %238 = arith.divf %236, %237 : vector<4x8xf32>
    %239 = vector.extract_strided_slice %219 {offsets = [0, 16], sizes = [4, 8], strides = [1, 1]} : vector<4x24xf32> to vector<4x8xf32>
    %240 = vector.extract_strided_slice %222 {offsets = [0, 16], sizes = [4, 8], strides = [1, 1]} : vector<4x24xf32> to vector<4x8xf32>
    %241 = arith.mulf %230, %240 : vector<4x8xf32>
    %242 = arith.addf %239, %241 : vector<4x8xf32>
    %243 = math.tanh %242 : vector<4x8xf32>
    %cst_55 = arith.constant 1.000000e+00 : f32
    %244 = vector.broadcast %cst_55 : f32 to vector<4x8xf32>
    %245 = arith.subf %244, %238 : vector<4x8xf32>
    %246 = arith.mulf %245, %243 : vector<4x8xf32>
    %247 = arith.mulf %238, %218 : vector<4x8xf32>
    %248 = arith.addf %246, %247 : vector<4x8xf32>
    %249 = vector.extract_strided_slice %7 {offsets = [28, 0], sizes = [4, 24], strides = [1, 1]} : vector<120x24xf32> to vector<4x24xf32>
    %cst_56 = arith.constant dense<0.000000e+00> : vector<4x24xf32>
    %250 = tpu.matmul %248, %0, %cst_56 {dimension_numbers = #tpu.dot_dimension_numbers<[1], [0], [0], [1], [0, 0, 1, 1], [], []>} : vector<4x8xf32>, vector<8x24xf32>, vector<4x24xf32> -> vector<4x24xf32>
    %251 = vector.broadcast %1 : vector<1x24xf32> to vector<4x24xf32>
    %252 = arith.addf %250, %251 : vector<4x24xf32>
    %253 = vector.extract_strided_slice %249 {offsets = [0, 0], sizes = [4, 8], strides = [1, 1]} : vector<4x24xf32> to vector<4x8xf32>
    %254 = vector.extract_strided_slice %252 {offsets = [0, 0], sizes = [4, 8], strides = [1, 1]} : vector<4x24xf32> to vector<4x8xf32>
    %255 = arith.addf %253, %254 : vector<4x8xf32>
    %256 = arith.negf %255 : vector<4x8xf32>
    %257 = math.exp %256 : vector<4x8xf32>
    %cst_57 = arith.constant 1.000000e+00 : f32
    %258 = vector.broadcast %cst_57 : f32 to vector<4x8xf32>
    %259 = arith.addf %258, %257 : vector<4x8xf32>
    %260 = arith.divf %258, %259 : vector<4x8xf32>
    %261 = vector.extract_strided_slice %249 {offsets = [0, 8], sizes = [4, 8], strides = [1, 1]} : vector<4x24xf32> to vector<4x8xf32>
    %262 = vector.extract_strided_slice %252 {offsets = [0, 8], sizes = [4, 8], strides = [1, 1]} : vector<4x24xf32> to vector<4x8xf32>
    %263 = arith.addf %261, %262 : vector<4x8xf32>
    %264 = arith.negf %263 : vector<4x8xf32>
    %265 = math.exp %264 : vector<4x8xf32>
    %cst_58 = arith.constant 1.000000e+00 : f32
    %266 = vector.broadcast %cst_58 : f32 to vector<4x8xf32>
    %267 = arith.addf %266, %265 : vector<4x8xf32>
    %268 = arith.divf %266, %267 : vector<4x8xf32>
    %269 = vector.extract_strided_slice %249 {offsets = [0, 16], sizes = [4, 8], strides = [1, 1]} : vector<4x24xf32> to vector<4x8xf32>
    %270 = vector.extract_strided_slice %252 {offsets = [0, 16], sizes = [4, 8], strides = [1, 1]} : vector<4x24xf32> to vector<4x8xf32>
    %271 = arith.mulf %260, %270 : vector<4x8xf32>
    %272 = arith.addf %269, %271 : vector<4x8xf32>
    %273 = math.tanh %272 : vector<4x8xf32>
    %cst_59 = arith.constant 1.000000e+00 : f32
    %274 = vector.broadcast %cst_59 : f32 to vector<4x8xf32>
    %275 = arith.subf %274, %268 : vector<4x8xf32>
    %276 = arith.mulf %275, %273 : vector<4x8xf32>
    %277 = arith.mulf %268, %248 : vector<4x8xf32>
    %278 = arith.addf %276, %277 : vector<4x8xf32>
    %279 = vector.extract_strided_slice %7 {offsets = [32, 0], sizes = [4, 24], strides = [1, 1]} : vector<120x24xf32> to vector<4x24xf32>
    %cst_60 = arith.constant dense<0.000000e+00> : vector<4x24xf32>
    %280 = tpu.matmul %278, %0, %cst_60 {dimension_numbers = #tpu.dot_dimension_numbers<[1], [0], [0], [1], [0, 0, 1, 1], [], []>} : vector<4x8xf32>, vector<8x24xf32>, vector<4x24xf32> -> vector<4x24xf32>
    %281 = vector.broadcast %1 : vector<1x24xf32> to vector<4x24xf32>
    %282 = arith.addf %280, %281 : vector<4x24xf32>
    %283 = vector.extract_strided_slice %279 {offsets = [0, 0], sizes = [4, 8], strides = [1, 1]} : vector<4x24xf32> to vector<4x8xf32>
    %284 = vector.extract_strided_slice %282 {offsets = [0, 0], sizes = [4, 8], strides = [1, 1]} : vector<4x24xf32> to vector<4x8xf32>
    %285 = arith.addf %283, %284 : vector<4x8xf32>
    %286 = arith.negf %285 : vector<4x8xf32>
    %287 = math.exp %286 : vector<4x8xf32>
    %cst_61 = arith.constant 1.000000e+00 : f32
    %288 = vector.broadcast %cst_61 : f32 to vector<4x8xf32>
    %289 = arith.addf %288, %287 : vector<4x8xf32>
    %290 = arith.divf %288, %289 : vector<4x8xf32>
    %291 = vector.extract_strided_slice %279 {offsets = [0, 8], sizes = [4, 8], strides = [1, 1]} : vector<4x24xf32> to vector<4x8xf32>
    %292 = vector.extract_strided_slice %282 {offsets = [0, 8], sizes = [4, 8], strides = [1, 1]} : vector<4x24xf32> to vector<4x8xf32>
    %293 = arith.addf %291, %292 : vector<4x8xf32>
    %294 = arith.negf %293 : vector<4x8xf32>
    %295 = math.exp %294 : vector<4x8xf32>
    %cst_62 = arith.constant 1.000000e+00 : f32
    %296 = vector.broadcast %cst_62 : f32 to vector<4x8xf32>
    %297 = arith.addf %296, %295 : vector<4x8xf32>
    %298 = arith.divf %296, %297 : vector<4x8xf32>
    %299 = vector.extract_strided_slice %279 {offsets = [0, 16], sizes = [4, 8], strides = [1, 1]} : vector<4x24xf32> to vector<4x8xf32>
    %300 = vector.extract_strided_slice %282 {offsets = [0, 16], sizes = [4, 8], strides = [1, 1]} : vector<4x24xf32> to vector<4x8xf32>
    %301 = arith.mulf %290, %300 : vector<4x8xf32>
    %302 = arith.addf %299, %301 : vector<4x8xf32>
    %303 = math.tanh %302 : vector<4x8xf32>
    %cst_63 = arith.constant 1.000000e+00 : f32
    %304 = vector.broadcast %cst_63 : f32 to vector<4x8xf32>
    %305 = arith.subf %304, %298 : vector<4x8xf32>
    %306 = arith.mulf %305, %303 : vector<4x8xf32>
    %307 = arith.mulf %298, %278 : vector<4x8xf32>
    %308 = arith.addf %306, %307 : vector<4x8xf32>
    %309 = vector.extract_strided_slice %7 {offsets = [36, 0], sizes = [4, 24], strides = [1, 1]} : vector<120x24xf32> to vector<4x24xf32>
    %cst_64 = arith.constant dense<0.000000e+00> : vector<4x24xf32>
    %310 = tpu.matmul %308, %0, %cst_64 {dimension_numbers = #tpu.dot_dimension_numbers<[1], [0], [0], [1], [0, 0, 1, 1], [], []>} : vector<4x8xf32>, vector<8x24xf32>, vector<4x24xf32> -> vector<4x24xf32>
    %311 = vector.broadcast %1 : vector<1x24xf32> to vector<4x24xf32>
    %312 = arith.addf %310, %311 : vector<4x24xf32>
    %313 = vector.extract_strided_slice %309 {offsets = [0, 0], sizes = [4, 8], strides = [1, 1]} : vector<4x24xf32> to vector<4x8xf32>
    %314 = vector.extract_strided_slice %312 {offsets = [0, 0], sizes = [4, 8], strides = [1, 1]} : vector<4x24xf32> to vector<4x8xf32>
    %315 = arith.addf %313, %314 : vector<4x8xf32>
    %316 = arith.negf %315 : vector<4x8xf32>
    %317 = math.exp %316 : vector<4x8xf32>
    %cst_65 = arith.constant 1.000000e+00 : f32
    %318 = vector.broadcast %cst_65 : f32 to vector<4x8xf32>
    %319 = arith.addf %318, %317 : vector<4x8xf32>
    %320 = arith.divf %318, %319 : vector<4x8xf32>
    %321 = vector.extract_strided_slice %309 {offsets = [0, 8], sizes = [4, 8], strides = [1, 1]} : vector<4x24xf32> to vector<4x8xf32>
    %322 = vector.extract_strided_slice %312 {offsets = [0, 8], sizes = [4, 8], strides = [1, 1]} : vector<4x24xf32> to vector<4x8xf32>
    %323 = arith.addf %321, %322 : vector<4x8xf32>
    %324 = arith.negf %323 : vector<4x8xf32>
    %325 = math.exp %324 : vector<4x8xf32>
    %cst_66 = arith.constant 1.000000e+00 : f32
    %326 = vector.broadcast %cst_66 : f32 to vector<4x8xf32>
    %327 = arith.addf %326, %325 : vector<4x8xf32>
    %328 = arith.divf %326, %327 : vector<4x8xf32>
    %329 = vector.extract_strided_slice %309 {offsets = [0, 16], sizes = [4, 8], strides = [1, 1]} : vector<4x24xf32> to vector<4x8xf32>
    %330 = vector.extract_strided_slice %312 {offsets = [0, 16], sizes = [4, 8], strides = [1, 1]} : vector<4x24xf32> to vector<4x8xf32>
    %331 = arith.mulf %320, %330 : vector<4x8xf32>
    %332 = arith.addf %329, %331 : vector<4x8xf32>
    %333 = math.tanh %332 : vector<4x8xf32>
    %cst_67 = arith.constant 1.000000e+00 : f32
    %334 = vector.broadcast %cst_67 : f32 to vector<4x8xf32>
    %335 = arith.subf %334, %328 : vector<4x8xf32>
    %336 = arith.mulf %335, %333 : vector<4x8xf32>
    %337 = arith.mulf %328, %308 : vector<4x8xf32>
    %338 = arith.addf %336, %337 : vector<4x8xf32>
    %339 = vector.shape_cast %338 : vector<4x8xf32> to vector<4x1x8xf32>
    %340 = vector.broadcast %339 : vector<4x1x8xf32> to vector<4x5x8xf32>
    %341 = arith.mulf %188, %340 : vector<4x5x8xf32>
    %cst_68 = arith.constant dense<0.000000e+00> : vector<4x5xf32>
    %342 = vector.multi_reduction <add>, %341, %cst_68 [2] : vector<4x5x8xf32> to vector<4x5xf32>
    %343 = math.tanh %342 : vector<4x5xf32>
    %cst_69 = arith.constant 1.000000e+01 : f32
    %344 = vector.broadcast %cst_69 : f32 to vector<4x5xf32>
    %345 = arith.mulf %344, %343 : vector<4x5xf32>
    %cst_70 = arith.constant dense<0xFF800000> : vector<4xf32>
    %346 = vector.multi_reduction <maximumf>, %345, %cst_70 [1] : vector<4x5xf32> to vector<4xf32>
    %cst_71 = arith.constant 0xFF800000 : f32
    %347 = vector.broadcast %cst_71 : f32 to vector<4xf32>
    %348 = arith.maximumf %347, %346 : vector<4xf32>
    %349 = vector.shape_cast %348 : vector<4xf32> to vector<4x1xf32>
    %350 = vector.broadcast %349 : vector<4x1xf32> to vector<4x5xf32>
    %351 = arith.subf %345, %350 : vector<4x5xf32>
    %352 = math.exp %351 : vector<4x5xf32>
    %cst_72 = arith.constant dense<0.000000e+00> : vector<4xf32>
    %353 = vector.multi_reduction <add>, %352, %cst_72 [1] : vector<4x5xf32> to vector<4xf32>
    %354 = vector.shape_cast %353 : vector<4xf32> to vector<4x1xf32>
    %355 = vector.broadcast %354 : vector<4x1xf32> to vector<4x5xf32>
    %356 = arith.divf %352, %355 : vector<4x5xf32>
    %c1_73 = arith.constant 1 : index
    %c0_74 = arith.constant 0 : index
    %c0_75 = arith.constant 0 : index
    %357 = vector.load %arg25[%c1_73, %c0_74, %c0_75] : memref<6x4x5xf32, #tpu.memory_space<vmem>>, vector<1x4x5xf32>
    %358 = vector.shape_cast %357 : vector<1x4x5xf32> to vector<4x5xf32>
    %359 = vector.shape_cast %356 : vector<4x5xf32> to vector<1x4x5xf32>
    tpu.vector_store %arg25[%c1_73, %c0_74, %c0_75], %359 {strides = array<i32>} : memref<6x4x5xf32, #tpu.memory_space<vmem>>, vector<1x4x5xf32>,
    %360 = vector.shape_cast %356 : vector<4x5xf32> to vector<4x5x1xf32>
    %361 = vector.broadcast %360 : vector<4x5x1xf32> to vector<4x5x8xf32>
    %362 = arith.mulf %188, %361 : vector<4x5x8xf32>
    %cst_76 = arith.constant dense<0.000000e+00> : vector<4x8xf32>
    %363 = vector.multi_reduction <add>, %362, %cst_76 [1] : vector<4x5x8xf32> to vector<4x8xf32>
    %c4 = arith.constant 4 : index
    %c0_77 = arith.constant 0 : index
    %364 = vector.load %arg27[%c4, %c0_77] : memref<24x8xf32, #tpu.memory_space<vmem>>, vector<4x8xf32>
    tpu.vector_store %arg27[%c4, %c0_77], %363 {strides = array<i32>} : memref<24x8xf32, #tpu.memory_space<vmem>>, vector<4x8xf32>,
    %c2 = arith.constant 2 : index
    %c0_78 = arith.constant 0 : index
    %c0_79 = arith.constant 0 : index
    %c0_80 = arith.constant 0 : index
    %365 = vector.load %arg1[%c2, %c0_78, %c0_79, %c0_80] : memref<6x4x5x8xf32, #tpu.memory_space<vmem>>, vector<1x4x5x8xf32>
    %366 = vector.shape_cast %365 : vector<1x4x5x8xf32> to vector<4x5x8xf32>
    %367 = vector.extract_strided_slice %7 {offsets = [40, 0], sizes = [4, 24], strides = [1, 1]} : vector<120x24xf32> to vector<4x24xf32>
    %cst_81 = arith.constant dense<0.000000e+00> : vector<4x24xf32>
    %368 = tpu.matmul %338, %0, %cst_81 {dimension_numbers = #tpu.dot_dimension_numbers<[1], [0], [0], [1], [0, 0, 1, 1], [], []>} : vector<4x8xf32>, vector<8x24xf32>, vector<4x24xf32> -> vector<4x24xf32>
    %369 = vector.broadcast %1 : vector<1x24xf32> to vector<4x24xf32>
    %370 = arith.addf %368, %369 : vector<4x24xf32>
    %371 = vector.extract_strided_slice %367 {offsets = [0, 0], sizes = [4, 8], strides = [1, 1]} : vector<4x24xf32> to vector<4x8xf32>
    %372 = vector.extract_strided_slice %370 {offsets = [0, 0], sizes = [4, 8], strides = [1, 1]} : vector<4x24xf32> to vector<4x8xf32>
    %373 = arith.addf %371, %372 : vector<4x8xf32>
    %374 = arith.negf %373 : vector<4x8xf32>
    %375 = math.exp %374 : vector<4x8xf32>
    %cst_82 = arith.constant 1.000000e+00 : f32
    %376 = vector.broadcast %cst_82 : f32 to vector<4x8xf32>
    %377 = arith.addf %376, %375 : vector<4x8xf32>
    %378 = arith.divf %376, %377 : vector<4x8xf32>
    %379 = vector.extract_strided_slice %367 {offsets = [0, 8], sizes = [4, 8], strides = [1, 1]} : vector<4x24xf32> to vector<4x8xf32>
    %380 = vector.extract_strided_slice %370 {offsets = [0, 8], sizes = [4, 8], strides = [1, 1]} : vector<4x24xf32> to vector<4x8xf32>
    %381 = arith.addf %379, %380 : vector<4x8xf32>
    %382 = arith.negf %381 : vector<4x8xf32>
    %383 = math.exp %382 : vector<4x8xf32>
    %cst_83 = arith.constant 1.000000e+00 : f32
    %384 = vector.broadcast %cst_83 : f32 to vector<4x8xf32>
    %385 = arith.addf %384, %383 : vector<4x8xf32>
    %386 = arith.divf %384, %385 : vector<4x8xf32>
    %387 = vector.extract_strided_slice %367 {offsets = [0, 16], sizes = [4, 8], strides = [1, 1]} : vector<4x24xf32> to vector<4x8xf32>
    %388 = vector.extract_strided_slice %370 {offsets = [0, 16], sizes = [4, 8], strides = [1, 1]} : vector<4x24xf32> to vector<4x8xf32>
    %389 = arith.mulf %378, %388 : vector<4x8xf32>
    %390 = arith.addf %387, %389 : vector<4x8xf32>
    %391 = math.tanh %390 : vector<4x8xf32>
    %cst_84 = arith.constant 1.000000e+00 : f32
    %392 = vector.broadcast %cst_84 : f32 to vector<4x8xf32>
    %393 = arith.subf %392, %386 : vector<4x8xf32>
    %394 = arith.mulf %393, %391 : vector<4x8xf32>
    %395 = arith.mulf %386, %338 : vector<4x8xf32>
    %396 = arith.addf %394, %395 : vector<4x8xf32>
    %397 = vector.extract_strided_slice %7 {offsets = [44, 0], sizes = [4, 24], strides = [1, 1]} : vector<120x24xf32> to vector<4x24xf32>
    %cst_85 = arith.constant dense<0.000000e+00> : vector<4x24xf32>
    %398 = tpu.matmul %396, %0, %cst_85 {dimension_numbers = #tpu.dot_dimension_numbers<[1], [0], [0], [1], [0, 0, 1, 1], [], []>} : vector<4x8xf32>, vector<8x24xf32>, vector<4x24xf32> -> vector<4x24xf32>
    %399 = vector.broadcast %1 : vector<1x24xf32> to vector<4x24xf32>
    %400 = arith.addf %398, %399 : vector<4x24xf32>
    %401 = vector.extract_strided_slice %397 {offsets = [0, 0], sizes = [4, 8], strides = [1, 1]} : vector<4x24xf32> to vector<4x8xf32>
    %402 = vector.extract_strided_slice %400 {offsets = [0, 0], sizes = [4, 8], strides = [1, 1]} : vector<4x24xf32> to vector<4x8xf32>
    %403 = arith.addf %401, %402 : vector<4x8xf32>
    %404 = arith.negf %403 : vector<4x8xf32>
    %405 = math.exp %404 : vector<4x8xf32>
    %cst_86 = arith.constant 1.000000e+00 : f32
    %406 = vector.broadcast %cst_86 : f32 to vector<4x8xf32>
    %407 = arith.addf %406, %405 : vector<4x8xf32>
    %408 = arith.divf %406, %407 : vector<4x8xf32>
    %409 = vector.extract_strided_slice %397 {offsets = [0, 8], sizes = [4, 8], strides = [1, 1]} : vector<4x24xf32> to vector<4x8xf32>
    %410 = vector.extract_strided_slice %400 {offsets = [0, 8], sizes = [4, 8], strides = [1, 1]} : vector<4x24xf32> to vector<4x8xf32>
    %411 = arith.addf %409, %410 : vector<4x8xf32>
    %412 = arith.negf %411 : vector<4x8xf32>
    %413 = math.exp %412 : vector<4x8xf32>
    %cst_87 = arith.constant 1.000000e+00 : f32
    %414 = vector.broadcast %cst_87 : f32 to vector<4x8xf32>
    %415 = arith.addf %414, %413 : vector<4x8xf32>
    %416 = arith.divf %414, %415 : vector<4x8xf32>
    %417 = vector.extract_strided_slice %397 {offsets = [0, 16], sizes = [4, 8], strides = [1, 1]} : vector<4x24xf32> to vector<4x8xf32>
    %418 = vector.extract_strided_slice %400 {offsets = [0, 16], sizes = [4, 8], strides = [1, 1]} : vector<4x24xf32> to vector<4x8xf32>
    %419 = arith.mulf %408, %418 : vector<4x8xf32>
    %420 = arith.addf %417, %419 : vector<4x8xf32>
    %421 = math.tanh %420 : vector<4x8xf32>
    %cst_88 = arith.constant 1.000000e+00 : f32
    %422 = vector.broadcast %cst_88 : f32 to vector<4x8xf32>
    %423 = arith.subf %422, %416 : vector<4x8xf32>
    %424 = arith.mulf %423, %421 : vector<4x8xf32>
    %425 = arith.mulf %416, %396 : vector<4x8xf32>
    %426 = arith.addf %424, %425 : vector<4x8xf32>
    %427 = vector.extract_strided_slice %7 {offsets = [48, 0], sizes = [4, 24], strides = [1, 1]} : vector<120x24xf32> to vector<4x24xf32>
    %cst_89 = arith.constant dense<0.000000e+00> : vector<4x24xf32>
    %428 = tpu.matmul %426, %0, %cst_89 {dimension_numbers = #tpu.dot_dimension_numbers<[1], [0], [0], [1], [0, 0, 1, 1], [], []>} : vector<4x8xf32>, vector<8x24xf32>, vector<4x24xf32> -> vector<4x24xf32>
    %429 = vector.broadcast %1 : vector<1x24xf32> to vector<4x24xf32>
    %430 = arith.addf %428, %429 : vector<4x24xf32>
    %431 = vector.extract_strided_slice %427 {offsets = [0, 0], sizes = [4, 8], strides = [1, 1]} : vector<4x24xf32> to vector<4x8xf32>
    %432 = vector.extract_strided_slice %430 {offsets = [0, 0], sizes = [4, 8], strides = [1, 1]} : vector<4x24xf32> to vector<4x8xf32>
    %433 = arith.addf %431, %432 : vector<4x8xf32>
    %434 = arith.negf %433 : vector<4x8xf32>
    %435 = math.exp %434 : vector<4x8xf32>
    %cst_90 = arith.constant 1.000000e+00 : f32
    %436 = vector.broadcast %cst_90 : f32 to vector<4x8xf32>
    %437 = arith.addf %436, %435 : vector<4x8xf32>
    %438 = arith.divf %436, %437 : vector<4x8xf32>
    %439 = vector.extract_strided_slice %427 {offsets = [0, 8], sizes = [4, 8], strides = [1, 1]} : vector<4x24xf32> to vector<4x8xf32>
    %440 = vector.extract_strided_slice %430 {offsets = [0, 8], sizes = [4, 8], strides = [1, 1]} : vector<4x24xf32> to vector<4x8xf32>
    %441 = arith.addf %439, %440 : vector<4x8xf32>
    %442 = arith.negf %441 : vector<4x8xf32>
    %443 = math.exp %442 : vector<4x8xf32>
    %cst_91 = arith.constant 1.000000e+00 : f32
    %444 = vector.broadcast %cst_91 : f32 to vector<4x8xf32>
    %445 = arith.addf %444, %443 : vector<4x8xf32>
    %446 = arith.divf %444, %445 : vector<4x8xf32>
    %447 = vector.extract_strided_slice %427 {offsets = [0, 16], sizes = [4, 8], strides = [1, 1]} : vector<4x24xf32> to vector<4x8xf32>
    %448 = vector.extract_strided_slice %430 {offsets = [0, 16], sizes = [4, 8], strides = [1, 1]} : vector<4x24xf32> to vector<4x8xf32>
    %449 = arith.mulf %438, %448 : vector<4x8xf32>
    %450 = arith.addf %447, %449 : vector<4x8xf32>
    %451 = math.tanh %450 : vector<4x8xf32>
    %cst_92 = arith.constant 1.000000e+00 : f32
    %452 = vector.broadcast %cst_92 : f32 to vector<4x8xf32>
    %453 = arith.subf %452, %446 : vector<4x8xf32>
    %454 = arith.mulf %453, %451 : vector<4x8xf32>
    %455 = arith.mulf %446, %426 : vector<4x8xf32>
    %456 = arith.addf %454, %455 : vector<4x8xf32>
    %457 = vector.extract_strided_slice %7 {offsets = [52, 0], sizes = [4, 24], strides = [1, 1]} : vector<120x24xf32> to vector<4x24xf32>
    %cst_93 = arith.constant dense<0.000000e+00> : vector<4x24xf32>
    %458 = tpu.matmul %456, %0, %cst_93 {dimension_numbers = #tpu.dot_dimension_numbers<[1], [0], [0], [1], [0, 0, 1, 1], [], []>} : vector<4x8xf32>, vector<8x24xf32>, vector<4x24xf32> -> vector<4x24xf32>
    %459 = vector.broadcast %1 : vector<1x24xf32> to vector<4x24xf32>
    %460 = arith.addf %458, %459 : vector<4x24xf32>
    %461 = vector.extract_strided_slice %457 {offsets = [0, 0], sizes = [4, 8], strides = [1, 1]} : vector<4x24xf32> to vector<4x8xf32>
    %462 = vector.extract_strided_slice %460 {offsets = [0, 0], sizes = [4, 8], strides = [1, 1]} : vector<4x24xf32> to vector<4x8xf32>
    %463 = arith.addf %461, %462 : vector<4x8xf32>
    %464 = arith.negf %463 : vector<4x8xf32>
    %465 = math.exp %464 : vector<4x8xf32>
    %cst_94 = arith.constant 1.000000e+00 : f32
    %466 = vector.broadcast %cst_94 : f32 to vector<4x8xf32>
    %467 = arith.addf %466, %465 : vector<4x8xf32>
    %468 = arith.divf %466, %467 : vector<4x8xf32>
    %469 = vector.extract_strided_slice %457 {offsets = [0, 8], sizes = [4, 8], strides = [1, 1]} : vector<4x24xf32> to vector<4x8xf32>
    %470 = vector.extract_strided_slice %460 {offsets = [0, 8], sizes = [4, 8], strides = [1, 1]} : vector<4x24xf32> to vector<4x8xf32>
    %471 = arith.addf %469, %470 : vector<4x8xf32>
    %472 = arith.negf %471 : vector<4x8xf32>
    %473 = math.exp %472 : vector<4x8xf32>
    %cst_95 = arith.constant 1.000000e+00 : f32
    %474 = vector.broadcast %cst_95 : f32 to vector<4x8xf32>
    %475 = arith.addf %474, %473 : vector<4x8xf32>
    %476 = arith.divf %474, %475 : vector<4x8xf32>
    %477 = vector.extract_strided_slice %457 {offsets = [0, 16], sizes = [4, 8], strides = [1, 1]} : vector<4x24xf32> to vector<4x8xf32>
    %478 = vector.extract_strided_slice %460 {offsets = [0, 16], sizes = [4, 8], strides = [1, 1]} : vector<4x24xf32> to vector<4x8xf32>
    %479 = arith.mulf %468, %478 : vector<4x8xf32>
    %480 = arith.addf %477, %479 : vector<4x8xf32>
    %481 = math.tanh %480 : vector<4x8xf32>
    %cst_96 = arith.constant 1.000000e+00 : f32
    %482 = vector.broadcast %cst_96 : f32 to vector<4x8xf32>
    %483 = arith.subf %482, %476 : vector<4x8xf32>
    %484 = arith.mulf %483, %481 : vector<4x8xf32>
    %485 = arith.mulf %476, %456 : vector<4x8xf32>
    %486 = arith.addf %484, %485 : vector<4x8xf32>
    %487 = vector.extract_strided_slice %7 {offsets = [56, 0], sizes = [4, 24], strides = [1, 1]} : vector<120x24xf32> to vector<4x24xf32>
    %cst_97 = arith.constant dense<0.000000e+00> : vector<4x24xf32>
    %488 = tpu.matmul %486, %0, %cst_97 {dimension_numbers = #tpu.dot_dimension_numbers<[1], [0], [0], [1], [0, 0, 1, 1], [], []>} : vector<4x8xf32>, vector<8x24xf32>, vector<4x24xf32> -> vector<4x24xf32>
    %489 = vector.broadcast %1 : vector<1x24xf32> to vector<4x24xf32>
    %490 = arith.addf %488, %489 : vector<4x24xf32>
    %491 = vector.extract_strided_slice %487 {offsets = [0, 0], sizes = [4, 8], strides = [1, 1]} : vector<4x24xf32> to vector<4x8xf32>
    %492 = vector.extract_strided_slice %490 {offsets = [0, 0], sizes = [4, 8], strides = [1, 1]} : vector<4x24xf32> to vector<4x8xf32>
    %493 = arith.addf %491, %492 : vector<4x8xf32>
    %494 = arith.negf %493 : vector<4x8xf32>
    %495 = math.exp %494 : vector<4x8xf32>
    %cst_98 = arith.constant 1.000000e+00 : f32
    %496 = vector.broadcast %cst_98 : f32 to vector<4x8xf32>
    %497 = arith.addf %496, %495 : vector<4x8xf32>
    %498 = arith.divf %496, %497 : vector<4x8xf32>
    %499 = vector.extract_strided_slice %487 {offsets = [0, 8], sizes = [4, 8], strides = [1, 1]} : vector<4x24xf32> to vector<4x8xf32>
    %500 = vector.extract_strided_slice %490 {offsets = [0, 8], sizes = [4, 8], strides = [1, 1]} : vector<4x24xf32> to vector<4x8xf32>
    %501 = arith.addf %499, %500 : vector<4x8xf32>
    %502 = arith.negf %501 : vector<4x8xf32>
    %503 = math.exp %502 : vector<4x8xf32>
    %cst_99 = arith.constant 1.000000e+00 : f32
    %504 = vector.broadcast %cst_99 : f32 to vector<4x8xf32>
    %505 = arith.addf %504, %503 : vector<4x8xf32>
    %506 = arith.divf %504, %505 : vector<4x8xf32>
    %507 = vector.extract_strided_slice %487 {offsets = [0, 16], sizes = [4, 8], strides = [1, 1]} : vector<4x24xf32> to vector<4x8xf32>
    %508 = vector.extract_strided_slice %490 {offsets = [0, 16], sizes = [4, 8], strides = [1, 1]} : vector<4x24xf32> to vector<4x8xf32>
    %509 = arith.mulf %498, %508 : vector<4x8xf32>
    %510 = arith.addf %507, %509 : vector<4x8xf32>
    %511 = math.tanh %510 : vector<4x8xf32>
    %cst_100 = arith.constant 1.000000e+00 : f32
    %512 = vector.broadcast %cst_100 : f32 to vector<4x8xf32>
    %513 = arith.subf %512, %506 : vector<4x8xf32>
    %514 = arith.mulf %513, %511 : vector<4x8xf32>
    %515 = arith.mulf %506, %486 : vector<4x8xf32>
    %516 = arith.addf %514, %515 : vector<4x8xf32>
    %517 = vector.shape_cast %516 : vector<4x8xf32> to vector<4x1x8xf32>
    %518 = vector.broadcast %517 : vector<4x1x8xf32> to vector<4x5x8xf32>
    %519 = arith.mulf %366, %518 : vector<4x5x8xf32>
    %cst_101 = arith.constant dense<0.000000e+00> : vector<4x5xf32>
    %520 = vector.multi_reduction <add>, %519, %cst_101 [2] : vector<4x5x8xf32> to vector<4x5xf32>
    %521 = math.tanh %520 : vector<4x5xf32>
    %cst_102 = arith.constant 1.000000e+01 : f32
    %522 = vector.broadcast %cst_102 : f32 to vector<4x5xf32>
    %523 = arith.mulf %522, %521 : vector<4x5xf32>
    %cst_103 = arith.constant dense<0xFF800000> : vector<4xf32>
    %524 = vector.multi_reduction <maximumf>, %523, %cst_103 [1] : vector<4x5xf32> to vector<4xf32>
    %cst_104 = arith.constant 0xFF800000 : f32
    %525 = vector.broadcast %cst_104 : f32 to vector<4xf32>
    %526 = arith.maximumf %525, %524 : vector<4xf32>
    %527 = vector.shape_cast %526 : vector<4xf32> to vector<4x1xf32>
    %528 = vector.broadcast %527 : vector<4x1xf32> to vector<4x5xf32>
    %529 = arith.subf %523, %528 : vector<4x5xf32>
    %530 = math.exp %529 : vector<4x5xf32>
    %cst_105 = arith.constant dense<0.000000e+00> : vector<4xf32>
    %531 = vector.multi_reduction <add>, %530, %cst_105 [1] : vector<4x5xf32> to vector<4xf32>
    %532 = vector.shape_cast %531 : vector<4xf32> to vector<4x1xf32>
    %533 = vector.broadcast %532 : vector<4x1xf32> to vector<4x5xf32>
    %534 = arith.divf %530, %533 : vector<4x5xf32>
    %c2_106 = arith.constant 2 : index
    %c0_107 = arith.constant 0 : index
    %c0_108 = arith.constant 0 : index
    %535 = vector.load %arg25[%c2_106, %c0_107, %c0_108] : memref<6x4x5xf32, #tpu.memory_space<vmem>>, vector<1x4x5xf32>
    %536 = vector.shape_cast %535 : vector<1x4x5xf32> to vector<4x5xf32>
    %537 = vector.shape_cast %534 : vector<4x5xf32> to vector<1x4x5xf32>
    tpu.vector_store %arg25[%c2_106, %c0_107, %c0_108], %537 {strides = array<i32>} : memref<6x4x5xf32, #tpu.memory_space<vmem>>, vector<1x4x5xf32>,
    %538 = vector.shape_cast %534 : vector<4x5xf32> to vector<4x5x1xf32>
    %539 = vector.broadcast %538 : vector<4x5x1xf32> to vector<4x5x8xf32>
    %540 = arith.mulf %366, %539 : vector<4x5x8xf32>
    %cst_109 = arith.constant dense<0.000000e+00> : vector<4x8xf32>
    %541 = vector.multi_reduction <add>, %540, %cst_109 [1] : vector<4x5x8xf32> to vector<4x8xf32>
    %c8 = arith.constant 8 : index
    %c0_110 = arith.constant 0 : index
    %542 = vector.load %arg27[%c8, %c0_110] : memref<24x8xf32, #tpu.memory_space<vmem>>, vector<4x8xf32>
    tpu.vector_store %arg27[%c8, %c0_110], %541 {strides = array<i32>} : memref<24x8xf32, #tpu.memory_space<vmem>>, vector<4x8xf32>,
    %c3 = arith.constant 3 : index
    %c0_111 = arith.constant 0 : index
    %c0_112 = arith.constant 0 : index
    %c0_113 = arith.constant 0 : index
    %543 = vector.load %arg1[%c3, %c0_111, %c0_112, %c0_113] : memref<6x4x5x8xf32, #tpu.memory_space<vmem>>, vector<1x4x5x8xf32>
    %544 = vector.shape_cast %543 : vector<1x4x5x8xf32> to vector<4x5x8xf32>
    %545 = vector.extract_strided_slice %7 {offsets = [60, 0], sizes = [4, 24], strides = [1, 1]} : vector<120x24xf32> to vector<4x24xf32>
    %cst_114 = arith.constant dense<0.000000e+00> : vector<4x24xf32>
    %546 = tpu.matmul %516, %0, %cst_114 {dimension_numbers = #tpu.dot_dimension_numbers<[1], [0], [0], [1], [0, 0, 1, 1], [], []>} : vector<4x8xf32>, vector<8x24xf32>, vector<4x24xf32> -> vector<4x24xf32>
    %547 = vector.broadcast %1 : vector<1x24xf32> to vector<4x24xf32>
    %548 = arith.addf %546, %547 : vector<4x24xf32>
    %549 = vector.extract_strided_slice %545 {offsets = [0, 0], sizes = [4, 8], strides = [1, 1]} : vector<4x24xf32> to vector<4x8xf32>
    %550 = vector.extract_strided_slice %548 {offsets = [0, 0], sizes = [4, 8], strides = [1, 1]} : vector<4x24xf32> to vector<4x8xf32>
    %551 = arith.addf %549, %550 : vector<4x8xf32>
    %552 = arith.negf %551 : vector<4x8xf32>
    %553 = math.exp %552 : vector<4x8xf32>
    %cst_115 = arith.constant 1.000000e+00 : f32
    %554 = vector.broadcast %cst_115 : f32 to vector<4x8xf32>
    %555 = arith.addf %554, %553 : vector<4x8xf32>
    %556 = arith.divf %554, %555 : vector<4x8xf32>
    %557 = vector.extract_strided_slice %545 {offsets = [0, 8], sizes = [4, 8], strides = [1, 1]} : vector<4x24xf32> to vector<4x8xf32>
    %558 = vector.extract_strided_slice %548 {offsets = [0, 8], sizes = [4, 8], strides = [1, 1]} : vector<4x24xf32> to vector<4x8xf32>
    %559 = arith.addf %557, %558 : vector<4x8xf32>
    %560 = arith.negf %559 : vector<4x8xf32>
    %561 = math.exp %560 : vector<4x8xf32>
    %cst_116 = arith.constant 1.000000e+00 : f32
    %562 = vector.broadcast %cst_116 : f32 to vector<4x8xf32>
    %563 = arith.addf %562, %561 : vector<4x8xf32>
    %564 = arith.divf %562, %563 : vector<4x8xf32>
    %565 = vector.extract_strided_slice %545 {offsets = [0, 16], sizes = [4, 8], strides = [1, 1]} : vector<4x24xf32> to vector<4x8xf32>
    %566 = vector.extract_strided_slice %548 {offsets = [0, 16], sizes = [4, 8], strides = [1, 1]} : vector<4x24xf32> to vector<4x8xf32>
    %567 = arith.mulf %556, %566 : vector<4x8xf32>
    %568 = arith.addf %565, %567 : vector<4x8xf32>
    %569 = math.tanh %568 : vector<4x8xf32>
    %cst_117 = arith.constant 1.000000e+00 : f32
    %570 = vector.broadcast %cst_117 : f32 to vector<4x8xf32>
    %571 = arith.subf %570, %564 : vector<4x8xf32>
    %572 = arith.mulf %571, %569 : vector<4x8xf32>
    %573 = arith.mulf %564, %516 : vector<4x8xf32>
    %574 = arith.addf %572, %573 : vector<4x8xf32>
    %575 = vector.extract_strided_slice %7 {offsets = [64, 0], sizes = [4, 24], strides = [1, 1]} : vector<120x24xf32> to vector<4x24xf32>
    %cst_118 = arith.constant dense<0.000000e+00> : vector<4x24xf32>
    %576 = tpu.matmul %574, %0, %cst_118 {dimension_numbers = #tpu.dot_dimension_numbers<[1], [0], [0], [1], [0, 0, 1, 1], [], []>} : vector<4x8xf32>, vector<8x24xf32>, vector<4x24xf32> -> vector<4x24xf32>
    %577 = vector.broadcast %1 : vector<1x24xf32> to vector<4x24xf32>
    %578 = arith.addf %576, %577 : vector<4x24xf32>
    %579 = vector.extract_strided_slice %575 {offsets = [0, 0], sizes = [4, 8], strides = [1, 1]} : vector<4x24xf32> to vector<4x8xf32>
    %580 = vector.extract_strided_slice %578 {offsets = [0, 0], sizes = [4, 8], strides = [1, 1]} : vector<4x24xf32> to vector<4x8xf32>
    %581 = arith.addf %579, %580 : vector<4x8xf32>
    %582 = arith.negf %581 : vector<4x8xf32>
    %583 = math.exp %582 : vector<4x8xf32>
    %cst_119 = arith.constant 1.000000e+00 : f32
    %584 = vector.broadcast %cst_119 : f32 to vector<4x8xf32>
    %585 = arith.addf %584, %583 : vector<4x8xf32>
    %586 = arith.divf %584, %585 : vector<4x8xf32>
    %587 = vector.extract_strided_slice %575 {offsets = [0, 8], sizes = [4, 8], strides = [1, 1]} : vector<4x24xf32> to vector<4x8xf32>
    %588 = vector.extract_strided_slice %578 {offsets = [0, 8], sizes = [4, 8], strides = [1, 1]} : vector<4x24xf32> to vector<4x8xf32>
    %589 = arith.addf %587, %588 : vector<4x8xf32>
    %590 = arith.negf %589 : vector<4x8xf32>
    %591 = math.exp %590 : vector<4x8xf32>
    %cst_120 = arith.constant 1.000000e+00 : f32
    %592 = vector.broadcast %cst_120 : f32 to vector<4x8xf32>
    %593 = arith.addf %592, %591 : vector<4x8xf32>
    %594 = arith.divf %592, %593 : vector<4x8xf32>
    %595 = vector.extract_strided_slice %575 {offsets = [0, 16], sizes = [4, 8], strides = [1, 1]} : vector<4x24xf32> to vector<4x8xf32>
    %596 = vector.extract_strided_slice %578 {offsets = [0, 16], sizes = [4, 8], strides = [1, 1]} : vector<4x24xf32> to vector<4x8xf32>
    %597 = arith.mulf %586, %596 : vector<4x8xf32>
    %598 = arith.addf %595, %597 : vector<4x8xf32>
    %599 = math.tanh %598 : vector<4x8xf32>
    %cst_121 = arith.constant 1.000000e+00 : f32
    %600 = vector.broadcast %cst_121 : f32 to vector<4x8xf32>
    %601 = arith.subf %600, %594 : vector<4x8xf32>
    %602 = arith.mulf %601, %599 : vector<4x8xf32>
    %603 = arith.mulf %594, %574 : vector<4x8xf32>
    %604 = arith.addf %602, %603 : vector<4x8xf32>
    %605 = vector.extract_strided_slice %7 {offsets = [68, 0], sizes = [4, 24], strides = [1, 1]} : vector<120x24xf32> to vector<4x24xf32>
    %cst_122 = arith.constant dense<0.000000e+00> : vector<4x24xf32>
    %606 = tpu.matmul %604, %0, %cst_122 {dimension_numbers = #tpu.dot_dimension_numbers<[1], [0], [0], [1], [0, 0, 1, 1], [], []>} : vector<4x8xf32>, vector<8x24xf32>, vector<4x24xf32> -> vector<4x24xf32>
    %607 = vector.broadcast %1 : vector<1x24xf32> to vector<4x24xf32>
    %608 = arith.addf %606, %607 : vector<4x24xf32>
    %609 = vector.extract_strided_slice %605 {offsets = [0, 0], sizes = [4, 8], strides = [1, 1]} : vector<4x24xf32> to vector<4x8xf32>
    %610 = vector.extract_strided_slice %608 {offsets = [0, 0], sizes = [4, 8], strides = [1, 1]} : vector<4x24xf32> to vector<4x8xf32>
    %611 = arith.addf %609, %610 : vector<4x8xf32>
    %612 = arith.negf %611 : vector<4x8xf32>
    %613 = math.exp %612 : vector<4x8xf32>
    %cst_123 = arith.constant 1.000000e+00 : f32
    %614 = vector.broadcast %cst_123 : f32 to vector<4x8xf32>
    %615 = arith.addf %614, %613 : vector<4x8xf32>
    %616 = arith.divf %614, %615 : vector<4x8xf32>
    %617 = vector.extract_strided_slice %605 {offsets = [0, 8], sizes = [4, 8], strides = [1, 1]} : vector<4x24xf32> to vector<4x8xf32>
    %618 = vector.extract_strided_slice %608 {offsets = [0, 8], sizes = [4, 8], strides = [1, 1]} : vector<4x24xf32> to vector<4x8xf32>
    %619 = arith.addf %617, %618 : vector<4x8xf32>
    %620 = arith.negf %619 : vector<4x8xf32>
    %621 = math.exp %620 : vector<4x8xf32>
    %cst_124 = arith.constant 1.000000e+00 : f32
    %622 = vector.broadcast %cst_124 : f32 to vector<4x8xf32>
    %623 = arith.addf %622, %621 : vector<4x8xf32>
    %624 = arith.divf %622, %623 : vector<4x8xf32>
    %625 = vector.extract_strided_slice %605 {offsets = [0, 16], sizes = [4, 8], strides = [1, 1]} : vector<4x24xf32> to vector<4x8xf32>
    %626 = vector.extract_strided_slice %608 {offsets = [0, 16], sizes = [4, 8], strides = [1, 1]} : vector<4x24xf32> to vector<4x8xf32>
    %627 = arith.mulf %616, %626 : vector<4x8xf32>
    %628 = arith.addf %625, %627 : vector<4x8xf32>
    %629 = math.tanh %628 : vector<4x8xf32>
    %cst_125 = arith.constant 1.000000e+00 : f32
    %630 = vector.broadcast %cst_125 : f32 to vector<4x8xf32>
    %631 = arith.subf %630, %624 : vector<4x8xf32>
    %632 = arith.mulf %631, %629 : vector<4x8xf32>
    %633 = arith.mulf %624, %604 : vector<4x8xf32>
    %634 = arith.addf %632, %633 : vector<4x8xf32>
    %635 = vector.extract_strided_slice %7 {offsets = [72, 0], sizes = [4, 24], strides = [1, 1]} : vector<120x24xf32> to vector<4x24xf32>
    %cst_126 = arith.constant dense<0.000000e+00> : vector<4x24xf32>
    %636 = tpu.matmul %634, %0, %cst_126 {dimension_numbers = #tpu.dot_dimension_numbers<[1], [0], [0], [1], [0, 0, 1, 1], [], []>} : vector<4x8xf32>, vector<8x24xf32>, vector<4x24xf32> -> vector<4x24xf32>
    %637 = vector.broadcast %1 : vector<1x24xf32> to vector<4x24xf32>
    %638 = arith.addf %636, %637 : vector<4x24xf32>
    %639 = vector.extract_strided_slice %635 {offsets = [0, 0], sizes = [4, 8], strides = [1, 1]} : vector<4x24xf32> to vector<4x8xf32>
    %640 = vector.extract_strided_slice %638 {offsets = [0, 0], sizes = [4, 8], strides = [1, 1]} : vector<4x24xf32> to vector<4x8xf32>
    %641 = arith.addf %639, %640 : vector<4x8xf32>
    %642 = arith.negf %641 : vector<4x8xf32>
    %643 = math.exp %642 : vector<4x8xf32>
    %cst_127 = arith.constant 1.000000e+00 : f32
    %644 = vector.broadcast %cst_127 : f32 to vector<4x8xf32>
    %645 = arith.addf %644, %643 : vector<4x8xf32>
    %646 = arith.divf %644, %645 : vector<4x8xf32>
    %647 = vector.extract_strided_slice %635 {offsets = [0, 8], sizes = [4, 8], strides = [1, 1]} : vector<4x24xf32> to vector<4x8xf32>
    %648 = vector.extract_strided_slice %638 {offsets = [0, 8], sizes = [4, 8], strides = [1, 1]} : vector<4x24xf32> to vector<4x8xf32>
    %649 = arith.addf %647, %648 : vector<4x8xf32>
    %650 = arith.negf %649 : vector<4x8xf32>
    %651 = math.exp %650 : vector<4x8xf32>
    %cst_128 = arith.constant 1.000000e+00 : f32
    %652 = vector.broadcast %cst_128 : f32 to vector<4x8xf32>
    %653 = arith.addf %652, %651 : vector<4x8xf32>
    %654 = arith.divf %652, %653 : vector<4x8xf32>
    %655 = vector.extract_strided_slice %635 {offsets = [0, 16], sizes = [4, 8], strides = [1, 1]} : vector<4x24xf32> to vector<4x8xf32>
    %656 = vector.extract_strided_slice %638 {offsets = [0, 16], sizes = [4, 8], strides = [1, 1]} : vector<4x24xf32> to vector<4x8xf32>
    %657 = arith.mulf %646, %656 : vector<4x8xf32>
    %658 = arith.addf %655, %657 : vector<4x8xf32>
    %659 = math.tanh %658 : vector<4x8xf32>
    %cst_129 = arith.constant 1.000000e+00 : f32
    %660 = vector.broadcast %cst_129 : f32 to vector<4x8xf32>
    %661 = arith.subf %660, %654 : vector<4x8xf32>
    %662 = arith.mulf %661, %659 : vector<4x8xf32>
    %663 = arith.mulf %654, %634 : vector<4x8xf32>
    %664 = arith.addf %662, %663 : vector<4x8xf32>
    %665 = vector.extract_strided_slice %7 {offsets = [76, 0], sizes = [4, 24], strides = [1, 1]} : vector<120x24xf32> to vector<4x24xf32>
    %cst_130 = arith.constant dense<0.000000e+00> : vector<4x24xf32>
    %666 = tpu.matmul %664, %0, %cst_130 {dimension_numbers = #tpu.dot_dimension_numbers<[1], [0], [0], [1], [0, 0, 1, 1], [], []>} : vector<4x8xf32>, vector<8x24xf32>, vector<4x24xf32> -> vector<4x24xf32>
    %667 = vector.broadcast %1 : vector<1x24xf32> to vector<4x24xf32>
    %668 = arith.addf %666, %667 : vector<4x24xf32>
    %669 = vector.extract_strided_slice %665 {offsets = [0, 0], sizes = [4, 8], strides = [1, 1]} : vector<4x24xf32> to vector<4x8xf32>
    %670 = vector.extract_strided_slice %668 {offsets = [0, 0], sizes = [4, 8], strides = [1, 1]} : vector<4x24xf32> to vector<4x8xf32>
    %671 = arith.addf %669, %670 : vector<4x8xf32>
    %672 = arith.negf %671 : vector<4x8xf32>
    %673 = math.exp %672 : vector<4x8xf32>
    %cst_131 = arith.constant 1.000000e+00 : f32
    %674 = vector.broadcast %cst_131 : f32 to vector<4x8xf32>
    %675 = arith.addf %674, %673 : vector<4x8xf32>
    %676 = arith.divf %674, %675 : vector<4x8xf32>
    %677 = vector.extract_strided_slice %665 {offsets = [0, 8], sizes = [4, 8], strides = [1, 1]} : vector<4x24xf32> to vector<4x8xf32>
    %678 = vector.extract_strided_slice %668 {offsets = [0, 8], sizes = [4, 8], strides = [1, 1]} : vector<4x24xf32> to vector<4x8xf32>
    %679 = arith.addf %677, %678 : vector<4x8xf32>
    %680 = arith.negf %679 : vector<4x8xf32>
    %681 = math.exp %680 : vector<4x8xf32>
    %cst_132 = arith.constant 1.000000e+00 : f32
    %682 = vector.broadcast %cst_132 : f32 to vector<4x8xf32>
    %683 = arith.addf %682, %681 : vector<4x8xf32>
    %684 = arith.divf %682, %683 : vector<4x8xf32>
    %685 = vector.extract_strided_slice %665 {offsets = [0, 16], sizes = [4, 8], strides = [1, 1]} : vector<4x24xf32> to vector<4x8xf32>
    %686 = vector.extract_strided_slice %668 {offsets = [0, 16], sizes = [4, 8], strides = [1, 1]} : vector<4x24xf32> to vector<4x8xf32>
    %687 = arith.mulf %676, %686 : vector<4x8xf32>
    %688 = arith.addf %685, %687 : vector<4x8xf32>
    %689 = math.tanh %688 : vector<4x8xf32>
    %cst_133 = arith.constant 1.000000e+00 : f32
    %690 = vector.broadcast %cst_133 : f32 to vector<4x8xf32>
    %691 = arith.subf %690, %684 : vector<4x8xf32>
    %692 = arith.mulf %691, %689 : vector<4x8xf32>
    %693 = arith.mulf %684, %664 : vector<4x8xf32>
    %694 = arith.addf %692, %693 : vector<4x8xf32>
    %695 = vector.shape_cast %694 : vector<4x8xf32> to vector<4x1x8xf32>
    %696 = vector.broadcast %695 : vector<4x1x8xf32> to vector<4x5x8xf32>
    %697 = arith.mulf %544, %696 : vector<4x5x8xf32>
    %cst_134 = arith.constant dense<0.000000e+00> : vector<4x5xf32>
    %698 = vector.multi_reduction <add>, %697, %cst_134 [2] : vector<4x5x8xf32> to vector<4x5xf32>
    %699 = math.tanh %698 : vector<4x5xf32>
    %cst_135 = arith.constant 1.000000e+01 : f32
    %700 = vector.broadcast %cst_135 : f32 to vector<4x5xf32>
    %701 = arith.mulf %700, %699 : vector<4x5xf32>
    %cst_136 = arith.constant dense<0xFF800000> : vector<4xf32>
    %702 = vector.multi_reduction <maximumf>, %701, %cst_136 [1] : vector<4x5xf32> to vector<4xf32>
    %cst_137 = arith.constant 0xFF800000 : f32
    %703 = vector.broadcast %cst_137 : f32 to vector<4xf32>
    %704 = arith.maximumf %703, %702 : vector<4xf32>
    %705 = vector.shape_cast %704 : vector<4xf32> to vector<4x1xf32>
    %706 = vector.broadcast %705 : vector<4x1xf32> to vector<4x5xf32>
    %707 = arith.subf %701, %706 : vector<4x5xf32>
    %708 = math.exp %707 : vector<4x5xf32>
    %cst_138 = arith.constant dense<0.000000e+00> : vector<4xf32>
    %709 = vector.multi_reduction <add>, %708, %cst_138 [1] : vector<4x5xf32> to vector<4xf32>
    %710 = vector.shape_cast %709 : vector<4xf32> to vector<4x1xf32>
    %711 = vector.broadcast %710 : vector<4x1xf32> to vector<4x5xf32>
    %712 = arith.divf %708, %711 : vector<4x5xf32>
    %c3_139 = arith.constant 3 : index
    %c0_140 = arith.constant 0 : index
    %c0_141 = arith.constant 0 : index
    %713 = vector.load %arg25[%c3_139, %c0_140, %c0_141] : memref<6x4x5xf32, #tpu.memory_space<vmem>>, vector<1x4x5xf32>
    %714 = vector.shape_cast %713 : vector<1x4x5xf32> to vector<4x5xf32>
    %715 = vector.shape_cast %712 : vector<4x5xf32> to vector<1x4x5xf32>
    tpu.vector_store %arg25[%c3_139, %c0_140, %c0_141], %715 {strides = array<i32>} : memref<6x4x5xf32, #tpu.memory_space<vmem>>, vector<1x4x5xf32>,
    %716 = vector.shape_cast %712 : vector<4x5xf32> to vector<4x5x1xf32>
    %717 = vector.broadcast %716 : vector<4x5x1xf32> to vector<4x5x8xf32>
    %718 = arith.mulf %544, %717 : vector<4x5x8xf32>
    %cst_142 = arith.constant dense<0.000000e+00> : vector<4x8xf32>
    %719 = vector.multi_reduction <add>, %718, %cst_142 [1] : vector<4x5x8xf32> to vector<4x8xf32>
    %c12 = arith.constant 12 : index
    %c0_143 = arith.constant 0 : index
    %720 = vector.load %arg27[%c12, %c0_143] : memref<24x8xf32, #tpu.memory_space<vmem>>, vector<4x8xf32>
    tpu.vector_store %arg27[%c12, %c0_143], %719 {strides = array<i32>} : memref<24x8xf32, #tpu.memory_space<vmem>>, vector<4x8xf32>,
    %c4_144 = arith.constant 4 : index
    %c0_145 = arith.constant 0 : index
    %c0_146 = arith.constant 0 : index
    %c0_147 = arith.constant 0 : index
    %721 = vector.load %arg1[%c4_144, %c0_145, %c0_146, %c0_147] : memref<6x4x5x8xf32, #tpu.memory_space<vmem>>, vector<1x4x5x8xf32>
    %722 = vector.shape_cast %721 : vector<1x4x5x8xf32> to vector<4x5x8xf32>
    %723 = vector.extract_strided_slice %7 {offsets = [80, 0], sizes = [4, 24], strides = [1, 1]} : vector<120x24xf32> to vector<4x24xf32>
    %cst_148 = arith.constant dense<0.000000e+00> : vector<4x24xf32>
    %724 = tpu.matmul %694, %0, %cst_148 {dimension_numbers = #tpu.dot_dimension_numbers<[1], [0], [0], [1], [0, 0, 1, 1], [], []>} : vector<4x8xf32>, vector<8x24xf32>, vector<4x24xf32> -> vector<4x24xf32>
    %725 = vector.broadcast %1 : vector<1x24xf32> to vector<4x24xf32>
    %726 = arith.addf %724, %725 : vector<4x24xf32>
    %727 = vector.extract_strided_slice %723 {offsets = [0, 0], sizes = [4, 8], strides = [1, 1]} : vector<4x24xf32> to vector<4x8xf32>
    %728 = vector.extract_strided_slice %726 {offsets = [0, 0], sizes = [4, 8], strides = [1, 1]} : vector<4x24xf32> to vector<4x8xf32>
    %729 = arith.addf %727, %728 : vector<4x8xf32>
    %730 = arith.negf %729 : vector<4x8xf32>
    %731 = math.exp %730 : vector<4x8xf32>
    %cst_149 = arith.constant 1.000000e+00 : f32
    %732 = vector.broadcast %cst_149 : f32 to vector<4x8xf32>
    %733 = arith.addf %732, %731 : vector<4x8xf32>
    %734 = arith.divf %732, %733 : vector<4x8xf32>
    %735 = vector.extract_strided_slice %723 {offsets = [0, 8], sizes = [4, 8], strides = [1, 1]} : vector<4x24xf32> to vector<4x8xf32>
    %736 = vector.extract_strided_slice %726 {offsets = [0, 8], sizes = [4, 8], strides = [1, 1]} : vector<4x24xf32> to vector<4x8xf32>
    %737 = arith.addf %735, %736 : vector<4x8xf32>
    %738 = arith.negf %737 : vector<4x8xf32>
    %739 = math.exp %738 : vector<4x8xf32>
    %cst_150 = arith.constant 1.000000e+00 : f32
    %740 = vector.broadcast %cst_150 : f32 to vector<4x8xf32>
    %741 = arith.addf %740, %739 : vector<4x8xf32>
    %742 = arith.divf %740, %741 : vector<4x8xf32>
    %743 = vector.extract_strided_slice %723 {offsets = [0, 16], sizes = [4, 8], strides = [1, 1]} : vector<4x24xf32> to vector<4x8xf32>
    %744 = vector.extract_strided_slice %726 {offsets = [0, 16], sizes = [4, 8], strides = [1, 1]} : vector<4x24xf32> to vector<4x8xf32>
    %745 = arith.mulf %734, %744 : vector<4x8xf32>
    %746 = arith.addf %743, %745 : vector<4x8xf32>
    %747 = math.tanh %746 : vector<4x8xf32>
    %cst_151 = arith.constant 1.000000e+00 : f32
    %748 = vector.broadcast %cst_151 : f32 to vector<4x8xf32>
    %749 = arith.subf %748, %742 : vector<4x8xf32>
    %750 = arith.mulf %749, %747 : vector<4x8xf32>
    %751 = arith.mulf %742, %694 : vector<4x8xf32>
    %752 = arith.addf %750, %751 : vector<4x8xf32>
    %753 = vector.extract_strided_slice %7 {offsets = [84, 0], sizes = [4, 24], strides = [1, 1]} : vector<120x24xf32> to vector<4x24xf32>
    %cst_152 = arith.constant dense<0.000000e+00> : vector<4x24xf32>
    %754 = tpu.matmul %752, %0, %cst_152 {dimension_numbers = #tpu.dot_dimension_numbers<[1], [0], [0], [1], [0, 0, 1, 1], [], []>} : vector<4x8xf32>, vector<8x24xf32>, vector<4x24xf32> -> vector<4x24xf32>
    %755 = vector.broadcast %1 : vector<1x24xf32> to vector<4x24xf32>
    %756 = arith.addf %754, %755 : vector<4x24xf32>
    %757 = vector.extract_strided_slice %753 {offsets = [0, 0], sizes = [4, 8], strides = [1, 1]} : vector<4x24xf32> to vector<4x8xf32>
    %758 = vector.extract_strided_slice %756 {offsets = [0, 0], sizes = [4, 8], strides = [1, 1]} : vector<4x24xf32> to vector<4x8xf32>
    %759 = arith.addf %757, %758 : vector<4x8xf32>
    %760 = arith.negf %759 : vector<4x8xf32>
    %761 = math.exp %760 : vector<4x8xf32>
    %cst_153 = arith.constant 1.000000e+00 : f32
    %762 = vector.broadcast %cst_153 : f32 to vector<4x8xf32>
    %763 = arith.addf %762, %761 : vector<4x8xf32>
    %764 = arith.divf %762, %763 : vector<4x8xf32>
    %765 = vector.extract_strided_slice %753 {offsets = [0, 8], sizes = [4, 8], strides = [1, 1]} : vector<4x24xf32> to vector<4x8xf32>
    %766 = vector.extract_strided_slice %756 {offsets = [0, 8], sizes = [4, 8], strides = [1, 1]} : vector<4x24xf32> to vector<4x8xf32>
    %767 = arith.addf %765, %766 : vector<4x8xf32>
    %768 = arith.negf %767 : vector<4x8xf32>
    %769 = math.exp %768 : vector<4x8xf32>
    %cst_154 = arith.constant 1.000000e+00 : f32
    %770 = vector.broadcast %cst_154 : f32 to vector<4x8xf32>
    %771 = arith.addf %770, %769 : vector<4x8xf32>
    %772 = arith.divf %770, %771 : vector<4x8xf32>
    %773 = vector.extract_strided_slice %753 {offsets = [0, 16], sizes = [4, 8], strides = [1, 1]} : vector<4x24xf32> to vector<4x8xf32>
    %774 = vector.extract_strided_slice %756 {offsets = [0, 16], sizes = [4, 8], strides = [1, 1]} : vector<4x24xf32> to vector<4x8xf32>
    %775 = arith.mulf %764, %774 : vector<4x8xf32>
    %776 = arith.addf %773, %775 : vector<4x8xf32>
    %777 = math.tanh %776 : vector<4x8xf32>
    %cst_155 = arith.constant 1.000000e+00 : f32
    %778 = vector.broadcast %cst_155 : f32 to vector<4x8xf32>
    %779 = arith.subf %778, %772 : vector<4x8xf32>
    %780 = arith.mulf %779, %777 : vector<4x8xf32>
    %781 = arith.mulf %772, %752 : vector<4x8xf32>
    %782 = arith.addf %780, %781 : vector<4x8xf32>
    %783 = vector.extract_strided_slice %7 {offsets = [88, 0], sizes = [4, 24], strides = [1, 1]} : vector<120x24xf32> to vector<4x24xf32>
    %cst_156 = arith.constant dense<0.000000e+00> : vector<4x24xf32>
    %784 = tpu.matmul %782, %0, %cst_156 {dimension_numbers = #tpu.dot_dimension_numbers<[1], [0], [0], [1], [0, 0, 1, 1], [], []>} : vector<4x8xf32>, vector<8x24xf32>, vector<4x24xf32> -> vector<4x24xf32>
    %785 = vector.broadcast %1 : vector<1x24xf32> to vector<4x24xf32>
    %786 = arith.addf %784, %785 : vector<4x24xf32>
    %787 = vector.extract_strided_slice %783 {offsets = [0, 0], sizes = [4, 8], strides = [1, 1]} : vector<4x24xf32> to vector<4x8xf32>
    %788 = vector.extract_strided_slice %786 {offsets = [0, 0], sizes = [4, 8], strides = [1, 1]} : vector<4x24xf32> to vector<4x8xf32>
    %789 = arith.addf %787, %788 : vector<4x8xf32>
    %790 = arith.negf %789 : vector<4x8xf32>
    %791 = math.exp %790 : vector<4x8xf32>
    %cst_157 = arith.constant 1.000000e+00 : f32
    %792 = vector.broadcast %cst_157 : f32 to vector<4x8xf32>
    %793 = arith.addf %792, %791 : vector<4x8xf32>
    %794 = arith.divf %792, %793 : vector<4x8xf32>
    %795 = vector.extract_strided_slice %783 {offsets = [0, 8], sizes = [4, 8], strides = [1, 1]} : vector<4x24xf32> to vector<4x8xf32>
    %796 = vector.extract_strided_slice %786 {offsets = [0, 8], sizes = [4, 8], strides = [1, 1]} : vector<4x24xf32> to vector<4x8xf32>
    %797 = arith.addf %795, %796 : vector<4x8xf32>
    %798 = arith.negf %797 : vector<4x8xf32>
    %799 = math.exp %798 : vector<4x8xf32>
    %cst_158 = arith.constant 1.000000e+00 : f32
    %800 = vector.broadcast %cst_158 : f32 to vector<4x8xf32>
    %801 = arith.addf %800, %799 : vector<4x8xf32>
    %802 = arith.divf %800, %801 : vector<4x8xf32>
    %803 = vector.extract_strided_slice %783 {offsets = [0, 16], sizes = [4, 8], strides = [1, 1]} : vector<4x24xf32> to vector<4x8xf32>
    %804 = vector.extract_strided_slice %786 {offsets = [0, 16], sizes = [4, 8], strides = [1, 1]} : vector<4x24xf32> to vector<4x8xf32>
    %805 = arith.mulf %794, %804 : vector<4x8xf32>
    %806 = arith.addf %803, %805 : vector<4x8xf32>
    %807 = math.tanh %806 : vector<4x8xf32>
    %cst_159 = arith.constant 1.000000e+00 : f32
    %808 = vector.broadcast %cst_159 : f32 to vector<4x8xf32>
    %809 = arith.subf %808, %802 : vector<4x8xf32>
    %810 = arith.mulf %809, %807 : vector<4x8xf32>
    %811 = arith.mulf %802, %782 : vector<4x8xf32>
    %812 = arith.addf %810, %811 : vector<4x8xf32>
    %813 = vector.extract_strided_slice %7 {offsets = [92, 0], sizes = [4, 24], strides = [1, 1]} : vector<120x24xf32> to vector<4x24xf32>
    %cst_160 = arith.constant dense<0.000000e+00> : vector<4x24xf32>
    %814 = tpu.matmul %812, %0, %cst_160 {dimension_numbers = #tpu.dot_dimension_numbers<[1], [0], [0], [1], [0, 0, 1, 1], [], []>} : vector<4x8xf32>, vector<8x24xf32>, vector<4x24xf32> -> vector<4x24xf32>
    %815 = vector.broadcast %1 : vector<1x24xf32> to vector<4x24xf32>
    %816 = arith.addf %814, %815 : vector<4x24xf32>
    %817 = vector.extract_strided_slice %813 {offsets = [0, 0], sizes = [4, 8], strides = [1, 1]} : vector<4x24xf32> to vector<4x8xf32>
    %818 = vector.extract_strided_slice %816 {offsets = [0, 0], sizes = [4, 8], strides = [1, 1]} : vector<4x24xf32> to vector<4x8xf32>
    %819 = arith.addf %817, %818 : vector<4x8xf32>
    %820 = arith.negf %819 : vector<4x8xf32>
    %821 = math.exp %820 : vector<4x8xf32>
    %cst_161 = arith.constant 1.000000e+00 : f32
    %822 = vector.broadcast %cst_161 : f32 to vector<4x8xf32>
    %823 = arith.addf %822, %821 : vector<4x8xf32>
    %824 = arith.divf %822, %823 : vector<4x8xf32>
    %825 = vector.extract_strided_slice %813 {offsets = [0, 8], sizes = [4, 8], strides = [1, 1]} : vector<4x24xf32> to vector<4x8xf32>
    %826 = vector.extract_strided_slice %816 {offsets = [0, 8], sizes = [4, 8], strides = [1, 1]} : vector<4x24xf32> to vector<4x8xf32>
    %827 = arith.addf %825, %826 : vector<4x8xf32>
    %828 = arith.negf %827 : vector<4x8xf32>
    %829 = math.exp %828 : vector<4x8xf32>
    %cst_162 = arith.constant 1.000000e+00 : f32
    %830 = vector.broadcast %cst_162 : f32 to vector<4x8xf32>
    %831 = arith.addf %830, %829 : vector<4x8xf32>
    %832 = arith.divf %830, %831 : vector<4x8xf32>
    %833 = vector.extract_strided_slice %813 {offsets = [0, 16], sizes = [4, 8], strides = [1, 1]} : vector<4x24xf32> to vector<4x8xf32>
    %834 = vector.extract_strided_slice %816 {offsets = [0, 16], sizes = [4, 8], strides = [1, 1]} : vector<4x24xf32> to vector<4x8xf32>
    %835 = arith.mulf %824, %834 : vector<4x8xf32>
    %836 = arith.addf %833, %835 : vector<4x8xf32>
    %837 = math.tanh %836 : vector<4x8xf32>
    %cst_163 = arith.constant 1.000000e+00 : f32
    %838 = vector.broadcast %cst_163 : f32 to vector<4x8xf32>
    %839 = arith.subf %838, %832 : vector<4x8xf32>
    %840 = arith.mulf %839, %837 : vector<4x8xf32>
    %841 = arith.mulf %832, %812 : vector<4x8xf32>
    %842 = arith.addf %840, %841 : vector<4x8xf32>
    %843 = vector.extract_strided_slice %7 {offsets = [96, 0], sizes = [4, 24], strides = [1, 1]} : vector<120x24xf32> to vector<4x24xf32>
    %cst_164 = arith.constant dense<0.000000e+00> : vector<4x24xf32>
    %844 = tpu.matmul %842, %0, %cst_164 {dimension_numbers = #tpu.dot_dimension_numbers<[1], [0], [0], [1], [0, 0, 1, 1], [], []>} : vector<4x8xf32>, vector<8x24xf32>, vector<4x24xf32> -> vector<4x24xf32>
    %845 = vector.broadcast %1 : vector<1x24xf32> to vector<4x24xf32>
    %846 = arith.addf %844, %845 : vector<4x24xf32>
    %847 = vector.extract_strided_slice %843 {offsets = [0, 0], sizes = [4, 8], strides = [1, 1]} : vector<4x24xf32> to vector<4x8xf32>
    %848 = vector.extract_strided_slice %846 {offsets = [0, 0], sizes = [4, 8], strides = [1, 1]} : vector<4x24xf32> to vector<4x8xf32>
    %849 = arith.addf %847, %848 : vector<4x8xf32>
    %850 = arith.negf %849 : vector<4x8xf32>
    %851 = math.exp %850 : vector<4x8xf32>
    %cst_165 = arith.constant 1.000000e+00 : f32
    %852 = vector.broadcast %cst_165 : f32 to vector<4x8xf32>
    %853 = arith.addf %852, %851 : vector<4x8xf32>
    %854 = arith.divf %852, %853 : vector<4x8xf32>
    %855 = vector.extract_strided_slice %843 {offsets = [0, 8], sizes = [4, 8], strides = [1, 1]} : vector<4x24xf32> to vector<4x8xf32>
    %856 = vector.extract_strided_slice %846 {offsets = [0, 8], sizes = [4, 8], strides = [1, 1]} : vector<4x24xf32> to vector<4x8xf32>
    %857 = arith.addf %855, %856 : vector<4x8xf32>
    %858 = arith.negf %857 : vector<4x8xf32>
    %859 = math.exp %858 : vector<4x8xf32>
    %cst_166 = arith.constant 1.000000e+00 : f32
    %860 = vector.broadcast %cst_166 : f32 to vector<4x8xf32>
    %861 = arith.addf %860, %859 : vector<4x8xf32>
    %862 = arith.divf %860, %861 : vector<4x8xf32>
    %863 = vector.extract_strided_slice %843 {offsets = [0, 16], sizes = [4, 8], strides = [1, 1]} : vector<4x24xf32> to vector<4x8xf32>
    %864 = vector.extract_strided_slice %846 {offsets = [0, 16], sizes = [4, 8], strides = [1, 1]} : vector<4x24xf32> to vector<4x8xf32>
    %865 = arith.mulf %854, %864 : vector<4x8xf32>
    %866 = arith.addf %863, %865 : vector<4x8xf32>
    %867 = math.tanh %866 : vector<4x8xf32>
    %cst_167 = arith.constant 1.000000e+00 : f32
    %868 = vector.broadcast %cst_167 : f32 to vector<4x8xf32>
    %869 = arith.subf %868, %862 : vector<4x8xf32>
    %870 = arith.mulf %869, %867 : vector<4x8xf32>
    %871 = arith.mulf %862, %842 : vector<4x8xf32>
    %872 = arith.addf %870, %871 : vector<4x8xf32>
    %873 = vector.shape_cast %872 : vector<4x8xf32> to vector<4x1x8xf32>
    %874 = vector.broadcast %873 : vector<4x1x8xf32> to vector<4x5x8xf32>
    %875 = arith.mulf %722, %874 : vector<4x5x8xf32>
    %cst_168 = arith.constant dense<0.000000e+00> : vector<4x5xf32>
    %876 = vector.multi_reduction <add>, %875, %cst_168 [2] : vector<4x5x8xf32> to vector<4x5xf32>
    %877 = math.tanh %876 : vector<4x5xf32>
    %cst_169 = arith.constant 1.000000e+01 : f32
    %878 = vector.broadcast %cst_169 : f32 to vector<4x5xf32>
    %879 = arith.mulf %878, %877 : vector<4x5xf32>
    %cst_170 = arith.constant dense<0xFF800000> : vector<4xf32>
    %880 = vector.multi_reduction <maximumf>, %879, %cst_170 [1] : vector<4x5xf32> to vector<4xf32>
    %cst_171 = arith.constant 0xFF800000 : f32
    %881 = vector.broadcast %cst_171 : f32 to vector<4xf32>
    %882 = arith.maximumf %881, %880 : vector<4xf32>
    %883 = vector.shape_cast %882 : vector<4xf32> to vector<4x1xf32>
    %884 = vector.broadcast %883 : vector<4x1xf32> to vector<4x5xf32>
    %885 = arith.subf %879, %884 : vector<4x5xf32>
    %886 = math.exp %885 : vector<4x5xf32>
    %cst_172 = arith.constant dense<0.000000e+00> : vector<4xf32>
    %887 = vector.multi_reduction <add>, %886, %cst_172 [1] : vector<4x5xf32> to vector<4xf32>
    %888 = vector.shape_cast %887 : vector<4xf32> to vector<4x1xf32>
    %889 = vector.broadcast %888 : vector<4x1xf32> to vector<4x5xf32>
    %890 = arith.divf %886, %889 : vector<4x5xf32>
    %c4_173 = arith.constant 4 : index
    %c0_174 = arith.constant 0 : index
    %c0_175 = arith.constant 0 : index
    %891 = vector.load %arg25[%c4_173, %c0_174, %c0_175] : memref<6x4x5xf32, #tpu.memory_space<vmem>>, vector<1x4x5xf32>
    %892 = vector.shape_cast %891 : vector<1x4x5xf32> to vector<4x5xf32>
    %893 = vector.shape_cast %890 : vector<4x5xf32> to vector<1x4x5xf32>
    tpu.vector_store %arg25[%c4_173, %c0_174, %c0_175], %893 {strides = array<i32>} : memref<6x4x5xf32, #tpu.memory_space<vmem>>, vector<1x4x5xf32>,
    %894 = vector.shape_cast %890 : vector<4x5xf32> to vector<4x5x1xf32>
    %895 = vector.broadcast %894 : vector<4x5x1xf32> to vector<4x5x8xf32>
    %896 = arith.mulf %722, %895 : vector<4x5x8xf32>
    %cst_176 = arith.constant dense<0.000000e+00> : vector<4x8xf32>
    %897 = vector.multi_reduction <add>, %896, %cst_176 [1] : vector<4x5x8xf32> to vector<4x8xf32>
    %c16 = arith.constant 16 : index
    %c0_177 = arith.constant 0 : index
    %898 = vector.load %arg27[%c16, %c0_177] : memref<24x8xf32, #tpu.memory_space<vmem>>, vector<4x8xf32>
    tpu.vector_store %arg27[%c16, %c0_177], %897 {strides = array<i32>} : memref<24x8xf32, #tpu.memory_space<vmem>>, vector<4x8xf32>,
    %c5 = arith.constant 5 : index
    %c0_178 = arith.constant 0 : index
    %c0_179 = arith.constant 0 : index
    %c0_180 = arith.constant 0 : index
    %899 = vector.load %arg1[%c5, %c0_178, %c0_179, %c0_180] : memref<6x4x5x8xf32, #tpu.memory_space<vmem>>, vector<1x4x5x8xf32>
    %900 = vector.shape_cast %899 : vector<1x4x5x8xf32> to vector<4x5x8xf32>
    %901 = vector.extract_strided_slice %7 {offsets = [100, 0], sizes = [4, 24], strides = [1, 1]} : vector<120x24xf32> to vector<4x24xf32>
    %cst_181 = arith.constant dense<0.000000e+00> : vector<4x24xf32>
    %902 = tpu.matmul %872, %0, %cst_181 {dimension_numbers = #tpu.dot_dimension_numbers<[1], [0], [0], [1], [0, 0, 1, 1], [], []>} : vector<4x8xf32>, vector<8x24xf32>, vector<4x24xf32> -> vector<4x24xf32>
    %903 = vector.broadcast %1 : vector<1x24xf32> to vector<4x24xf32>
    %904 = arith.addf %902, %903 : vector<4x24xf32>
    %905 = vector.extract_strided_slice %901 {offsets = [0, 0], sizes = [4, 8], strides = [1, 1]} : vector<4x24xf32> to vector<4x8xf32>
    %906 = vector.extract_strided_slice %904 {offsets = [0, 0], sizes = [4, 8], strides = [1, 1]} : vector<4x24xf32> to vector<4x8xf32>
    %907 = arith.addf %905, %906 : vector<4x8xf32>
    %908 = arith.negf %907 : vector<4x8xf32>
    %909 = math.exp %908 : vector<4x8xf32>
    %cst_182 = arith.constant 1.000000e+00 : f32
    %910 = vector.broadcast %cst_182 : f32 to vector<4x8xf32>
    %911 = arith.addf %910, %909 : vector<4x8xf32>
    %912 = arith.divf %910, %911 : vector<4x8xf32>
    %913 = vector.extract_strided_slice %901 {offsets = [0, 8], sizes = [4, 8], strides = [1, 1]} : vector<4x24xf32> to vector<4x8xf32>
    %914 = vector.extract_strided_slice %904 {offsets = [0, 8], sizes = [4, 8], strides = [1, 1]} : vector<4x24xf32> to vector<4x8xf32>
    %915 = arith.addf %913, %914 : vector<4x8xf32>
    %916 = arith.negf %915 : vector<4x8xf32>
    %917 = math.exp %916 : vector<4x8xf32>
    %cst_183 = arith.constant 1.000000e+00 : f32
    %918 = vector.broadcast %cst_183 : f32 to vector<4x8xf32>
    %919 = arith.addf %918, %917 : vector<4x8xf32>
    %920 = arith.divf %918, %919 : vector<4x8xf32>
    %921 = vector.extract_strided_slice %901 {offsets = [0, 16], sizes = [4, 8], strides = [1, 1]} : vector<4x24xf32> to vector<4x8xf32>
    %922 = vector.extract_strided_slice %904 {offsets = [0, 16], sizes = [4, 8], strides = [1, 1]} : vector<4x24xf32> to vector<4x8xf32>
    %923 = arith.mulf %912, %922 : vector<4x8xf32>
    %924 = arith.addf %921, %923 : vector<4x8xf32>
    %925 = math.tanh %924 : vector<4x8xf32>
    %cst_184 = arith.constant 1.000000e+00 : f32
    %926 = vector.broadcast %cst_184 : f32 to vector<4x8xf32>
    %927 = arith.subf %926, %920 : vector<4x8xf32>
    %928 = arith.mulf %927, %925 : vector<4x8xf32>
    %929 = arith.mulf %920, %872 : vector<4x8xf32>
    %930 = arith.addf %928, %929 : vector<4x8xf32>
    %931 = vector.extract_strided_slice %7 {offsets = [104, 0], sizes = [4, 24], strides = [1, 1]} : vector<120x24xf32> to vector<4x24xf32>
    %cst_185 = arith.constant dense<0.000000e+00> : vector<4x24xf32>
    %932 = tpu.matmul %930, %0, %cst_185 {dimension_numbers = #tpu.dot_dimension_numbers<[1], [0], [0], [1], [0, 0, 1, 1], [], []>} : vector<4x8xf32>, vector<8x24xf32>, vector<4x24xf32> -> vector<4x24xf32>
    %933 = vector.broadcast %1 : vector<1x24xf32> to vector<4x24xf32>
    %934 = arith.addf %932, %933 : vector<4x24xf32>
    %935 = vector.extract_strided_slice %931 {offsets = [0, 0], sizes = [4, 8], strides = [1, 1]} : vector<4x24xf32> to vector<4x8xf32>
    %936 = vector.extract_strided_slice %934 {offsets = [0, 0], sizes = [4, 8], strides = [1, 1]} : vector<4x24xf32> to vector<4x8xf32>
    %937 = arith.addf %935, %936 : vector<4x8xf32>
    %938 = arith.negf %937 : vector<4x8xf32>
    %939 = math.exp %938 : vector<4x8xf32>
    %cst_186 = arith.constant 1.000000e+00 : f32
    %940 = vector.broadcast %cst_186 : f32 to vector<4x8xf32>
    %941 = arith.addf %940, %939 : vector<4x8xf32>
    %942 = arith.divf %940, %941 : vector<4x8xf32>
    %943 = vector.extract_strided_slice %931 {offsets = [0, 8], sizes = [4, 8], strides = [1, 1]} : vector<4x24xf32> to vector<4x8xf32>
    %944 = vector.extract_strided_slice %934 {offsets = [0, 8], sizes = [4, 8], strides = [1, 1]} : vector<4x24xf32> to vector<4x8xf32>
    %945 = arith.addf %943, %944 : vector<4x8xf32>
    %946 = arith.negf %945 : vector<4x8xf32>
    %947 = math.exp %946 : vector<4x8xf32>
    %cst_187 = arith.constant 1.000000e+00 : f32
    %948 = vector.broadcast %cst_187 : f32 to vector<4x8xf32>
    %949 = arith.addf %948, %947 : vector<4x8xf32>
    %950 = arith.divf %948, %949 : vector<4x8xf32>
    %951 = vector.extract_strided_slice %931 {offsets = [0, 16], sizes = [4, 8], strides = [1, 1]} : vector<4x24xf32> to vector<4x8xf32>
    %952 = vector.extract_strided_slice %934 {offsets = [0, 16], sizes = [4, 8], strides = [1, 1]} : vector<4x24xf32> to vector<4x8xf32>
    %953 = arith.mulf %942, %952 : vector<4x8xf32>
    %954 = arith.addf %951, %953 : vector<4x8xf32>
    %955 = math.tanh %954 : vector<4x8xf32>
    %cst_188 = arith.constant 1.000000e+00 : f32
    %956 = vector.broadcast %cst_188 : f32 to vector<4x8xf32>
    %957 = arith.subf %956, %950 : vector<4x8xf32>
    %958 = arith.mulf %957, %955 : vector<4x8xf32>
    %959 = arith.mulf %950, %930 : vector<4x8xf32>
    %960 = arith.addf %958, %959 : vector<4x8xf32>
    %961 = vector.extract_strided_slice %7 {offsets = [108, 0], sizes = [4, 24], strides = [1, 1]} : vector<120x24xf32> to vector<4x24xf32>
    %cst_189 = arith.constant dense<0.000000e+00> : vector<4x24xf32>
    %962 = tpu.matmul %960, %0, %cst_189 {dimension_numbers = #tpu.dot_dimension_numbers<[1], [0], [0], [1], [0, 0, 1, 1], [], []>} : vector<4x8xf32>, vector<8x24xf32>, vector<4x24xf32> -> vector<4x24xf32>
    %963 = vector.broadcast %1 : vector<1x24xf32> to vector<4x24xf32>
    %964 = arith.addf %962, %963 : vector<4x24xf32>
    %965 = vector.extract_strided_slice %961 {offsets = [0, 0], sizes = [4, 8], strides = [1, 1]} : vector<4x24xf32> to vector<4x8xf32>
    %966 = vector.extract_strided_slice %964 {offsets = [0, 0], sizes = [4, 8], strides = [1, 1]} : vector<4x24xf32> to vector<4x8xf32>
    %967 = arith.addf %965, %966 : vector<4x8xf32>
    %968 = arith.negf %967 : vector<4x8xf32>
    %969 = math.exp %968 : vector<4x8xf32>
    %cst_190 = arith.constant 1.000000e+00 : f32
    %970 = vector.broadcast %cst_190 : f32 to vector<4x8xf32>
    %971 = arith.addf %970, %969 : vector<4x8xf32>
    %972 = arith.divf %970, %971 : vector<4x8xf32>
    %973 = vector.extract_strided_slice %961 {offsets = [0, 8], sizes = [4, 8], strides = [1, 1]} : vector<4x24xf32> to vector<4x8xf32>
    %974 = vector.extract_strided_slice %964 {offsets = [0, 8], sizes = [4, 8], strides = [1, 1]} : vector<4x24xf32> to vector<4x8xf32>
    %975 = arith.addf %973, %974 : vector<4x8xf32>
    %976 = arith.negf %975 : vector<4x8xf32>
    %977 = math.exp %976 : vector<4x8xf32>
    %cst_191 = arith.constant 1.000000e+00 : f32
    %978 = vector.broadcast %cst_191 : f32 to vector<4x8xf32>
    %979 = arith.addf %978, %977 : vector<4x8xf32>
    %980 = arith.divf %978, %979 : vector<4x8xf32>
    %981 = vector.extract_strided_slice %961 {offsets = [0, 16], sizes = [4, 8], strides = [1, 1]} : vector<4x24xf32> to vector<4x8xf32>
    %982 = vector.extract_strided_slice %964 {offsets = [0, 16], sizes = [4, 8], strides = [1, 1]} : vector<4x24xf32> to vector<4x8xf32>
    %983 = arith.mulf %972, %982 : vector<4x8xf32>
    %984 = arith.addf %981, %983 : vector<4x8xf32>
    %985 = math.tanh %984 : vector<4x8xf32>
    %cst_192 = arith.constant 1.000000e+00 : f32
    %986 = vector.broadcast %cst_192 : f32 to vector<4x8xf32>
    %987 = arith.subf %986, %980 : vector<4x8xf32>
    %988 = arith.mulf %987, %985 : vector<4x8xf32>
    %989 = arith.mulf %980, %960 : vector<4x8xf32>
    %990 = arith.addf %988, %989 : vector<4x8xf32>
    %991 = vector.extract_strided_slice %7 {offsets = [112, 0], sizes = [4, 24], strides = [1, 1]} : vector<120x24xf32> to vector<4x24xf32>
    %cst_193 = arith.constant dense<0.000000e+00> : vector<4x24xf32>
    %992 = tpu.matmul %990, %0, %cst_193 {dimension_numbers = #tpu.dot_dimension_numbers<[1], [0], [0], [1], [0, 0, 1, 1], [], []>} : vector<4x8xf32>, vector<8x24xf32>, vector<4x24xf32> -> vector<4x24xf32>
    %993 = vector.broadcast %1 : vector<1x24xf32> to vector<4x24xf32>
    %994 = arith.addf %992, %993 : vector<4x24xf32>
    %995 = vector.extract_strided_slice %991 {offsets = [0, 0], sizes = [4, 8], strides = [1, 1]} : vector<4x24xf32> to vector<4x8xf32>
    %996 = vector.extract_strided_slice %994 {offsets = [0, 0], sizes = [4, 8], strides = [1, 1]} : vector<4x24xf32> to vector<4x8xf32>
    %997 = arith.addf %995, %996 : vector<4x8xf32>
    %998 = arith.negf %997 : vector<4x8xf32>
    %999 = math.exp %998 : vector<4x8xf32>
    %cst_194 = arith.constant 1.000000e+00 : f32
    %1000 = vector.broadcast %cst_194 : f32 to vector<4x8xf32>
    %1001 = arith.addf %1000, %999 : vector<4x8xf32>
    %1002 = arith.divf %1000, %1001 : vector<4x8xf32>
    %1003 = vector.extract_strided_slice %991 {offsets = [0, 8], sizes = [4, 8], strides = [1, 1]} : vector<4x24xf32> to vector<4x8xf32>
    %1004 = vector.extract_strided_slice %994 {offsets = [0, 8], sizes = [4, 8], strides = [1, 1]} : vector<4x24xf32> to vector<4x8xf32>
    %1005 = arith.addf %1003, %1004 : vector<4x8xf32>
    %1006 = arith.negf %1005 : vector<4x8xf32>
    %1007 = math.exp %1006 : vector<4x8xf32>
    %cst_195 = arith.constant 1.000000e+00 : f32
    %1008 = vector.broadcast %cst_195 : f32 to vector<4x8xf32>
    %1009 = arith.addf %1008, %1007 : vector<4x8xf32>
    %1010 = arith.divf %1008, %1009 : vector<4x8xf32>
    %1011 = vector.extract_strided_slice %991 {offsets = [0, 16], sizes = [4, 8], strides = [1, 1]} : vector<4x24xf32> to vector<4x8xf32>
    %1012 = vector.extract_strided_slice %994 {offsets = [0, 16], sizes = [4, 8], strides = [1, 1]} : vector<4x24xf32> to vector<4x8xf32>
    %1013 = arith.mulf %1002, %1012 : vector<4x8xf32>
    %1014 = arith.addf %1011, %1013 : vector<4x8xf32>
    %1015 = math.tanh %1014 : vector<4x8xf32>
    %cst_196 = arith.constant 1.000000e+00 : f32
    %1016 = vector.broadcast %cst_196 : f32 to vector<4x8xf32>
    %1017 = arith.subf %1016, %1010 : vector<4x8xf32>
    %1018 = arith.mulf %1017, %1015 : vector<4x8xf32>
    %1019 = arith.mulf %1010, %990 : vector<4x8xf32>
    %1020 = arith.addf %1018, %1019 : vector<4x8xf32>
    %1021 = vector.extract_strided_slice %7 {offsets = [116, 0], sizes = [4, 24], strides = [1, 1]} : vector<120x24xf32> to vector<4x24xf32>
    %cst_197 = arith.constant dense<0.000000e+00> : vector<4x24xf32>
    %1022 = tpu.matmul %1020, %0, %cst_197 {dimension_numbers = #tpu.dot_dimension_numbers<[1], [0], [0], [1], [0, 0, 1, 1], [], []>} : vector<4x8xf32>, vector<8x24xf32>, vector<4x24xf32> -> vector<4x24xf32>
    %1023 = vector.broadcast %1 : vector<1x24xf32> to vector<4x24xf32>
    %1024 = arith.addf %1022, %1023 : vector<4x24xf32>
    %1025 = vector.extract_strided_slice %1021 {offsets = [0, 0], sizes = [4, 8], strides = [1, 1]} : vector<4x24xf32> to vector<4x8xf32>
    %1026 = vector.extract_strided_slice %1024 {offsets = [0, 0], sizes = [4, 8], strides = [1, 1]} : vector<4x24xf32> to vector<4x8xf32>
    %1027 = arith.addf %1025, %1026 : vector<4x8xf32>
    %1028 = arith.negf %1027 : vector<4x8xf32>
    %1029 = math.exp %1028 : vector<4x8xf32>
    %cst_198 = arith.constant 1.000000e+00 : f32
    %1030 = vector.broadcast %cst_198 : f32 to vector<4x8xf32>
    %1031 = arith.addf %1030, %1029 : vector<4x8xf32>
    %1032 = arith.divf %1030, %1031 : vector<4x8xf32>
    %1033 = vector.extract_strided_slice %1021 {offsets = [0, 8], sizes = [4, 8], strides = [1, 1]} : vector<4x24xf32> to vector<4x8xf32>
    %1034 = vector.extract_strided_slice %1024 {offsets = [0, 8], sizes = [4, 8], strides = [1, 1]} : vector<4x24xf32> to vector<4x8xf32>
    %1035 = arith.addf %1033, %1034 : vector<4x8xf32>
    %1036 = arith.negf %1035 : vector<4x8xf32>
    %1037 = math.exp %1036 : vector<4x8xf32>
    %cst_199 = arith.constant 1.000000e+00 : f32
    %1038 = vector.broadcast %cst_199 : f32 to vector<4x8xf32>
    %1039 = arith.addf %1038, %1037 : vector<4x8xf32>
    %1040 = arith.divf %1038, %1039 : vector<4x8xf32>
    %1041 = vector.extract_strided_slice %1021 {offsets = [0, 16], sizes = [4, 8], strides = [1, 1]} : vector<4x24xf32> to vector<4x8xf32>
    %1042 = vector.extract_strided_slice %1024 {offsets = [0, 16], sizes = [4, 8], strides = [1, 1]} : vector<4x24xf32> to vector<4x8xf32>
    %1043 = arith.mulf %1032, %1042 : vector<4x8xf32>
    %1044 = arith.addf %1041, %1043 : vector<4x8xf32>
    %1045 = math.tanh %1044 : vector<4x8xf32>
    %cst_200 = arith.constant 1.000000e+00 : f32
    %1046 = vector.broadcast %cst_200 : f32 to vector<4x8xf32>
    %1047 = arith.subf %1046, %1040 : vector<4x8xf32>
    %1048 = arith.mulf %1047, %1045 : vector<4x8xf32>
    %1049 = arith.mulf %1040, %1020 : vector<4x8xf32>
    %1050 = arith.addf %1048, %1049 : vector<4x8xf32>
    %1051 = vector.shape_cast %1050 : vector<4x8xf32> to vector<4x1x8xf32>
    %1052 = vector.broadcast %1051 : vector<4x1x8xf32> to vector<4x5x8xf32>
    %1053 = arith.mulf %900, %1052 : vector<4x5x8xf32>
    %cst_201 = arith.constant dense<0.000000e+00> : vector<4x5xf32>
    %1054 = vector.multi_reduction <add>, %1053, %cst_201 [2] : vector<4x5x8xf32> to vector<4x5xf32>
    %1055 = math.tanh %1054 : vector<4x5xf32>
    %cst_202 = arith.constant 1.000000e+01 : f32
    %1056 = vector.broadcast %cst_202 : f32 to vector<4x5xf32>
    %1057 = arith.mulf %1056, %1055 : vector<4x5xf32>
    %cst_203 = arith.constant dense<0xFF800000> : vector<4xf32>
    %1058 = vector.multi_reduction <maximumf>, %1057, %cst_203 [1] : vector<4x5xf32> to vector<4xf32>
    %cst_204 = arith.constant 0xFF800000 : f32
    %1059 = vector.broadcast %cst_204 : f32 to vector<4xf32>
    %1060 = arith.maximumf %1059, %1058 : vector<4xf32>
    %1061 = vector.shape_cast %1060 : vector<4xf32> to vector<4x1xf32>
    %1062 = vector.broadcast %1061 : vector<4x1xf32> to vector<4x5xf32>
    %1063 = arith.subf %1057, %1062 : vector<4x5xf32>
    %1064 = math.exp %1063 : vector<4x5xf32>
    %cst_205 = arith.constant dense<0.000000e+00> : vector<4xf32>
    %1065 = vector.multi_reduction <add>, %1064, %cst_205 [1] : vector<4x5xf32> to vector<4xf32>
    %1066 = vector.shape_cast %1065 : vector<4xf32> to vector<4x1xf32>
    %1067 = vector.broadcast %1066 : vector<4x1xf32> to vector<4x5xf32>
    %1068 = arith.divf %1064, %1067 : vector<4x5xf32>
    %c5_206 = arith.constant 5 : index
    %c0_207 = arith.constant 0 : index
    %c0_208 = arith.constant 0 : index
    %1069 = vector.load %arg25[%c5_206, %c0_207, %c0_208] : memref<6x4x5xf32, #tpu.memory_space<vmem>>, vector<1x4x5xf32>
    %1070 = vector.shape_cast %1069 : vector<1x4x5xf32> to vector<4x5xf32>
    %1071 = vector.shape_cast %1068 : vector<4x5xf32> to vector<1x4x5xf32>
    tpu.vector_store %arg25[%c5_206, %c0_207, %c0_208], %1071 {strides = array<i32>} : memref<6x4x5xf32, #tpu.memory_space<vmem>>, vector<1x4x5xf32>,
    %1072 = vector.shape_cast %1068 : vector<4x5xf32> to vector<4x5x1xf32>
    %1073 = vector.broadcast %1072 : vector<4x5x1xf32> to vector<4x5x8xf32>
    %1074 = arith.mulf %900, %1073 : vector<4x5x8xf32>
    %cst_209 = arith.constant dense<0.000000e+00> : vector<4x8xf32>
    %1075 = vector.multi_reduction <add>, %1074, %cst_209 [1] : vector<4x5x8xf32> to vector<4x8xf32>
    %c20 = arith.constant 20 : index
    %c0_210 = arith.constant 0 : index
    %1076 = vector.load %arg27[%c20, %c0_210] : memref<24x8xf32, #tpu.memory_space<vmem>>, vector<4x8xf32>
    tpu.vector_store %arg27[%c20, %c0_210], %1075 {strides = array<i32>} : memref<24x8xf32, #tpu.memory_space<vmem>>, vector<4x8xf32>,
    %c0_211 = arith.constant 0 : index
    %c0_212 = arith.constant 0 : index
    %1077 = vector.load %arg8[%c0_211, %c0_212] : memref<20x60xf32, #tpu.memory_space<vmem>>, vector<20x60xf32>
    %c0_213 = arith.constant 0 : index
    %c0_214 = arith.constant 0 : index
    %1078 = vector.load %arg10[%c0_213, %c0_214] : memref<1x60xf32, #tpu.memory_space<vmem>>, vector<1x60xf32>
    %c0_215 = arith.constant 0 : index
    %c0_216 = arith.constant 0 : index
    %1079 = vector.load %arg27[%c0_215, %c0_216] : memref<24x8xf32, #tpu.memory_space<vmem>>, vector<24x8xf32>
    %c0_217 = arith.constant 0 : index
    %c0_218 = arith.constant 0 : index
    %1080 = vector.load %arg7[%c0_217, %c0_218] : memref<8x60xf32, #tpu.memory_space<vmem>>, vector<8x60xf32>
    %cst_219 = arith.constant dense<0.000000e+00> : vector<24x60xf32>
    %1081 = tpu.matmul %1079, %1080, %cst_219 {dimension_numbers = #tpu.dot_dimension_numbers<[1], [0], [0], [1], [0, 0, 1, 1], [], []>} : vector<24x8xf32>, vector<8x60xf32>, vector<24x60xf32> -> vector<24x60xf32>
    %c0_220 = arith.constant 0 : index
    %c0_221 = arith.constant 0 : index
    %1082 = vector.load %arg9[%c0_220, %c0_221] : memref<1x60xf32, #tpu.memory_space<vmem>>, vector<1x60xf32>
    %1083 = vector.broadcast %1082 : vector<1x60xf32> to vector<24x60xf32>
    %1084 = arith.addf %1081, %1083 : vector<24x60xf32>
    %cst_222 = arith.constant 0.000000e+00 : f32
    %1085 = vector.broadcast %cst_222 : f32 to vector<4x20xf32>
    %1086 = vector.extract_strided_slice %1084 {offsets = [0, 0], sizes = [4, 60], strides = [1, 1]} : vector<24x60xf32> to vector<4x60xf32>
    %cst_223 = arith.constant dense<0.000000e+00> : vector<4x60xf32>
    %1087 = tpu.matmul %1085, %1077, %cst_223 {dimension_numbers = #tpu.dot_dimension_numbers<[1], [0], [0], [1], [0, 0, 1, 1], [], []>} : vector<4x20xf32>, vector<20x60xf32>, vector<4x60xf32> -> vector<4x60xf32>
    %1088 = vector.broadcast %1078 : vector<1x60xf32> to vector<4x60xf32>
    %1089 = arith.addf %1087, %1088 : vector<4x60xf32>
    %1090 = vector.extract_strided_slice %1086 {offsets = [0, 0], sizes = [4, 20], strides = [1, 1]} : vector<4x60xf32> to vector<4x20xf32>
    %1091 = vector.extract_strided_slice %1089 {offsets = [0, 0], sizes = [4, 20], strides = [1, 1]} : vector<4x60xf32> to vector<4x20xf32>
    %1092 = arith.addf %1090, %1091 : vector<4x20xf32>
    %1093 = arith.negf %1092 : vector<4x20xf32>
    %1094 = math.exp %1093 : vector<4x20xf32>
    %cst_224 = arith.constant 1.000000e+00 : f32
    %1095 = vector.broadcast %cst_224 : f32 to vector<4x20xf32>
    %1096 = arith.addf %1095, %1094 : vector<4x20xf32>
    %1097 = arith.divf %1095, %1096 : vector<4x20xf32>
    %1098 = vector.extract_strided_slice %1086 {offsets = [0, 20], sizes = [4, 20], strides = [1, 1]} : vector<4x60xf32> to vector<4x20xf32>
    %1099 = vector.extract_strided_slice %1089 {offsets = [0, 20], sizes = [4, 20], strides = [1, 1]} : vector<4x60xf32> to vector<4x20xf32>
    %1100 = arith.addf %1098, %1099 : vector<4x20xf32>
    %1101 = arith.negf %1100 : vector<4x20xf32>
    %1102 = math.exp %1101 : vector<4x20xf32>
    %cst_225 = arith.constant 1.000000e+00 : f32
    %1103 = vector.broadcast %cst_225 : f32 to vector<4x20xf32>
    %1104 = arith.addf %1103, %1102 : vector<4x20xf32>
    %1105 = arith.divf %1103, %1104 : vector<4x20xf32>
    %1106 = vector.extract_strided_slice %1086 {offsets = [0, 40], sizes = [4, 20], strides = [1, 1]} : vector<4x60xf32> to vector<4x20xf32>
    %1107 = vector.extract_strided_slice %1089 {offsets = [0, 40], sizes = [4, 20], strides = [1, 1]} : vector<4x60xf32> to vector<4x20xf32>
    %1108 = arith.mulf %1097, %1107 : vector<4x20xf32>
    %1109 = arith.addf %1106, %1108 : vector<4x20xf32>
    %1110 = math.tanh %1109 : vector<4x20xf32>
    %cst_226 = arith.constant 1.000000e+00 : f32
    %1111 = vector.broadcast %cst_226 : f32 to vector<4x20xf32>
    %1112 = arith.subf %1111, %1105 : vector<4x20xf32>
    %1113 = arith.mulf %1112, %1110 : vector<4x20xf32>
    %1114 = arith.mulf %1105, %1085 : vector<4x20xf32>
    %1115 = arith.addf %1113, %1114 : vector<4x20xf32>
    %c0_227 = arith.constant 0 : index
    %c0_228 = arith.constant 0 : index
    %1116 = vector.load %arg28[%c0_227, %c0_228] : memref<24x20xf32, #tpu.memory_space<vmem>>, vector<4x20xf32>
    tpu.vector_store %arg28[%c0_227, %c0_228], %1115 {strides = array<i32>} : memref<24x20xf32, #tpu.memory_space<vmem>>, vector<4x20xf32>,
    %1117 = vector.extract_strided_slice %1084 {offsets = [4, 0], sizes = [4, 60], strides = [1, 1]} : vector<24x60xf32> to vector<4x60xf32>
    %cst_229 = arith.constant dense<0.000000e+00> : vector<4x60xf32>
    %1118 = tpu.matmul %1115, %1077, %cst_229 {dimension_numbers = #tpu.dot_dimension_numbers<[1], [0], [0], [1], [0, 0, 1, 1], [], []>} : vector<4x20xf32>, vector<20x60xf32>, vector<4x60xf32> -> vector<4x60xf32>
    %1119 = vector.broadcast %1078 : vector<1x60xf32> to vector<4x60xf32>
    %1120 = arith.addf %1118, %1119 : vector<4x60xf32>
    %1121 = vector.extract_strided_slice %1117 {offsets = [0, 0], sizes = [4, 20], strides = [1, 1]} : vector<4x60xf32> to vector<4x20xf32>
    %1122 = vector.extract_strided_slice %1120 {offsets = [0, 0], sizes = [4, 20], strides = [1, 1]} : vector<4x60xf32> to vector<4x20xf32>
    %1123 = arith.addf %1121, %1122 : vector<4x20xf32>
    %1124 = arith.negf %1123 : vector<4x20xf32>
    %1125 = math.exp %1124 : vector<4x20xf32>
    %cst_230 = arith.constant 1.000000e+00 : f32
    %1126 = vector.broadcast %cst_230 : f32 to vector<4x20xf32>
    %1127 = arith.addf %1126, %1125 : vector<4x20xf32>
    %1128 = arith.divf %1126, %1127 : vector<4x20xf32>
    %1129 = vector.extract_strided_slice %1117 {offsets = [0, 20], sizes = [4, 20], strides = [1, 1]} : vector<4x60xf32> to vector<4x20xf32>
    %1130 = vector.extract_strided_slice %1120 {offsets = [0, 20], sizes = [4, 20], strides = [1, 1]} : vector<4x60xf32> to vector<4x20xf32>
    %1131 = arith.addf %1129, %1130 : vector<4x20xf32>
    %1132 = arith.negf %1131 : vector<4x20xf32>
    %1133 = math.exp %1132 : vector<4x20xf32>
    %cst_231 = arith.constant 1.000000e+00 : f32
    %1134 = vector.broadcast %cst_231 : f32 to vector<4x20xf32>
    %1135 = arith.addf %1134, %1133 : vector<4x20xf32>
    %1136 = arith.divf %1134, %1135 : vector<4x20xf32>
    %1137 = vector.extract_strided_slice %1117 {offsets = [0, 40], sizes = [4, 20], strides = [1, 1]} : vector<4x60xf32> to vector<4x20xf32>
    %1138 = vector.extract_strided_slice %1120 {offsets = [0, 40], sizes = [4, 20], strides = [1, 1]} : vector<4x60xf32> to vector<4x20xf32>
    %1139 = arith.mulf %1128, %1138 : vector<4x20xf32>
    %1140 = arith.addf %1137, %1139 : vector<4x20xf32>
    %1141 = math.tanh %1140 : vector<4x20xf32>
    %cst_232 = arith.constant 1.000000e+00 : f32
    %1142 = vector.broadcast %cst_232 : f32 to vector<4x20xf32>
    %1143 = arith.subf %1142, %1136 : vector<4x20xf32>
    %1144 = arith.mulf %1143, %1141 : vector<4x20xf32>
    %1145 = arith.mulf %1136, %1115 : vector<4x20xf32>
    %1146 = arith.addf %1144, %1145 : vector<4x20xf32>
    %c4_233 = arith.constant 4 : index
    %c0_234 = arith.constant 0 : index
    %1147 = vector.load %arg28[%c4_233, %c0_234] : memref<24x20xf32, #tpu.memory_space<vmem>>, vector<4x20xf32>
    tpu.vector_store %arg28[%c4_233, %c0_234], %1146 {strides = array<i32>} : memref<24x20xf32, #tpu.memory_space<vmem>>, vector<4x20xf32>,
    %1148 = vector.extract_strided_slice %1084 {offsets = [8, 0], sizes = [4, 60], strides = [1, 1]} : vector<24x60xf32> to vector<4x60xf32>
    %cst_235 = arith.constant dense<0.000000e+00> : vector<4x60xf32>
    %1149 = tpu.matmul %1146, %1077, %cst_235 {dimension_numbers = #tpu.dot_dimension_numbers<[1], [0], [0], [1], [0, 0, 1, 1], [], []>} : vector<4x20xf32>, vector<20x60xf32>, vector<4x60xf32> -> vector<4x60xf32>
    %1150 = vector.broadcast %1078 : vector<1x60xf32> to vector<4x60xf32>
    %1151 = arith.addf %1149, %1150 : vector<4x60xf32>
    %1152 = vector.extract_strided_slice %1148 {offsets = [0, 0], sizes = [4, 20], strides = [1, 1]} : vector<4x60xf32> to vector<4x20xf32>
    %1153 = vector.extract_strided_slice %1151 {offsets = [0, 0], sizes = [4, 20], strides = [1, 1]} : vector<4x60xf32> to vector<4x20xf32>
    %1154 = arith.addf %1152, %1153 : vector<4x20xf32>
    %1155 = arith.negf %1154 : vector<4x20xf32>
    %1156 = math.exp %1155 : vector<4x20xf32>
    %cst_236 = arith.constant 1.000000e+00 : f32
    %1157 = vector.broadcast %cst_236 : f32 to vector<4x20xf32>
    %1158 = arith.addf %1157, %1156 : vector<4x20xf32>
    %1159 = arith.divf %1157, %1158 : vector<4x20xf32>
    %1160 = vector.extract_strided_slice %1148 {offsets = [0, 20], sizes = [4, 20], strides = [1, 1]} : vector<4x60xf32> to vector<4x20xf32>
    %1161 = vector.extract_strided_slice %1151 {offsets = [0, 20], sizes = [4, 20], strides = [1, 1]} : vector<4x60xf32> to vector<4x20xf32>
    %1162 = arith.addf %1160, %1161 : vector<4x20xf32>
    %1163 = arith.negf %1162 : vector<4x20xf32>
    %1164 = math.exp %1163 : vector<4x20xf32>
    %cst_237 = arith.constant 1.000000e+00 : f32
    %1165 = vector.broadcast %cst_237 : f32 to vector<4x20xf32>
    %1166 = arith.addf %1165, %1164 : vector<4x20xf32>
    %1167 = arith.divf %1165, %1166 : vector<4x20xf32>
    %1168 = vector.extract_strided_slice %1148 {offsets = [0, 40], sizes = [4, 20], strides = [1, 1]} : vector<4x60xf32> to vector<4x20xf32>
    %1169 = vector.extract_strided_slice %1151 {offsets = [0, 40], sizes = [4, 20], strides = [1, 1]} : vector<4x60xf32> to vector<4x20xf32>
    %1170 = arith.mulf %1159, %1169 : vector<4x20xf32>
    %1171 = arith.addf %1168, %1170 : vector<4x20xf32>
    %1172 = math.tanh %1171 : vector<4x20xf32>
    %cst_238 = arith.constant 1.000000e+00 : f32
    %1173 = vector.broadcast %cst_238 : f32 to vector<4x20xf32>
    %1174 = arith.subf %1173, %1167 : vector<4x20xf32>
    %1175 = arith.mulf %1174, %1172 : vector<4x20xf32>
    %1176 = arith.mulf %1167, %1146 : vector<4x20xf32>
    %1177 = arith.addf %1175, %1176 : vector<4x20xf32>
    %c8_239 = arith.constant 8 : index
    %c0_240 = arith.constant 0 : index
    %1178 = vector.load %arg28[%c8_239, %c0_240] : memref<24x20xf32, #tpu.memory_space<vmem>>, vector<4x20xf32>
    tpu.vector_store %arg28[%c8_239, %c0_240], %1177 {strides = array<i32>} : memref<24x20xf32, #tpu.memory_space<vmem>>, vector<4x20xf32>,
    %1179 = vector.extract_strided_slice %1084 {offsets = [12, 0], sizes = [4, 60], strides = [1, 1]} : vector<24x60xf32> to vector<4x60xf32>
    %cst_241 = arith.constant dense<0.000000e+00> : vector<4x60xf32>
    %1180 = tpu.matmul %1177, %1077, %cst_241 {dimension_numbers = #tpu.dot_dimension_numbers<[1], [0], [0], [1], [0, 0, 1, 1], [], []>} : vector<4x20xf32>, vector<20x60xf32>, vector<4x60xf32> -> vector<4x60xf32>
    %1181 = vector.broadcast %1078 : vector<1x60xf32> to vector<4x60xf32>
    %1182 = arith.addf %1180, %1181 : vector<4x60xf32>
    %1183 = vector.extract_strided_slice %1179 {offsets = [0, 0], sizes = [4, 20], strides = [1, 1]} : vector<4x60xf32> to vector<4x20xf32>
    %1184 = vector.extract_strided_slice %1182 {offsets = [0, 0], sizes = [4, 20], strides = [1, 1]} : vector<4x60xf32> to vector<4x20xf32>
    %1185 = arith.addf %1183, %1184 : vector<4x20xf32>
    %1186 = arith.negf %1185 : vector<4x20xf32>
    %1187 = math.exp %1186 : vector<4x20xf32>
    %cst_242 = arith.constant 1.000000e+00 : f32
    %1188 = vector.broadcast %cst_242 : f32 to vector<4x20xf32>
    %1189 = arith.addf %1188, %1187 : vector<4x20xf32>
    %1190 = arith.divf %1188, %1189 : vector<4x20xf32>
    %1191 = vector.extract_strided_slice %1179 {offsets = [0, 20], sizes = [4, 20], strides = [1, 1]} : vector<4x60xf32> to vector<4x20xf32>
    %1192 = vector.extract_strided_slice %1182 {offsets = [0, 20], sizes = [4, 20], strides = [1, 1]} : vector<4x60xf32> to vector<4x20xf32>
    %1193 = arith.addf %1191, %1192 : vector<4x20xf32>
    %1194 = arith.negf %1193 : vector<4x20xf32>
    %1195 = math.exp %1194 : vector<4x20xf32>
    %cst_243 = arith.constant 1.000000e+00 : f32
    %1196 = vector.broadcast %cst_243 : f32 to vector<4x20xf32>
    %1197 = arith.addf %1196, %1195 : vector<4x20xf32>
    %1198 = arith.divf %1196, %1197 : vector<4x20xf32>
    %1199 = vector.extract_strided_slice %1179 {offsets = [0, 40], sizes = [4, 20], strides = [1, 1]} : vector<4x60xf32> to vector<4x20xf32>
    %1200 = vector.extract_strided_slice %1182 {offsets = [0, 40], sizes = [4, 20], strides = [1, 1]} : vector<4x60xf32> to vector<4x20xf32>
    %1201 = arith.mulf %1190, %1200 : vector<4x20xf32>
    %1202 = arith.addf %1199, %1201 : vector<4x20xf32>
    %1203 = math.tanh %1202 : vector<4x20xf32>
    %cst_244 = arith.constant 1.000000e+00 : f32
    %1204 = vector.broadcast %cst_244 : f32 to vector<4x20xf32>
    %1205 = arith.subf %1204, %1198 : vector<4x20xf32>
    %1206 = arith.mulf %1205, %1203 : vector<4x20xf32>
    %1207 = arith.mulf %1198, %1177 : vector<4x20xf32>
    %1208 = arith.addf %1206, %1207 : vector<4x20xf32>
    %c12_245 = arith.constant 12 : index
    %c0_246 = arith.constant 0 : index
    %1209 = vector.load %arg28[%c12_245, %c0_246] : memref<24x20xf32, #tpu.memory_space<vmem>>, vector<4x20xf32>
    tpu.vector_store %arg28[%c12_245, %c0_246], %1208 {strides = array<i32>} : memref<24x20xf32, #tpu.memory_space<vmem>>, vector<4x20xf32>,
    %1210 = vector.extract_strided_slice %1084 {offsets = [16, 0], sizes = [4, 60], strides = [1, 1]} : vector<24x60xf32> to vector<4x60xf32>
    %cst_247 = arith.constant dense<0.000000e+00> : vector<4x60xf32>
    %1211 = tpu.matmul %1208, %1077, %cst_247 {dimension_numbers = #tpu.dot_dimension_numbers<[1], [0], [0], [1], [0, 0, 1, 1], [], []>} : vector<4x20xf32>, vector<20x60xf32>, vector<4x60xf32> -> vector<4x60xf32>
    %1212 = vector.broadcast %1078 : vector<1x60xf32> to vector<4x60xf32>
    %1213 = arith.addf %1211, %1212 : vector<4x60xf32>
    %1214 = vector.extract_strided_slice %1210 {offsets = [0, 0], sizes = [4, 20], strides = [1, 1]} : vector<4x60xf32> to vector<4x20xf32>
    %1215 = vector.extract_strided_slice %1213 {offsets = [0, 0], sizes = [4, 20], strides = [1, 1]} : vector<4x60xf32> to vector<4x20xf32>
    %1216 = arith.addf %1214, %1215 : vector<4x20xf32>
    %1217 = arith.negf %1216 : vector<4x20xf32>
    %1218 = math.exp %1217 : vector<4x20xf32>
    %cst_248 = arith.constant 1.000000e+00 : f32
    %1219 = vector.broadcast %cst_248 : f32 to vector<4x20xf32>
    %1220 = arith.addf %1219, %1218 : vector<4x20xf32>
    %1221 = arith.divf %1219, %1220 : vector<4x20xf32>
    %1222 = vector.extract_strided_slice %1210 {offsets = [0, 20], sizes = [4, 20], strides = [1, 1]} : vector<4x60xf32> to vector<4x20xf32>
    %1223 = vector.extract_strided_slice %1213 {offsets = [0, 20], sizes = [4, 20], strides = [1, 1]} : vector<4x60xf32> to vector<4x20xf32>
    %1224 = arith.addf %1222, %1223 : vector<4x20xf32>
    %1225 = arith.negf %1224 : vector<4x20xf32>
    %1226 = math.exp %1225 : vector<4x20xf32>
    %cst_249 = arith.constant 1.000000e+00 : f32
    %1227 = vector.broadcast %cst_249 : f32 to vector<4x20xf32>
    %1228 = arith.addf %1227, %1226 : vector<4x20xf32>
    %1229 = arith.divf %1227, %1228 : vector<4x20xf32>
    %1230 = vector.extract_strided_slice %1210 {offsets = [0, 40], sizes = [4, 20], strides = [1, 1]} : vector<4x60xf32> to vector<4x20xf32>
    %1231 = vector.extract_strided_slice %1213 {offsets = [0, 40], sizes = [4, 20], strides = [1, 1]} : vector<4x60xf32> to vector<4x20xf32>
    %1232 = arith.mulf %1221, %1231 : vector<4x20xf32>
    %1233 = arith.addf %1230, %1232 : vector<4x20xf32>
    %1234 = math.tanh %1233 : vector<4x20xf32>
    %cst_250 = arith.constant 1.000000e+00 : f32
    %1235 = vector.broadcast %cst_250 : f32 to vector<4x20xf32>
    %1236 = arith.subf %1235, %1229 : vector<4x20xf32>
    %1237 = arith.mulf %1236, %1234 : vector<4x20xf32>
    %1238 = arith.mulf %1229, %1208 : vector<4x20xf32>
    %1239 = arith.addf %1237, %1238 : vector<4x20xf32>
    %c16_251 = arith.constant 16 : index
    %c0_252 = arith.constant 0 : index
    %1240 = vector.load %arg28[%c16_251, %c0_252] : memref<24x20xf32, #tpu.memory_space<vmem>>, vector<4x20xf32>
    tpu.vector_store %arg28[%c16_251, %c0_252], %1239 {strides = array<i32>} : memref<24x20xf32, #tpu.memory_space<vmem>>, vector<4x20xf32>,
    %1241 = vector.extract_strided_slice %1084 {offsets = [20, 0], sizes = [4, 60], strides = [1, 1]} : vector<24x60xf32> to vector<4x60xf32>
    %cst_253 = arith.constant dense<0.000000e+00> : vector<4x60xf32>
    %1242 = tpu.matmul %1239, %1077, %cst_253 {dimension_numbers = #tpu.dot_dimension_numbers<[1], [0], [0], [1], [0, 0, 1, 1], [], []>} : vector<4x20xf32>, vector<20x60xf32>, vector<4x60xf32> -> vector<4x60xf32>
    %1243 = vector.broadcast %1078 : vector<1x60xf32> to vector<4x60xf32>
    %1244 = arith.addf %1242, %1243 : vector<4x60xf32>
    %1245 = vector.extract_strided_slice %1241 {offsets = [0, 0], sizes = [4, 20], strides = [1, 1]} : vector<4x60xf32> to vector<4x20xf32>
    %1246 = vector.extract_strided_slice %1244 {offsets = [0, 0], sizes = [4, 20], strides = [1, 1]} : vector<4x60xf32> to vector<4x20xf32>
    %1247 = arith.addf %1245, %1246 : vector<4x20xf32>
    %1248 = arith.negf %1247 : vector<4x20xf32>
    %1249 = math.exp %1248 : vector<4x20xf32>
    %cst_254 = arith.constant 1.000000e+00 : f32
    %1250 = vector.broadcast %cst_254 : f32 to vector<4x20xf32>
    %1251 = arith.addf %1250, %1249 : vector<4x20xf32>
    %1252 = arith.divf %1250, %1251 : vector<4x20xf32>
    %1253 = vector.extract_strided_slice %1241 {offsets = [0, 20], sizes = [4, 20], strides = [1, 1]} : vector<4x60xf32> to vector<4x20xf32>
    %1254 = vector.extract_strided_slice %1244 {offsets = [0, 20], sizes = [4, 20], strides = [1, 1]} : vector<4x60xf32> to vector<4x20xf32>
    %1255 = arith.addf %1253, %1254 : vector<4x20xf32>
    %1256 = arith.negf %1255 : vector<4x20xf32>
    %1257 = math.exp %1256 : vector<4x20xf32>
    %cst_255 = arith.constant 1.000000e+00 : f32
    %1258 = vector.broadcast %cst_255 : f32 to vector<4x20xf32>
    %1259 = arith.addf %1258, %1257 : vector<4x20xf32>
    %1260 = arith.divf %1258, %1259 : vector<4x20xf32>
    %1261 = vector.extract_strided_slice %1241 {offsets = [0, 40], sizes = [4, 20], strides = [1, 1]} : vector<4x60xf32> to vector<4x20xf32>
    %1262 = vector.extract_strided_slice %1244 {offsets = [0, 40], sizes = [4, 20], strides = [1, 1]} : vector<4x60xf32> to vector<4x20xf32>
    %1263 = arith.mulf %1252, %1262 : vector<4x20xf32>
    %1264 = arith.addf %1261, %1263 : vector<4x20xf32>
    %1265 = math.tanh %1264 : vector<4x20xf32>
    %cst_256 = arith.constant 1.000000e+00 : f32
    %1266 = vector.broadcast %cst_256 : f32 to vector<4x20xf32>
    %1267 = arith.subf %1266, %1260 : vector<4x20xf32>
    %1268 = arith.mulf %1267, %1265 : vector<4x20xf32>
    %1269 = arith.mulf %1260, %1239 : vector<4x20xf32>
    %1270 = arith.addf %1268, %1269 : vector<4x20xf32>
    %c20_257 = arith.constant 20 : index
    %c0_258 = arith.constant 0 : index
    %1271 = vector.load %arg28[%c20_257, %c0_258] : memref<24x20xf32, #tpu.memory_space<vmem>>, vector<4x20xf32>
    tpu.vector_store %arg28[%c20_257, %c0_258], %1270 {strides = array<i32>} : memref<24x20xf32, #tpu.memory_space<vmem>>, vector<4x20xf32>,
    %c0_259 = arith.constant 0 : index
    %c0_260 = arith.constant 0 : index
    %1272 = vector.load %arg28[%c0_259, %c0_260] : memref<24x20xf32, #tpu.memory_space<vmem>>, vector<24x20xf32>
    %c0_261 = arith.constant 0 : index
    %c0_262 = arith.constant 0 : index
    %1273 = vector.load %arg15[%c0_261, %c0_262] : memref<20x3xf32, #tpu.memory_space<vmem>>, vector<20x3xf32>
    %cst_263 = arith.constant dense<0.000000e+00> : vector<24x3xf32>
    %1274 = tpu.matmul %1272, %1273, %cst_263 {dimension_numbers = #tpu.dot_dimension_numbers<[1], [0], [0], [1], [0, 0, 1, 1], [], []>} : vector<24x20xf32>, vector<20x3xf32>, vector<24x3xf32> -> vector<24x3xf32>
    %c0_264 = arith.constant 0 : index
    %c0_265 = arith.constant 0 : index
    %1275 = vector.load %arg17[%c0_264, %c0_265] : memref<1x3xf32, #tpu.memory_space<vmem>>, vector<1x3xf32>
    %1276 = vector.broadcast %1275 : vector<1x3xf32> to vector<24x3xf32>
    %1277 = arith.addf %1274, %1276 : vector<24x3xf32>
    %c0_266 = arith.constant 0 : index
    %c0_267 = arith.constant 0 : index
    %1278 = vector.load %arg16[%c0_266, %c0_267] : memref<1x3xf32, #tpu.memory_space<vmem>>, vector<1x3xf32>
    %c0_268 = arith.constant 0 : index
    %c0_269 = arith.constant 0 : index
    %1279 = vector.load %arg18[%c0_268, %c0_269] : memref<1x3xf32, #tpu.memory_space<vmem>>, vector<1x3xf32>
    %cst_270 = arith.constant 0.000000e+00 : f32
    %1280 = vector.broadcast %cst_270 : f32 to vector<4x1xf32>
    %1281 = vector.extract_strided_slice %1277 {offsets = [0, 0], sizes = [4, 3], strides = [1, 1]} : vector<24x3xf32> to vector<4x3xf32>
    %1282 = vector.broadcast %1280 : vector<4x1xf32> to vector<4x3xf32>
    %1283 = vector.broadcast %1278 : vector<1x3xf32> to vector<4x3xf32>
    %1284 = arith.mulf %1282, %1283 : vector<4x3xf32>
    %1285 = vector.broadcast %1279 : vector<1x3xf32> to vector<4x3xf32>
    %1286 = arith.addf %1284, %1285 : vector<4x3xf32>
    %1287 = vector.extract_strided_slice %1281 {offsets = [0, 0], sizes = [4, 1], strides = [1, 1]} : vector<4x3xf32> to vector<4x1xf32>
    %1288 = vector.extract_strided_slice %1286 {offsets = [0, 0], sizes = [4, 1], strides = [1, 1]} : vector<4x3xf32> to vector<4x1xf32>
    %1289 = arith.addf %1287, %1288 : vector<4x1xf32>
    %1290 = arith.negf %1289 : vector<4x1xf32>
    %1291 = math.exp %1290 : vector<4x1xf32>
    %cst_271 = arith.constant 1.000000e+00 : f32
    %1292 = vector.broadcast %cst_271 : f32 to vector<4x1xf32>
    %1293 = arith.addf %1292, %1291 : vector<4x1xf32>
    %1294 = arith.divf %1292, %1293 : vector<4x1xf32>
    %1295 = vector.extract_strided_slice %1281 {offsets = [0, 1], sizes = [4, 1], strides = [1, 1]} : vector<4x3xf32> to vector<4x1xf32>
    %1296 = vector.extract_strided_slice %1286 {offsets = [0, 1], sizes = [4, 1], strides = [1, 1]} : vector<4x3xf32> to vector<4x1xf32>
    %1297 = arith.addf %1295, %1296 : vector<4x1xf32>
    %1298 = arith.negf %1297 : vector<4x1xf32>
    %1299 = math.exp %1298 : vector<4x1xf32>
    %cst_272 = arith.constant 1.000000e+00 : f32
    %1300 = vector.broadcast %cst_272 : f32 to vector<4x1xf32>
    %1301 = arith.addf %1300, %1299 : vector<4x1xf32>
    %1302 = arith.divf %1300, %1301 : vector<4x1xf32>
    %1303 = vector.extract_strided_slice %1281 {offsets = [0, 2], sizes = [4, 1], strides = [1, 1]} : vector<4x3xf32> to vector<4x1xf32>
    %1304 = vector.extract_strided_slice %1286 {offsets = [0, 2], sizes = [4, 1], strides = [1, 1]} : vector<4x3xf32> to vector<4x1xf32>
    %1305 = arith.mulf %1294, %1304 : vector<4x1xf32>
    %1306 = arith.addf %1303, %1305 : vector<4x1xf32>
    %1307 = math.tanh %1306 : vector<4x1xf32>
    %cst_273 = arith.constant 1.000000e+00 : f32
    %1308 = vector.broadcast %cst_273 : f32 to vector<4x1xf32>
    %1309 = arith.subf %1308, %1302 : vector<4x1xf32>
    %1310 = arith.mulf %1309, %1307 : vector<4x1xf32>
    %1311 = arith.mulf %1302, %1280 : vector<4x1xf32>
    %1312 = arith.addf %1310, %1311 : vector<4x1xf32>
    %c0_274 = arith.constant 0 : index
    %c0_275 = arith.constant 0 : index
    %1313 = vector.load %arg29[%c0_274, %c0_275] : memref<4x6xf32, #tpu.memory_space<vmem>>, vector<4x1xf32>
    tpu.vector_store %arg29[%c0_274, %c0_275], %1312 {strides = array<i32>} : memref<4x6xf32, #tpu.memory_space<vmem>>, vector<4x1xf32>,
    %1314 = vector.extract_strided_slice %1277 {offsets = [4, 0], sizes = [4, 3], strides = [1, 1]} : vector<24x3xf32> to vector<4x3xf32>
    %1315 = vector.broadcast %1312 : vector<4x1xf32> to vector<4x3xf32>
    %1316 = vector.broadcast %1278 : vector<1x3xf32> to vector<4x3xf32>
    %1317 = arith.mulf %1315, %1316 : vector<4x3xf32>
    %1318 = vector.broadcast %1279 : vector<1x3xf32> to vector<4x3xf32>
    %1319 = arith.addf %1317, %1318 : vector<4x3xf32>
    %1320 = vector.extract_strided_slice %1314 {offsets = [0, 0], sizes = [4, 1], strides = [1, 1]} : vector<4x3xf32> to vector<4x1xf32>
    %1321 = vector.extract_strided_slice %1319 {offsets = [0, 0], sizes = [4, 1], strides = [1, 1]} : vector<4x3xf32> to vector<4x1xf32>
    %1322 = arith.addf %1320, %1321 : vector<4x1xf32>
    %1323 = arith.negf %1322 : vector<4x1xf32>
    %1324 = math.exp %1323 : vector<4x1xf32>
    %cst_276 = arith.constant 1.000000e+00 : f32
    %1325 = vector.broadcast %cst_276 : f32 to vector<4x1xf32>
    %1326 = arith.addf %1325, %1324 : vector<4x1xf32>
    %1327 = arith.divf %1325, %1326 : vector<4x1xf32>
    %1328 = vector.extract_strided_slice %1314 {offsets = [0, 1], sizes = [4, 1], strides = [1, 1]} : vector<4x3xf32> to vector<4x1xf32>
    %1329 = vector.extract_strided_slice %1319 {offsets = [0, 1], sizes = [4, 1], strides = [1, 1]} : vector<4x3xf32> to vector<4x1xf32>
    %1330 = arith.addf %1328, %1329 : vector<4x1xf32>
    %1331 = arith.negf %1330 : vector<4x1xf32>
    %1332 = math.exp %1331 : vector<4x1xf32>
    %cst_277 = arith.constant 1.000000e+00 : f32
    %1333 = vector.broadcast %cst_277 : f32 to vector<4x1xf32>
    %1334 = arith.addf %1333, %1332 : vector<4x1xf32>
    %1335 = arith.divf %1333, %1334 : vector<4x1xf32>
    %1336 = vector.extract_strided_slice %1314 {offsets = [0, 2], sizes = [4, 1], strides = [1, 1]} : vector<4x3xf32> to vector<4x1xf32>
    %1337 = vector.extract_strided_slice %1319 {offsets = [0, 2], sizes = [4, 1], strides = [1, 1]} : vector<4x3xf32> to vector<4x1xf32>
    %1338 = arith.mulf %1327, %1337 : vector<4x1xf32>
    %1339 = arith.addf %1336, %1338 : vector<4x1xf32>
    %1340 = math.tanh %1339 : vector<4x1xf32>
    %cst_278 = arith.constant 1.000000e+00 : f32
    %1341 = vector.broadcast %cst_278 : f32 to vector<4x1xf32>
    %1342 = arith.subf %1341, %1335 : vector<4x1xf32>
    %1343 = arith.mulf %1342, %1340 : vector<4x1xf32>
    %1344 = arith.mulf %1335, %1312 : vector<4x1xf32>
    %1345 = arith.addf %1343, %1344 : vector<4x1xf32>
    %c0_279 = arith.constant 0 : index
    %c1_280 = arith.constant 1 : index
    %1346 = vector.load %arg29[%c0_279, %c1_280] : memref<4x6xf32, #tpu.memory_space<vmem>>, vector<4x1xf32>
    tpu.vector_store %arg29[%c0_279, %c1_280], %1345 {strides = array<i32>} : memref<4x6xf32, #tpu.memory_space<vmem>>, vector<4x1xf32>,
    %1347 = vector.extract_strided_slice %1277 {offsets = [8, 0], sizes = [4, 3], strides = [1, 1]} : vector<24x3xf32> to vector<4x3xf32>
    %1348 = vector.broadcast %1345 : vector<4x1xf32> to vector<4x3xf32>
    %1349 = vector.broadcast %1278 : vector<1x3xf32> to vector<4x3xf32>
    %1350 = arith.mulf %1348, %1349 : vector<4x3xf32>
    %1351 = vector.broadcast %1279 : vector<1x3xf32> to vector<4x3xf32>
    %1352 = arith.addf %1350, %1351 : vector<4x3xf32>
    %1353 = vector.extract_strided_slice %1347 {offsets = [0, 0], sizes = [4, 1], strides = [1, 1]} : vector<4x3xf32> to vector<4x1xf32>
    %1354 = vector.extract_strided_slice %1352 {offsets = [0, 0], sizes = [4, 1], strides = [1, 1]} : vector<4x3xf32> to vector<4x1xf32>
    %1355 = arith.addf %1353, %1354 : vector<4x1xf32>
    %1356 = arith.negf %1355 : vector<4x1xf32>
    %1357 = math.exp %1356 : vector<4x1xf32>
    %cst_281 = arith.constant 1.000000e+00 : f32
    %1358 = vector.broadcast %cst_281 : f32 to vector<4x1xf32>
    %1359 = arith.addf %1358, %1357 : vector<4x1xf32>
    %1360 = arith.divf %1358, %1359 : vector<4x1xf32>
    %1361 = vector.extract_strided_slice %1347 {offsets = [0, 1], sizes = [4, 1], strides = [1, 1]} : vector<4x3xf32> to vector<4x1xf32>
    %1362 = vector.extract_strided_slice %1352 {offsets = [0, 1], sizes = [4, 1], strides = [1, 1]} : vector<4x3xf32> to vector<4x1xf32>
    %1363 = arith.addf %1361, %1362 : vector<4x1xf32>
    %1364 = arith.negf %1363 : vector<4x1xf32>
    %1365 = math.exp %1364 : vector<4x1xf32>
    %cst_282 = arith.constant 1.000000e+00 : f32
    %1366 = vector.broadcast %cst_282 : f32 to vector<4x1xf32>
    %1367 = arith.addf %1366, %1365 : vector<4x1xf32>
    %1368 = arith.divf %1366, %1367 : vector<4x1xf32>
    %1369 = vector.extract_strided_slice %1347 {offsets = [0, 2], sizes = [4, 1], strides = [1, 1]} : vector<4x3xf32> to vector<4x1xf32>
    %1370 = vector.extract_strided_slice %1352 {offsets = [0, 2], sizes = [4, 1], strides = [1, 1]} : vector<4x3xf32> to vector<4x1xf32>
    %1371 = arith.mulf %1360, %1370 : vector<4x1xf32>
    %1372 = arith.addf %1369, %1371 : vector<4x1xf32>
    %1373 = math.tanh %1372 : vector<4x1xf32>
    %cst_283 = arith.constant 1.000000e+00 : f32
    %1374 = vector.broadcast %cst_283 : f32 to vector<4x1xf32>
    %1375 = arith.subf %1374, %1368 : vector<4x1xf32>
    %1376 = arith.mulf %1375, %1373 : vector<4x1xf32>
    %1377 = arith.mulf %1368, %1345 : vector<4x1xf32>
    %1378 = arith.addf %1376, %1377 : vector<4x1xf32>
    %c0_284 = arith.constant 0 : index
    %c2_285 = arith.constant 2 : index
    %1379 = vector.load %arg29[%c0_284, %c2_285] : memref<4x6xf32, #tpu.memory_space<vmem>>, vector<4x1xf32>
    tpu.vector_store %arg29[%c0_284, %c2_285], %1378 {strides = array<i32>} : memref<4x6xf32, #tpu.memory_space<vmem>>, vector<4x1xf32>,
    %1380 = vector.extract_strided_slice %1277 {offsets = [12, 0], sizes = [4, 3], strides = [1, 1]} : vector<24x3xf32> to vector<4x3xf32>
    %1381 = vector.broadcast %1378 : vector<4x1xf32> to vector<4x3xf32>
    %1382 = vector.broadcast %1278 : vector<1x3xf32> to vector<4x3xf32>
    %1383 = arith.mulf %1381, %1382 : vector<4x3xf32>
    %1384 = vector.broadcast %1279 : vector<1x3xf32> to vector<4x3xf32>
    %1385 = arith.addf %1383, %1384 : vector<4x3xf32>
    %1386 = vector.extract_strided_slice %1380 {offsets = [0, 0], sizes = [4, 1], strides = [1, 1]} : vector<4x3xf32> to vector<4x1xf32>
    %1387 = vector.extract_strided_slice %1385 {offsets = [0, 0], sizes = [4, 1], strides = [1, 1]} : vector<4x3xf32> to vector<4x1xf32>
    %1388 = arith.addf %1386, %1387 : vector<4x1xf32>
    %1389 = arith.negf %1388 : vector<4x1xf32>
    %1390 = math.exp %1389 : vector<4x1xf32>
    %cst_286 = arith.constant 1.000000e+00 : f32
    %1391 = vector.broadcast %cst_286 : f32 to vector<4x1xf32>
    %1392 = arith.addf %1391, %1390 : vector<4x1xf32>
    %1393 = arith.divf %1391, %1392 : vector<4x1xf32>
    %1394 = vector.extract_strided_slice %1380 {offsets = [0, 1], sizes = [4, 1], strides = [1, 1]} : vector<4x3xf32> to vector<4x1xf32>
    %1395 = vector.extract_strided_slice %1385 {offsets = [0, 1], sizes = [4, 1], strides = [1, 1]} : vector<4x3xf32> to vector<4x1xf32>
    %1396 = arith.addf %1394, %1395 : vector<4x1xf32>
    %1397 = arith.negf %1396 : vector<4x1xf32>
    %1398 = math.exp %1397 : vector<4x1xf32>
    %cst_287 = arith.constant 1.000000e+00 : f32
    %1399 = vector.broadcast %cst_287 : f32 to vector<4x1xf32>
    %1400 = arith.addf %1399, %1398 : vector<4x1xf32>
    %1401 = arith.divf %1399, %1400 : vector<4x1xf32>
    %1402 = vector.extract_strided_slice %1380 {offsets = [0, 2], sizes = [4, 1], strides = [1, 1]} : vector<4x3xf32> to vector<4x1xf32>
    %1403 = vector.extract_strided_slice %1385 {offsets = [0, 2], sizes = [4, 1], strides = [1, 1]} : vector<4x3xf32> to vector<4x1xf32>
    %1404 = arith.mulf %1393, %1403 : vector<4x1xf32>
    %1405 = arith.addf %1402, %1404 : vector<4x1xf32>
    %1406 = math.tanh %1405 : vector<4x1xf32>
    %cst_288 = arith.constant 1.000000e+00 : f32
    %1407 = vector.broadcast %cst_288 : f32 to vector<4x1xf32>
    %1408 = arith.subf %1407, %1401 : vector<4x1xf32>
    %1409 = arith.mulf %1408, %1406 : vector<4x1xf32>
    %1410 = arith.mulf %1401, %1378 : vector<4x1xf32>
    %1411 = arith.addf %1409, %1410 : vector<4x1xf32>
    %c0_289 = arith.constant 0 : index
    %c3_290 = arith.constant 3 : index
    %1412 = vector.load %arg29[%c0_289, %c3_290] : memref<4x6xf32, #tpu.memory_space<vmem>>, vector<4x1xf32>
    tpu.vector_store %arg29[%c0_289, %c3_290], %1411 {strides = array<i32>} : memref<4x6xf32, #tpu.memory_space<vmem>>, vector<4x1xf32>,
    %1413 = vector.extract_strided_slice %1277 {offsets = [16, 0], sizes = [4, 3], strides = [1, 1]} : vector<24x3xf32> to vector<4x3xf32>
    %1414 = vector.broadcast %1411 : vector<4x1xf32> to vector<4x3xf32>
    %1415 = vector.broadcast %1278 : vector<1x3xf32> to vector<4x3xf32>
    %1416 = arith.mulf %1414, %1415 : vector<4x3xf32>
    %1417 = vector.broadcast %1279 : vector<1x3xf32> to vector<4x3xf32>
    %1418 = arith.addf %1416, %1417 : vector<4x3xf32>
    %1419 = vector.extract_strided_slice %1413 {offsets = [0, 0], sizes = [4, 1], strides = [1, 1]} : vector<4x3xf32> to vector<4x1xf32>
    %1420 = vector.extract_strided_slice %1418 {offsets = [0, 0], sizes = [4, 1], strides = [1, 1]} : vector<4x3xf32> to vector<4x1xf32>
    %1421 = arith.addf %1419, %1420 : vector<4x1xf32>
    %1422 = arith.negf %1421 : vector<4x1xf32>
    %1423 = math.exp %1422 : vector<4x1xf32>
    %cst_291 = arith.constant 1.000000e+00 : f32
    %1424 = vector.broadcast %cst_291 : f32 to vector<4x1xf32>
    %1425 = arith.addf %1424, %1423 : vector<4x1xf32>
    %1426 = arith.divf %1424, %1425 : vector<4x1xf32>
    %1427 = vector.extract_strided_slice %1413 {offsets = [0, 1], sizes = [4, 1], strides = [1, 1]} : vector<4x3xf32> to vector<4x1xf32>
    %1428 = vector.extract_strided_slice %1418 {offsets = [0, 1], sizes = [4, 1], strides = [1, 1]} : vector<4x3xf32> to vector<4x1xf32>
    %1429 = arith.addf %1427, %1428 : vector<4x1xf32>
    %1430 = arith.negf %1429 : vector<4x1xf32>
    %1431 = math.exp %1430 : vector<4x1xf32>
    %cst_292 = arith.constant 1.000000e+00 : f32
    %1432 = vector.broadcast %cst_292 : f32 to vector<4x1xf32>
    %1433 = arith.addf %1432, %1431 : vector<4x1xf32>
    %1434 = arith.divf %1432, %1433 : vector<4x1xf32>
    %1435 = vector.extract_strided_slice %1413 {offsets = [0, 2], sizes = [4, 1], strides = [1, 1]} : vector<4x3xf32> to vector<4x1xf32>
    %1436 = vector.extract_strided_slice %1418 {offsets = [0, 2], sizes = [4, 1], strides = [1, 1]} : vector<4x3xf32> to vector<4x1xf32>
    %1437 = arith.mulf %1426, %1436 : vector<4x1xf32>
    %1438 = arith.addf %1435, %1437 : vector<4x1xf32>
    %1439 = math.tanh %1438 : vector<4x1xf32>
    %cst_293 = arith.constant 1.000000e+00 : f32
    %1440 = vector.broadcast %cst_293 : f32 to vector<4x1xf32>
    %1441 = arith.subf %1440, %1434 : vector<4x1xf32>
    %1442 = arith.mulf %1441, %1439 : vector<4x1xf32>
    %1443 = arith.mulf %1434, %1411 : vector<4x1xf32>
    %1444 = arith.addf %1442, %1443 : vector<4x1xf32>
    %c0_294 = arith.constant 0 : index
    %c4_295 = arith.constant 4 : index
    %1445 = vector.load %arg29[%c0_294, %c4_295] : memref<4x6xf32, #tpu.memory_space<vmem>>, vector<4x1xf32>
    tpu.vector_store %arg29[%c0_294, %c4_295], %1444 {strides = array<i32>} : memref<4x6xf32, #tpu.memory_space<vmem>>, vector<4x1xf32>,
    %1446 = vector.extract_strided_slice %1277 {offsets = [20, 0], sizes = [4, 3], strides = [1, 1]} : vector<24x3xf32> to vector<4x3xf32>
    %1447 = vector.broadcast %1444 : vector<4x1xf32> to vector<4x3xf32>
    %1448 = vector.broadcast %1278 : vector<1x3xf32> to vector<4x3xf32>
    %1449 = arith.mulf %1447, %1448 : vector<4x3xf32>
    %1450 = vector.broadcast %1279 : vector<1x3xf32> to vector<4x3xf32>
    %1451 = arith.addf %1449, %1450 : vector<4x3xf32>
    %1452 = vector.extract_strided_slice %1446 {offsets = [0, 0], sizes = [4, 1], strides = [1, 1]} : vector<4x3xf32> to vector<4x1xf32>
    %1453 = vector.extract_strided_slice %1451 {offsets = [0, 0], sizes = [4, 1], strides = [1, 1]} : vector<4x3xf32> to vector<4x1xf32>
    %1454 = arith.addf %1452, %1453 : vector<4x1xf32>
    %1455 = arith.negf %1454 : vector<4x1xf32>
    %1456 = math.exp %1455 : vector<4x1xf32>
    %cst_296 = arith.constant 1.000000e+00 : f32
    %1457 = vector.broadcast %cst_296 : f32 to vector<4x1xf32>
    %1458 = arith.addf %1457, %1456 : vector<4x1xf32>
    %1459 = arith.divf %1457, %1458 : vector<4x1xf32>
    %1460 = vector.extract_strided_slice %1446 {offsets = [0, 1], sizes = [4, 1], strides = [1, 1]} : vector<4x3xf32> to vector<4x1xf32>
    %1461 = vector.extract_strided_slice %1451 {offsets = [0, 1], sizes = [4, 1], strides = [1, 1]} : vector<4x3xf32> to vector<4x1xf32>
    %1462 = arith.addf %1460, %1461 : vector<4x1xf32>
    %1463 = arith.negf %1462 : vector<4x1xf32>
    %1464 = math.exp %1463 : vector<4x1xf32>
    %cst_297 = arith.constant 1.000000e+00 : f32
    %1465 = vector.broadcast %cst_297 : f32 to vector<4x1xf32>
    %1466 = arith.addf %1465, %1464 : vector<4x1xf32>
    %1467 = arith.divf %1465, %1466 : vector<4x1xf32>
    %1468 = vector.extract_strided_slice %1446 {offsets = [0, 2], sizes = [4, 1], strides = [1, 1]} : vector<4x3xf32> to vector<4x1xf32>
    %1469 = vector.extract_strided_slice %1451 {offsets = [0, 2], sizes = [4, 1], strides = [1, 1]} : vector<4x3xf32> to vector<4x1xf32>
    %1470 = arith.mulf %1459, %1469 : vector<4x1xf32>
    %1471 = arith.addf %1468, %1470 : vector<4x1xf32>
    %1472 = math.tanh %1471 : vector<4x1xf32>
    %cst_298 = arith.constant 1.000000e+00 : f32
    %1473 = vector.broadcast %cst_298 : f32 to vector<4x1xf32>
    %1474 = arith.subf %1473, %1467 : vector<4x1xf32>
    %1475 = arith.mulf %1474, %1472 : vector<4x1xf32>
    %1476 = arith.mulf %1467, %1444 : vector<4x1xf32>
    %1477 = arith.addf %1475, %1476 : vector<4x1xf32>
    %c0_299 = arith.constant 0 : index
    %c5_300 = arith.constant 5 : index
    %1478 = vector.load %arg29[%c0_299, %c5_300] : memref<4x6xf32, #tpu.memory_space<vmem>>, vector<4x1xf32>
    tpu.vector_store %arg29[%c0_299, %c5_300], %1477 {strides = array<i32>} : memref<4x6xf32, #tpu.memory_space<vmem>>, vector<4x1xf32>,
    %c0_301 = arith.constant 0 : index
    %c0_302 = arith.constant 0 : index
    %1479 = vector.load %arg29[%c0_301, %c0_302] : memref<4x6xf32, #tpu.memory_space<vmem>>, vector<4x6xf32>
    %cst_303 = arith.constant dense<0xFF800000> : vector<4xf32>
    %1480 = vector.multi_reduction <maximumf>, %1479, %cst_303 [1] : vector<4x6xf32> to vector<4xf32>
    %cst_304 = arith.constant 0xFF800000 : f32
    %1481 = vector.broadcast %cst_304 : f32 to vector<4xf32>
    %1482 = arith.maximumf %1481, %1480 : vector<4xf32>
    %1483 = vector.shape_cast %1482 : vector<4xf32> to vector<4x1xf32>
    %1484 = vector.broadcast %1483 : vector<4x1xf32> to vector<4x6xf32>
    %1485 = arith.subf %1479, %1484 : vector<4x6xf32>
    %1486 = math.exp %1485 : vector<4x6xf32>
    %cst_305 = arith.constant dense<0.000000e+00> : vector<4xf32>
    %1487 = vector.multi_reduction <add>, %1486, %cst_305 [1] : vector<4x6xf32> to vector<4xf32>
    %1488 = vector.shape_cast %1487 : vector<4xf32> to vector<4x1xf32>
    %1489 = vector.broadcast %1488 : vector<4x1xf32> to vector<4x6xf32>
    %1490 = arith.divf %1486, %1489 : vector<4x6xf32>
    %1491 = tpu.transpose %1490, [1, 0] : vector<4x6xf32> -> vector<6x4xf32>
    %c0_306 = arith.constant 0 : index
    %c0_307 = arith.constant 0 : index
    %1492 = vector.load %arg26[%c0_306, %c0_307] : memref<6x4xf32, #tpu.memory_space<vmem>>, vector<6x4xf32>
    tpu.vector_store %arg26[%c0_306, %c0_307], %1491 {strides = array<i32>} : memref<6x4xf32, #tpu.memory_space<vmem>>, vector<6x4xf32>,
    %c0_308 = arith.constant 0 : index
    %c0_309 = arith.constant 0 : index
    %1493 = vector.load %arg12[%c0_308, %c0_309] : memref<8x24xf32, #tpu.memory_space<vmem>>, vector<8x24xf32>
    %c0_310 = arith.constant 0 : index
    %c0_311 = arith.constant 0 : index
    %1494 = vector.load %arg14[%c0_310, %c0_311] : memref<1x24xf32, #tpu.memory_space<vmem>>, vector<1x24xf32>
    %c0_312 = arith.constant 0 : index
    %c0_313 = arith.constant 0 : index
    %1495 = vector.load %arg13[%c0_312, %c0_313] : memref<1x24xf32, #tpu.memory_space<vmem>>, vector<1x24xf32>
    %c0_314 = arith.constant 0 : index
    %c0_315 = arith.constant 0 : index
    %1496 = vector.load %arg11[%c0_314, %c0_315] : memref<20x24xf32, #tpu.memory_space<vmem>>, vector<20x24xf32>
    %cst_316 = arith.constant dense<0.000000e+00> : vector<24x24xf32>
    %1497 = tpu.matmul %1272, %1496, %cst_316 {dimension_numbers = #tpu.dot_dimension_numbers<[1], [0], [0], [1], [0, 0, 1, 1], [], []>} : vector<24x20xf32>, vector<20x24xf32>, vector<24x24xf32> -> vector<24x24xf32>
    %cst_317 = arith.constant 0.000000e+00 : f32
    %1498 = vector.broadcast %cst_317 : f32 to vector<4x8xf32>
    %1499 = vector.extract_strided_slice %1490 {offsets = [0, 0], sizes = [4, 1], strides = [1, 1]} : vector<4x6xf32> to vector<4x1xf32>
    %1500 = vector.extract_strided_slice %1497 {offsets = [0, 0], sizes = [4, 24], strides = [1, 1]} : vector<24x24xf32> to vector<4x24xf32>
    %1501 = vector.broadcast %1499 : vector<4x1xf32> to vector<4x24xf32>
    %1502 = arith.mulf %1500, %1501 : vector<4x24xf32>
    %1503 = vector.broadcast %1495 : vector<1x24xf32> to vector<4x24xf32>
    %1504 = arith.addf %1502, %1503 : vector<4x24xf32>
    %cst_318 = arith.constant dense<0.000000e+00> : vector<4x24xf32>
    %1505 = tpu.matmul %1498, %1493, %cst_318 {dimension_numbers = #tpu.dot_dimension_numbers<[1], [0], [0], [1], [0, 0, 1, 1], [], []>} : vector<4x8xf32>, vector<8x24xf32>, vector<4x24xf32> -> vector<4x24xf32>
    %1506 = vector.broadcast %1494 : vector<1x24xf32> to vector<4x24xf32>
    %1507 = arith.addf %1505, %1506 : vector<4x24xf32>
    %1508 = vector.extract_strided_slice %1504 {offsets = [0, 0], sizes = [4, 8], strides = [1, 1]} : vector<4x24xf32> to vector<4x8xf32>
    %1509 = vector.extract_strided_slice %1507 {offsets = [0, 0], sizes = [4, 8], strides = [1, 1]} : vector<4x24xf32> to vector<4x8xf32>
    %1510 = arith.addf %1508, %1509 : vector<4x8xf32>
    %1511 = arith.negf %1510 : vector<4x8xf32>
    %1512 = math.exp %1511 : vector<4x8xf32>
    %cst_319 = arith.constant 1.000000e+00 : f32
    %1513 = vector.broadcast %cst_319 : f32 to vector<4x8xf32>
    %1514 = arith.addf %1513, %1512 : vector<4x8xf32>
    %1515 = arith.divf %1513, %1514 : vector<4x8xf32>
    %1516 = vector.extract_strided_slice %1504 {offsets = [0, 8], sizes = [4, 8], strides = [1, 1]} : vector<4x24xf32> to vector<4x8xf32>
    %1517 = vector.extract_strided_slice %1507 {offsets = [0, 8], sizes = [4, 8], strides = [1, 1]} : vector<4x24xf32> to vector<4x8xf32>
    %1518 = arith.addf %1516, %1517 : vector<4x8xf32>
    %1519 = arith.negf %1518 : vector<4x8xf32>
    %1520 = math.exp %1519 : vector<4x8xf32>
    %cst_320 = arith.constant 1.000000e+00 : f32
    %1521 = vector.broadcast %cst_320 : f32 to vector<4x8xf32>
    %1522 = arith.addf %1521, %1520 : vector<4x8xf32>
    %1523 = arith.divf %1521, %1522 : vector<4x8xf32>
    %1524 = vector.extract_strided_slice %1504 {offsets = [0, 16], sizes = [4, 8], strides = [1, 1]} : vector<4x24xf32> to vector<4x8xf32>
    %1525 = vector.extract_strided_slice %1507 {offsets = [0, 16], sizes = [4, 8], strides = [1, 1]} : vector<4x24xf32> to vector<4x8xf32>
    %1526 = arith.mulf %1515, %1525 : vector<4x8xf32>
    %1527 = arith.addf %1524, %1526 : vector<4x8xf32>
    %1528 = math.tanh %1527 : vector<4x8xf32>
    %cst_321 = arith.constant 1.000000e+00 : f32
    %1529 = vector.broadcast %cst_321 : f32 to vector<4x8xf32>
    %1530 = arith.subf %1529, %1523 : vector<4x8xf32>
    %1531 = arith.mulf %1530, %1528 : vector<4x8xf32>
    %1532 = arith.mulf %1523, %1498 : vector<4x8xf32>
    %1533 = arith.addf %1531, %1532 : vector<4x8xf32>
    %1534 = vector.extract_strided_slice %1490 {offsets = [0, 1], sizes = [4, 1], strides = [1, 1]} : vector<4x6xf32> to vector<4x1xf32>
    %1535 = vector.extract_strided_slice %1497 {offsets = [4, 0], sizes = [4, 24], strides = [1, 1]} : vector<24x24xf32> to vector<4x24xf32>
    %1536 = vector.broadcast %1534 : vector<4x1xf32> to vector<4x24xf32>
    %1537 = arith.mulf %1535, %1536 : vector<4x24xf32>
    %1538 = vector.broadcast %1495 : vector<1x24xf32> to vector<4x24xf32>
    %1539 = arith.addf %1537, %1538 : vector<4x24xf32>
    %cst_322 = arith.constant dense<0.000000e+00> : vector<4x24xf32>
    %1540 = tpu.matmul %1533, %1493, %cst_322 {dimension_numbers = #tpu.dot_dimension_numbers<[1], [0], [0], [1], [0, 0, 1, 1], [], []>} : vector<4x8xf32>, vector<8x24xf32>, vector<4x24xf32> -> vector<4x24xf32>
    %1541 = vector.broadcast %1494 : vector<1x24xf32> to vector<4x24xf32>
    %1542 = arith.addf %1540, %1541 : vector<4x24xf32>
    %1543 = vector.extract_strided_slice %1539 {offsets = [0, 0], sizes = [4, 8], strides = [1, 1]} : vector<4x24xf32> to vector<4x8xf32>
    %1544 = vector.extract_strided_slice %1542 {offsets = [0, 0], sizes = [4, 8], strides = [1, 1]} : vector<4x24xf32> to vector<4x8xf32>
    %1545 = arith.addf %1543, %1544 : vector<4x8xf32>
    %1546 = arith.negf %1545 : vector<4x8xf32>
    %1547 = math.exp %1546 : vector<4x8xf32>
    %cst_323 = arith.constant 1.000000e+00 : f32
    %1548 = vector.broadcast %cst_323 : f32 to vector<4x8xf32>
    %1549 = arith.addf %1548, %1547 : vector<4x8xf32>
    %1550 = arith.divf %1548, %1549 : vector<4x8xf32>
    %1551 = vector.extract_strided_slice %1539 {offsets = [0, 8], sizes = [4, 8], strides = [1, 1]} : vector<4x24xf32> to vector<4x8xf32>
    %1552 = vector.extract_strided_slice %1542 {offsets = [0, 8], sizes = [4, 8], strides = [1, 1]} : vector<4x24xf32> to vector<4x8xf32>
    %1553 = arith.addf %1551, %1552 : vector<4x8xf32>
    %1554 = arith.negf %1553 : vector<4x8xf32>
    %1555 = math.exp %1554 : vector<4x8xf32>
    %cst_324 = arith.constant 1.000000e+00 : f32
    %1556 = vector.broadcast %cst_324 : f32 to vector<4x8xf32>
    %1557 = arith.addf %1556, %1555 : vector<4x8xf32>
    %1558 = arith.divf %1556, %1557 : vector<4x8xf32>
    %1559 = vector.extract_strided_slice %1539 {offsets = [0, 16], sizes = [4, 8], strides = [1, 1]} : vector<4x24xf32> to vector<4x8xf32>
    %1560 = vector.extract_strided_slice %1542 {offsets = [0, 16], sizes = [4, 8], strides = [1, 1]} : vector<4x24xf32> to vector<4x8xf32>
    %1561 = arith.mulf %1550, %1560 : vector<4x8xf32>
    %1562 = arith.addf %1559, %1561 : vector<4x8xf32>
    %1563 = math.tanh %1562 : vector<4x8xf32>
    %cst_325 = arith.constant 1.000000e+00 : f32
    %1564 = vector.broadcast %cst_325 : f32 to vector<4x8xf32>
    %1565 = arith.subf %1564, %1558 : vector<4x8xf32>
    %1566 = arith.mulf %1565, %1563 : vector<4x8xf32>
    %1567 = arith.mulf %1558, %1533 : vector<4x8xf32>
    %1568 = arith.addf %1566, %1567 : vector<4x8xf32>
    %1569 = vector.extract_strided_slice %1490 {offsets = [0, 2], sizes = [4, 1], strides = [1, 1]} : vector<4x6xf32> to vector<4x1xf32>
    %1570 = vector.extract_strided_slice %1497 {offsets = [8, 0], sizes = [4, 24], strides = [1, 1]} : vector<24x24xf32> to vector<4x24xf32>
    %1571 = vector.broadcast %1569 : vector<4x1xf32> to vector<4x24xf32>
    %1572 = arith.mulf %1570, %1571 : vector<4x24xf32>
    %1573 = vector.broadcast %1495 : vector<1x24xf32> to vector<4x24xf32>
    %1574 = arith.addf %1572, %1573 : vector<4x24xf32>
    %cst_326 = arith.constant dense<0.000000e+00> : vector<4x24xf32>
    %1575 = tpu.matmul %1568, %1493, %cst_326 {dimension_numbers = #tpu.dot_dimension_numbers<[1], [0], [0], [1], [0, 0, 1, 1], [], []>} : vector<4x8xf32>, vector<8x24xf32>, vector<4x24xf32> -> vector<4x24xf32>
    %1576 = vector.broadcast %1494 : vector<1x24xf32> to vector<4x24xf32>
    %1577 = arith.addf %1575, %1576 : vector<4x24xf32>
    %1578 = vector.extract_strided_slice %1574 {offsets = [0, 0], sizes = [4, 8], strides = [1, 1]} : vector<4x24xf32> to vector<4x8xf32>
    %1579 = vector.extract_strided_slice %1577 {offsets = [0, 0], sizes = [4, 8], strides = [1, 1]} : vector<4x24xf32> to vector<4x8xf32>
    %1580 = arith.addf %1578, %1579 : vector<4x8xf32>
    %1581 = arith.negf %1580 : vector<4x8xf32>
    %1582 = math.exp %1581 : vector<4x8xf32>
    %cst_327 = arith.constant 1.000000e+00 : f32
    %1583 = vector.broadcast %cst_327 : f32 to vector<4x8xf32>
    %1584 = arith.addf %1583, %1582 : vector<4x8xf32>
    %1585 = arith.divf %1583, %1584 : vector<4x8xf32>
    %1586 = vector.extract_strided_slice %1574 {offsets = [0, 8], sizes = [4, 8], strides = [1, 1]} : vector<4x24xf32> to vector<4x8xf32>
    %1587 = vector.extract_strided_slice %1577 {offsets = [0, 8], sizes = [4, 8], strides = [1, 1]} : vector<4x24xf32> to vector<4x8xf32>
    %1588 = arith.addf %1586, %1587 : vector<4x8xf32>
    %1589 = arith.negf %1588 : vector<4x8xf32>
    %1590 = math.exp %1589 : vector<4x8xf32>
    %cst_328 = arith.constant 1.000000e+00 : f32
    %1591 = vector.broadcast %cst_328 : f32 to vector<4x8xf32>
    %1592 = arith.addf %1591, %1590 : vector<4x8xf32>
    %1593 = arith.divf %1591, %1592 : vector<4x8xf32>
    %1594 = vector.extract_strided_slice %1574 {offsets = [0, 16], sizes = [4, 8], strides = [1, 1]} : vector<4x24xf32> to vector<4x8xf32>
    %1595 = vector.extract_strided_slice %1577 {offsets = [0, 16], sizes = [4, 8], strides = [1, 1]} : vector<4x24xf32> to vector<4x8xf32>
    %1596 = arith.mulf %1585, %1595 : vector<4x8xf32>
    %1597 = arith.addf %1594, %1596 : vector<4x8xf32>
    %1598 = math.tanh %1597 : vector<4x8xf32>
    %cst_329 = arith.constant 1.000000e+00 : f32
    %1599 = vector.broadcast %cst_329 : f32 to vector<4x8xf32>
    %1600 = arith.subf %1599, %1593 : vector<4x8xf32>
    %1601 = arith.mulf %1600, %1598 : vector<4x8xf32>
    %1602 = arith.mulf %1593, %1568 : vector<4x8xf32>
    %1603 = arith.addf %1601, %1602 : vector<4x8xf32>
    %1604 = vector.extract_strided_slice %1490 {offsets = [0, 3], sizes = [4, 1], strides = [1, 1]} : vector<4x6xf32> to vector<4x1xf32>
    %1605 = vector.extract_strided_slice %1497 {offsets = [12, 0], sizes = [4, 24], strides = [1, 1]} : vector<24x24xf32> to vector<4x24xf32>
    %1606 = vector.broadcast %1604 : vector<4x1xf32> to vector<4x24xf32>
    %1607 = arith.mulf %1605, %1606 : vector<4x24xf32>
    %1608 = vector.broadcast %1495 : vector<1x24xf32> to vector<4x24xf32>
    %1609 = arith.addf %1607, %1608 : vector<4x24xf32>
    %cst_330 = arith.constant dense<0.000000e+00> : vector<4x24xf32>
    %1610 = tpu.matmul %1603, %1493, %cst_330 {dimension_numbers = #tpu.dot_dimension_numbers<[1], [0], [0], [1], [0, 0, 1, 1], [], []>} : vector<4x8xf32>, vector<8x24xf32>, vector<4x24xf32> -> vector<4x24xf32>
    %1611 = vector.broadcast %1494 : vector<1x24xf32> to vector<4x24xf32>
    %1612 = arith.addf %1610, %1611 : vector<4x24xf32>
    %1613 = vector.extract_strided_slice %1609 {offsets = [0, 0], sizes = [4, 8], strides = [1, 1]} : vector<4x24xf32> to vector<4x8xf32>
    %1614 = vector.extract_strided_slice %1612 {offsets = [0, 0], sizes = [4, 8], strides = [1, 1]} : vector<4x24xf32> to vector<4x8xf32>
    %1615 = arith.addf %1613, %1614 : vector<4x8xf32>
    %1616 = arith.negf %1615 : vector<4x8xf32>
    %1617 = math.exp %1616 : vector<4x8xf32>
    %cst_331 = arith.constant 1.000000e+00 : f32
    %1618 = vector.broadcast %cst_331 : f32 to vector<4x8xf32>
    %1619 = arith.addf %1618, %1617 : vector<4x8xf32>
    %1620 = arith.divf %1618, %1619 : vector<4x8xf32>
    %1621 = vector.extract_strided_slice %1609 {offsets = [0, 8], sizes = [4, 8], strides = [1, 1]} : vector<4x24xf32> to vector<4x8xf32>
    %1622 = vector.extract_strided_slice %1612 {offsets = [0, 8], sizes = [4, 8], strides = [1, 1]} : vector<4x24xf32> to vector<4x8xf32>
    %1623 = arith.addf %1621, %1622 : vector<4x8xf32>
    %1624 = arith.negf %1623 : vector<4x8xf32>
    %1625 = math.exp %1624 : vector<4x8xf32>
    %cst_332 = arith.constant 1.000000e+00 : f32
    %1626 = vector.broadcast %cst_332 : f32 to vector<4x8xf32>
    %1627 = arith.addf %1626, %1625 : vector<4x8xf32>
    %1628 = arith.divf %1626, %1627 : vector<4x8xf32>
    %1629 = vector.extract_strided_slice %1609 {offsets = [0, 16], sizes = [4, 8], strides = [1, 1]} : vector<4x24xf32> to vector<4x8xf32>
    %1630 = vector.extract_strided_slice %1612 {offsets = [0, 16], sizes = [4, 8], strides = [1, 1]} : vector<4x24xf32> to vector<4x8xf32>
    %1631 = arith.mulf %1620, %1630 : vector<4x8xf32>
    %1632 = arith.addf %1629, %1631 : vector<4x8xf32>
    %1633 = math.tanh %1632 : vector<4x8xf32>
    %cst_333 = arith.constant 1.000000e+00 : f32
    %1634 = vector.broadcast %cst_333 : f32 to vector<4x8xf32>
    %1635 = arith.subf %1634, %1628 : vector<4x8xf32>
    %1636 = arith.mulf %1635, %1633 : vector<4x8xf32>
    %1637 = arith.mulf %1628, %1603 : vector<4x8xf32>
    %1638 = arith.addf %1636, %1637 : vector<4x8xf32>
    %1639 = vector.extract_strided_slice %1490 {offsets = [0, 4], sizes = [4, 1], strides = [1, 1]} : vector<4x6xf32> to vector<4x1xf32>
    %1640 = vector.extract_strided_slice %1497 {offsets = [16, 0], sizes = [4, 24], strides = [1, 1]} : vector<24x24xf32> to vector<4x24xf32>
    %1641 = vector.broadcast %1639 : vector<4x1xf32> to vector<4x24xf32>
    %1642 = arith.mulf %1640, %1641 : vector<4x24xf32>
    %1643 = vector.broadcast %1495 : vector<1x24xf32> to vector<4x24xf32>
    %1644 = arith.addf %1642, %1643 : vector<4x24xf32>
    %cst_334 = arith.constant dense<0.000000e+00> : vector<4x24xf32>
    %1645 = tpu.matmul %1638, %1493, %cst_334 {dimension_numbers = #tpu.dot_dimension_numbers<[1], [0], [0], [1], [0, 0, 1, 1], [], []>} : vector<4x8xf32>, vector<8x24xf32>, vector<4x24xf32> -> vector<4x24xf32>
    %1646 = vector.broadcast %1494 : vector<1x24xf32> to vector<4x24xf32>
    %1647 = arith.addf %1645, %1646 : vector<4x24xf32>
    %1648 = vector.extract_strided_slice %1644 {offsets = [0, 0], sizes = [4, 8], strides = [1, 1]} : vector<4x24xf32> to vector<4x8xf32>
    %1649 = vector.extract_strided_slice %1647 {offsets = [0, 0], sizes = [4, 8], strides = [1, 1]} : vector<4x24xf32> to vector<4x8xf32>
    %1650 = arith.addf %1648, %1649 : vector<4x8xf32>
    %1651 = arith.negf %1650 : vector<4x8xf32>
    %1652 = math.exp %1651 : vector<4x8xf32>
    %cst_335 = arith.constant 1.000000e+00 : f32
    %1653 = vector.broadcast %cst_335 : f32 to vector<4x8xf32>
    %1654 = arith.addf %1653, %1652 : vector<4x8xf32>
    %1655 = arith.divf %1653, %1654 : vector<4x8xf32>
    %1656 = vector.extract_strided_slice %1644 {offsets = [0, 8], sizes = [4, 8], strides = [1, 1]} : vector<4x24xf32> to vector<4x8xf32>
    %1657 = vector.extract_strided_slice %1647 {offsets = [0, 8], sizes = [4, 8], strides = [1, 1]} : vector<4x24xf32> to vector<4x8xf32>
    %1658 = arith.addf %1656, %1657 : vector<4x8xf32>
    %1659 = arith.negf %1658 : vector<4x8xf32>
    %1660 = math.exp %1659 : vector<4x8xf32>
    %cst_336 = arith.constant 1.000000e+00 : f32
    %1661 = vector.broadcast %cst_336 : f32 to vector<4x8xf32>
    %1662 = arith.addf %1661, %1660 : vector<4x8xf32>
    %1663 = arith.divf %1661, %1662 : vector<4x8xf32>
    %1664 = vector.extract_strided_slice %1644 {offsets = [0, 16], sizes = [4, 8], strides = [1, 1]} : vector<4x24xf32> to vector<4x8xf32>
    %1665 = vector.extract_strided_slice %1647 {offsets = [0, 16], sizes = [4, 8], strides = [1, 1]} : vector<4x24xf32> to vector<4x8xf32>
    %1666 = arith.mulf %1655, %1665 : vector<4x8xf32>
    %1667 = arith.addf %1664, %1666 : vector<4x8xf32>
    %1668 = math.tanh %1667 : vector<4x8xf32>
    %cst_337 = arith.constant 1.000000e+00 : f32
    %1669 = vector.broadcast %cst_337 : f32 to vector<4x8xf32>
    %1670 = arith.subf %1669, %1663 : vector<4x8xf32>
    %1671 = arith.mulf %1670, %1668 : vector<4x8xf32>
    %1672 = arith.mulf %1663, %1638 : vector<4x8xf32>
    %1673 = arith.addf %1671, %1672 : vector<4x8xf32>
    %1674 = vector.extract_strided_slice %1490 {offsets = [0, 5], sizes = [4, 1], strides = [1, 1]} : vector<4x6xf32> to vector<4x1xf32>
    %1675 = vector.extract_strided_slice %1497 {offsets = [20, 0], sizes = [4, 24], strides = [1, 1]} : vector<24x24xf32> to vector<4x24xf32>
    %1676 = vector.broadcast %1674 : vector<4x1xf32> to vector<4x24xf32>
    %1677 = arith.mulf %1675, %1676 : vector<4x24xf32>
    %1678 = vector.broadcast %1495 : vector<1x24xf32> to vector<4x24xf32>
    %1679 = arith.addf %1677, %1678 : vector<4x24xf32>
    %cst_338 = arith.constant dense<0.000000e+00> : vector<4x24xf32>
    %1680 = tpu.matmul %1673, %1493, %cst_338 {dimension_numbers = #tpu.dot_dimension_numbers<[1], [0], [0], [1], [0, 0, 1, 1], [], []>} : vector<4x8xf32>, vector<8x24xf32>, vector<4x24xf32> -> vector<4x24xf32>
    %1681 = vector.broadcast %1494 : vector<1x24xf32> to vector<4x24xf32>
    %1682 = arith.addf %1680, %1681 : vector<4x24xf32>
    %1683 = vector.extract_strided_slice %1679 {offsets = [0, 0], sizes = [4, 8], strides = [1, 1]} : vector<4x24xf32> to vector<4x8xf32>
    %1684 = vector.extract_strided_slice %1682 {offsets = [0, 0], sizes = [4, 8], strides = [1, 1]} : vector<4x24xf32> to vector<4x8xf32>
    %1685 = arith.addf %1683, %1684 : vector<4x8xf32>
    %1686 = arith.negf %1685 : vector<4x8xf32>
    %1687 = math.exp %1686 : vector<4x8xf32>
    %cst_339 = arith.constant 1.000000e+00 : f32
    %1688 = vector.broadcast %cst_339 : f32 to vector<4x8xf32>
    %1689 = arith.addf %1688, %1687 : vector<4x8xf32>
    %1690 = arith.divf %1688, %1689 : vector<4x8xf32>
    %1691 = vector.extract_strided_slice %1679 {offsets = [0, 8], sizes = [4, 8], strides = [1, 1]} : vector<4x24xf32> to vector<4x8xf32>
    %1692 = vector.extract_strided_slice %1682 {offsets = [0, 8], sizes = [4, 8], strides = [1, 1]} : vector<4x24xf32> to vector<4x8xf32>
    %1693 = arith.addf %1691, %1692 : vector<4x8xf32>
    %1694 = arith.negf %1693 : vector<4x8xf32>
    %1695 = math.exp %1694 : vector<4x8xf32>
    %cst_340 = arith.constant 1.000000e+00 : f32
    %1696 = vector.broadcast %cst_340 : f32 to vector<4x8xf32>
    %1697 = arith.addf %1696, %1695 : vector<4x8xf32>
    %1698 = arith.divf %1696, %1697 : vector<4x8xf32>
    %1699 = vector.extract_strided_slice %1679 {offsets = [0, 16], sizes = [4, 8], strides = [1, 1]} : vector<4x24xf32> to vector<4x8xf32>
    %1700 = vector.extract_strided_slice %1682 {offsets = [0, 16], sizes = [4, 8], strides = [1, 1]} : vector<4x24xf32> to vector<4x8xf32>
    %1701 = arith.mulf %1690, %1700 : vector<4x8xf32>
    %1702 = arith.addf %1699, %1701 : vector<4x8xf32>
    %1703 = math.tanh %1702 : vector<4x8xf32>
    %cst_341 = arith.constant 1.000000e+00 : f32
    %1704 = vector.broadcast %cst_341 : f32 to vector<4x8xf32>
    %1705 = arith.subf %1704, %1698 : vector<4x8xf32>
    %1706 = arith.mulf %1705, %1703 : vector<4x8xf32>
    %1707 = arith.mulf %1698, %1673 : vector<4x8xf32>
    %1708 = arith.addf %1706, %1707 : vector<4x8xf32>
    %c0_342 = arith.constant 0 : index
    %c0_343 = arith.constant 0 : index
    %1709 = vector.load %arg19[%c0_342, %c0_343] : memref<8x16xf32, #tpu.memory_space<vmem>>, vector<8x16xf32>
    %cst_344 = arith.constant dense<0.000000e+00> : vector<4x16xf32>
    %1710 = tpu.matmul %1708, %1709, %cst_344 {dimension_numbers = #tpu.dot_dimension_numbers<[1], [0], [0], [1], [0, 0, 1, 1], [], []>} : vector<4x8xf32>, vector<8x16xf32>, vector<4x16xf32> -> vector<4x16xf32>
    %c0_345 = arith.constant 0 : index
    %c0_346 = arith.constant 0 : index
    %1711 = vector.load %arg20[%c0_345, %c0_346] : memref<1x16xf32, #tpu.memory_space<vmem>>, vector<1x16xf32>
    %1712 = vector.broadcast %1711 : vector<1x16xf32> to vector<4x16xf32>
    %1713 = arith.addf %1710, %1712 : vector<4x16xf32>
    %c0_347 = arith.constant 0 : index
    %c0_348 = arith.constant 0 : index
    %1714 = vector.load %arg23[%c0_347, %c0_348] : memref<4x16xf32, #tpu.memory_space<vmem>>, vector<4x16xf32>
    %1715 = arith.mulf %1713, %1714 : vector<4x16xf32>
    %cst_349 = arith.constant 0.000000e+00 : f32
    %1716 = vector.broadcast %cst_349 : f32 to vector<4x16xf32>
    %1717 = arith.maximumf %1715, %1716 : vector<4x16xf32>
    %c0_350 = arith.constant 0 : index
    %c0_351 = arith.constant 0 : index
    %1718 = vector.load %arg21[%c0_350, %c0_351] : memref<16x4xf32, #tpu.memory_space<vmem>>, vector<16x4xf32>
    %cst_352 = arith.constant dense<0.000000e+00> : vector<4x4xf32>
    %1719 = tpu.matmul %1717, %1718, %cst_352 {dimension_numbers = #tpu.dot_dimension_numbers<[1], [0], [0], [1], [0, 0, 1, 1], [], []>} : vector<4x16xf32>, vector<16x4xf32>, vector<4x4xf32> -> vector<4x4xf32>
    %c0_353 = arith.constant 0 : index
    %c0_354 = arith.constant 0 : index
    %1720 = vector.load %arg22[%c0_353, %c0_354] : memref<1x4xf32, #tpu.memory_space<vmem>>, vector<1x4xf32>
    %1721 = vector.broadcast %1720 : vector<1x4xf32> to vector<4x4xf32>
    %1722 = arith.addf %1719, %1721 : vector<4x4xf32>
    %c0_355 = arith.constant 0 : index
    %c0_356 = arith.constant 0 : index
    %c0_357 = arith.constant 0 : index
    %1723 = vector.load %arg24[%c0_355, %c0_356, %c0_357] : memref<1x4x4xf32, #tpu.memory_space<vmem>>, vector<1x4x4xf32>
    %1724 = vector.shape_cast %1723 : vector<1x4x4xf32> to vector<4x4xf32>
    %1725 = vector.shape_cast %1722 : vector<4x4xf32> to vector<1x4x4xf32>
    tpu.vector_store %arg24[%c0_355, %c0_356, %c0_357], %1725 {strides = array<i32>} : memref<1x4x4xf32, #tpu.memory_space<vmem>>, vector<1x4x4xf32>,
    return
  }
  func.func @transform_0(%arg0: i32) -> (i32, i32, i32, i32) {
    %c0_i32 = arith.constant 0 : i32
    %c0_i32_0 = arith.constant 0 : i32
    %c0_i32_1 = arith.constant 0 : i32
    %c0_i32_2 = arith.constant 0 : i32
    %c0_i32_3 = arith.constant 0 : i32
    return %c0_i32, %c0_i32_0, %c0_i32_1, %c0_i32_2 : i32, i32, i32, i32
  }
  func.func @transform_1(%arg0: i32) -> (i32, i32) {
    %c0_i32 = arith.constant 0 : i32
    %c0_i32_0 = arith.constant 0 : i32
    %c0_i32_1 = arith.constant 0 : i32
    return %c0_i32, %c0_i32_0 : i32, i32
  }
  func.func @transform_2(%arg0: i32) -> (i32, i32) {
    %c0_i32 = arith.constant 0 : i32
    %c0_i32_0 = arith.constant 0 : i32
    %c0_i32_1 = arith.constant 0 : i32
    return %c0_i32, %c0_i32_0 : i32, i32
  }
  func.func @transform_3(%arg0: i32) -> (i32, i32) {
    %c0_i32 = arith.constant 0 : i32
    %c0_i32_0 = arith.constant 0 : i32
    %c0_i32_1 = arith.constant 0 : i32
    return %c0_i32, %c0_i32_0 : i32, i32
  }
  func.func @transform_4(%arg0: i32) -> (i32, i32) {
    %c0_i32 = arith.constant 0 : i32
    %c0_i32_0 = arith.constant 0 : i32
    %c0_i32_1 = arith.constant 0 : i32
    return %c0_i32, %c0_i32_0 : i32, i32
  }
  func.func @transform_5(%arg0: i32) -> (i32, i32) {
    %c0_i32 = arith.constant 0 : i32
    %c0_i32_0 = arith.constant 0 : i32
    %c0_i32_1 = arith.constant 0 : i32
    return %c0_i32, %c0_i32_0 : i32, i32
  }
  func.func @transform_6(%arg0: i32) -> (i32, i32) {
    %c0_i32 = arith.constant 0 : i32
    %c0_i32_0 = arith.constant 0 : i32
    %c0_i32_1 = arith.constant 0 : i32
    return %c0_i32, %c0_i32_0 : i32, i32
  }
  func.func @transform_7(%arg0: i32) -> (i32, i32) {
    %c0_i32 = arith.constant 0 : i32
    %c0_i32_0 = arith.constant 0 : i32
    %c0_i32_1 = arith.constant 0 : i32
    return %c0_i32, %c0_i32_0 : i32, i32
  }
  func.func @transform_8(%arg0: i32) -> (i32, i32) {
    %c0_i32 = arith.constant 0 : i32
    %c0_i32_0 = arith.constant 0 : i32
    %c0_i32_1 = arith.constant 0 : i32
    return %c0_i32, %c0_i32_0 : i32, i32
  }
  func.func @transform_9(%arg0: i32) -> (i32, i32) {
    %c0_i32 = arith.constant 0 : i32
    %c0_i32_0 = arith.constant 0 : i32
    %c0_i32_1 = arith.constant 0 : i32
    return %c0_i32, %c0_i32_0 : i32, i32
  }
  func.func @transform_10(%arg0: i32) -> (i32, i32) {
    %c0_i32 = arith.constant 0 : i32
    %c0_i32_0 = arith.constant 0 : i32
    %c0_i32_1 = arith.constant 0 : i32
    return %c0_i32, %c0_i32_0 : i32, i32
  }
  func.func @transform_11(%arg0: i32) -> (i32, i32) {
    %c0_i32 = arith.constant 0 : i32
    %c0_i32_0 = arith.constant 0 : i32
    %c0_i32_1 = arith.constant 0 : i32
    return %c0_i32, %c0_i32_0 : i32, i32
  }
  func.func @transform_12(%arg0: i32) -> (i32, i32) {
    %c0_i32 = arith.constant 0 : i32
    %c0_i32_0 = arith.constant 0 : i32
    %c0_i32_1 = arith.constant 0 : i32
    return %c0_i32, %c0_i32_0 : i32, i32
  }
  func.func @transform_13(%arg0: i32) -> (i32, i32) {
    %c0_i32 = arith.constant 0 : i32
    %c0_i32_0 = arith.constant 0 : i32
    %c0_i32_1 = arith.constant 0 : i32
    return %c0_i32, %c0_i32_0 : i32, i32
  }
  func.func @transform_14(%arg0: i32) -> (i32, i32) {
    %c0_i32 = arith.constant 0 : i32
    %c0_i32_0 = arith.constant 0 : i32
    %c0_i32_1 = arith.constant 0 : i32
    return %c0_i32, %c0_i32_0 : i32, i32
  }
  func.func @transform_15(%arg0: i32) -> (i32, i32) {
    %c0_i32 = arith.constant 0 : i32
    %c0_i32_0 = arith.constant 0 : i32
    %c0_i32_1 = arith.constant 0 : i32
    return %c0_i32, %c0_i32_0 : i32, i32
  }
  func.func @transform_16(%arg0: i32) -> (i32, i32) {
    %c0_i32 = arith.constant 0 : i32
    %c0_i32_0 = arith.constant 0 : i32
    %c0_i32_1 = arith.constant 0 : i32
    return %c0_i32, %c0_i32_0 : i32, i32
  }
  func.func @transform_17(%arg0: i32) -> (i32, i32) {
    %c0_i32 = arith.constant 0 : i32
    %c0_i32_0 = arith.constant 0 : i32
    %c0_i32_1 = arith.constant 0 : i32
    return %c0_i32, %c0_i32_0 : i32, i32
  }
  func.func @transform_18(%arg0: i32) -> (i32, i32) {
    %c0_i32 = arith.constant 0 : i32
    %c0_i32_0 = arith.constant 0 : i32
    %c0_i32_1 = arith.constant 0 : i32
    return %c0_i32, %c0_i32_0 : i32, i32
  }
  func.func @transform_19(%arg0: i32) -> (i32, i32) {
    %c0_i32 = arith.constant 0 : i32
    %c0_i32_0 = arith.constant 0 : i32
    %c0_i32_1 = arith.constant 0 : i32
    return %c0_i32, %c0_i32_0 : i32, i32
  }
  func.func @transform_20(%arg0: i32) -> (i32, i32) {
    %c0_i32 = arith.constant 0 : i32
    %c0_i32_0 = arith.constant 0 : i32
    %c0_i32_1 = arith.constant 0 : i32
    return %c0_i32, %c0_i32_0 : i32, i32
  }
  func.func @transform_21(%arg0: i32) -> (i32, i32) {
    %c0_i32 = arith.constant 0 : i32
    %c0_i32_0 = arith.constant 0 : i32
    %c0_i32_1 = arith.constant 0 : i32
    return %c0_i32, %c0_i32_0 : i32, i32
  }
  func.func @transform_22(%arg0: i32) -> (i32, i32) {
    %c0_i32 = arith.constant 0 : i32
    %c0_i32_0 = arith.constant 0 : i32
    %c0_i32_1 = arith.constant 0 : i32
    return %c0_i32, %c0_i32_0 : i32, i32
  }
  func.func @transform_23(%arg0: i32) -> (i32, i32, i32) {
    %c0_i32 = arith.constant 0 : i32
    %c0_i32_0 = arith.constant 0 : i32
    %c0_i32_1 = arith.constant 0 : i32
    %c0_i32_2 = arith.constant 0 : i32
    return %c0_i32, %c0_i32_0, %c0_i32_1 : i32, i32, i32
  }
  func.func @transform_24(%arg0: i32) -> (i32, i32, i32) {
    %c0_i32 = arith.constant 0 : i32
    %c0_i32_0 = arith.constant 0 : i32
    %c0_i32_1 = arith.constant 0 : i32
    %c0_i32_2 = arith.constant 0 : i32
    return %c0_i32, %c0_i32_0, %c0_i32_1 : i32, i32, i32
  }
  func.func @transform_25(%arg0: i32) -> (i32, i32) {
    %c0_i32 = arith.constant 0 : i32
    %c0_i32_0 = arith.constant 0 : i32
    %c0_i32_1 = arith.constant 0 : i32
    return %c0_i32, %c0_i32_0 : i32, i32
  }
}

</mosaic_0001>

<bundles_post_ra>
// kernel: evaluation_forward.1
= control target key start
LH: loop header
LB: loop body
LE: loop exit
PB: predicated region body
PF: predicated region fallthrough
CT: control target
= control target key end

     0   :  { %s10252_s0 = inlined_call_operand.vmem [shape: f32[6,4,5,8], index: 0, kind: input, shape index: {}]   ;;  %s10253_s1 = inlined_call_operand.vmem [shape: f32[120,8], index: 1, kind: input, shape index: {}]   ;;  %s10254_s2 = inlined_call_operand.vmem [shape: f32[8,24], index: 2, kind: input, shape index: {}]   ;;  %s10255_s3 = inlined_call_operand.vmem [shape: f32[8,24], index: 3, kind: input, shape index: {}]   ;;  %s10256_s4 = inlined_call_operand.vmem [shape: f32[1,24], index: 4, kind: input, shape index: {}]   ;;  %s10257_s5 = inlined_call_operand.vmem [shape: f32[1,24], index: 5, kind: input, shape index: {}]   ;;  %s10258_s6 = inlined_call_operand.vmem [shape: f32[8,60], index: 6, kind: input, shape index: {}]   ;;  %s10259_s7 = inlined_call_operand.vmem [shape: f32[20,60], index: 7, kind: input, shape index: {}]   ;;  %s10260_s8 = inlined_call_operand.vmem [shape: f32[1,60], index: 8, kind: input, shape index: {}]   ;;  %s10261_s9 = inlined_call_operand.vmem [shape: f32[1,60], index: 9, kind: input, shape index: {}]   ;;  %s10262_s10 = inlined_call_operand.vmem [shape: f32[20,24], index: 10, kind: input, shape index: {}]   ;;  %s10263_s11 = inlined_call_operand.vmem [shape: f32[8,24], index: 11, kind: input, shape index: {}]   ;;  %s10264_s12 = inlined_call_operand.vmem [shape: f32[1,24], index: 12, kind: input, shape index: {}]   ;;  %s10265_s13 = inlined_call_operand.vmem [shape: f32[1,24], index: 13, kind: input, shape index: {}]   ;;  %s10266_s14 = inlined_call_operand.vmem [shape: f32[20,3], index: 14, kind: input, shape index: {}]   ;;  %s10267_s15 = inlined_call_operand.vmem [shape: f32[1,3], index: 15, kind: input, shape index: {}]   ;;  %s10268_s16 = inlined_call_operand.vmem [shape: f32[1,3], index: 16, kind: input, shape index: {}]   ;;  %s10269_s17 = inlined_call_operand.vmem [shape: f32[1,3], index: 17, kind: input, shape index: {}]   ;;  %s10270_s18 = inlined_call_operand.vmem [shape: f32[8,16], index: 18, kind: input, shape index: {}]   ;;  %s10271_s19 = inlined_call_operand.vmem [shape: f32[1,16], index: 19, kind: input, shape index: {}]   ;;  %s10272_s20 = inlined_call_operand.vmem [shape: f32[16,4], index: 20, kind: input, shape index: {}]   ;;  %s10273_s21 = inlined_call_operand.vmem [shape: f32[1,4], index: 21, kind: input, shape index: {}]   ;;  %s10274_s22 = inlined_call_operand.vmem [shape: f32[4,16], index: 22, kind: input, shape index: {}]   ;;  %s10275_s23 = inlined_call_operand.hbm [shape: f32[1,4,4], index: 23, kind: output, shape index: {0}]   ;;  %s10276_s24 = inlined_call_operand.vmem [shape: f32[6,4,5], index: 24, kind: output, shape index: {1}]   ;;  %s10277_s25 = inlined_call_operand.vmem [shape: f32[6,4], index: 25, kind: output, shape index: {2}]  }
   0x1   :  { %10286 = sst [smem:[#allocation8_spill]] %s10252_s0 }
   0x2   :  { %10287 = sst [smem:[#allocation9_spill]] %s10253_s1 }
   0x3   :  { %10288 = sst [smem:[#allocation10_spill]] %s10254_s2 }
   0x4   :  { %10289 = sst [smem:[#allocation11_spill]] %s10255_s3 }
   0x5   :  { %10290 = sst [smem:[#allocation12_spill]] %s10256_s4 }
   0x6   :  { %10291 = sst [smem:[#allocation13_spill]] %s10257_s5 }
   0x7   :  { %10292 = sst [smem:[#allocation14_spill]] %s10258_s6 }
   0x8   :  { %10293 = sst [smem:[#allocation15_spill]] %s10259_s7 }
   0x9   :  { %10294 = sst [smem:[#allocation16_spill]] %s10260_s8 }
   0xa   :  { %10295 = sst [smem:[#allocation17_spill]] %s10261_s9 }
   0xb   :  { %10296 = sst [smem:[#allocation18_spill]] %s10271_s19 }
   0xc   :  { %s10297_s6 = sld [smem:[#allocation10_spill]]  ;;  %v8413_v2 = vmov 0.0   ;;  %vm103_vm0 = vcmask 64512  }
   0xd   :  { %s10298_s19 = sld [smem:[#allocation11_spill]]  ;;  %7577 = vmatprep.subr.mxu0 %v8413_v2  ;;  %7624 = vmatprep.subr.mxu1 %v8413_v2 }
   0xe   :  { %s10299_s1 = sld [smem:[#allocation9_spill]] }
  0x12   :  { %v95_v0 = vld [vmem:[%s10297_s6] sm:$0xff] }
  0x13   :  { %v8571_v1 = vld [vmem:[%s10298_s19] sm:$0xff] }
  0x14   :  { %v80_v3 = vld [vmem:[%s10299_s1] sm:$0xff] }
  0x15   :  { %31 = vsyncpa [#allocation6], 0  ;;  %7578 = vmatpush3.msra.mxu0 %v95_v0  ;;  %vm8414_vm1 = vmmov 0   ;;  %7625 = vmatpush3.msra.mxu1 %v8571_v1  ;;  %s10300_s4 = sld [smem:[#allocation13_spill]]  ;;  %s8415_s28 = smov 112   ;;  %v81_v42 = vld [vmem:[%s10299_s1 + $0x8] sm:$0xff] }
  0x16   :  { %7579 = vmatprep.mubr.msk.f32.mxu0 %vm8414_vm1, %v8413_v2  ;;  %7626 = vmatprep.mubr.msk.f32.mxu1 %vm8414_vm1, %v8413_v2  ;;  %s10301_s0 = sld [smem:[#allocation12_spill]]  ;;  %s8416_s29 = smov 16   ;;  %vm871_vm2 = vcmask 61440   ;;  %vm914_vm3 = vcmask 1041409   ;;  %vm916_vm4 = vcmask 1042434   ;;  %vm918_vm5 = vcmask 1043459  }
  0x17   :  { %7580 = vmatmul.mubr.msk.f32.vlgmr.msra.gmra.mxu0 %vm103_vm0, %v80_v3  ;;  %7627 = vmatmul.mubr.f32.vlgmr.msra.gmra.mxu1 %v8413_v2  ;;  %s8417_s2 = smov 120   ;;  %s10302_s9 = sld [smem:[#allocation8_spill]]  ;;  %vm921_vm6 = vcmask 35840   ;;  %vm5286_vm7 = vcmask 1043456   ;;  %vm1107_vm8 = vcmask 60416   ;;  %vm5390_vm9 = vcmask 158720  }
  0x18   :  { %7629 = vmatprep.subr.mxu1 %v8413_v2  ;;  %7631 = vmatprep.mubr.msk.f32.mxu1 %vm8414_vm1, %v8413_v2  ;;  %s10303_s8 = sld [smem:[#allocation14_spill]]  ;;  %vm5283_vm10 = vcmask 162816   ;;  %vm5498_vm11 = vcmask 162820   ;;  %s8423_s7 = smov 126   ;;  %vm6079_vm12 = vcmask 3072   ;;  %vm6117_vm13 = vcmask 15372  }
  0x19   :  { %7630 = vmatpush3.msra.mxu1 %v8571_v1  ;;  %7582 = vmatprep.mubr.msk.f32.mxu0 %vm8414_vm1, %v8413_v2  ;;  %s10304_s6 = sld [smem:[#allocation15_spill]]  ;;  %vm6160_vm14 = vcmask 19472   ;;  %vm6202_vm15 = vcmask 31772   ;;  %s8434_s30 = smov [#allocation5]  }
  0x1a   :  { %7634 = vmatprep.subr.mxu1 %v8413_v2  ;;  %7699 = vmatprep.subr.mxu0 %v8413_v2  ;;  %s10305_s5 = sld [smem:[#allocation17_spill]] }
  0x1b   :  { %7700 = vmatpush3.msra.mxu0 %v8571_v1  ;;  %v8598_v4 = vld [vmem:[%s10300_s4] ss:$0 sm:$0xff]  ;;  %s10306_s3 = sld [smem:[#allocation16_spill]] }
  0x1c   :  { %7709 = vmatprep.subr.mxu0 %v8413_v2  ;;  %v8605_v10 = vld [vmem:[%s10301_s0] ss:$0 sm:$0xff]  ;;  %7583 = vmatmul.mubr.msk.f32.gmra.mxu0 %vm103_vm0, %v81_v42 }
  0x1d   :  { %7585 = vmatprep.mubr.msk.f32.mxu0 %vm8414_vm1, %v8413_v2 }
  0xd7   :  { %v215_v5 = vpop.f32.mrf.mxu0  ;;  %v368_v6 = vpop.f32.mrf.mxu1 }
  0xd8   :  { %v369_v7 = vadd.f32 %v8598_v4, %v368_v6  ;;  %v216_v11 = vadd.f32 %v8605_v10, %v215_v5 }
  0xd9   :  { %v7628_v8 = vpop.f32.mrf.mxu1  ;;  %v7581_v9 = vpop.f32.mrf.mxu0 }
  0xda   :  { %380 = vrot.lane.b32.xlu0 %v369_v7, %s8415_s28  ;;  %v372_v12 = vadd.f32 %v369_v7, %v216_v11 }
  0xdc   :  { %v7304_v13 = vmul.f32 -1.442695, %v372_v12  ;;  %v220_v51 = vpop.f32.mrf.mxu0 }
  0xdd   :  { %v221_v56 = vadd.f32 %v8605_v10, %v220_v51 }
  0xde   :  { %7942 = vpow2.f32 %v7304_v13  ;;  %v7584_v52 = vpop.f32.mrf.mxu0 }
  0xeb   :  { %v7943_v14 = vpop.eup %7942 }
  0xec   :  { %v376_v15 = vadd.f32 1.0, %v7943_v14 }
  0xee   :  { %7944 = vrcp.f32 %v376_v15 }
  0xfb   :  { %v7945_v16 = vpop.eup %7944 }
  0xfc   :  { %v390_v22 = vsub.f32 1.0, %v7945_v16  ;;  %v396_v24 = vmul.f32 0.0, %v7945_v16 }
 0x14c   :  { %v381_v17 = vpop.permute.xlu0 %380 }
 0x14d   :  { %v383_v18 = vmul.f32 %v7945_v16, %v381_v17 }
 0x14f   :  { %385 = vrot.lane.b32.xlu0 %v383_v18, %s8416_s29 }
 0x1c1   :  { %v386_v19 = vpop.permute.xlu0 %385 }
 0x1c2   :  { %v388_v20 = vadd.f32 %v386_v19, %v216_v11 }
 0x1c4   :  { %7946 = vtanh.f32 %v388_v20 }
 0x1d1   :  { %v7947_v21 = vpop.eup %7946 }
 0x1d2   :  { %392 = vrot.lane.b32.xlu1 %v7947_v21, %s8417_s2 }
 0x244   :  { %v393_v23 = vpop.permute.xlu1 %392 }
 0x245   :  { %v395_v25 = vmul.f32 %v393_v23, %v390_v22 }
 0x247   :  { %v397_v26 = vadd.f32 %v396_v24, %v395_v25 }
 0x249   :  { %399 = vrot.lane.b32.xlu1 %v397_v26, %s8417_s2  ;;  %v499_v43 = vrot.slane %v397_v26, 4 }
 0x2bb   :  { %v400_v27 = vpop.permute.xlu1 %399 }
 0x2bc   :  { %7632 = vmatmul.mubr.msk.f32.vlgmr.msra.gmra.mxu1 %vm103_vm0, %v400_v27  ;;  %v82_v27 = vld [vmem:[%s10299_s1 + $0x10] sm:$0xff] }
 0x2bd   :  { %7635 = vmatpush3.msra.mxu1 %v8571_v1  ;;  %7636 = vmatprep.mubr.msk.f32.mxu1 %vm8414_vm1, %v8413_v2 }
 0x2be   :  { %7639 = vmatprep.subr.mxu1 %v8413_v2  ;;  %7586 = vmatmul.mubr.msk.f32.gmra.mxu0 %vm103_vm0, %v82_v27 }
 0x2bf   :  { %7588 = vmatprep.mubr.msk.f32.mxu0 %vm8414_vm1, %v8413_v2 }
 0x37c   :  { %v469_v28 = vpop.f32.mrf.mxu1 }
 0x37d   :  { %v470_v29 = vadd.f32 %v8598_v4, %v469_v28 }
 0x37e   :  { %v7633_v30 = vpop.f32.mrf.mxu1 }
 0x37f   :  { %v474_v31 = vrot.slane %v470_v29, 4 }
 0x381   :  { %483 = vrot.lane.b32.xlu0 %v474_v31, %s8415_s28  ;;  %v476_v32 = vadd.f32 %v474_v31, %v216_v11 }
 0x383   :  { %v7306_v33 = vmul.f32 -1.442695, %v476_v32 }
 0x385   :  { %7948 = vpow2.f32 %v7306_v33 }
 0x392   :  { %v7949_v34 = vpop.eup %7948 }
 0x393   :  { %v480_v35 = vadd.f32 1.0, %v7949_v34 }
 0x395   :  { %7950 = vrcp.f32 %v480_v35 }
 0x3a2   :  { %v7951_v36 = vpop.eup %7950 }
 0x3a3   :  { %v493_v44 = vsub.f32 1.0, %v7951_v36  ;;  %v501_v46 = vmul.f32 %v7951_v36, %v499_v43 }
 0x3f3   :  { %v484_v37 = vpop.permute.xlu0 %483 }
 0x3f4   :  { %v486_v38 = vmul.f32 %v7951_v36, %v484_v37  ;;  %v225_v36 = vpop.f32.mrf.mxu0 }
 0x3f6   :  { %488 = vrot.lane.b32.xlu1 %v486_v38, %s8416_s29  ;;  %v7587_v37 = vpop.f32.mrf.mxu0 }
 0x468   :  { %v489_v39 = vpop.permute.xlu1 %488 }
 0x469   :  { %v491_v40 = vadd.f32 %v489_v39, %v216_v11 }
 0x46b   :  { %7952 = vtanh.f32 %v491_v40 }
 0x478   :  { %v7953_v41 = vpop.eup %7952 }
 0x479   :  { %495 = vrot.lane.b32.xlu0 %v7953_v41, %s8417_s2  ;;  %v226_v41 = vadd.f32 %v8605_v10, %v225_v36 }
 0x4eb   :  { %v496_v45 = vpop.permute.xlu0 %495 }
 0x4ec   :  { %v498_v47 = vmul.f32 %v496_v45, %v493_v44 }
 0x4ee   :  { %v502_v48 = vadd.f32 %v501_v46, %v498_v47 }
 0x4f0   :  { %v504_v49 = vrot.slane %v502_v48, 4 }
 0x4f2   :  { %505 = vrot.lane.b32.xlu1 %v504_v49, %s8417_s2 }
 0x564   :  { %v506_v50 = vpop.permute.xlu1 %505 }
 0x565   :  { %7637 = vmatmul.mubr.msk.f32.vlgmr.msra.gmra.mxu1 %vm103_vm0, %v506_v50 }
 0x566   :  { %7640 = vmatpush3.msra.mxu1 %v8571_v1  ;;  %7641 = vmatprep.mubr.msk.f32.mxu1 %vm8414_vm1, %v8413_v2 }
 0x567   :  { %7644 = vmatprep.subr.mxu1 %v8413_v2 }
 0x625   :  { %v575_v53 = vpop.f32.mrf.mxu1 }
 0x626   :  { %v576_v54 = vadd.f32 %v8598_v4, %v575_v53 }
 0x627   :  { %v7638_v55 = vpop.f32.mrf.mxu1 }
 0x628   :  { %587 = vrot.lane.b32.xlu0 %v576_v54, %s8415_s28  ;;  %v579_v57 = vadd.f32 %v576_v54, %v221_v56 }
 0x62a   :  { %v7308_v58 = vmul.f32 -1.442695, %v579_v57 }
 0x62c   :  { %7954 = vpow2.f32 %v7308_v58 }
 0x639   :  { %v7955_v59 = vpop.eup %7954 }
 0x63a   :  { %v583_v60 = vadd.f32 1.0, %v7955_v59 }
 0x63c   :  { %7956 = vrcp.f32 %v583_v60 }
 0x649   :  { %v7957_v61 = vpop.eup %7956 }
 0x64a   :  { %v597_v6 = vsub.f32 1.0, %v7957_v61  ;;  %v604_v8 = vmul.f32 %v7957_v61, %v504_v49 }
 0x69a   :  { %v588_v62 = vpop.permute.xlu0 %587 }
 0x69b   :  { %v590_v63 = vmul.f32 %v7957_v61, %v588_v62 }
 0x69d   :  { %592 = vrot.lane.b32.xlu1 %v590_v63, %s8416_s29 }
 0x70f   :  { %v593_v0 = vpop.permute.xlu1 %592 }
 0x710   :  { %v595_v3 = vadd.f32 %v593_v0, %v221_v56 }
 0x712   :  { %7958 = vtanh.f32 %v595_v3 }
 0x71f   :  { %v7959_v5 = vpop.eup %7958 }
 0x720   :  { %599 = vrot.lane.b32.xlu0 %v7959_v5, %s8417_s2 }
 0x792   :  { %v600_v7 = vpop.permute.xlu0 %599 }
 0x793   :  { %v602_v9 = vmul.f32 %v600_v7, %v597_v6 }
 0x795   :  { %v605_v11 = vadd.f32 %v604_v8, %v602_v9 }
 0x797   :  { %607 = vrot.lane.b32.xlu1 %v605_v11, %s8417_s2  ;;  %v707_v28 = vrot.slane %v605_v11, 4 }
 0x809   :  { %v608_v12 = vpop.permute.xlu1 %607 }
 0x80a   :  { %7642 = vmatmul.mubr.msk.f32.vlgmr.msra.gmra.mxu1 %vm103_vm0, %v608_v12  ;;  %v83_v12 = vld [vmem:[%s10299_s1 + $0x18] sm:$0xff] }
 0x80b   :  { %7645 = vmatpush3.msra.mxu1 %v8571_v1  ;;  %7646 = vmatprep.mubr.msk.f32.mxu1 %vm8414_vm1, %v8413_v2 }
 0x80c   :  { %7649 = vmatprep.subr.mxu1 %v8413_v2  ;;  %7589 = vmatmul.mubr.msk.f32.gmra.mxu0 %vm103_vm0, %v83_v12 }
 0x80d   :  { %7591 = vmatprep.mubr.msk.f32.mxu0 %vm8414_vm1, %v8413_v2 }
 0x8ca   :  { %v677_v13 = vpop.f32.mrf.mxu1 }
 0x8cb   :  { %v678_v14 = vadd.f32 %v8598_v4, %v677_v13 }
 0x8cc   :  { %v7643_v15 = vpop.f32.mrf.mxu1 }
 0x8cd   :  { %v682_v16 = vrot.slane %v678_v14, 4 }
 0x8cf   :  { %691 = vrot.lane.b32.xlu0 %v682_v16, %s8415_s28  ;;  %v684_v17 = vadd.f32 %v682_v16, %v221_v56 }
 0x8d1   :  { %v7310_v18 = vmul.f32 -1.442695, %v684_v17 }
 0x8d3   :  { %7960 = vpow2.f32 %v7310_v18 }
 0x8e0   :  { %v7961_v19 = vpop.eup %7960 }
 0x8e1   :  { %v688_v20 = vadd.f32 1.0, %v7961_v19 }
 0x8e3   :  { %7962 = vrcp.f32 %v688_v20 }
 0x8f0   :  { %v7963_v21 = vpop.eup %7962 }
 0x8f1   :  { %v701_v29 = vsub.f32 1.0, %v7963_v21  ;;  %v709_v31 = vmul.f32 %v7963_v21, %v707_v28 }
 0x941   :  { %v692_v22 = vpop.permute.xlu0 %691 }
 0x942   :  { %v694_v23 = vmul.f32 %v7963_v21, %v692_v22  ;;  %v230_v21 = vpop.f32.mrf.mxu0 }
 0x944   :  { %696 = vrot.lane.b32.xlu1 %v694_v23, %s8416_s29  ;;  %v7590_v22 = vpop.f32.mrf.mxu0 }
 0x9b6   :  { %v697_v24 = vpop.permute.xlu1 %696 }
 0x9b7   :  { %v699_v25 = vadd.f32 %v697_v24, %v221_v56 }
 0x9b9   :  { %7964 = vtanh.f32 %v699_v25 }
 0x9c6   :  { %v7965_v26 = vpop.eup %7964 }
 0x9c7   :  { %703 = vrot.lane.b32.xlu0 %v7965_v26, %s8417_s2  ;;  %v231_v26 = vadd.f32 %v8605_v10, %v230_v21 }
 0xa39   :  { %v704_v30 = vpop.permute.xlu0 %703 }
 0xa3a   :  { %v706_v32 = vmul.f32 %v704_v30, %v701_v29 }
 0xa3c   :  { %v710_v33 = vadd.f32 %v709_v31, %v706_v32 }
 0xa3e   :  { %v712_v34 = vrot.slane %v710_v33, 4 }
 0xa40   :  { %713 = vrot.lane.b32.xlu1 %v712_v34, %s8417_s2 }
 0xab2   :  { %v714_v35 = vpop.permute.xlu1 %713 }
 0xab3   :  { %7647 = vmatmul.mubr.msk.f32.vlgmr.msra.gmra.mxu1 %vm103_vm0, %v714_v35 }
 0xab4   :  { %7650 = vmatpush3.msra.mxu1 %v8571_v1  ;;  %7651 = vmatprep.mubr.msk.f32.mxu1 %vm8414_vm1, %v8413_v2 }
 0xab5   :  { %7654 = vmatprep.subr.mxu1 %v8413_v2 }
 0xb73   :  { %v783_v38 = vpop.f32.mrf.mxu1 }
 0xb74   :  { %v784_v39 = vadd.f32 %v8598_v4, %v783_v38 }
 0xb75   :  { %v7648_v40 = vpop.f32.mrf.mxu1 }
 0xb76   :  { %795 = vrot.lane.b32.xlu0 %v784_v39, %s8415_s28  ;;  %v787_v42 = vadd.f32 %v784_v39, %v226_v41 }
 0xb78   :  { %v7312_v43 = vmul.f32 -1.442695, %v787_v42 }
 0xb7a   :  { %7966 = vpow2.f32 %v7312_v43 }
 0xb87   :  { %v7967_v44 = vpop.eup %7966 }
 0xb88   :  { %v791_v45 = vadd.f32 1.0, %v7967_v44 }
 0xb8a   :  { %7968 = vrcp.f32 %v791_v45 }
 0xb97   :  { %v7969_v46 = vpop.eup %7968 }
 0xb98   :  { %v805_v52 = vsub.f32 1.0, %v7969_v46  ;;  %v812_v54 = vmul.f32 %v7969_v46, %v712_v34 }
 0xbe8   :  { %v796_v47 = vpop.permute.xlu0 %795 }
 0xbe9   :  { %v798_v48 = vmul.f32 %v7969_v46, %v796_v47 }
 0xbeb   :  { %800 = vrot.lane.b32.xlu1 %v798_v48, %s8416_s29 }
 0xc5d   :  { %v801_v49 = vpop.permute.xlu1 %800 }
 0xc5e   :  { %v803_v50 = vadd.f32 %v801_v49, %v226_v41 }
 0xc60   :  { %7970 = vtanh.f32 %v803_v50 }
 0xc6d   :  { %v7971_v51 = vpop.eup %7970 }
 0xc6e   :  { %807 = vrot.lane.b32.xlu0 %v7971_v51, %s8417_s2 }
 0xce0   :  { %v808_v53 = vpop.permute.xlu0 %807 }
 0xce1   :  { %v810_v55 = vmul.f32 %v808_v53, %v805_v52 }
 0xce3   :  { %v8664_v56 = vadd.f32 %v812_v54, %v810_v55 }
 0xce5   :  { %1114 = vrot.lane.b32.xlu1 %v8664_v56, %s8417_s2  ;;  %v1214_v14 = vrot.slane %v8664_v56, 4 }
 0xd57   :  { %v1115_v57 = vpop.permute.xlu1 %1114 }
 0xd58   :  { %7652 = vmatmul.mubr.msk.f32.vlgmr.msra.gmra.mxu1 %vm103_vm0, %v1115_v57 }
 0xd59   :  { %7655 = vmatpush3.msra.mxu1 %v8571_v1  ;;  %7656 = vmatprep.mubr.msk.f32.mxu1 %vm8414_vm1, %v8413_v2 }
 0xd5a   :  { %7659 = vmatprep.subr.mxu1 %v8413_v2 }
 0xe18   :  { %v1184_v58 = vpop.f32.mrf.mxu1 }
 0xe19   :  { %v1185_v59 = vadd.f32 %v8598_v4, %v1184_v58  ;;  %v84_v58 = vld [vmem:[%s10299_s1 + $0x20] sm:$0xff] }
 0xe1a   :  { %v7653_v60 = vpop.f32.mrf.mxu1  ;;  %7592 = vmatmul.mubr.msk.f32.gmra.mxu0 %vm103_vm0, %v84_v58 }
 0xe1b   :  { %v1189_v61 = vrot.slane %v1185_v59, 4  ;;  %7594 = vmatprep.mubr.msk.f32.mxu0 %vm8414_vm1, %v8413_v2 }
 0xe1d   :  { %1198 = vrot.lane.b32.xlu0 %v1189_v61, %s8415_s28  ;;  %v1191_v62 = vadd.f32 %v1189_v61, %v226_v41 }
 0xe1f   :  { %v7318_v63 = vmul.f32 -1.442695, %v1191_v62 }
 0xe21   :  { %7972 = vpow2.f32 %v7318_v63 }
 0xe2e   :  { %v7973_v0 = vpop.eup %7972 }
 0xe2f   :  { %v1195_v3 = vadd.f32 1.0, %v7973_v0 }
 0xe31   :  { %7974 = vrcp.f32 %v1195_v3 }
 0xe3e   :  { %v7975_v5 = vpop.eup %7974 }
 0xe3f   :  { %v1208_v13 = vsub.f32 1.0, %v7975_v5  ;;  %v1216_v16 = vmul.f32 %v7975_v5, %v1214_v14 }
 0xe8f   :  { %v1199_v6 = vpop.permute.xlu0 %1198 }
 0xe90   :  { %v1201_v7 = vmul.f32 %v7975_v5, %v1199_v6 }
 0xe92   :  { %1203 = vrot.lane.b32.xlu1 %v1201_v7, %s8416_s29 }
 0xeda   :  { %v235_v6 = vpop.f32.mrf.mxu0 }
 0xedb   :  { %v236_v12 = vadd.f32 %v8605_v10, %v235_v6 }
 0xedc   :  { %v7593_v7 = vpop.f32.mrf.mxu0 }
 0xf04   :  { %v1204_v8 = vpop.permute.xlu1 %1203 }
 0xf05   :  { %v1206_v9 = vadd.f32 %v1204_v8, %v226_v41 }
 0xf07   :  { %7976 = vtanh.f32 %v1206_v9 }
 0xf14   :  { %v7977_v11 = vpop.eup %7976 }
 0xf15   :  { %1210 = vrot.lane.b32.xlu0 %v7977_v11, %s8417_s2 }
 0xf87   :  { %v1211_v15 = vpop.permute.xlu0 %1210 }
 0xf88   :  { %v1213_v17 = vmul.f32 %v1211_v15, %v1208_v13 }
 0xf8a   :  { %v1217_v18 = vadd.f32 %v1216_v16, %v1213_v17 }
 0xf8c   :  { %v1219_v19 = vrot.slane %v1217_v18, 4 }
 0xf8e   :  { %1220 = vrot.lane.b32.xlu1 %v1219_v19, %s8417_s2 }
0x1000   :  { %v1221_v20 = vpop.permute.xlu1 %1220 }
0x1001   :  { %7657 = vmatmul.mubr.msk.f32.vlgmr.msra.gmra.mxu1 %vm103_vm0, %v1221_v20 }
0x1002   :  { %7660 = vmatpush3.msra.mxu1 %v8571_v1  ;;  %7661 = vmatprep.mubr.msk.f32.mxu1 %vm8414_vm1, %v8413_v2 }
0x1003   :  { %7664 = vmatprep.subr.mxu1 %v8413_v2 }
0x10c1   :  { %v1290_v23 = vpop.f32.mrf.mxu1 }
0x10c2   :  { %v1291_v24 = vadd.f32 %v8598_v4, %v1290_v23 }
0x10c3   :  { %v7658_v25 = vpop.f32.mrf.mxu1 }
0x10c4   :  { %1302 = vrot.lane.b32.xlu0 %v1291_v24, %s8415_s28  ;;  %v1294_v27 = vadd.f32 %v1291_v24, %v231_v26 }
0x10c6   :  { %v7320_v28 = vmul.f32 -1.442695, %v1294_v27 }
0x10c8   :  { %7978 = vpow2.f32 %v7320_v28 }
0x10d5   :  { %v7979_v29 = vpop.eup %7978 }
0x10d6   :  { %v1298_v30 = vadd.f32 1.0, %v7979_v29 }
0x10d8   :  { %7980 = vrcp.f32 %v1298_v30 }
0x10e5   :  { %v7981_v31 = vpop.eup %7980 }
0x10e6   :  { %v1312_v37 = vsub.f32 1.0, %v7981_v31  ;;  %v1319_v39 = vmul.f32 %v7981_v31, %v1219_v19 }
0x1136   :  { %v1303_v32 = vpop.permute.xlu0 %1302 }
0x1137   :  { %v1305_v33 = vmul.f32 %v7981_v31, %v1303_v32 }
0x1139   :  { %1307 = vrot.lane.b32.xlu1 %v1305_v33, %s8416_s29 }
0x11ab   :  { %v1308_v34 = vpop.permute.xlu1 %1307 }
0x11ac   :  { %v1310_v35 = vadd.f32 %v1308_v34, %v231_v26 }
0x11ae   :  { %7982 = vtanh.f32 %v1310_v35 }
0x11bb   :  { %v7983_v36 = vpop.eup %7982 }
0x11bc   :  { %1314 = vrot.lane.b32.xlu0 %v7983_v36, %s8417_s2 }
0x122e   :  { %v1315_v38 = vpop.permute.xlu0 %1314 }
0x122f   :  { %v1317_v40 = vmul.f32 %v1315_v38, %v1312_v37 }
0x1231   :  { %v1320_v41 = vadd.f32 %v1319_v39, %v1317_v40 }
0x1233   :  { %1322 = vrot.lane.b32.xlu1 %v1320_v41, %s8417_s2  ;;  %v1422_v59 = vrot.slane %v1320_v41, 4 }
0x12a5   :  { %v1323_v42 = vpop.permute.xlu1 %1322 }
0x12a6   :  { %7662 = vmatmul.mubr.msk.f32.vlgmr.msra.gmra.mxu1 %vm103_vm0, %v1323_v42 }
0x12a7   :  { %7665 = vmatpush3.msra.mxu1 %v8571_v1  ;;  %7666 = vmatprep.mubr.msk.f32.mxu1 %vm8414_vm1, %v8413_v2 }
0x12a8   :  { %7669 = vmatprep.subr.mxu1 %v8413_v2 }
0x1366   :  { %v1392_v43 = vpop.f32.mrf.mxu1 }
0x1367   :  { %v1393_v44 = vadd.f32 %v8598_v4, %v1392_v43  ;;  %v85_v43 = vld [vmem:[%s10299_s1 + $0x28] sm:$0xff] }
0x1368   :  { %v7663_v45 = vpop.f32.mrf.mxu1  ;;  %7595 = vmatmul.mubr.msk.f32.gmra.mxu0 %vm103_vm0, %v85_v43 }
0x1369   :  { %v1397_v46 = vrot.slane %v1393_v44, 4  ;;  %7597 = vmatprep.mubr.msk.f32.mxu0 %vm8414_vm1, %v8413_v2 }
0x136b   :  { %1406 = vrot.lane.b32.xlu0 %v1397_v46, %s8415_s28  ;;  %v1399_v47 = vadd.f32 %v1397_v46, %v231_v26 }
0x136d   :  { %v7322_v48 = vmul.f32 -1.442695, %v1399_v47 }
0x136f   :  { %7984 = vpow2.f32 %v7322_v48 }
0x137c   :  { %v7985_v49 = vpop.eup %7984 }
0x137d   :  { %v1403_v50 = vadd.f32 1.0, %v7985_v49 }
0x137f   :  { %7986 = vrcp.f32 %v1403_v50 }
0x138c   :  { %v7987_v51 = vpop.eup %7986 }
0x138d   :  { %v1416_v60 = vsub.f32 1.0, %v7987_v51  ;;  %v1424_v62 = vmul.f32 %v7987_v51, %v1422_v59 }
0x13dd   :  { %v1407_v52 = vpop.permute.xlu0 %1406 }
0x13de   :  { %v1409_v53 = vmul.f32 %v7987_v51, %v1407_v52 }
0x13e0   :  { %1411 = vrot.lane.b32.xlu1 %v1409_v53, %s8416_s29 }
0x1428   :  { %v240_v52 = vpop.f32.mrf.mxu0 }
0x1429   :  { %v241_v58 = vadd.f32 %v8605_v10, %v240_v52 }
0x142a   :  { %v7596_v53 = vpop.f32.mrf.mxu0 }
0x1452   :  { %v1412_v54 = vpop.permute.xlu1 %1411 }
0x1453   :  { %v1414_v55 = vadd.f32 %v1412_v54, %v231_v26 }
0x1455   :  { %7988 = vtanh.f32 %v1414_v55 }
0x1462   :  { %v7989_v57 = vpop.eup %7988 }
0x1463   :  { %1418 = vrot.lane.b32.xlu0 %v7989_v57, %s8417_s2 }
0x14d5   :  { %v1419_v61 = vpop.permute.xlu0 %1418 }
0x14d6   :  { %v1421_v63 = vmul.f32 %v1419_v61, %v1416_v60 }
0x14d8   :  { %v1425_v0 = vadd.f32 %v1424_v62, %v1421_v63 }
0x14da   :  { %v1427_v3 = vrot.slane %v1425_v0, 4 }
0x14dc   :  { %1428 = vrot.lane.b32.xlu1 %v1427_v3, %s8417_s2 }
0x154e   :  { %v1429_v5 = vpop.permute.xlu1 %1428 }
0x154f   :  { %7667 = vmatmul.mubr.msk.f32.vlgmr.msra.gmra.mxu1 %vm103_vm0, %v1429_v5 }
0x1550   :  { %7670 = vmatpush3.msra.mxu1 %v8571_v1  ;;  %7671 = vmatprep.mubr.msk.f32.mxu1 %vm8414_vm1, %v8413_v2 }
0x1551   :  { %7674 = vmatprep.subr.mxu1 %v8413_v2 }
0x160f   :  { %v1498_v8 = vpop.f32.mrf.mxu1 }
0x1610   :  { %v1499_v9 = vadd.f32 %v8598_v4, %v1498_v8 }
0x1611   :  { %v7668_v11 = vpop.f32.mrf.mxu1 }
0x1612   :  { %1510 = vrot.lane.b32.xlu0 %v1499_v9, %s8415_s28  ;;  %v1502_v13 = vadd.f32 %v1499_v9, %v236_v12 }
0x1614   :  { %v7324_v14 = vmul.f32 -1.442695, %v1502_v13 }
0x1616   :  { %7990 = vpow2.f32 %v7324_v14 }
0x1623   :  { %v7991_v15 = vpop.eup %7990 }
0x1624   :  { %v1506_v16 = vadd.f32 1.0, %v7991_v15 }
0x1626   :  { %7992 = vrcp.f32 %v1506_v16 }
0x1633   :  { %v7993_v17 = vpop.eup %7992 }
0x1634   :  { %v1520_v23 = vsub.f32 1.0, %v7993_v17  ;;  %v1527_v25 = vmul.f32 %v7993_v17, %v1427_v3 }
0x1684   :  { %v1511_v18 = vpop.permute.xlu0 %1510 }
0x1685   :  { %v1513_v19 = vmul.f32 %v7993_v17, %v1511_v18 }
0x1687   :  { %1515 = vrot.lane.b32.xlu1 %v1513_v19, %s8416_s29 }
0x16f9   :  { %v1516_v20 = vpop.permute.xlu1 %1515 }
0x16fa   :  { %v1518_v21 = vadd.f32 %v1516_v20, %v236_v12 }
0x16fc   :  { %7994 = vtanh.f32 %v1518_v21 }
0x1709   :  { %v7995_v22 = vpop.eup %7994 }
0x170a   :  { %1522 = vrot.lane.b32.xlu0 %v7995_v22, %s8417_s2 }
0x177c   :  { %v1523_v24 = vpop.permute.xlu0 %1522 }
0x177d   :  { %v1525_v26 = vmul.f32 %v1523_v24, %v1520_v23 }
0x177f   :  { %v1528_v27 = vadd.f32 %v1527_v25, %v1525_v26 }
0x1781   :  { %1530 = vrot.lane.b32.xlu1 %v1528_v27, %s8417_s2  ;;  %v1630_v44 = vrot.slane %v1528_v27, 4 }
0x17f3   :  { %v1531_v28 = vpop.permute.xlu1 %1530 }
0x17f4   :  { %7672 = vmatmul.mubr.msk.f32.vlgmr.msra.gmra.mxu1 %vm103_vm0, %v1531_v28 }
0x17f5   :  { %7675 = vmatpush3.msra.mxu1 %v8571_v1  ;;  %7676 = vmatprep.mubr.msk.f32.mxu1 %vm8414_vm1, %v8413_v2 }
0x17f6   :  { %7679 = vmatprep.subr.mxu1 %v8413_v2 }
0x18b4   :  { %v1600_v29 = vpop.f32.mrf.mxu1 }
0x18b5   :  { %v1601_v30 = vadd.f32 %v8598_v4, %v1600_v29  ;;  %v86_v29 = vld [vmem:[%s10299_s1 + $0x30] sm:$0xff] }
0x18b6   :  { %v7673_v31 = vpop.f32.mrf.mxu1  ;;  %7598 = vmatmul.mubr.msk.f32.gmra.mxu0 %vm103_vm0, %v86_v29 }
0x18b7   :  { %v1605_v32 = vrot.slane %v1601_v30, 4  ;;  %7600 = vmatprep.mubr.msk.f32.mxu0 %vm8414_vm1, %v8413_v2 }
0x18b9   :  { %1614 = vrot.lane.b32.xlu0 %v1605_v32, %s8415_s28  ;;  %v1607_v33 = vadd.f32 %v1605_v32, %v236_v12 }
0x18bb   :  { %v7326_v34 = vmul.f32 -1.442695, %v1607_v33 }
0x18bd   :  { %7996 = vpow2.f32 %v7326_v34 }
0x18ca   :  { %v7997_v35 = vpop.eup %7996 }
0x18cb   :  { %v1611_v36 = vadd.f32 1.0, %v7997_v35 }
0x18cd   :  { %7998 = vrcp.f32 %v1611_v36 }
0x18da   :  { %v7999_v37 = vpop.eup %7998 }
0x18db   :  { %v1624_v45 = vsub.f32 1.0, %v7999_v37  ;;  %v1632_v47 = vmul.f32 %v7999_v37, %v1630_v44 }
0x192b   :  { %v1615_v38 = vpop.permute.xlu0 %1614 }
0x192c   :  { %v1617_v39 = vmul.f32 %v7999_v37, %v1615_v38 }
0x192e   :  { %1619 = vrot.lane.b32.xlu1 %v1617_v39, %s8416_s29 }
0x1976   :  { %v245_v38 = vpop.f32.mrf.mxu0 }
0x1977   :  { %v246_v43 = vadd.f32 %v8605_v10, %v245_v38  ;;  %v89_v38 = vld [vmem:[%s10299_s1 + $0x48] sm:$0xff] }
0x1978   :  { %v7599_v39 = vpop.f32.mrf.mxu0 }
0x19a0   :  { %v1620_v40 = vpop.permute.xlu1 %1619 }
0x19a1   :  { %v1622_v41 = vadd.f32 %v1620_v40, %v236_v12 }
0x19a3   :  { %8000 = vtanh.f32 %v1622_v41 }
0x19b0   :  { %v8001_v42 = vpop.eup %8000 }
0x19b1   :  { %1626 = vrot.lane.b32.xlu0 %v8001_v42, %s8417_s2 }
0x1a23   :  { %v1627_v46 = vpop.permute.xlu0 %1626 }
0x1a24   :  { %v1629_v48 = vmul.f32 %v1627_v46, %v1624_v45 }
0x1a26   :  { %v8738_v49 = vadd.f32 %v1632_v47, %v1629_v48 }
0x1a28   :  { %v1928_v50 = vrot.slane %v8738_v49, 4 }
0x1a2a   :  { %1929 = vrot.lane.b32.xlu1 %v1928_v50, %s8417_s2 }
0x1a9c   :  { %v1930_v51 = vpop.permute.xlu1 %1929 }
0x1a9d   :  { %7677 = vmatmul.mubr.msk.f32.vlgmr.msra.gmra.mxu1 %vm103_vm0, %v1930_v51 }
0x1a9e   :  { %7680 = vmatpush3.msra.mxu1 %v8571_v1  ;;  %7681 = vmatprep.mubr.msk.f32.mxu1 %vm8414_vm1, %v8413_v2 }
0x1a9f   :  { %7684 = vmatprep.subr.mxu1 %v8413_v2 }
0x1b5d   :  { %v1999_v54 = vpop.f32.mrf.mxu1 }
0x1b5e   :  { %v2000_v55 = vadd.f32 %v8598_v4, %v1999_v54 }
0x1b5f   :  { %v7678_v57 = vpop.f32.mrf.mxu1 }
0x1b60   :  { %2011 = vrot.lane.b32.xlu0 %v2000_v55, %s8415_s28  ;;  %v2003_v59 = vadd.f32 %v2000_v55, %v241_v58 }
0x1b62   :  { %v7333_v60 = vmul.f32 -1.442695, %v2003_v59 }
0x1b64   :  { %8002 = vpow2.f32 %v7333_v60 }
0x1b71   :  { %v8003_v61 = vpop.eup %8002 }
0x1b72   :  { %v2007_v62 = vadd.f32 1.0, %v8003_v61 }
0x1b74   :  { %8004 = vrcp.f32 %v2007_v62 }
0x1b81   :  { %v8005_v63 = vpop.eup %8004 }
0x1b82   :  { %v2021_v8 = vsub.f32 1.0, %v8005_v63  ;;  %v2028_v11 = vmul.f32 %v8005_v63, %v1928_v50 }
0x1bd2   :  { %v2012_v0 = vpop.permute.xlu0 %2011 }
0x1bd3   :  { %v2014_v3 = vmul.f32 %v8005_v63, %v2012_v0 }
0x1bd5   :  { %2016 = vrot.lane.b32.xlu1 %v2014_v3, %s8416_s29 }
0x1c47   :  { %v2017_v5 = vpop.permute.xlu1 %2016 }
0x1c48   :  { %v2019_v6 = vadd.f32 %v2017_v5, %v241_v58 }
0x1c4a   :  { %8006 = vtanh.f32 %v2019_v6 }
0x1c57   :  { %v8007_v7 = vpop.eup %8006 }
0x1c58   :  { %2023 = vrot.lane.b32.xlu0 %v8007_v7, %s8417_s2 }
0x1cca   :  { %v2024_v9 = vpop.permute.xlu0 %2023 }
0x1ccb   :  { %v2026_v12 = vmul.f32 %v2024_v9, %v2021_v8 }
0x1ccd   :  { %v2029_v13 = vadd.f32 %v2028_v11, %v2026_v12 }
0x1ccf   :  { %2031 = vrot.lane.b32.xlu1 %v2029_v13, %s8417_s2  ;;  %v2131_v30 = vrot.slane %v2029_v13, 4 }
0x1d41   :  { %v2032_v14 = vpop.permute.xlu1 %2031 }
0x1d42   :  { %7682 = vmatmul.mubr.msk.f32.vlgmr.msra.gmra.mxu1 %vm103_vm0, %v2032_v14 }
0x1d43   :  { %7685 = vmatpush3.msra.mxu1 %v8571_v1  ;;  %7686 = vmatprep.mubr.msk.f32.mxu1 %vm8414_vm1, %v8413_v2 }
0x1d44   :  { %7689 = vmatprep.subr.mxu1 %v8413_v2 }
0x1e02   :  { %v2101_v15 = vpop.f32.mrf.mxu1 }
0x1e03   :  { %v2102_v16 = vadd.f32 %v8598_v4, %v2101_v15 }
0x1e04   :  { %v7683_v17 = vpop.f32.mrf.mxu1 }
0x1e05   :  { %v2106_v18 = vrot.slane %v2102_v16, 4  ;;  %v87_v16 = vld [vmem:[%s10299_s1 + $0x38] sm:$0xff] }
0x1e06   :  { %7601 = vmatmul.mubr.msk.f32.gmra.mxu0 %vm103_vm0, %v87_v16 }
0x1e07   :  { %2115 = vrot.lane.b32.xlu0 %v2106_v18, %s8415_s28  ;;  %v2108_v19 = vadd.f32 %v2106_v18, %v241_v58  ;;  %7603 = vmatprep.mubr.msk.f32.mxu0 %vm8414_vm1, %v8413_v2 }
0x1e09   :  { %v7335_v20 = vmul.f32 -1.442695, %v2108_v19 }
0x1e0b   :  { %8008 = vpow2.f32 %v7335_v20 }
0x1e18   :  { %v8009_v21 = vpop.eup %8008 }
0x1e19   :  { %v2112_v22 = vadd.f32 1.0, %v8009_v21 }
0x1e1b   :  { %8010 = vrcp.f32 %v2112_v22 }
0x1e28   :  { %v8011_v23 = vpop.eup %8010 }
0x1e29   :  { %v2125_v31 = vsub.f32 1.0, %v8011_v23  ;;  %v2133_v33 = vmul.f32 %v8011_v23, %v2131_v30 }
0x1e79   :  { %v2116_v24 = vpop.permute.xlu0 %2115 }
0x1e7a   :  { %v2118_v25 = vmul.f32 %v8011_v23, %v2116_v24 }
0x1e7c   :  { %2120 = vrot.lane.b32.xlu1 %v2118_v25, %s8416_s29 }
0x1ec6   :  { %v250_v25 = vpop.f32.mrf.mxu0 }
0x1ec7   :  { %v8804_v30 = vadd.f32 %v8605_v10, %v250_v25  ;;  %v88_v10 = vld [vmem:[%s10299_s1 + $0x40] sm:$0xff] }
0x1ec8   :  { %7604 = vmatmul.mubr.msk.f32.gmra.mxu0 %vm103_vm0, %v88_v10 }
0x1ec9   :  { %7606 = vmatprep.mubr.msk.f32.mxu0 %vm8414_vm1, %v8413_v2 }
0x1ecc   :  { %7607 = vmatmul.mubr.msk.f32.gmra.mxu0 %vm103_vm0, %v89_v38 }
0x1ecd   :  { %7609 = vmatprep.mubr.msk.f32.mxu0 %vm8414_vm1, %v8413_v2 }
0x1eee   :  { %v2121_v26 = vpop.permute.xlu1 %2120 }
0x1eef   :  { %v2123_v27 = vadd.f32 %v2121_v26, %v241_v58  ;;  %v7602_v26 = vpop.f32.mrf.mxu0 }
0x1ef1   :  { %8012 = vtanh.f32 %v2123_v27 }
0x1efe   :  { %v8013_v28 = vpop.eup %8012 }
0x1eff   :  { %2127 = vrot.lane.b32.xlu0 %v8013_v28, %s8417_s2 }
0x1f71   :  { %v2128_v32 = vpop.permute.xlu0 %2127 }
0x1f72   :  { %v2130_v34 = vmul.f32 %v2128_v32, %v2125_v31 }
0x1f74   :  { %v2134_v35 = vadd.f32 %v2133_v33, %v2130_v34 }
0x1f76   :  { %v2136_v36 = vrot.slane %v2134_v35, 4 }
0x1f78   :  { %2137 = vrot.lane.b32.xlu1 %v2136_v36, %s8417_s2 }
0x1fea   :  { %v2138_v37 = vpop.permute.xlu1 %2137 }
0x1feb   :  { %7687 = vmatmul.mubr.msk.f32.vlgmr.msra.gmra.mxu1 %vm103_vm0, %v2138_v37 }
0x1fec   :  { %7690 = vmatpush3.msra.mxu1 %v8571_v1  ;;  %7691 = vmatprep.mubr.msk.f32.mxu1 %vm8414_vm1, %v8413_v2 }
0x1fed   :  { %7694 = vmatprep.subr.mxu1 %v8413_v2 }
0x20ab   :  { %v2207_v40 = vpop.f32.mrf.mxu1 }
0x20ac   :  { %v2208_v41 = vadd.f32 %v8598_v4, %v2207_v40  ;;  %v90_v40 = vld [vmem:[%s10299_s1 + $0x50] sm:$0xff] }
0x20ad   :  { %v7688_v42 = vpop.f32.mrf.mxu1  ;;  %7610 = vmatmul.mubr.msk.f32.gmra.mxu0 %vm103_vm0, %v90_v40 }
0x20ae   :  { %2219 = vrot.lane.b32.xlu0 %v2208_v41, %s8415_s28  ;;  %v2211_v44 = vadd.f32 %v2208_v41, %v246_v43  ;;  %7612 = vmatprep.mubr.msk.f32.mxu0 %vm8414_vm1, %v8413_v2  ;;  %v91_v41 = vld [vmem:[%s10299_s1 + $0x58] sm:$0xff]  ;;  %v92_v42 = vld [vmem:[%s10299_s1 + $0x60] sm:$0xff] }
0x20b0   :  { %v7337_v45 = vmul.f32 -1.442695, %v2211_v44  ;;  %v94_v44 = vld [vmem:[%s10299_s1 + $0x70] sm:$0xff] }
0x20b1   :  { %7613 = vmatmul.mubr.msk.f32.gmra.mxu0 %vm103_vm0, %v91_v41 }
0x20b2   :  { %8014 = vpow2.f32 %v7337_v45  ;;  %7615 = vmatprep.mubr.msk.f32.mxu0 %vm8414_vm1, %v8413_v2 }
0x20b5   :  { %7616 = vmatmul.mubr.msk.f32.gmra.mxu0 %vm103_vm0, %v92_v42 }
0x20b6   :  { %7618 = vmatprep.mubr.msk.f32.mxu0 %vm8414_vm1, %v8413_v2 }
0x20bf   :  { %v8015_v46 = vpop.eup %8014 }
0x20c0   :  { %v2215_v47 = vadd.f32 1.0, %v8015_v46 }
0x20c2   :  { %8016 = vrcp.f32 %v2215_v47 }
0x20cf   :  { %v8017_v48 = vpop.eup %8016 }
0x20d0   :  { %v2229_v55 = vsub.f32 1.0, %v8017_v48  ;;  %v2236_v58 = vmul.f32 %v8017_v48, %v2136_v36 }
0x2120   :  { %v2220_v50 = vpop.permute.xlu0 %2219 }
0x2121   :  { %v2222_v51 = vmul.f32 %v8017_v48, %v2220_v50 }
0x2123   :  { %2224 = vrot.lane.b32.xlu1 %v2222_v51, %s8416_s29  ;;  %v255_v51 = vpop.f32.mrf.mxu0 }
0x2195   :  { %v2225_v52 = vpop.permute.xlu1 %2224 }
0x2196   :  { %v2227_v53 = vadd.f32 %v2225_v52, %v246_v43  ;;  %v7605_v52 = vpop.f32.mrf.mxu0 }
0x2198   :  { %8018 = vtanh.f32 %v2227_v53  ;;  %v8856_v53 = vpop.f32.mrf.mxu0 }
0x21a5   :  { %v8019_v54 = vpop.eup %8018 }
0x21a6   :  { %2231 = vrot.lane.b32.xlu0 %v8019_v54, %s8417_s2  ;;  %v7608_v54 = vpop.f32.mrf.mxu0 }
0x2218   :  { %v2232_v57 = vpop.permute.xlu0 %2231 }
0x2219   :  { %v2234_v59 = vmul.f32 %v2232_v57, %v2229_v55  ;;  %v8858_v55 = vpop.f32.mrf.mxu0 }
0x221b   :  { %v2237_v60 = vadd.f32 %v2236_v58, %v2234_v59  ;;  %v7611_v57 = vpop.f32.mrf.mxu0 }
0x221d   :  { %2239 = vrot.lane.b32.xlu1 %v2237_v60, %s8417_s2  ;;  %v2339_v17 = vrot.slane %v2237_v60, 4  ;;  %v8860_v58 = vpop.f32.mrf.mxu0 }
0x221f   :  { %v7614_v59 = vpop.f32.mrf.mxu0 }
0x2221   :  { %v8862_v60 = vpop.f32.mrf.mxu0 }
0x228f   :  { %v2240_v61 = vpop.permute.xlu1 %2239 }
0x2290   :  { %7692 = vmatmul.mubr.msk.f32.vlgmr.msra.gmra.mxu1 %vm103_vm0, %v2240_v61  ;;  %v7617_v61 = vpop.f32.mrf.mxu0 }
0x2291   :  { %7695 = vmatpush3.msra.mxu1 %v8571_v1  ;;  %7696 = vmatprep.mubr.msk.f32.mxu1 %vm8414_vm1, %v8413_v2 }
0x2292   :  { %7704 = vmatprep.subr.mxu1 %v8413_v2 }
0x2350   :  { %v2309_v62 = vpop.f32.mrf.mxu1 }
0x2351   :  { %v2310_v63 = vadd.f32 %v8598_v4, %v2309_v62 }
0x2352   :  { %v7693_v0 = vpop.f32.mrf.mxu1 }
0x2353   :  { %v2314_v3 = vrot.slane %v2310_v63, 4 }
0x2355   :  { %2323 = vrot.lane.b32.xlu0 %v2314_v3, %s8415_s28  ;;  %v2316_v5 = vadd.f32 %v2314_v3, %v246_v43 }
0x2357   :  { %v7339_v6 = vmul.f32 -1.442695, %v2316_v5 }
0x2359   :  { %8020 = vpow2.f32 %v7339_v6  ;;  %v8872_v6 = vld [vmem:[%s10298_s19] sm:$0xff]  ;;  %s8422_s19 = smov 108  }
0x2366   :  { %v8021_v7 = vpop.eup %8020 }
0x2367   :  { %v2320_v8 = vadd.f32 1.0, %v8021_v7 }
0x2369   :  { %8022 = vrcp.f32 %v2320_v8  ;;  %v8881_v8 = vld [vmem:[%s10300_s4] ss:$0 sm:$0xff] }
0x2376   :  { %v8023_v9 = vpop.eup %8022 }
0x2377   :  { %v2333_v18 = vsub.f32 1.0, %v8023_v9  ;;  %v2341_v20 = vmul.f32 %v8023_v9, %v2339_v17 }
0x23c7   :  { %v2324_v11 = vpop.permute.xlu0 %2323 }
0x23c8   :  { %v2326_v12 = vmul.f32 %v8023_v9, %v2324_v11 }
0x23ca   :  { %2328 = vrot.lane.b32.xlu1 %v2326_v12, %s8416_s29 }
0x243c   :  { %v2329_v13 = vpop.permute.xlu1 %2328 }
0x243d   :  { %v2331_v14 = vadd.f32 %v2329_v13, %v246_v43  ;;  %v93_v43 = vld [vmem:[%s10299_s1 + $0x68] sm:$0xff]  ;;  %s8420_s1 = smov 88  }
0x243e   :  { %7619 = vmatmul.mubr.msk.f32.gmra.mxu0 %vm103_vm0, %v93_v43 }
0x243f   :  { %8024 = vtanh.f32 %v2331_v14  ;;  %7621 = vmatprep.mubr.msk.f32.mxu0 %vm8414_vm1, %v8413_v2 }
0x2442   :  { %7622 = vmatmul.mubr.msk.f32.gmra.mxu0 %vm103_vm0, %v94_v44 }
0x2443   :  { %7701 = vmatprep.mubr.msk.f32.mxu0 %vm8414_vm1, %v8413_v2 }
0x244c   :  { %v8025_v15 = vpop.eup %8024 }
0x244d   :  { %2335 = vrot.lane.b32.xlu0 %v8025_v15, %s8417_s2 }
0x24bf   :  { %v2336_v19 = vpop.permute.xlu0 %2335 }
0x24c0   :  { %v2338_v21 = vmul.f32 %v2336_v19, %v2333_v18 }
0x24c2   :  { %v2342_v22 = vadd.f32 %v2341_v20, %v2338_v21 }
0x24c4   :  { %v2344_v23 = vrot.slane %v2342_v22, 4 }
0x24c6   :  { %2345 = vrot.lane.b32.xlu1 %v2344_v23, %s8417_s2 }
0x24fe   :  { %v8864_v62 = vpop.f32.mrf.mxu0 }
0x2500   :  { %v7620_v63 = vpop.f32.mrf.mxu0 }
0x2502   :  { %v8866_v0 = vpop.f32.mrf.mxu0 }
0x2504   :  { %v7623_v3 = vpop.f32.mrf.mxu0 }
0x2538   :  { %v2346_v24 = vpop.permute.xlu1 %2345 }
0x2539   :  { %7697 = vmatmul.mubr.msk.f32.vlgmr.msra.gmra.mxu1 %vm103_vm0, %v2346_v24 }
0x253a   :  { %7705 = vmatpush3.msra.mxu1 %v8571_v1  ;;  %7706 = vmatprep.mubr.msk.f32.mxu1 %vm8414_vm1, %v8413_v2 }
0x253b   :  { %7714 = vmatprep.subr.mxu1 %v8413_v2 }
0x25f9   :  { %v2415_v27 = vpop.f32.mrf.mxu1 }
0x25fa   :  { %v2416_v28 = vadd.f32 %v8598_v4, %v2415_v27 }
0x25fb   :  { %v7698_v29 = vpop.f32.mrf.mxu1 }
0x25fc   :  { %2427 = vrot.lane.b32.xlu0 %v2416_v28, %s8415_s28  ;;  %v2419_v31 = vadd.f32 %v2416_v28, %v8804_v30 }
0x25fe   :  { %v7341_v32 = vmul.f32 -1.442695, %v2419_v31 }
0x2600   :  { %8026 = vpow2.f32 %v7341_v32 }
0x260d   :  { %v8027_v1 = vpop.eup %8026 }
0x260e   :  { %v2423_v33 = vadd.f32 1.0, %v8027_v1 }
0x2610   :  { %8028 = vrcp.f32 %v2423_v33  ;;  %v8901_v33 = vld [vmem:[%s10301_s0] ss:$0 sm:$0xff] }
0x261d   :  { %v8029_v34 = vpop.eup %8028 }
0x261e   :  { %v2437_v45 = vsub.f32 1.0, %v8029_v34  ;;  %v2444_v47 = vmul.f32 %v8029_v34, %v2344_v23 }
0x266e   :  { %v2428_v35 = vpop.permute.xlu0 %2427 }
0x266f   :  { %v2430_v36 = vmul.f32 %v8029_v34, %v2428_v35  ;;  %v256_v34 = vadd.f32 %v8901_v33, %v255_v51 }
0x2671   :  { %2432 = vrot.lane.b32.xlu1 %v2430_v36, %s8416_s29 }
0x26e3   :  { %v2433_v37 = vpop.permute.xlu1 %2432 }
0x26e4   :  { %v2435_v4 = vadd.f32 %v2433_v37, %v8804_v30 }
0x26e6   :  { %8030 = vtanh.f32 %v2435_v4 }
0x26f3   :  { %v8031_v39 = vpop.eup %8030 }
0x26f4   :  { %2439 = vrot.lane.b32.xlu0 %v8031_v39, %s8417_s2 }
0x2766   :  { %v2440_v46 = vpop.permute.xlu0 %2439 }
0x2767   :  { %v2442_v48 = vmul.f32 %v2440_v46, %v2437_v45 }
0x2769   :  { %v8852_v50 = vadd.f32 %v2444_v47, %v2442_v48 }
0x276b   :  { %2739 = vrot.lane.b32.xlu1 %v8852_v50, %s8417_s2  ;;  %v2839_v24 = vrot.slane %v8852_v50, 4 }
0x27dd   :  { %v2740_v5 = vpop.permute.xlu1 %2739 }
0x27de   :  { %7702 = vmatmul.mubr.msk.f32.vlgmr.msra.gmra.mxu0 %vm103_vm0, %v2740_v5 }
0x27df   :  { %7710 = vmatpush3.msra.mxu0 %v8872_v6  ;;  %7711 = vmatprep.mubr.msk.f32.mxu0 %vm8414_vm1, %v8413_v2 }
0x27e0   :  { %7719 = vmatprep.subr.mxu0 %v8413_v2 }
0x289e   :  { %v2809_v7 = vpop.f32.mrf.mxu0 }
0x289f   :  { %v2810_v9 = vadd.f32 %v8881_v8, %v2809_v7 }
0x28a0   :  { %v7703_v11 = vpop.f32.mrf.mxu0 }
0x28a1   :  { %v2814_v12 = vrot.slane %v2810_v9, 4 }
0x28a3   :  { %2823 = vrot.lane.b32.xlu0 %v2814_v12, %s8415_s28  ;;  %v2816_v13 = vadd.f32 %v2814_v12, %v8804_v30 }
0x28a5   :  { %v7348_v14 = vmul.f32 -1.442695, %v2816_v13 }
0x28a7   :  { %8032 = vpow2.f32 %v7348_v14 }
0x28b4   :  { %v8033_v15 = vpop.eup %8032 }
0x28b5   :  { %v2820_v16 = vadd.f32 1.0, %v8033_v15 }
0x28b7   :  { %8034 = vrcp.f32 %v2820_v16 }
0x28c4   :  { %v8035_v17 = vpop.eup %8034 }
0x28c5   :  { %v2833_v23 = vsub.f32 1.0, %v8035_v17  ;;  %v2841_v27 = vmul.f32 %v8035_v17, %v2839_v24 }
0x2915   :  { %v2824_v18 = vpop.permute.xlu0 %2823 }
0x2916   :  { %v2826_v19 = vmul.f32 %v8035_v17, %v2824_v18 }
0x2918   :  { %2828 = vrot.lane.b32.xlu1 %v2826_v19, %s8416_s29 }
0x298a   :  { %v2829_v20 = vpop.permute.xlu1 %2828 }
0x298b   :  { %v2831_v21 = vadd.f32 %v2829_v20, %v8804_v30 }
0x298d   :  { %8036 = vtanh.f32 %v2831_v21 }
0x299a   :  { %v8037_v22 = vpop.eup %8036 }
0x299b   :  { %2835 = vrot.lane.b32.xlu0 %v8037_v22, %s8417_s2 }
0x2a0d   :  { %v2836_v25 = vpop.permute.xlu0 %2835 }
0x2a0e   :  { %v2838_v26 = vmul.f32 %v2836_v25, %v2833_v23  ;;  %v261_v25 = vadd.f32 %v8901_v33, %v8856_v53 }
0x2a10   :  { %v2842_v28 = vadd.f32 %v2841_v27, %v2838_v26 }
0x2a12   :  { %v2844_v29 = vrot.slane %v2842_v28, 4 }
0x2a14   :  { %2845 = vrot.lane.b32.xlu1 %v2844_v29, %s8417_s2 }
0x2a86   :  { %v2846_v31 = vpop.permute.xlu1 %2845 }
0x2a87   :  { %7707 = vmatmul.mubr.msk.f32.vlgmr.msra.gmra.mxu1 %vm103_vm0, %v2846_v31 }
0x2a88   :  { %7715 = vmatpush3.msra.mxu1 %v8872_v6  ;;  %7716 = vmatprep.mubr.msk.f32.mxu1 %vm8414_vm1, %v8413_v2 }
0x2a89   :  { %7724 = vmatprep.subr.mxu1 %v8413_v2 }
0x2b47   :  { %v2915_v30 = vpop.f32.mrf.mxu1 }
0x2b48   :  { %v2916_v32 = vadd.f32 %v8881_v8, %v2915_v30 }
0x2b49   :  { %v7708_v1 = vpop.f32.mrf.mxu1 }
0x2b4a   :  { %2927 = vrot.lane.b32.xlu0 %v2916_v32, %s8415_s28  ;;  %v2919_v35 = vadd.f32 %v2916_v32, %v256_v34 }
0x2b4c   :  { %v7350_v36 = vmul.f32 -1.442695, %v2919_v35 }
0x2b4e   :  { %8038 = vpow2.f32 %v7350_v36 }
0x2b5b   :  { %v8039_v37 = vpop.eup %8038 }
0x2b5c   :  { %v2923_v4 = vadd.f32 1.0, %v8039_v37 }
0x2b5e   :  { %8040 = vrcp.f32 %v2923_v4 }
0x2b6b   :  { %v8041_v10 = vpop.eup %8040 }
0x2b6c   :  { %v2937_v43 = vsub.f32 1.0, %v8041_v10  ;;  %v2944_v45 = vmul.f32 %v8041_v10, %v2844_v29 }
0x2bbc   :  { %v2928_v38 = vpop.permute.xlu0 %2927 }
0x2bbd   :  { %v2930_v39 = vmul.f32 %v8041_v10, %v2928_v38 }
0x2bbf   :  { %2932 = vrot.lane.b32.xlu1 %v2930_v39, %s8416_s29 }
0x2c31   :  { %v2933_v40 = vpop.permute.xlu1 %2932 }
0x2c32   :  { %v2935_v41 = vadd.f32 %v2933_v40, %v256_v34 }
0x2c34   :  { %8042 = vtanh.f32 %v2935_v41 }
0x2c41   :  { %v8043_v42 = vpop.eup %8042 }
0x2c42   :  { %2939 = vrot.lane.b32.xlu0 %v8043_v42, %s8417_s2 }
0x2cb4   :  { %v2940_v44 = vpop.permute.xlu0 %2939 }
0x2cb5   :  { %v2942_v46 = vmul.f32 %v2940_v44, %v2937_v43 }
0x2cb7   :  { %v2945_v47 = vadd.f32 %v2944_v45, %v2942_v46 }
0x2cb9   :  { %2947 = vrot.lane.b32.xlu1 %v2945_v47, %s8417_s2  ;;  %v3047_v14 = vrot.slane %v2945_v47, 4 }
0x2d2b   :  { %v2948_v48 = vpop.permute.xlu1 %2947 }
0x2d2c   :  { %7712 = vmatmul.mubr.msk.f32.vlgmr.msra.gmra.mxu0 %vm103_vm0, %v2948_v48 }
0x2d2d   :  { %7720 = vmatpush3.msra.mxu0 %v8872_v6  ;;  %7721 = vmatprep.mubr.msk.f32.mxu0 %vm8414_vm1, %v8413_v2 }
0x2d2e   :  { %7729 = vmatprep.subr.mxu0 %v8413_v2 }
0x2dec   :  { %v3017_v51 = vpop.f32.mrf.mxu0 }
0x2ded   :  { %v3018_v52 = vadd.f32 %v8881_v8, %v3017_v51 }
0x2dee   :  { %v7713_v54 = vpop.f32.mrf.mxu0 }
0x2def   :  { %v3022_v57 = vrot.slane %v3018_v52, 4 }
0x2df1   :  { %3031 = vrot.lane.b32.xlu0 %v3022_v57, %s8415_s28  ;;  %v3024_v59 = vadd.f32 %v3022_v57, %v256_v34 }
0x2df3   :  { %v7352_v61 = vmul.f32 -1.442695, %v3024_v59 }
0x2df5   :  { %8044 = vpow2.f32 %v7352_v61 }
0x2e02   :  { %v8045_v63 = vpop.eup %8044 }
0x2e03   :  { %v3028_v3 = vadd.f32 1.0, %v8045_v63 }
0x2e05   :  { %8046 = vrcp.f32 %v3028_v3 }
0x2e12   :  { %v8047_v5 = vpop.eup %8046 }
0x2e13   :  { %v3041_v15 = vsub.f32 1.0, %v8047_v5  ;;  %v3049_v18 = vmul.f32 %v8047_v5, %v3047_v14 }
0x2e63   :  { %v3032_v7 = vpop.permute.xlu0 %3031 }
0x2e64   :  { %v3034_v9 = vmul.f32 %v8047_v5, %v3032_v7 }
0x2e66   :  { %3036 = vrot.lane.b32.xlu1 %v3034_v9, %s8416_s29 }
0x2ed8   :  { %v3037_v11 = vpop.permute.xlu1 %3036 }
0x2ed9   :  { %v3039_v12 = vadd.f32 %v3037_v11, %v256_v34 }
0x2edb   :  { %8048 = vtanh.f32 %v3039_v12 }
0x2ee8   :  { %v8049_v13 = vpop.eup %8048 }
0x2ee9   :  { %3043 = vrot.lane.b32.xlu0 %v8049_v13, %s8417_s2 }
0x2f5b   :  { %v3044_v16 = vpop.permute.xlu0 %3043 }
0x2f5c   :  { %v3046_v17 = vmul.f32 %v3044_v16, %v3041_v15  ;;  %v266_v15 = vadd.f32 %v8901_v33, %v8858_v55 }
0x2f5e   :  { %v3050_v19 = vadd.f32 %v3049_v18, %v3046_v17 }
0x2f60   :  { %v3052_v20 = vrot.slane %v3050_v19, 4 }
0x2f62   :  { %3053 = vrot.lane.b32.xlu1 %v3052_v20, %s8417_s2 }
0x2fd4   :  { %v3054_v21 = vpop.permute.xlu1 %3053 }
0x2fd5   :  { %7717 = vmatmul.mubr.msk.f32.vlgmr.msra.gmra.mxu1 %vm103_vm0, %v3054_v21 }
0x2fd6   :  { %7725 = vmatpush3.msra.mxu1 %v8872_v6  ;;  %7726 = vmatprep.mubr.msk.f32.mxu1 %vm8414_vm1, %v8413_v2 }
0x2fd7   :  { %7734 = vmatprep.subr.mxu1 %v8413_v2 }
0x3095   :  { %v3123_v22 = vpop.f32.mrf.mxu1 }
0x3096   :  { %v3124_v23 = vadd.f32 %v8881_v8, %v3123_v22 }
0x3097   :  { %v7718_v24 = vpop.f32.mrf.mxu1 }
0x3098   :  { %3135 = vrot.lane.b32.xlu0 %v3124_v23, %s8415_s28  ;;  %v3127_v26 = vadd.f32 %v3124_v23, %v261_v25 }
0x309a   :  { %v7354_v27 = vmul.f32 -1.442695, %v3127_v26 }
0x309c   :  { %8050 = vpow2.f32 %v7354_v27 }
0x30a9   :  { %v8051_v28 = vpop.eup %8050 }
0x30aa   :  { %v3131_v29 = vadd.f32 1.0, %v8051_v28 }
0x30ac   :  { %8052 = vrcp.f32 %v3131_v29 }
0x30b9   :  { %v8053_v31 = vpop.eup %8052 }
0x30ba   :  { %v3145_v36 = vsub.f32 1.0, %v8053_v31  ;;  %v3152_v53 = vmul.f32 %v8053_v31, %v3052_v20 }
0x310a   :  { %v3136_v30 = vpop.permute.xlu0 %3135 }
0x310b   :  { %v3138_v32 = vmul.f32 %v8053_v31, %v3136_v30 }
0x310d   :  { %3140 = vrot.lane.b32.xlu1 %v3138_v32, %s8416_s29 }
0x317f   :  { %v3141_v1 = vpop.permute.xlu1 %3140 }
0x3180   :  { %v3143_v34 = vadd.f32 %v3141_v1, %v261_v25 }
0x3182   :  { %8054 = vtanh.f32 %v3143_v34 }
0x318f   :  { %v8055_v35 = vpop.eup %8054 }
0x3190   :  { %3147 = vrot.lane.b32.xlu0 %v8055_v35, %s8417_s2 }
0x3202   :  { %v3148_v37 = vpop.permute.xlu0 %3147 }
0x3203   :  { %v3150_v4 = vmul.f32 %v3148_v37, %v3145_v36 }
0x3205   :  { %v3153_v10 = vadd.f32 %v3152_v53, %v3150_v4 }
0x3207   :  { %3155 = vrot.lane.b32.xlu1 %v3153_v10, %s8417_s2  ;;  %v3255_v59 = vrot.slane %v3153_v10, 4 }
0x3279   :  { %v3156_v38 = vpop.permute.xlu1 %3155 }
0x327a   :  { %7722 = vmatmul.mubr.msk.f32.vlgmr.msra.gmra.mxu0 %vm103_vm0, %v3156_v38 }
0x327b   :  { %7730 = vmatpush3.msra.mxu0 %v8872_v6  ;;  %7731 = vmatprep.mubr.msk.f32.mxu0 %vm8414_vm1, %v8413_v2 }
0x327c   :  { %7739 = vmatprep.subr.mxu0 %v8413_v2 }
0x333a   :  { %v3225_v39 = vpop.f32.mrf.mxu0 }
0x333b   :  { %v3226_v40 = vadd.f32 %v8881_v8, %v3225_v39 }
0x333c   :  { %v7723_v41 = vpop.f32.mrf.mxu0 }
0x333d   :  { %v3230_v42 = vrot.slane %v3226_v40, 4 }
0x333f   :  { %3239 = vrot.lane.b32.xlu0 %v3230_v42, %s8415_s28  ;;  %v3232_v43 = vadd.f32 %v3230_v42, %v261_v25 }
0x3341   :  { %v7356_v44 = vmul.f32 -1.442695, %v3232_v43 }
0x3343   :  { %8056 = vpow2.f32 %v7356_v44 }
0x3350   :  { %v8057_v45 = vpop.eup %8056 }
0x3351   :  { %v3236_v46 = vadd.f32 1.0, %v8057_v45 }
0x3353   :  { %8058 = vrcp.f32 %v3236_v46 }
0x3360   :  { %v8059_v47 = vpop.eup %8058 }
0x3361   :  { %v3249_v61 = vsub.f32 1.0, %v8059_v47  ;;  %v3257_v5 = vmul.f32 %v8059_v47, %v3255_v59  ;;  %v271_v59 = vadd.f32 %v8901_v33, %v8860_v58 }
0x33b1   :  { %v3240_v48 = vpop.permute.xlu0 %3239 }
0x33b2   :  { %v3242_v51 = vmul.f32 %v8059_v47, %v3240_v48 }
0x33b4   :  { %3244 = vrot.lane.b32.xlu1 %v3242_v51, %s8416_s29 }
0x3426   :  { %v3245_v52 = vpop.permute.xlu1 %3244 }
0x3427   :  { %v3247_v54 = vadd.f32 %v3245_v52, %v261_v25 }
0x3429   :  { %8060 = vtanh.f32 %v3247_v54 }
0x3436   :  { %v8061_v57 = vpop.eup %8060 }
0x3437   :  { %3251 = vrot.lane.b32.xlu0 %v8061_v57, %s8417_s2 }
0x34a9   :  { %v3252_v63 = vpop.permute.xlu0 %3251 }
0x34aa   :  { %v3254_v3 = vmul.f32 %v3252_v63, %v3249_v61 }
0x34ac   :  { %v8938_v7 = vadd.f32 %v3257_v5, %v3254_v3 }
0x34ae   :  { %v3553_v9 = vrot.slane %v8938_v7, 4 }
0x34b0   :  { %3554 = vrot.lane.b32.xlu1 %v3553_v9, %s8417_s2 }
0x3522   :  { %v3555_v11 = vpop.permute.xlu1 %3554 }
0x3523   :  { %7727 = vmatmul.mubr.msk.f32.vlgmr.msra.gmra.mxu1 %vm103_vm0, %v3555_v11 }
0x3524   :  { %7735 = vmatpush3.msra.mxu1 %v8872_v6  ;;  %7736 = vmatprep.mubr.msk.f32.mxu1 %vm8414_vm1, %v8413_v2 }
0x3525   :  { %7744 = vmatprep.subr.mxu1 %v8413_v2 }
0x35e3   :  { %v3624_v12 = vpop.f32.mrf.mxu1 }
0x35e4   :  { %v3625_v13 = vadd.f32 %v8881_v8, %v3624_v12 }
0x35e5   :  { %v7728_v14 = vpop.f32.mrf.mxu1 }
0x35e6   :  { %3636 = vrot.lane.b32.xlu0 %v3625_v13, %s8415_s28  ;;  %v3628_v16 = vadd.f32 %v3625_v13, %v266_v15 }
0x35e8   :  { %v7363_v17 = vmul.f32 -1.442695, %v3628_v16 }
0x35ea   :  { %8062 = vpow2.f32 %v7363_v17 }
0x35f7   :  { %v8063_v18 = vpop.eup %8062 }
0x35f8   :  { %v3632_v19 = vadd.f32 1.0, %v8063_v18 }
0x35fa   :  { %8064 = vrcp.f32 %v3632_v19 }
0x3607   :  { %v8065_v20 = vpop.eup %8064 }
0x3608   :  { %v3646_v26 = vsub.f32 1.0, %v8065_v20  ;;  %v3653_v55 = vmul.f32 %v8065_v20, %v3553_v9 }
0x3658   :  { %v3637_v21 = vpop.permute.xlu0 %3636 }
0x3659   :  { %v3639_v22 = vmul.f32 %v8065_v20, %v3637_v21 }
0x365b   :  { %3641 = vrot.lane.b32.xlu1 %v3639_v22, %s8416_s29 }
0x36cd   :  { %v3642_v23 = vpop.permute.xlu1 %3641 }
0x36ce   :  { %v3644_v24 = vadd.f32 %v3642_v23, %v266_v15 }
0x36d0   :  { %8066 = vtanh.f32 %v3644_v24 }
0x36dd   :  { %v8067_v25 = vpop.eup %8066 }
0x36de   :  { %3648 = vrot.lane.b32.xlu0 %v8067_v25, %s8417_s2 }
0x3750   :  { %v3649_v27 = vpop.permute.xlu0 %3648 }
0x3751   :  { %v3651_v28 = vmul.f32 %v3649_v27, %v3646_v26 }
0x3753   :  { %v3654_v29 = vadd.f32 %v3653_v55, %v3651_v28 }
0x3755   :  { %3656 = vrot.lane.b32.xlu1 %v3654_v29, %s8417_s2  ;;  %v3756_v42 = vrot.slane %v3654_v29, 4 }
0x37c7   :  { %v3657_v31 = vpop.permute.xlu1 %3656 }
0x37c8   :  { %7732 = vmatmul.mubr.msk.f32.vlgmr.msra.gmra.mxu0 %vm103_vm0, %v3657_v31 }
0x37c9   :  { %7740 = vmatpush3.msra.mxu0 %v8872_v6  ;;  %7741 = vmatprep.mubr.msk.f32.mxu0 %vm8414_vm1, %v8413_v2 }
0x37ca   :  { %7749 = vmatprep.subr.mxu0 %v8413_v2 }
0x3888   :  { %v3726_v30 = vpop.f32.mrf.mxu0 }
0x3889   :  { %v3727_v32 = vadd.f32 %v8881_v8, %v3726_v30 }
0x388a   :  { %v7733_v1 = vpop.f32.mrf.mxu0 }
0x388b   :  { %v3731_v34 = vrot.slane %v3727_v32, 4 }
0x388d   :  { %3740 = vrot.lane.b32.xlu0 %v3731_v34, %s8415_s28  ;;  %v3733_v35 = vadd.f32 %v3731_v34, %v266_v15 }
0x388f   :  { %v7365_v36 = vmul.f32 -1.442695, %v3733_v35 }
0x3891   :  { %8068 = vpow2.f32 %v7365_v36 }
0x389e   :  { %v8069_v37 = vpop.eup %8068 }
0x389f   :  { %v3737_v53 = vadd.f32 1.0, %v8069_v37 }
0x38a1   :  { %8070 = vrcp.f32 %v3737_v53 }
0x38ae   :  { %v8071_v4 = vpop.eup %8070 }
0x38af   :  { %v3750_v43 = vsub.f32 1.0, %v8071_v4  ;;  %v3758_v46 = vmul.f32 %v8071_v4, %v3756_v42  ;;  %v276_v42 = vadd.f32 %v8901_v33, %v8862_v60 }
0x38ff   :  { %v3741_v10 = vpop.permute.xlu0 %3740 }
0x3900   :  { %v3743_v38 = vmul.f32 %v8071_v4, %v3741_v10 }
0x3902   :  { %3745 = vrot.lane.b32.xlu1 %v3743_v38, %s8416_s29 }
0x3974   :  { %v3746_v39 = vpop.permute.xlu1 %3745 }
0x3975   :  { %v3748_v40 = vadd.f32 %v3746_v39, %v266_v15 }
0x3977   :  { %8072 = vtanh.f32 %v3748_v40 }
0x3984   :  { %v8073_v41 = vpop.eup %8072 }
0x3985   :  { %3752 = vrot.lane.b32.xlu0 %v8073_v41, %s8417_s2 }
0x39f7   :  { %v3753_v44 = vpop.permute.xlu0 %3752 }
0x39f8   :  { %v3755_v45 = vmul.f32 %v3753_v44, %v3750_v43 }
0x39fa   :  { %v3759_v47 = vadd.f32 %v3758_v46, %v3755_v45 }
0x39fc   :  { %v3761_v48 = vrot.slane %v3759_v47, 4 }
0x39fe   :  { %3762 = vrot.lane.b32.xlu1 %v3761_v48, %s8417_s2 }
0x3a70   :  { %v3763_v51 = vpop.permute.xlu1 %3762 }
0x3a71   :  { %7737 = vmatmul.mubr.msk.f32.vlgmr.msra.gmra.mxu1 %vm103_vm0, %v3763_v51 }
0x3a72   :  { %7745 = vmatpush3.msra.mxu1 %v8872_v6  ;;  %7746 = vmatprep.mubr.msk.f32.mxu1 %vm8414_vm1, %v8413_v2 }
0x3a73   :  { %7754 = vmatprep.subr.mxu1 %v8413_v2 }
0x3b31   :  { %v3832_v52 = vpop.f32.mrf.mxu1 }
0x3b32   :  { %v3833_v54 = vadd.f32 %v8881_v8, %v3832_v52 }
0x3b33   :  { %v7738_v57 = vpop.f32.mrf.mxu1 }
0x3b34   :  { %3844 = vrot.lane.b32.xlu0 %v3833_v54, %s8415_s28  ;;  %v3836_v61 = vadd.f32 %v3833_v54, %v271_v59 }
0x3b36   :  { %v7367_v63 = vmul.f32 -1.442695, %v3836_v61 }
0x3b38   :  { %8074 = vpow2.f32 %v7367_v63 }
0x3b45   :  { %v8075_v3 = vpop.eup %8074 }
0x3b46   :  { %v3840_v5 = vadd.f32 1.0, %v8075_v3 }
0x3b48   :  { %8076 = vrcp.f32 %v3840_v5 }
0x3b55   :  { %v8077_v9 = vpop.eup %8076 }
0x3b56   :  { %v3854_v16 = vsub.f32 1.0, %v8077_v9  ;;  %v3861_v58 = vmul.f32 %v8077_v9, %v3761_v48 }
0x3ba6   :  { %v3845_v11 = vpop.permute.xlu0 %3844 }
0x3ba7   :  { %v3847_v12 = vmul.f32 %v8077_v9, %v3845_v11 }
0x3ba9   :  { %3849 = vrot.lane.b32.xlu1 %v3847_v12, %s8416_s29 }
0x3c1b   :  { %v3850_v13 = vpop.permute.xlu1 %3849 }
0x3c1c   :  { %v3852_v14 = vadd.f32 %v3850_v13, %v271_v59 }
0x3c1e   :  { %8078 = vtanh.f32 %v3852_v14 }
0x3c2b   :  { %v8079_v15 = vpop.eup %8078 }
0x3c2c   :  { %3856 = vrot.lane.b32.xlu0 %v8079_v15, %s8417_s2 }
0x3c9e   :  { %v3857_v17 = vpop.permute.xlu0 %3856 }
0x3c9f   :  { %v3859_v18 = vmul.f32 %v3857_v17, %v3854_v16 }
0x3ca1   :  { %v3862_v19 = vadd.f32 %v3861_v58, %v3859_v18 }
0x3ca3   :  { %3864 = vrot.lane.b32.xlu1 %v3862_v19, %s8417_s2  ;;  %v3964_v34 = vrot.slane %v3862_v19, 4 }
0x3d15   :  { %v3865_v20 = vpop.permute.xlu1 %3864 }
0x3d16   :  { %7742 = vmatmul.mubr.msk.f32.vlgmr.msra.gmra.mxu0 %vm103_vm0, %v3865_v20 }
0x3d17   :  { %7750 = vmatpush3.msra.mxu0 %v8872_v6  ;;  %7751 = vmatprep.mubr.msk.f32.mxu0 %vm8414_vm1, %v8413_v2 }
0x3d18   :  { %7759 = vmatprep.subr.mxu0 %v8413_v2 }
0x3dd6   :  { %v3934_v21 = vpop.f32.mrf.mxu0 }
0x3dd7   :  { %v3935_v22 = vadd.f32 %v8881_v8, %v3934_v21 }
0x3dd8   :  { %v7743_v23 = vpop.f32.mrf.mxu0 }
0x3dd9   :  { %v3939_v24 = vrot.slane %v3935_v22, 4 }
0x3ddb   :  { %3948 = vrot.lane.b32.xlu0 %v3939_v24, %s8415_s28  ;;  %v3941_v25 = vadd.f32 %v3939_v24, %v271_v59 }
0x3ddd   :  { %v7369_v26 = vmul.f32 -1.442695, %v3941_v25 }
0x3ddf   :  { %8080 = vpow2.f32 %v7369_v26 }
0x3dec   :  { %v8081_v27 = vpop.eup %8080 }
0x3ded   :  { %v3945_v55 = vadd.f32 1.0, %v8081_v27 }
0x3def   :  { %8082 = vrcp.f32 %v3945_v55 }
0x3dfc   :  { %v8083_v28 = vpop.eup %8082 }
0x3dfd   :  { %v3958_v35 = vsub.f32 1.0, %v8083_v28  ;;  %v3966_v53 = vmul.f32 %v8083_v28, %v3964_v34 }
0x3e4d   :  { %v3949_v29 = vpop.permute.xlu0 %3948 }
0x3e4e   :  { %v3951_v31 = vmul.f32 %v8083_v28, %v3949_v29 }
0x3e50   :  { %3953 = vrot.lane.b32.xlu1 %v3951_v31, %s8416_s29 }
0x3ec2   :  { %v3954_v30 = vpop.permute.xlu1 %3953 }
0x3ec3   :  { %v3956_v32 = vadd.f32 %v3954_v30, %v271_v59 }
0x3ec5   :  { %8084 = vtanh.f32 %v3956_v32 }
0x3ed2   :  { %v8085_v1 = vpop.eup %8084 }
0x3ed3   :  { %3960 = vrot.lane.b32.xlu0 %v8085_v1, %s8417_s2  ;;  %v281_v1 = vadd.f32 %v8901_v33, %v8864_v62 }
0x3f45   :  { %v3961_v36 = vpop.permute.xlu0 %3960 }
0x3f46   :  { %v3963_v37 = vmul.f32 %v3961_v36, %v3958_v35 }
0x3f48   :  { %v3967_v4 = vadd.f32 %v3966_v53, %v3963_v37 }
0x3f4a   :  { %v3969_v10 = vrot.slane %v3967_v4, 4 }
0x3f4c   :  { %3970 = vrot.lane.b32.xlu1 %v3969_v10, %s8417_s2 }
0x3fbe   :  { %v3971_v38 = vpop.permute.xlu1 %3970 }
0x3fbf   :  { %7747 = vmatmul.mubr.msk.f32.vlgmr.msra.gmra.mxu1 %vm103_vm0, %v3971_v38 }
0x3fc0   :  { %7755 = vmatpush3.msra.mxu1 %v8872_v6  ;;  %7756 = vmatprep.mubr.msk.f32.mxu1 %vm8414_vm1, %v8413_v2 }
0x3fc1   :  { %7764 = vmatprep.subr.mxu1 %v8413_v2 }
0x407f   :  { %v4040_v39 = vpop.f32.mrf.mxu1 }
0x4080   :  { %v4041_v40 = vadd.f32 %v8881_v8, %v4040_v39 }
0x4081   :  { %v7748_v41 = vpop.f32.mrf.mxu1 }
0x4082   :  { %4052 = vrot.lane.b32.xlu0 %v4041_v40, %s8415_s28  ;;  %v4044_v43 = vadd.f32 %v4041_v40, %v276_v42 }
0x4084   :  { %v7371_v44 = vmul.f32 -1.442695, %v4044_v43 }
0x4086   :  { %8086 = vpow2.f32 %v7371_v44 }
0x4093   :  { %v8087_v45 = vpop.eup %8086 }
0x4094   :  { %v4048_v46 = vadd.f32 1.0, %v8087_v45 }
0x4096   :  { %8088 = vrcp.f32 %v4048_v46 }
0x40a3   :  { %v8089_v47 = vpop.eup %8088 }
0x40a4   :  { %v4062_v59 = vsub.f32 1.0, %v8089_v47  ;;  %v4069_v60 = vmul.f32 %v8089_v47, %v3969_v10 }
0x40f4   :  { %v4053_v48 = vpop.permute.xlu0 %4052 }
0x40f5   :  { %v4055_v51 = vmul.f32 %v8089_v47, %v4053_v48 }
0x40f7   :  { %4057 = vrot.lane.b32.xlu1 %v4055_v51, %s8416_s29 }
0x4169   :  { %v4058_v52 = vpop.permute.xlu1 %4057 }
0x416a   :  { %v4060_v54 = vadd.f32 %v4058_v52, %v276_v42 }
0x416c   :  { %8090 = vtanh.f32 %v4060_v54 }
0x4179   :  { %v8091_v57 = vpop.eup %8090 }
0x417a   :  { %4064 = vrot.lane.b32.xlu0 %v8091_v57, %s8417_s2 }
0x41ec   :  { %v4065_v61 = vpop.permute.xlu0 %4064 }
0x41ed   :  { %v4067_v63 = vmul.f32 %v4065_v61, %v4062_v59 }
0x41ef   :  { %v8997_v3 = vadd.f32 %v4069_v60, %v4067_v63  ;;  %v8418_v60 = vmov 1966171168  }
0x41f0   :  { %v816_v63 = vunpack.c.l.s4 %v8418_v60  ;;  %v9117_v60 = vld [vmem:[%s10302_s9 + $0x30] sm:$0x1f] }
0x41f1   :  { %4364 = vrot.lane.b32.xlu1 %v8997_v3, %s8417_s2  ;;  %v4464_v24 = vrot.slane %v8997_v3, 4 }
0x4263   :  { %v4365_v5 = vpop.permute.xlu1 %4364 }
0x4264   :  { %7752 = vmatmul.mubr.msk.f32.vlgmr.msra.gmra.mxu0 %vm103_vm0, %v4365_v5  ;;  %v818_v5 = vlaneseq }
0x4265   :  { %7760 = vmatpush3.msra.mxu0 %v8872_v6  ;;  %7761 = vmatprep.mubr.msk.f32.mxu0 %vm8414_vm1, %v8413_v2 }
0x4266   :  { %7769 = vmatprep.subr.mxu0 %v8413_v2 }
0x4324   :  { %v4434_v9 = vpop.f32.mrf.mxu0 }
0x4325   :  { %v4435_v11 = vadd.f32 %v8881_v8, %v4434_v9 }
0x4326   :  { %v7753_v12 = vpop.f32.mrf.mxu0 }
0x4327   :  { %v4439_v13 = vrot.slane %v4435_v11, 4  ;;  %v817_v11 = vunpack.c.0.s8 %v816_v63  ;;  %v9033_v12 = vshrl.u32 %v818_v5, 7 }
0x4329   :  { %4448 = vrot.lane.b32.xlu0 %v4439_v13, %s8415_s28  ;;  %v4441_v14 = vadd.f32 %v4439_v13, %v276_v42  ;;  %v9036_v13 = vsub.s32 %v817_v11, %v9033_v12 }
0x432b   :  { %v7378_v15 = vmul.f32 -1.442695, %v4441_v14  ;;  %v821_v14 = vrot.slane %v8664_v56, %v9036_v13 }
0x432d   :  { %8092 = vpow2.f32 %v7378_v15  ;;  %v1635_v15 = vcombine.high %v8738_v49, %v8738_v49 }
0x433a   :  { %v8093_v16 = vpop.eup %8092 }
0x433b   :  { %v4445_v17 = vadd.f32 1.0, %v8093_v16  ;;  %v9043_v16 = vsub.s32 0, %v9033_v12 }
0x433d   :  { %8094 = vrcp.f32 %v4445_v17  ;;  %v1642_v17 = vrot.slane %v1635_v15, %v9036_v13  ;;  %v9126_v15 = vld [vmem:[%s10302_s9 + $0x38] sm:$0x1f] }
0x434a   :  { %v8095_v58 = vpop.eup %8094 }
0x434b   :  { %v4458_v23 = vsub.f32 1.0, %v8095_v58  ;;  %v4466_v27 = vmul.f32 %v8095_v58, %v4464_v24 }
0x439b   :  { %v4449_v18 = vpop.permute.xlu0 %4448 }
0x439c   :  { %v4451_v19 = vmul.f32 %v8095_v58, %v4449_v18  ;;  %v829_v58 = vrot.slane %v821_v14, %v9036_v13 }
0x439e   :  { %4453 = vrot.lane.b32.xlu1 %v4451_v19, %s8416_s29  ;;  %v822_v19 = vcombine.high %v821_v14, %v821_v14  ;;  %v837_v49 = vcombine.high %v829_v58, %v829_v58 }
0x4410   :  { %v4454_v20 = vpop.permute.xlu1 %4453 }
0x4411   :  { %v4456_v21 = vadd.f32 %v4454_v20, %v276_v42  ;;  %v842_v20 = vrot.slane %v829_v58, %v9043_v16 }
0x4413   :  { %8096 = vtanh.f32 %v4456_v21  ;;  %v1650_v21 = vrot.slane %v1642_v17, %v9036_v13 }
0x4415   :  { %v1663_v56 = vrot.slane %v1650_v21, %v9043_v16 }
0x4420   :  { %v8097_v22 = vpop.eup %8096 }
0x4421   :  { %4460 = vrot.lane.b32.xlu0 %v8097_v22, %s8417_s2  ;;  %v836_v22 = vrot.slane %v822_v19, %v9036_v13 }
0x4423   :  { %v838_v24 = vcombine.high %v836_v22, %v836_v22 }
0x4493   :  { %v4461_v25 = vpop.permute.xlu0 %4460 }
0x4494   :  { %v4463_v26 = vmul.f32 %v4461_v25, %v4458_v23  ;;  %v850_v23 = vrot.slane %v837_v49, %v9043_v16  ;;  %v854_v25 = vrot.slane %v838_v24, %v9043_v16 }
0x4496   :  { %v4467_v55 = vadd.f32 %v4466_v27, %v4463_v26 }
0x4498   :  { %v4469_v28 = vrot.slane %v4467_v55, 4 }
0x449a   :  { %4470 = vrot.lane.b32.xlu1 %v4469_v28, %s8417_s2 }
0x450c   :  { %v4471_v29 = vpop.permute.xlu1 %4470 }
0x450d   :  { %7757 = vmatmul.mubr.msk.f32.vlgmr.msra.gmra.mxu1 %vm103_vm0, %v4471_v29 }
0x450e   :  { %7765 = vmatpush3.msra.mxu1 %v8872_v6  ;;  %7766 = vmatprep.mubr.msk.f32.mxu1 %vm8414_vm1, %v8413_v2 }
0x450f   :  { %7774 = vmatprep.subr.mxu1 %v8413_v2 }
0x45cd   :  { %v4540_v31 = vpop.f32.mrf.mxu1 }
0x45ce   :  { %v4541_v30 = vadd.f32 %v8881_v8, %v4540_v31  ;;  %v9061_v31 = vld [vmem:[%s10302_s9] sm:$0x1f] }
0x45cf   :  { %v7758_v32 = vpop.f32.mrf.mxu1 }
0x45d0   :  { %4552 = vrot.lane.b32.xlu0 %v4541_v30, %s8415_s28  ;;  %v4544_v34 = vadd.f32 %v4541_v30, %v281_v1 }
0x45d2   :  { %v7380_v35 = vmul.f32 -1.442695, %v4544_v34 }
0x45d4   :  { %8098 = vpow2.f32 %v7380_v35 }
0x45e1   :  { %v8099_v36 = vpop.eup %8098 }
0x45e2   :  { %v4548_v37 = vadd.f32 1.0, %v8099_v36  ;;  %v9070_v36 = vld [vmem:[%s10302_s9 + $0x20] sm:$0x1f] }
0x45e4   :  { %8100 = vrcp.f32 %v4548_v37 }
0x45f1   :  { %v8101_v53 = vpop.eup %8100 }
0x45f2   :  { %v4562_v41 = vsub.f32 1.0, %v8101_v53  ;;  %v4569_v62 = vmul.f32 %v8101_v53, %v4469_v28 }
0x4642   :  { %v4553_v4 = vpop.permute.xlu0 %4552 }
0x4643   :  { %v4555_v10 = vmul.f32 %v8101_v53, %v4553_v4 }
0x4645   :  { %4557 = vrot.lane.b32.xlu1 %v4555_v10, %s8416_s29  ;;  %v846_v10 = vrot.slane %v836_v22, %v9043_v16 }
0x46b7   :  { %v4558_v38 = vpop.permute.xlu1 %4557 }
0x46b8   :  { %v4560_v39 = vadd.f32 %v4558_v38, %v281_v1 }
0x46ba   :  { %8102 = vtanh.f32 %v4560_v39 }
0x46c7   :  { %v8103_v40 = vpop.eup %8102 }
0x46c8   :  { %4564 = vrot.lane.b32.xlu0 %v8103_v40, %s8417_s2 }
0x473a   :  { %v4565_v42 = vpop.permute.xlu0 %4564 }
0x473b   :  { %v4567_v33 = vmul.f32 %v4565_v42, %v4562_v41  ;;  %v1658_v41 = vcombine.high %v1650_v21, %v1650_v21 }
0x473d   :  { %v4570_v43 = vadd.f32 %v4569_v62, %v4567_v33  ;;  %v1671_v42 = vrot.slane %v1658_v41, %v9043_v16 }
0x473f   :  { %4572 = vrot.lane.b32.xlu1 %v4570_v43, %s8417_s2  ;;  %v4672_v26 = vrot.slane %v4570_v43, 4 }
0x47b1   :  { %v4573_v44 = vpop.permute.xlu1 %4572 }
0x47b2   :  { %7762 = vmatmul.mubr.msk.f32.vlgmr.msra.gmra.mxu0 %vm103_vm0, %v4573_v44 }
0x47b3   :  { %7770 = vmatpush3.msra.mxu0 %v8872_v6  ;;  %7771 = vmatprep.mubr.msk.f32.mxu0 %vm8414_vm1, %v8413_v2 }
0x47b4   :  { %7785 = vmatprep.subr.mxu0 %v8413_v2 }
0x4872   :  { %v4642_v45 = vpop.f32.mrf.mxu0 }
0x4873   :  { %v4643_v46 = vadd.f32 %v8881_v8, %v4642_v45  ;;  %v9091_v45 = vld [vmem:[%s10302_s9 + $0x8] sm:$0x1f] }
0x4874   :  { %v7763_v47 = vpop.f32.mrf.mxu0 }
0x4875   :  { %v4647_v48 = vrot.slane %v4643_v46, 4  ;;  %v9098_v46 = vld [vmem:[%s10302_s9 + $0x10] sm:$0x1f] }
0x4877   :  { %4656 = vrot.lane.b32.xlu0 %v4647_v48, %s8415_s28  ;;  %v4649_v51 = vadd.f32 %v4647_v48, %v281_v1 }
0x4879   :  { %v7382_v52 = vmul.f32 -1.442695, %v4649_v51  ;;  %v9104_v51 = vld [vmem:[%s10302_s9 + $0x28] sm:$0x1f] }
0x487b   :  { %8104 = vpow2.f32 %v7382_v52 }
0x4888   :  { %v8105_v54 = vpop.eup %8104 }
0x4889   :  { %v4653_v57 = vadd.f32 1.0, %v8105_v54 }
0x488b   :  { %8106 = vrcp.f32 %v4653_v57  ;;  %v9111_v57 = vld [vmem:[%s10302_s9 + $0x18] sm:$0x1f] }
0x4898   :  { %v8107_v59 = vpop.eup %8106 }
0x4899   :  { %v4666_v27 = vsub.f32 1.0, %v8107_v59  ;;  %v4674_v29 = vmul.f32 %v8107_v59, %v4672_v26 }
0x48e9   :  { %v4657_v6 = vpop.permute.xlu0 %4656 }
0x48ea   :  { %v4659_v61 = vmul.f32 %v8107_v59, %v4657_v6 }
0x48ec   :  { %4661 = vrot.lane.b32.xlu1 %v4659_v61, %s8416_s29 }
0x495e   :  { %v4662_v9 = vpop.permute.xlu1 %4661 }
0x495f   :  { %v4664_v8 = vadd.f32 %v4662_v9, %v281_v1  ;;  %v1643_v1 = vcombine.high %v1642_v17, %v1642_v17 }
0x4961   :  { %8108 = vtanh.f32 %v4664_v8  ;;  %v1657_v38 = vrot.slane %v1643_v1, %v9036_v13 }
0x4963   :  { %v1667_v40 = vrot.slane %v1657_v38, %v9043_v16  ;;  %v1659_v62 = vcombine.high %v1657_v38, %v1657_v38 }
0x4965   :  { %v1675_v33 = vrot.slane %v1659_v62, %v9043_v16 }
0x496e   :  { %v8109_v18 = vpop.eup %8108 }
0x496f   :  { %4668 = vrot.lane.b32.xlu0 %v8109_v18, %s8417_s2 }
0x4973   :  { %855 = vrot.lane.b32.xlu0 %v842_v20, %s8417_s2 }
0x4977   :  { %1676 = vrot.lane.b32.xlu0 %v1663_v56, %s8417_s2 }
0x497b   :  { %859 = vrot.lane.b32.xlu0 %v850_v23, %s8417_s2 }
0x497f   :  { %861 = vrot.lane.b32.xlu0 %v854_v25, %s8417_s2 }
0x49e1   :  { %v4669_v55 = vpop.permute.xlu0 %4668 }
0x49e2   :  { %v4671_v28 = vmul.f32 %v4669_v55, %v4666_v27  ;;  %v897_v55 = vand.u32 127, %v818_v5 }
0x49e4   :  { %v9063_v30 = vadd.f32 %v4674_v29, %v4671_v28 }
0x49e5   :  { %v856_v32 = vpop.permute.xlu0 %855 }
0x49e6   :  { %v4677_v34 = vrot.slane %v9063_v30, 4  ;;  %v867_v35 = vmul.f32 %v856_v32, %v9061_v31 }
0x49e8   :  { %4678 = vrot.lane.b32.xlu1 %v4677_v34, %s8417_s2  ;;  %v872_v37 = vsel %vm871_vm2, %v867_v35, 0.0 }
0x49e9   :  { %873 = vadd.xlane.f32.xlu0 %v872_v37  ;;  %v1677_v53 = vpop.permute.xlu0 %1676  ;;  %v9134_v37 = vsub.s32 %v897_v55, %v9033_v12 }
0x49ea   :  { %v1688_v4 = vmul.f32 %v9070_v36, %v1677_v53 }
0x49ec   :  { %857 = vrot.lane.b32.xlu1 %v846_v10, %s8417_s2  ;;  %v1692_v39 = vsel %vm871_vm2, %v1688_v4, 0.0 }
0x49ed   :  { %1693 = vadd.xlane.f32.xlu0 %v1692_v39  ;;  %v860_v44 = vpop.permute.xlu0 %859 }
0x49ee   :  { %v869_v52 = vmul.f32 %v860_v44, %v9098_v46 }
0x49f0   :  { %1678 = vrot.lane.b32.xlu1 %v1667_v40, %s8417_s2  ;;  %v878_v9 = vsel %vm871_vm2, %v869_v52, 0.0 }
0x49f1   :  { %v862_v59 = vpop.permute.xlu0 %861 }
0x49f2   :  { %v870_v63 = vmul.f32 %v862_v59, %v9111_v57 }
0x49f4   :  { %1680 = vrot.lane.b32.xlu1 %v1671_v42, %s8417_s2  ;;  %v881_v17 = vsel %vm871_vm2, %v870_v63, 0.0 }
0x49f8   :  { %1682 = vrot.lane.b32.xlu1 %v1675_v33, %s8417_s2 }
0x4a5a   :  { %v4679_v43 = vpop.permute.xlu1 %4678 }
0x4a5b   :  { %7767 = vmatmul.mubr.msk.f32.vlgmr.msra.gmra.mxu1 %vm103_vm0, %v4679_v43 }
0x4a5c   :  { %7776 = vmatprep.mubr.msk.f32.mxu1 %vm8414_vm1, %v8413_v2 }
0x4a5e   :  { %v858_v47 = vpop.permute.xlu1 %857 }
0x4a5f   :  { %v868_v48 = vmul.f32 %v858_v47, %v9091_v45 }
0x4a61   :  { %v875_v54 = vsel %vm871_vm2, %v868_v48, 0.0 }
0x4a62   :  { %876 = vadd.xlane.f32.xlu1 %v875_v54  ;;  %v1679_v6 = vpop.permute.xlu1 %1678 }
0x4a63   :  { %v1689_v61 = vmul.f32 %v9104_v51, %v1679_v6 }
0x4a65   :  { %v1695_v8 = vsel %vm871_vm2, %v1689_v61, 0.0 }
0x4a66   :  { %879 = vadd.xlane.f32.xlu1 %v878_v9  ;;  %1696 = vadd.xlane.f32.xlu0 %v1695_v8  ;;  %v1681_v11 = vpop.permute.xlu1 %1680 }
0x4a67   :  { %v1690_v14 = vmul.f32 %v9117_v60, %v1681_v11 }
0x4a69   :  { %v1698_v58 = vsel %vm871_vm2, %v1690_v14, 0.0 }
0x4a6a   :  { %882 = vadd.xlane.f32.xlu1 %v881_v17  ;;  %1699 = vadd.xlane.f32.xlu0 %v1698_v58  ;;  %v1683_v18 = vpop.permute.xlu1 %1682 }
0x4a6b   :  { %v1691_v19 = vmul.f32 %v9126_v15, %v1683_v18  ;;  %v9158_v18 = vld [vmem:[%s10300_s4] ss:$0 sm:$0xff]  ;;  %s8421_s4 = smov 40  }
0x4a6d   :  { %v1701_v20 = vsel %vm871_vm2, %v1691_v19, 0.0 }
0x4a6e   :  { %1702 = vadd.xlane.f32.xlu0 %v1701_v20 }
0x4a72   :  { %v874_v21 = vpop.xlane.xlu0 %873 }
0x4a76   :  { %v1694_v56 = vpop.xlane.xlu0 %1693 }
0x4aeb   :  { %v877_v49 = vpop.xlane.xlu1 %876 }
0x4aec   :  { %8110 = vtanh.f32 %v877_v49 }
0x4aed   :  { %8112 = vtanh.f32 %v874_v21  ;;  %v8419_v21 = vmov 0  }
0x4aee   :  { %7934 = vset.pattern.permute.xlu1 %v8419_v21  ;;  %7933 = vset.pattern.permute.xlu0 %v8419_v21 }
0x4aef   :  { %v1697_v22 = vpop.xlane.xlu0 %1696  ;;  %v880_v23 = vpop.xlane.xlu1 %879 }
0x4af0   :  { %8114 = vtanh.f32 %v1697_v22 }
0x4af1   :  { %8116 = vtanh.f32 %v880_v23 }
0x4af2   :  { %8118 = vtanh.f32 %v1694_v56  ;;  %v9165_v56 = vsub.s32 1, %v9033_v12 }
0x4af3   :  { %v1700_v24 = vpop.xlane.xlu0 %1699  ;;  %v883_v25 = vpop.xlane.xlu1 %882 }
0x4af4   :  { %8120 = vtanh.f32 %v1700_v24 }
0x4af5   :  { %8122 = vtanh.f32 %v883_v25 }
0x4af7   :  { %v1703_v26 = vpop.xlane.xlu0 %1702 }
0x4af8   :  { %8124 = vtanh.f32 %v1703_v26 }
0x4af9   :  { %v8111_v27 = vpop.eup %8110 }
0x4afa   :  { %v8113_v28 = vpop.eup %8112  ;;  %v889_v32 = vmul.f32 10.0, %v8111_v27  ;;  %v8382_v27 = vld [vmem:[%s10301_s0] ss:$0 sm:$0xff] }
0x4afb   :  { %v888_v53 = vmul.f32 10.0, %v8113_v28  ;;  %v9173_v55 = vadd.f32 %v8382_v27, %v8866_v0  ;;  %v9176_v28 = vsub.s32 2, %v9033_v12 }
0x4afc   :  { %v905_v39 = vrot.slane %v889_v32, %v9134_v37 }
0x4afd   :  { %v8115_v29 = vpop.eup %8114  ;;  %v901_v62 = vrot.slane %v888_v53, %v9134_v37 }
0x4afe   :  { %v8117_v1 = vpop.eup %8116  ;;  %v1709_v10 = vmul.f32 10.0, %v8115_v29 }
0x4aff   :  { %v8119_v35 = vpop.eup %8118  ;;  %v9136_v4 = vmul.f32 10.0, %v8117_v1  ;;  %v915_v52 = vsel %vm914_vm3, %v905_v39, %v901_v62  ;;  %v9183_v62 = vsub.s32 3, %v9033_v12 }
0x4b00   :  { %v1708_v41 = vmul.f32 10.0, %v8119_v35  ;;  %v1723_v43 = vrot.slane %v1709_v10, %v9134_v37 }
0x4b01   :  { %v8121_v38 = vpop.eup %8120  ;;  %v909_v5 = vrot.slane %v9136_v4, %v9134_v37 }
0x4b02   :  { %v8123_v40 = vpop.eup %8122  ;;  %v1710_v42 = vmul.f32 10.0, %v8121_v38  ;;  %v1719_v54 = vrot.slane %v1708_v41, %v9134_v37 }
0x4b03   :  { %v891_v33 = vmul.f32 10.0, %v8123_v40  ;;  %v917_v6 = vsel %vm916_vm4, %v909_v5, %v915_v52 }
0x4b04   :  { %v1727_v47 = vrot.slane %v1710_v42, %v9134_v37  ;;  %v1732_v8 = vsel %vm914_vm3, %v1723_v43, %v1719_v54 }
0x4b05   :  { %v8125_v44 = vpop.eup %8124  ;;  %v913_v48 = vrot.slane %v891_v33, %v9134_v37 }
0x4b06   :  { %v1711_v59 = vmul.f32 10.0, %v8125_v44  ;;  %v1733_v11 = vsel %vm916_vm4, %v1727_v47, %v1732_v8 }
0x4b07   :  { %v919_v61 = vsel %vm918_vm5, %v913_v48, %v917_v6 }
0x4b08   :  { %v922_v63 = vsel %vm921_vm6, %v919_v61, -inf  ;;  %v1731_v9 = vrot.slane %v1711_v59, %v9134_v37 }
0x4b09   :  { %923 = vmax.xlane.f32.xlu1 %v922_v63 }
0x4b0a   :  { %v1734_v14 = vsel %vm918_vm5, %v1731_v9, %v1733_v11 }
0x4b0b   :  { %v1736_v17 = vsel %vm921_vm6, %v1734_v14, -inf }
0x4b0c   :  { %1737 = vmax.xlane.f32.xlu0 %v1736_v17 }
0x4b1b   :  { %v4748_v58 = vpop.f32.mrf.mxu1 }
0x4b1c   :  { %v4749_v19 = vadd.f32 %v9158_v18, %v4748_v58 }
0x4b1d   :  { %v7768_v20 = vpop.f32.mrf.mxu1 }
0x4b1e   :  { %4760 = vrot.lane.b32.xlu1 %v4749_v19, %s8415_s28 }
0x4b92   :  { %v924_v49 = vpop.xlane.xlu1 %923 }
0x4b93   :  { %v929_v22 = vrot.slane %v924_v49, %v9043_v16  ;;  %v933_v23 = vrot.slane %v924_v49, %v9165_v56  ;;  %v937_v39 = vrot.slane %v924_v49, %v9176_v28  ;;  %v941_v48 = vrot.slane %v924_v49, %v9183_v62 }
0x4b95   :  { %v946_v24 = vsub.f32 %v888_v53, %v929_v22  ;;  %v947_v25 = vsub.f32 %v889_v32, %v933_v23  ;;  %v1738_v26 = vpop.xlane.xlu0 %1737  ;;  %v4752_v53 = vadd.f32 %v4749_v19, %v9173_v55  ;;  %v948_v43 = vsub.f32 %v9136_v4, %v937_v39 }
0x4b96   :  { %v1743_v29 = vrot.slane %v1738_v26, %v9043_v16  ;;  %v1747_v1 = vrot.slane %v1738_v26, %v9165_v56  ;;  %v1751_v44 = vrot.slane %v1738_v26, %v9176_v28  ;;  %v1755_v6 = vrot.slane %v1738_v26, %v9183_v62  ;;  %v4761_v19 = vpop.permute.xlu1 %4760 }
0x4b97   :  { %v950_v35 = vmul.f32 1.442695, %v946_v24  ;;  %v952_v38 = vmul.f32 1.442695, %v947_v25  ;;  %v7384_v0 = vmul.f32 -1.442695, %v4752_v53 }
0x4b98   :  { %v1760_v32 = vsub.f32 %v1708_v41, %v1743_v29  ;;  %v1761_v40 = vsub.f32 %v1709_v10, %v1747_v1  ;;  %v954_v41 = vmul.f32 1.442695, %v948_v43  ;;  %v1762_v52 = vsub.f32 %v1710_v42, %v1751_v44 }
0x4b99   :  { %8126 = vpow2.f32 %v950_v35  ;;  %v949_v10 = vsub.f32 %v891_v33, %v941_v48  ;;  %v1763_v9 = vsub.f32 %v1711_v59, %v1755_v6 }
0x4b9a   :  { %8128 = vpow2.f32 %v952_v38  ;;  %v1764_v5 = vmul.f32 1.442695, %v1760_v32  ;;  %v1766_v47 = vmul.f32 1.442695, %v1761_v40  ;;  %v1768_v61 = vmul.f32 1.442695, %v1762_v52 }
0x4b9b   :  { %v956_v63 = vmul.f32 1.442695, %v949_v10  ;;  %v1770_v33 = vmul.f32 1.442695, %v1763_v9 }
0x4b9c   :  { %8130 = vpow2.f32 %v1764_v5 }
0x4b9d   :  { %8132 = vpow2.f32 %v7384_v0 }
0x4b9e   :  { %8134 = vpow2.f32 %v1766_v47 }
0x4b9f   :  { %8136 = vpow2.f32 %v954_v41 }
0x4ba0   :  { %8138 = vpow2.f32 %v1768_v61 }
0x4ba1   :  { %8140 = vpow2.f32 %v956_v63 }
0x4ba2   :  { %8142 = vpow2.f32 %v1770_v33 }
0x4ba6   :  { %v9188_v54 = vpop.eup %8126 }
0x4ba7   :  { %v9191_v12 = vpop.eup %8128  ;;  %963 = vperm.xlu0 %7933, %v9188_v54  }
0x4ba8   :  { %966 = vperm.xlu1 %7934, %v9191_v12  }
0x4ba9   :  { %v9195_v4 = vpop.eup %8130 }
0x4baa   :  { %v8133_v42 = vpop.eup %8132 }
0x4bab   :  { %v9198_v8 = vpop.eup %8134  ;;  %v4756_v11 = vadd.f32 1.0, %v8133_v42 }
0x4bac   :  { %1777 = vperm.xlu1 %7934, %v9195_v4   ;;  %v9201_v14 = vpop.eup %8136 }
0x4bad   :  { %8144 = vrcp.f32 %v4756_v11  ;;  %v9204_v17 = vpop.eup %8138 }
0x4bae   :  { %v9207_v59 = vpop.eup %8140 }
0x4baf   :  { %v9210_v58 = vpop.eup %8142 }
0x4bb0   :  { %1780 = vperm.xlu1 %7934, %v9198_v8  }
0x4bb4   :  { %969 = vperm.xlu1 %7934, %v9201_v14  }
0x4bb8   :  { %1783 = vperm.xlu1 %7934, %v9204_v17  }
0x4bba   :  { %v9213_v20 = vpop.eup %8144 }
0x4bbb   :  { %v4763_v49 = vmul.f32 %v9213_v20, %v4761_v19 }
0x4bbc   :  { %972 = vperm.xlu1 %7934, %v9207_v59  }
0x4bc0   :  { %1786 = vperm.xlu1 %7934, %v9210_v58  }
0x4bc4   :  { %4765 = vrot.lane.b32.xlu1 %v4763_v49, %s8416_s29 }
0x4c22   :  { %v964_v26 = vpop.permute.xlu0 %963 }
0x4c23   :  { %v967_v22 = vpop.permute.xlu1 %966  ;;  %v977_v29 = vrot.slane %v964_v26, %v9134_v37 }
0x4c24   :  { %v981_v1 = vrot.slane %v967_v22, %v9134_v37 }
0x4c26   :  { %v990_v53 = vsel %vm914_vm3, %v981_v1, %v977_v29 }
0x4c27   :  { %v1778_v23 = vpop.permute.xlu1 %1777 }
0x4c28   :  { %v1791_v0 = vrot.slane %v1778_v23, %v9134_v37 }
0x4c2b   :  { %v1781_v24 = vpop.permute.xlu1 %1780 }
0x4c2c   :  { %v1795_v32 = vrot.slane %v1781_v24, %v9134_v37 }
0x4c2e   :  { %v1804_v48 = vsel %vm914_vm3, %v1795_v32, %v1791_v0 }
0x4c2f   :  { %v970_v25 = vpop.permute.xlu1 %969 }
0x4c30   :  { %v985_v35 = vrot.slane %v970_v25, %v9134_v37 }
0x4c32   :  { %v991_v5 = vsel %vm916_vm4, %v985_v35, %v990_v53 }
0x4c33   :  { %v1784_v27 = vpop.permute.xlu1 %1783 }
0x4c34   :  { %v1799_v40 = vrot.slane %v1784_v27, %v9134_v37 }
0x4c36   :  { %v1805_v52 = vsel %vm916_vm4, %v1799_v40, %v1804_v48 }
0x4c37   :  { %v973_v38 = vpop.permute.xlu1 %972 }
0x4c38   :  { %v989_v39 = vrot.slane %v973_v38, %v9134_v37 }
0x4c3a   :  { %v992_v43 = vsel %vm918_vm5, %v989_v39, %v991_v5 }
0x4c3b   :  { %v1787_v44 = vpop.permute.xlu1 %1786  ;;  %v994_v47 = vsel %vm921_vm6, %v992_v43, 0.0 }
0x4c3c   :  { %v1803_v41 = vrot.slane %v1787_v44, %v9134_v37  ;;  %995 = vadd.xlane.f32.xlu0 %v994_v47 }
0x4c3e   :  { %v1806_v10 = vsel %vm918_vm5, %v1803_v41, %v1805_v52 }
0x4c3f   :  { %v4766_v6 = vpop.permute.xlu1 %4765  ;;  %v1808_v61 = vsel %vm921_vm6, %v1806_v10, 0.0 }
0x4c40   :  { %v4768_v63 = vadd.f32 %v4766_v6, %v9173_v55  ;;  %1809 = vadd.xlane.f32.xlu1 %v1808_v61 }
0x4c42   :  { %8146 = vtanh.f32 %v4768_v63 }
0x4c4f   :  { %v8147_v9 = vpop.eup %8146 }
0x4c52   :  { %4772 = vrot.lane.b32.xlu0 %v8147_v9, %s8417_s2 }
0x4cc5   :  { %v996_v42 = vpop.xlane.xlu0 %995 }
0x4cc6   :  { %v1001_v33 = vrot.slane %v996_v42, %v9043_v16  ;;  %v1005_v11 = vrot.slane %v996_v42, %v9165_v56  ;;  %v1009_v49 = vrot.slane %v996_v42, %v9176_v28  ;;  %v1013_v25 = vrot.slane %v996_v42, %v9183_v62 }
0x4cc8   :  { %8148 = vrcp.f32 %v1001_v33 }
0x4cc9   :  { %8150 = vrcp.f32 %v1005_v11  ;;  %v1810_v19 = vpop.xlane.xlu1 %1809  ;;  %v4773_v44 = vpop.permute.xlu0 %4772 }
0x4cca   :  { %v1815_v22 = vrot.slane %v1810_v19, %v9043_v16  ;;  %v1819_v23 = vrot.slane %v1810_v19, %v9165_v56  ;;  %v1823_v24 = vrot.slane %v1810_v19, %v9176_v28  ;;  %v1827_v26 = vrot.slane %v1810_v19, %v9183_v62 }
0x4ccc   :  { %8152 = vrcp.f32 %v1815_v22 }
0x4ccd   :  { %8154 = vrcp.f32 %v1819_v23 }
0x4cce   :  { %8156 = vrcp.f32 %v1009_v49 }
0x4ccf   :  { %8158 = vrcp.f32 %v1823_v24 }
0x4cd0   :  { %8160 = vrcp.f32 %v1013_v25 }
0x4cd1   :  { %8162 = vrcp.f32 %v1827_v26 }
0x4cd5   :  { %v8149_v27 = vpop.eup %8148 }
0x4cd6   :  { %v8151_v29 = vpop.eup %8150  ;;  %v1019_v1 = vmul.f32 %v8149_v27, %v9188_v54 }
0x4cd7   :  { %v1021_v35 = vmul.f32 %v8151_v29, %v9191_v12  ;;  %v4770_v12 = vsub.f32 1.0, %v9213_v20 }
0x4cd8   :  { %1031 = vperm.xlu1 %7934, %v1019_v1  }
0x4cd9   :  { %v8153_v38 = vpop.eup %8152  ;;  %1034 = vperm.xlu0 %7933, %v1021_v35   ;;  %v4775_v48 = vmul.f32 %v4773_v44, %v4770_v12 }
0x4cda   :  { %v8155_v53 = vpop.eup %8154  ;;  %v1833_v32 = vmul.f32 %v8153_v38, %v9195_v4 }
0x4cdb   :  { %v8157_v39 = vpop.eup %8156  ;;  %v1835_v40 = vmul.f32 %v8155_v53, %v9198_v8  ;;  %v4777_v8 = vmul.f32 %v9213_v20, %v4677_v34 }
0x4cdc   :  { %v8159_v5 = vpop.eup %8158  ;;  %1845 = vperm.xlu1 %7934, %v1833_v32   ;;  %v1023_v0 = vmul.f32 %v8157_v39, %v9201_v14 }
0x4cdd   :  { %1848 = vperm.xlu0 %7933, %v1835_v40   ;;  %v8161_v43 = vpop.eup %8160  ;;  %v1837_v54 = vmul.f32 %v8159_v5, %v9204_v17  ;;  %v9255_v14 = vadd.f32 %v4777_v8, %v4775_v48  ;;  %v5180_v17 = vld [vmem:[%s10303_s8] sm:$0xff] }
0x4cde   :  { %v8163_v47 = vpop.eup %8162  ;;  %v1025_v4 = vmul.f32 %v8161_v43, %v9207_v59  ;;  %7775 = vmatpush3.msra.mxu1 %v5180_v17 }
0x4cdf   :  { %v1839_v41 = vmul.f32 %v8163_v47, %v9210_v58  ;;  %7803 = vmatprep.subr.mxu1 %v8413_v2 }
0x4ce0   :  { %1037 = vperm.xlu1 %7934, %v1023_v0  }
0x4ce1   :  { %1851 = vperm.xlu0 %7933, %v1837_v54  }
0x4ce4   :  { %1040 = vperm.xlu1 %7934, %v1025_v4  }
0x4ce5   :  { %1854 = vperm.xlu0 %7933, %v1839_v41  }
0x4ce8   :  { %4780 = vrot.lane.b32.xlu1 %v9255_v14, %s8417_s2 }
0x4d53   :  { %v1032_v59 = vpop.permute.xlu1 %1031 }
0x4d54   :  { %v1035_v58 = vpop.permute.xlu0 %1034  ;;  %v1067_v30 = vmul.f32 %v1032_v59, %v9061_v31  ;;  %v1045_v33 = vrot.slane %v1032_v59, %v9134_v37  ;;  %v9289_v59 = vld [vmem:[%s10304_s6 + $0x10] sm:$0xf] }
0x4d55   :  { %v1068_v34 = vmul.f32 %v1035_v58, %v9091_v45  ;;  %v1049_v31 = vrot.slane %v1035_v58, %v9134_v37 }
0x4d56   :  { %v1071_v20 = vsel %vm871_vm2, %v1067_v30, 0.0 }
0x4d57   :  { %v1078_v52 = vsel %vm871_vm2, %v1068_v34, 0.0  ;;  %v1072_v10 = vrot.slane %v1071_v20, 4  ;;  %v1846_v6 = vpop.permute.xlu1 %1845  ;;  %v1058_v53 = vsel %vm914_vm3, %v1049_v31, %v1045_v33 }
0x4d58   :  { %v1849_v61 = vpop.permute.xlu0 %1848  ;;  %v1882_v63 = vmul.f32 %v9070_v36, %v1846_v6  ;;  %v1079_v9 = vrot.slane %v1078_v52, 4  ;;  %v1859_v24 = vrot.slane %v1846_v6, %v9134_v37 }
0x4d59   :  { %v1883_v42 = vmul.f32 %v9104_v51, %v1849_v61  ;;  %v1073_v19 = vadd.f32 %v1072_v10, %v1071_v20  ;;  %v1863_v51 = vrot.slane %v1849_v61, %v9134_v37  ;;  %v9303_v61 = vld [vmem:[%s10304_s6 + $0x8] sm:$0xff] }
0x4d5a   :  { %v1886_v11 = vsel %vm871_vm2, %v1882_v63, 0.0  ;;  %v1080_v26 = vadd.f32 %v1079_v9, %v1078_v52 }
0x4d5b   :  { %v1893_v45 = vsel %vm871_vm2, %v1883_v42, 0.0  ;;  %v1887_v49 = vrot.slane %v1886_v11, 4  ;;  %v1038_v22 = vpop.permute.xlu1 %1037  ;;  %v1074_v32 = vrot.slane %v1073_v19, 2  ;;  %v1872_v47 = vsel %vm914_vm3, %v1863_v51, %v1859_v24 }
0x4d5c   :  { %v1894_v23 = vrot.slane %v1893_v45, 4  ;;  %v1852_v25 = vpop.permute.xlu0 %1851  ;;  %v1069_v36 = vmul.f32 %v1038_v22, %v9098_v46  ;;  %v1053_v43 = vrot.slane %v1038_v22, %v9134_v37 }
0x4d5d   :  { %v1888_v27 = vadd.f32 %v1887_v49, %v1886_v11  ;;  %v1884_v29 = vmul.f32 %v9117_v60, %v1852_v25  ;;  %v1867_v35 = vrot.slane %v1852_v25, %v9134_v37  ;;  %v1081_v60 = vrot.slane %v1080_v26, 2 }
0x4d5e   :  { %v1895_v1 = vadd.f32 %v1894_v23, %v1893_v45  ;;  %v1085_v38 = vsel %vm871_vm2, %v1069_v36, 0.0  ;;  %v1075_v11 = vadd.f32 %v1074_v32, %v1073_v19 }
0x4d5f   :  { %v1889_v39 = vrot.slane %v1888_v27, 2  ;;  %v1900_v40 = vsel %vm871_vm2, %v1884_v29, 0.0  ;;  %v1041_v5 = vpop.permute.xlu1 %1040  ;;  %v1086_v44 = vrot.slane %v1085_v38, 4  ;;  %v1873_v41 = vsel %vm916_vm4, %v1867_v35, %v1872_v47 }
0x4d60   :  { %v1896_v46 = vrot.slane %v1895_v1, 2  ;;  %v1901_v0 = vrot.slane %v1900_v40, 4  ;;  %v1855_v54 = vpop.permute.xlu0 %1854  ;;  %v1057_v20 = vrot.slane %v1041_v5, %v9134_v37  ;;  %v1070_v42 = vmul.f32 %v1041_v5, %v9111_v57  ;;  %v9319_v57 = vld [vmem:[%s10304_s6] sm:$0xff] }
0x4d61   :  { %v1871_v12 = vrot.slane %v1855_v54, %v9134_v37  ;;  %v1885_v48 = vmul.f32 %v9126_v15, %v1855_v54  ;;  %v1890_v4 = vadd.f32 %v1889_v39, %v1888_v27  ;;  %v1087_v17 = vadd.f32 %v1086_v44, %v1085_v38 }
0x4d62   :  { %v1902_v8 = vadd.f32 %v1901_v0, %v1900_v40  ;;  %v1897_v58 = vadd.f32 %v1896_v46, %v1895_v1  ;;  %v1059_v15 = vsel %vm916_vm4, %v1053_v43, %v1058_v53  ;;  %v1082_v33 = vadd.f32 %v1081_v60, %v1080_v26 }
0x4d63   :  { %v1874_v30 = vsel %vm918_vm5, %v1871_v12, %v1873_v41  ;;  %v1907_v34 = vsel %vm871_vm2, %v1885_v48, 0.0  ;;  %v4781_v52 = vpop.permute.xlu1 %4780  ;;  %v1088_v6 = vrot.slane %v1087_v17, 2  ;;  %v1060_v9 = vsel %vm918_vm5, %v1057_v20, %v1059_v15  ;;  %v9358_v20 = vld [vmem:[%s10305_s5] ss:$0 sm:$0xff] }
0x4d64   :  { %v1903_v10 = vrot.slane %v1902_v8, 2  ;;  %7327 = vst.msk [vmem:[%s10276_s24 + $0x4] sm:$0xf] %vm921_vm6, %v1874_v30  ;;  %7772 = vmatmul.mubr.msk.f32.vlgmr.msra.gmra.mxu0 %vm103_vm0, %v4781_v52  ;;  %v1908_v63 = vrot.slane %v1907_v34, 4  ;;  %v1891_v31 = vrot.slane %v1890_v4, 1  ;;  %v1898_v49 = vrot.slane %v1897_v58, 1 }
0x4d65   :  { %7786 = vmatpush3.msk.msra.mxu0 %vm5286_vm7, %v9289_v59  ;;  %7791 = vmatprep.mubr.msk.f32.mxu0 %vm8414_vm1, %v8413_v2  ;;  %1062 = vst.msk [vmem:[%s10276_s24] sm:$0xf] %vm921_vm6, %v1060_v9  ;;  %v1089_v22 = vadd.f32 %v1088_v6, %v1087_v17  ;;  %v1092_v24 = vsel %vm871_vm2, %v1070_v42, 0.0  ;;  %v1083_v26 = vrot.slane %v1082_v33, 1  ;;  %v1076_v51 = vrot.slane %v1075_v11, 1 }
0x4d66   :  { %v1904_v45 = vadd.f32 %v1903_v10, %v1902_v8  ;;  %7787 = vmatprep.subr.mxu0 %v8413_v2  ;;  %v1909_v23 = vadd.f32 %v1908_v63, %v1907_v34  ;;  %v1093_v25 = vrot.slane %v1092_v24, 4  ;;  %v1899_v29 = vadd.f32 %v1898_v49, %v1897_v58 }
0x4d67   :  { %7788 = vmatpush3.msra.mxu0 %v9303_v61  ;;  %v1892_v1 = vadd.f32 %v1891_v31, %v1890_v4  ;;  %v1090_v35 = vrot.slane %v1089_v22, 1  ;;  %v1084_v40 = vadd.f32 %v1083_v26, %v1082_v33  ;;  %v1077_v5 = vadd.f32 %v1076_v51, %v1075_v11 }
0x4d68   :  { %v1905_v19 = vrot.slane %v1904_v45, 1  ;;  %7789 = vmatprep.subr.mxu0 %v8413_v2  ;;  %v1910_v36 = vrot.slane %v1909_v23, 2  ;;  %v1094_v27 = vadd.f32 %v1093_v25, %v1092_v24 }
0x4d69   :  { %7790 = vmatpush3.msra.mxu0 %v9319_v57  ;;  %v1918_v0 = vsel %vm914_vm3, %v1899_v29, %v1892_v1  ;;  %v1091_v43 = vadd.f32 %v1090_v35, %v1089_v22  ;;  %v1103_v12 = vsel %vm914_vm3, %v1084_v40, %v1077_v5 }
0x4d6a   :  { %7792 = vmatmul.mubr.f32.vlgmr.msra.gmra.mxu0 %v8413_v2  ;;  %7794 = vmatprep.subr.mxu0 %v8413_v2  ;;  %v1911_v38 = vadd.f32 %v1910_v36, %v1909_v23  ;;  %v1906_v53 = vadd.f32 %v1905_v19, %v1904_v45  ;;  %v1095_v32 = vrot.slane %v1094_v27, 2 }
0x4d6b   :  { %7795 = vmatpush3.msk.msra.mxu0 %vm5286_vm7, %v9289_v59  ;;  %7800 = vmatprep.mubr.msk.f32.mxu0 %vm8414_vm1, %v8413_v2  ;;  %v1104_v4 = vsel %vm916_vm4, %v1091_v43, %v1103_v12  ;;  %v4078_v12 = vrot.slane %v8997_v3, %v9036_v13 }
0x4d6c   :  { %7796 = vmatprep.subr.mxu0 %v8413_v2  ;;  %v1912_v39 = vrot.slane %v1911_v38, 1  ;;  %v1096_v46 = vadd.f32 %v1095_v32, %v1094_v27  ;;  %v1919_v54 = vsel %vm916_vm4, %v1906_v53, %v1918_v0  ;;  %v3260_v53 = vcombine.high %v8938_v7, %v8938_v7 }
0x4d6d   :  { %7797 = vmatpush3.msra.mxu0 %v9303_v61 }
0x4d6e   :  { %7798 = vmatprep.subr.mxu0 %v8413_v2  ;;  %v1913_v44 = vadd.f32 %v1912_v39, %v1911_v38  ;;  %v1097_v60 = vrot.slane %v1096_v46, 1  ;;  %v2453_v38 = vrot.slane %v8852_v50, %v9036_v13  ;;  %v3267_v39 = vrot.slane %v3260_v53, %v9036_v13 }
0x4d6f   :  { %7799 = vmatpush3.msra.mxu0 %v9319_v57 }
0x4d70   :  { %7812 = vmatprep.subr.mxu0 %v8413_v2  ;;  %v1920_v47 = vsel %vm918_vm5, %v1913_v44, %v1919_v54  ;;  %v1098_v48 = vadd.f32 %v1097_v60, %v1096_v46  ;;  %v2454_v32 = vcombine.high %v2453_v38, %v2453_v38  ;;  %v2461_v40 = vrot.slane %v2453_v38, %v9036_v13 }
0x4d71   :  { %1922 = vst.msk [vmem:[#allocation2 + $0x4] sm:$0xf] %vm1107_vm8, %v1920_v47  ;;  %v3275_v43 = vrot.slane %v3267_v39, %v9036_v13 }
0x4d72   :  { %v1105_v41 = vsel %vm918_vm5, %v1098_v48, %v1104_v4  ;;  %v2474_v46 = vrot.slane %v2461_v40, %v9043_v16  ;;  %v2468_v0 = vrot.slane %v2454_v32, %v9036_v13  ;;  %v2469_v50 = vcombine.high %v2461_v40, %v2461_v40 }
0x4d73   :  { %1108 = vst.msk [vmem:[#allocation2] sm:$0xf] %vm1107_vm8, %v1105_v41  ;;  %v3288_v54 = vrot.slane %v3275_v43, %v9043_v16  ;;  %v3283_v4 = vcombine.high %v3275_v43, %v3275_v43  ;;  %v9438_v43 = vld [vmem:[%s10302_s9 + $0x68] sm:$0x1f] }
0x4d74   :  { %v2478_v7 = vrot.slane %v2468_v0, %v9043_v16  ;;  %v2482_v47 = vrot.slane %v2469_v50, %v9043_v16  ;;  %v2470_v41 = vcombine.high %v2468_v0, %v2468_v0 }
0x4d7a   :  { %v5177_v8 = vld [vmem:[#allocation2] sm:$0xff] }
0x4d7b   :  { %7777 = vmatmul.mubr.msk.f32.vlgmr.msra.gmra.mxu1 %vm103_vm0, %v5177_v8  ;;  %v3296_v8 = vrot.slane %v3283_v4, %v9043_v16 }
0x4d7c   :  { %7779 = vmatprep.mubr.msk.f32.mxu1 %vm8414_vm1, %v8413_v2  ;;  %7804 = vmatpush3.msk.msra.mxu1 %vm5286_vm7, %v9289_v59 }
0x4d7d   :  { %7805 = vmatprep.subr.mxu1 %v8413_v2 }
0x4d7e   :  { %7806 = vmatpush3.msra.mxu1 %v9303_v61 }
0x4d7f   :  { %7807 = vmatprep.subr.mxu1 %v8413_v2 }
0x4d80   :  { %7808 = vmatpush3.msra.mxu1 %v9319_v57 }
0x4d81   :  { %7821 = vmatprep.subr.mxu1 %v8413_v2 }
0x4e24   :  { %v4850_v17 = vpop.f32.mrf.mxu0 }
0x4e25   :  { %v4851_v58 = vadd.f32 %v9158_v18, %v4850_v17  ;;  %v7388_v18 = vld [vmem:[%s10306_s3] ss:$0 sm:$0xff]  ;;  %v2486_v17 = vrot.slane %v2470_v41, %v9043_v16 }
0x4e26   :  { %v7773_v30 = vpop.f32.mrf.mxu0 }
0x4e27   :  { %v4855_v34 = vrot.slane %v4851_v58, 4  ;;  %v4086_v58 = vrot.slane %v4078_v12, %v9036_v13 }
0x4e29   :  { %4864 = vrot.lane.b32.xlu1 %v4855_v34, %s8415_s28  ;;  %v4857_v9 = vadd.f32 %v4855_v34, %v9173_v55  ;;  %v4099_v3 = vrot.slane %v4086_v58, %v9043_v16  ;;  %v4094_v30 = vcombine.high %v4086_v58, %v4086_v58  ;;  %v9465_v58 = vld [vmem:[%s10302_s9 + $0x50] sm:$0x1f] }
0x4e2a   :  { %v5356_v52 = vpop.f32.mrf.mxu0 }
0x4e2b   :  { %v5357_v10 = vadd.f32 %v9358_v20, %v5356_v52  ;;  %v7386_v33 = vmul.f32 -1.442695, %v4857_v9  ;;  %v4107_v34 = vrot.slane %v4094_v30, %v9043_v16  ;;  %v4880_v52 = vrot.slane %v9255_v14, 4 }
0x4e2c   :  { %v7793_v15 = vpop.f32.mrf.mxu0 }
0x4e2d   :  { %5368 = vrot.lane.b32.xlu0 %v5357_v10, %s8420_s1  ;;  %8164 = vpow2.f32 %v7386_v33 }
0x4e3a   :  { %v8165_v45 = vpop.eup %8164 }
0x4e3b   :  { %v5263_v6 = vpop.f32.mrf.mxu1  ;;  %v4861_v49 = vadd.f32 1.0, %v8165_v45 }
0x4e3c   :  { %v9367_v42 = vadd.f32 %v7388_v18, %v5263_v6  ;;  %v4079_v18 = vcombine.high %v4078_v12, %v4078_v12 }
0x4e3d   :  { %v7778_v63 = vpop.f32.mrf.mxu1 }
0x4e3e   :  { %v5360_v11 = vadd.f32 %v5357_v10, %v9367_v42 }
0x4e40   :  { %v7394_v31 = vmul.f32 -1.442695, %v5360_v11 }
0x4e42   :  { %8166 = vpow2.f32 %v7394_v31 }
0x4e43   :  { %8168 = vrcp.f32 %v4861_v49 }
0x4e4f   :  { %v8167_v22 = vpop.eup %8166 }
0x4e50   :  { %v5364_v23 = vadd.f32 1.0, %v8167_v22  ;;  %v8169_v24 = vpop.eup %8168 }
0x4e51   :  { %v4874_v10 = vsub.f32 1.0, %v8169_v24  ;;  %v4882_v6 = vmul.f32 %v8169_v24, %v4880_v52 }
0x4e52   :  { %8170 = vrcp.f32 %v5364_v23 }
0x4e5f   :  { %v8171_v36 = vpop.eup %8170 }
0x4e60   :  { %v5378_v33 = vsub.f32 1.0, %v8171_v36  ;;  %v5384_v45 = vmul.f32 0.0, %v8171_v36 }
0x4e9b   :  { %v4865_v19 = vpop.permute.xlu1 %4864 }
0x4e9c   :  { %v4867_v25 = vmul.f32 %v8169_v24, %v4865_v19 }
0x4e9e   :  { %4869 = vrot.lane.b32.xlu1 %v4867_v25, %s8416_s29  ;;  %v4093_v25 = vrot.slane %v4079_v18, %v9036_v13  ;;  %v9480_v18 = vld [vmem:[%s10302_s9 + $0x80] sm:$0x1f] }
0x4e9f   :  { %v5369_v26 = vpop.permute.xlu0 %5368 }
0x4ea0   :  { %v5371_v51 = vmul.f32 %v8171_v36, %v5369_v26  ;;  %v4103_v36 = vrot.slane %v4093_v25, %v9043_v16 }
0x4ea2   :  { %5373 = vrot.lane.b32.xlu0 %v5371_v51, %s8421_s4 }
0x4f10   :  { %v4870_v27 = vpop.permute.xlu1 %4869 }
0x4f11   :  { %v4872_v29 = vadd.f32 %v4870_v27, %v9173_v55  ;;  %v3268_v55 = vcombine.high %v3267_v39, %v3267_v39  ;;  %v4095_v27 = vcombine.high %v4093_v25, %v4093_v25  ;;  %v9494_v25 = vld [vmem:[%s10302_s9 + $0x78] sm:$0x1f] }
0x4f13   :  { %8172 = vtanh.f32 %v4872_v29  ;;  %v3282_v60 = vrot.slane %v3268_v55, %v9036_v13  ;;  %v4111_v29 = vrot.slane %v4095_v27, %v9043_v16 }
0x4f14   :  { %v5374_v1 = vpop.permute.xlu0 %5373 }
0x4f15   :  { %v5376_v35 = vadd.f32 %v5374_v1, %v9367_v42  ;;  %v3292_v48 = vrot.slane %v3282_v60, %v9043_v16  ;;  %v3284_v19 = vcombine.high %v3282_v60, %v3282_v60 }
0x4f17   :  { %8174 = vtanh.f32 %v5376_v35  ;;  %v3300_v26 = vrot.slane %v3284_v19, %v9043_v16 }
0x4f20   :  { %v8173_v5 = vpop.eup %8172 }
0x4f21   :  { %4876 = vrot.lane.b32.xlu1 %v8173_v5, %s8417_s2  ;;  %v9432_v5 = vld [vmem:[%s10302_s9 + $0x40] sm:$0x1f] }
0x4f24   :  { %v8175_v44 = vpop.eup %8174 }
0x4f25   :  { %5380 = vrot.lane.b32.xlu0 %v8175_v44, %s8422_s19  ;;  %2487 = vrot.lane.b32.xlu1 %v2474_v46, %s8417_s2  ;;  %v9443_v44 = vld [vmem:[%s10302_s9 + $0x48] sm:$0x1f] }
0x4f29   :  { %2489 = vrot.lane.b32.xlu0 %v2478_v7, %s8417_s2  ;;  %3301 = vrot.lane.b32.xlu1 %v3288_v54, %s8417_s2  ;;  %v9450_v54 = vld [vmem:[%s10302_s9 + $0x70] sm:$0x1f] }
0x4f2d   :  { %3303 = vrot.lane.b32.xlu0 %v3292_v48, %s8417_s2  ;;  %2491 = vrot.lane.b32.xlu1 %v2482_v47, %s8417_s2  ;;  %v9456_v48 = vld [vmem:[%s10302_s9 + $0x60] sm:$0x1f] }
0x4f31   :  { %3305 = vrot.lane.b32.xlu0 %v3296_v8, %s8417_s2  ;;  %2493 = vrot.lane.b32.xlu1 %v2486_v17, %s8417_s2 }
0x4f35   :  { %4112 = vrot.lane.b32.xlu1 %v4099_v3, %s8417_s2 }
0x4f39   :  { %4116 = vrot.lane.b32.xlu1 %v4107_v34, %s8417_s2 }
0x4f93   :  { %v4877_v15 = vpop.permute.xlu1 %4876 }
0x4f94   :  { %v4879_v63 = vmul.f32 %v4877_v15, %v4874_v10  ;;  %v9473_v10 = vld [vmem:[%s10302_s9 + $0x58] sm:$0x1f] }
0x4f96   :  { %v4883_v9 = vadd.f32 %v4882_v6, %v4879_v63 }
0x4f97   :  { %v5381_v11 = vpop.permute.xlu0 %5380 }
0x4f98   :  { %v4885_v31 = vcombine.high %v4883_v9, %v4883_v9  ;;  %v5383_v49 = vmul.f32 %v5381_v11, %v5378_v33  ;;  %v7360_v11 = vld [vmem:[%s10302_s9 + $0x90] sm:$0x1f] }
0x4f9a   :  { %v4892_v22 = vrot.slane %v4885_v31, %v9036_v13  ;;  %v9408_v23 = vadd.f32 %v5384_v45, %v5383_v49 }
0x4f9b   :  { %v2490_v40 = vpop.permute.xlu0 %2489 }
0x4f9c   :  { %v4900_v14 = vrot.slane %v4892_v22, %v9036_v13  ;;  %5387 = vrot.lane.b32.xlu0 %v9408_v23, %s8422_s19  ;;  %v4893_v24 = vcombine.high %v4892_v22, %v4892_v22  ;;  %v2500_v12 = vmul.f32 %v9443_v44, %v2490_v40 }
0x4f9e   :  { %v4913_v51 = vrot.slane %v4900_v14, %v9043_v16  ;;  %v4907_v1 = vrot.slane %v4893_v24, %v9036_v13  ;;  %v4908_v38 = vcombine.high %v4900_v14, %v4900_v14  ;;  %v2488_v13 = vpop.permute.xlu1 %2487  ;;  %v2506_v17 = vsel %vm871_vm2, %v2500_v12, 0.0  ;;  %v7373_v14 = vld [vmem:[%s10302_s9 + $0xa0] sm:$0x1f] }
0x4f9f   :  { %v3304_v55 = vpop.permute.xlu0 %3303  ;;  %v2499_v46 = vmul.f32 %v9432_v5, %v2488_v13 }
0x4fa0   :  { %3307 = vrot.lane.b32.xlu0 %v3300_v26, %s8417_s2  ;;  %4926 = vrot.lane.b32.xlu1 %v4913_v51, %s8417_s2  ;;  %v4917_v35 = vrot.slane %v4907_v1, %v9043_v16  ;;  %v4921_v53 = vrot.slane %v4908_v38, %v9043_v16  ;;  %v4909_v32 = vcombine.high %v4907_v1, %v4907_v1 }
0x4fa1   :  { %v3314_v50 = vmul.f32 %v9438_v43, %v3304_v55  ;;  %v2503_v7 = vsel %vm871_vm2, %v2499_v46, 0.0  ;;  %v9531_v55 = vld [vmem:[%s10302_s9 + $0xb0] sm:$0x1f] }
0x4fa2   :  { %v4925_v39 = vrot.slane %v4909_v32, %v9043_v16  ;;  %v3302_v0 = vpop.permute.xlu1 %3301  ;;  %v9523_v32 = vld [vmem:[%s10302_s9 + $0xa8] sm:$0x1f] }
0x4fa3   :  { %v3306_v60 = vpop.permute.xlu0 %3305  ;;  %v3320_v41 = vsel %vm871_vm2, %v3314_v50, 0.0  ;;  %v3313_v8 = vmul.f32 %v9456_v48, %v3302_v0 }
0x4fa4   :  { %4114 = vrot.lane.b32.xlu0 %v4103_v36, %s8417_s2  ;;  %4118 = vrot.lane.b32.xlu1 %v4111_v29, %s8417_s2  ;;  %v3315_v4 = vmul.f32 %v9450_v54, %v3306_v60  ;;  %v9510_v36 = vld [vmem:[%s10302_s9 + $0x88] sm:$0x1f] }
0x4fa5   :  { %v3317_v52 = vsel %vm871_vm2, %v3313_v8, 0.0 }
0x4fa6   :  { %v2492_v47 = vpop.permute.xlu1 %2491  ;;  %v3323_v30 = vsel %vm871_vm2, %v3315_v4, 0.0 }
0x4fa7   :  { %v2501_v34 = vmul.f32 %v9465_v58, %v2492_v47 }
0x4fa8   :  { %4928 = vrot.lane.b32.xlu0 %v4917_v35, %s8417_s2 }
0x4fa9   :  { %v2509_v63 = vsel %vm871_vm2, %v2501_v34, 0.0 }
0x4faa   :  { %v2494_v3 = vpop.permute.xlu1 %2493 }
0x4fab   :  { %v2502_v6 = vmul.f32 %v9473_v10, %v2494_v3 }
0x4fac   :  { %4930 = vrot.lane.b32.xlu0 %v4921_v53, %s8417_s2 }
0x4fad   :  { %v2512_v33 = vsel %vm871_vm2, %v2502_v6, 0.0 }
0x4fae   :  { %v4113_v15 = vpop.permute.xlu1 %4112 }
0x4faf   :  { %v4124_v9 = vmul.f32 %v9480_v18, %v4113_v15 }
0x4fb0   :  { %4932 = vrot.lane.b32.xlu0 %v4925_v39, %s8417_s2 }
0x4fb1   :  { %v4128_v49 = vsel %vm871_vm2, %v4124_v9, 0.0 }
0x4fb2   :  { %v4117_v31 = vpop.permute.xlu1 %4116 }
0x4fb3   :  { %v4126_v45 = vmul.f32 %v7360_v11, %v4117_v31 }
0x4fb5   :  { %v4134_v22 = vsel %vm871_vm2, %v4126_v45, 0.0 }
0x4fc8   :  { %2504 = vadd.xlane.f32.xlu1 %v2503_v7  ;;  %v9538_v7 = vld [vmem:[%s10302_s9 + $0xb8] sm:$0x1f] }
0x4fcc   :  { %3321 = vadd.xlane.f32.xlu1 %v3320_v41 }
0x4fcf   :  { %2507 = vadd.xlane.f32.xlu0 %v2506_v17 }
0x4fd0   :  { %3324 = vadd.xlane.f32.xlu1 %v3323_v30 }
0x4fd3   :  { %3318 = vadd.xlane.f32.xlu0 %v3317_v52 }
0x4fd7   :  { %2510 = vadd.xlane.f32.xlu0 %v2509_v63 }
0x4fdb   :  { %2513 = vadd.xlane.f32.xlu0 %v2512_v33 }
0x4fdf   :  { %4129 = vadd.xlane.f32.xlu0 %v4128_v49 }
0x4fe3   :  { %4135 = vadd.xlane.f32.xlu0 %v4134_v22 }
0x500e   :  { %v5388_v19 = vpop.permute.xlu0 %5387 }
0x500f   :  { %5391 = vst.msk [vmem:[#allocation3] sm:$0xf] %vm5390_vm9, %v5388_v19  ;;  %7801 = vmatmul.mubr.msk.f32.vlgmr.msra.gmra.mxu0 %vm5283_vm10, %v5388_v19 }
0x5010   :  { %7813 = vmatpush3.msk.msra.mxu0 %vm5286_vm7, %v9289_v59  ;;  %7818 = vmatprep.mubr.msk.f32.mxu0 %vm8414_vm1, %v8413_v2  ;;  %v7361_v59 = vld [vmem:[%s10302_s9 + $0x98] sm:$0x1f] }
0x5011   :  { %7814 = vmatprep.subr.mxu0 %v8413_v2 }
0x5012   :  { %v3308_v24 = vpop.permute.xlu0 %3307  ;;  %v4927_v26 = vpop.permute.xlu1 %4926  ;;  %7815 = vmatpush3.msra.mxu0 %v9303_v61 }
0x5013   :  { %v3316_v51 = vmul.f32 %v9494_v25, %v3308_v24  ;;  %v4938_v27 = vmul.f32 %v7373_v14, %v4927_v26  ;;  %7816 = vmatprep.subr.mxu0 %v8413_v2 }
0x5014   :  { %7817 = vmatpush3.msra.mxu0 %v9319_v57 }
0x5015   :  { %v3326_v29 = vsel %vm871_vm2, %v3316_v51, 0.0  ;;  %v4942_v61 = vsel %vm871_vm2, %v4938_v27, 0.0  ;;  %7830 = vmatprep.subr.mxu0 %v8413_v2 }
0x5016   :  { %3327 = vadd.xlane.f32.xlu1 %v3326_v29  ;;  %v4115_v1 = vpop.permute.xlu0 %4114  ;;  %v4119_v35 = vpop.permute.xlu1 %4118  ;;  %4943 = vadd.xlane.f32.xlu0 %v4942_v61 }
0x5017   :  { %v4125_v38 = vmul.f32 %v9510_v36, %v4115_v1  ;;  %v4127_v53 = vmul.f32 %v7361_v59, %v4119_v35 }
0x5019   :  { %v4131_v57 = vsel %vm871_vm2, %v4125_v38, 0.0  ;;  %v4137_v39 = vsel %vm871_vm2, %v4127_v53, 0.0 }
0x501a   :  { %4132 = vadd.xlane.f32.xlu1 %v4131_v57  ;;  %v4929_v40 = vpop.permute.xlu0 %4928  ;;  %4138 = vadd.xlane.f32.xlu0 %v4137_v39 }
0x501b   :  { %v4939_v13 = vmul.f32 %v9523_v32, %v4929_v40 }
0x501d   :  { %v4945_v46 = vsel %vm871_vm2, %v4939_v13, 0.0 }
0x501e   :  { %4946 = vadd.xlane.f32.xlu1 %v4945_v46  ;;  %v4931_v0 = vpop.permute.xlu0 %4930 }
0x501f   :  { %v4940_v50 = vmul.f32 %v9531_v55, %v4931_v0 }
0x5021   :  { %v4948_v60 = vsel %vm871_vm2, %v4940_v50, 0.0 }
0x5022   :  { %4949 = vadd.xlane.f32.xlu1 %v4948_v60  ;;  %v4933_v47 = vpop.permute.xlu0 %4932 }
0x5023   :  { %v4941_v12 = vmul.f32 %v9538_v7, %v4933_v47 }
0x5025   :  { %v4951_v4 = vsel %vm871_vm2, %v4941_v12, 0.0 }
0x5026   :  { %4952 = vadd.xlane.f32.xlu1 %v4951_v4 }
0x5051   :  { %v2505_v8 = vpop.xlane.xlu1 %2504 }
0x5055   :  { %v3322_v51 = vpop.xlane.xlu1 %3321 }
0x5058   :  { %v2508_v41 = vpop.xlane.xlu0 %2507 }
0x5059   :  { %8176 = vtanh.f32 %v2508_v41  ;;  %v3325_v59 = vpop.xlane.xlu1 %3324 }
0x505a   :  { %8178 = vtanh.f32 %v2505_v8 }
0x505c   :  { %v3319_v17 = vpop.xlane.xlu0 %3318 }
0x5060   :  { %v2511_v3 = vpop.xlane.xlu0 %2510 }
0x5061   :  { %8180 = vtanh.f32 %v2511_v3 }
0x5064   :  { %v2514_v30 = vpop.xlane.xlu0 %2513 }
0x5065   :  { %8182 = vtanh.f32 %v2514_v30 }
0x5066   :  { %v8177_v34 = vpop.eup %8176  ;;  %8184 = vtanh.f32 %v3319_v17 }
0x5067   :  { %v8179_v52 = vpop.eup %8178  ;;  %v9543_v15 = vmul.f32 10.0, %v8177_v34  ;;  %8186 = vtanh.f32 %v3322_v51 }
0x5068   :  { %v9545_v63 = vmul.f32 10.0, %v8179_v52  ;;  %v4130_v27 = vpop.xlane.xlu0 %4129  ;;  %8188 = vtanh.f32 %v3325_v59 }
0x5069   :  { %v2534_v33 = vrot.slane %v9543_v15, %v9134_v37  ;;  %8190 = vtanh.f32 %v4130_v27 }
0x506a   :  { %v2530_v45 = vrot.slane %v9545_v63, %v9134_v37 }
0x506c   :  { %v2543_v19 = vsel %vm914_vm3, %v2534_v33, %v2530_v45  ;;  %v4136_v29 = vpop.xlane.xlu0 %4135 }
0x506e   :  { %v8181_v6 = vpop.eup %8180 }
0x506f   :  { %v9547_v9 = vmul.f32 10.0, %v8181_v6 }
0x5071   :  { %v2538_v31 = vrot.slane %v9547_v9, %v9134_v37 }
0x5072   :  { %v8183_v11 = vpop.eup %8182 }
0x5073   :  { %v9555_v49 = vmul.f32 10.0, %v8183_v11  ;;  %v2544_v14 = vsel %vm916_vm4, %v2538_v31, %v2543_v19  ;;  %v8185_v35 = vpop.eup %8184 }
0x5074   :  { %v8187_v57 = vpop.eup %8186  ;;  %v9563_v39 = vmul.f32 10.0, %v8185_v35 }
0x5075   :  { %v2542_v22 = vrot.slane %v9555_v49, %v9134_v37  ;;  %v8189_v13 = vpop.eup %8188  ;;  %v9565_v46 = vmul.f32 10.0, %v8187_v57 }
0x5076   :  { %v3344_v0 = vrot.slane %v9563_v39, %v9134_v37  ;;  %v9569_v50 = vmul.f32 10.0, %v8189_v13  ;;  %v8191_v47 = vpop.eup %8190 }
0x5077   :  { %v2545_v24 = vsel %vm918_vm5, %v2542_v22, %v2544_v14  ;;  %v3348_v12 = vrot.slane %v9565_v46, %v9134_v37  ;;  %v9578_v34 = vmul.f32 10.0, %v8191_v47 }
0x5078   :  { %v2547_v26 = vsel %vm921_vm6, %v2545_v24, -inf  ;;  %v3352_v3 = vrot.slane %v9569_v50, %v9134_v37 }
0x5079   :  { %2548 = vmax.xlane.f32.xlu0 %v2547_v26  ;;  %v3357_v17 = vsel %vm914_vm3, %v3348_v12, %v3344_v0  ;;  %v4155_v24 = vrot.slane %v9578_v34, %v9134_v37 }
0x507a   :  { %v3358_v11 = vsel %vm916_vm4, %v3352_v3, %v3357_v17 }
0x509f   :  { %v3328_v61 = vpop.xlane.xlu1 %3327  ;;  %v4944_v1 = vpop.xlane.xlu0 %4943 }
0x50a0   :  { %8192 = vtanh.f32 %v3328_v61 }
0x50a1   :  { %8194 = vtanh.f32 %v4136_v29 }
0x50a3   :  { %v4133_v38 = vpop.xlane.xlu1 %4132  ;;  %v4139_v53 = vpop.xlane.xlu0 %4138 }
0x50a4   :  { %8196 = vtanh.f32 %v4133_v38 }
0x50a5   :  { %8198 = vtanh.f32 %v4139_v53 }
0x50a7   :  { %v4947_v40 = vpop.xlane.xlu1 %4946 }
0x50a8   :  { %8200 = vtanh.f32 %v4947_v40 }
0x50a9   :  { %8202 = vtanh.f32 %v4944_v1 }
0x50ab   :  { %v4950_v60 = vpop.xlane.xlu1 %4949 }
0x50ac   :  { %8204 = vtanh.f32 %v4950_v60 }
0x50ad   :  { %v8193_v4 = vpop.eup %8192 }
0x50ae   :  { %v8195_v41 = vpop.eup %8194  ;;  %v9573_v8 = vmul.f32 10.0, %v8193_v4 }
0x50af   :  { %v4953_v30 = vpop.xlane.xlu1 %4952  ;;  %v9582_v33 = vmul.f32 10.0, %v8195_v41 }
0x50b0   :  { %8206 = vtanh.f32 %v4953_v30  ;;  %v3356_v52 = vrot.slane %v9573_v8, %v9134_v37 }
0x50b1   :  { %v8197_v6 = vpop.eup %8196  ;;  %v4163_v27 = vrot.slane %v9582_v33, %v9134_v37 }
0x50b2   :  { %v8199_v31 = vpop.eup %8198  ;;  %v9585_v45 = vmul.f32 10.0, %v8197_v6  ;;  %v3359_v22 = vsel %vm918_vm5, %v3356_v52, %v3358_v11 }
0x50b3   :  { %v9588_v19 = vmul.f32 10.0, %v8199_v31  ;;  %v3361_v14 = vsel %vm921_vm6, %v3359_v22, -inf }
0x50b4   :  { %v4159_v26 = vrot.slane %v9585_v45, %v9134_v37  ;;  %3362 = vmax.xlane.f32.xlu1 %v3361_v14 }
0x50b5   :  { %v8201_v51 = vpop.eup %8200  ;;  %v4167_v59 = vrot.slane %v9588_v19, %v9134_v37 }
0x50b6   :  { %v4168_v29 = vsel %vm914_vm3, %v4159_v26, %v4155_v24  ;;  %v8203_v61 = vpop.eup %8202  ;;  %v9601_v35 = vmul.f32 10.0, %v8201_v51 }
0x50b7   :  { %v4169_v1 = vsel %vm916_vm4, %v4163_v27, %v4168_v29  ;;  %v9605_v40 = vmul.f32 10.0, %v8203_v61 }
0x50b8   :  { %v4170_v38 = vsel %vm918_vm5, %v4167_v59, %v4169_v1  ;;  %v4973_v0 = vrot.slane %v9601_v35, %v9134_v37 }
0x50b9   :  { %v8205_v53 = vpop.eup %8204  ;;  %v4172_v57 = vsel %vm921_vm6, %v4170_v38, -inf  ;;  %v4969_v12 = vrot.slane %v9605_v40, %v9134_v37 }
0x50ba   :  { %v9607_v13 = vmul.f32 10.0, %v8205_v53  ;;  %4173 = vmax.xlane.f32.xlu0 %v4172_v57 }
0x50bb   :  { %v4982_v17 = vsel %vm914_vm3, %v4973_v0, %v4969_v12 }
0x50bc   :  { %v4977_v47 = vrot.slane %v9607_v13, %v9134_v37 }
0x50bd   :  { %v8207_v60 = vpop.eup %8206 }
0x50be   :  { %v9615_v4 = vmul.f32 10.0, %v8207_v60  ;;  %v4983_v3 = vsel %vm916_vm4, %v4977_v47, %v4982_v17 }
0x50c0   :  { %v4981_v41 = vrot.slane %v9615_v4, %v9134_v37 }
0x50c2   :  { %v4984_v30 = vsel %vm918_vm5, %v4981_v41, %v4983_v3 }
0x50c3   :  { %v4986_v52 = vsel %vm921_vm6, %v4984_v30, -inf }
0x50c4   :  { %4987 = vmax.xlane.f32.xlu1 %v4986_v52 }
0x50cf   :  { %v9623_v6 = vpop.f32.mrf.mxu0 }
0x50d1   :  { %v7802_v11 = vpop.f32.mrf.mxu0 }
0x5102   :  { %v2549_v31 = vpop.xlane.xlu0 %2548 }
0x5103   :  { %v2554_v22 = vrot.slane %v2549_v31, %v9043_v16  ;;  %v2558_v14 = vrot.slane %v2549_v31, %v9165_v56  ;;  %v2562_v61 = vrot.slane %v2549_v31, %v9176_v28  ;;  %v2566_v53 = vrot.slane %v2549_v31, %v9183_v62 }
0x5105   :  { %v2571_v24 = vsub.f32 %v9545_v63, %v2554_v22  ;;  %v2572_v26 = vsub.f32 %v9543_v15, %v2558_v14  ;;  %v2573_v57 = vsub.f32 %v9547_v9, %v2562_v61  ;;  %v2574_v30 = vsub.f32 %v9555_v49, %v2566_v53 }
0x5107   :  { %v2575_v51 = vmul.f32 1.442695, %v2571_v24  ;;  %v2577_v27 = vmul.f32 1.442695, %v2572_v26  ;;  %v2579_v52 = vmul.f32 1.442695, %v2573_v57 }
0x5109   :  { %8208 = vpow2.f32 %v2575_v51 }
0x510a   :  { %8210 = vpow2.f32 %v2577_v27 }
0x5116   :  { %v9629_v59 = vpop.eup %8208 }
0x5117   :  { %2588 = vperm.xlu1 %7934, %v9629_v59   ;;  %v9632_v29 = vpop.eup %8210 }
0x511b   :  { %2591 = vperm.xlu1 %7934, %v9632_v29  }
0x513d   :  { %v3363_v1 = vpop.xlane.xlu1 %3362 }
0x513e   :  { %v3368_v38 = vrot.slane %v3363_v1, %v9043_v16  ;;  %v3372_v63 = vrot.slane %v3363_v1, %v9165_v56  ;;  %v3376_v15 = vrot.slane %v3363_v1, %v9176_v28  ;;  %v3380_v47 = vrot.slane %v3363_v1, %v9183_v62 }
0x5140   :  { %v3385_v0 = vsub.f32 %v9563_v39, %v3368_v38  ;;  %v3386_v60 = vsub.f32 %v9565_v46, %v3372_v63  ;;  %v3387_v12 = vsub.f32 %v9569_v50, %v3376_v15  ;;  %v3388_v31 = vsub.f32 %v9573_v8, %v3380_v47 }
0x5141   :  { %v2581_v46 = vmul.f32 1.442695, %v2574_v30 }
0x5142   :  { %v3389_v41 = vmul.f32 1.442695, %v3385_v0  ;;  %v3391_v17 = vmul.f32 1.442695, %v3386_v60  ;;  %v3393_v9 = vmul.f32 1.442695, %v3387_v12 }
0x5143   :  { %v4174_v3 = vpop.xlane.xlu0 %4173  ;;  %v3395_v14 = vmul.f32 1.442695, %v3388_v31 }
0x5144   :  { %8212 = vpow2.f32 %v3389_v41  ;;  %v4179_v11 = vrot.slane %v4174_v3, %v9043_v16  ;;  %v4183_v39 = vrot.slane %v4174_v3, %v9165_v56  ;;  %v4187_v22 = vrot.slane %v4174_v3, %v9176_v28 }
0x5145   :  { %8214 = vpow2.f32 %v3391_v17  ;;  %v4191_v57 = vrot.slane %v4174_v3, %v9183_v62 }
0x5146   :  { %8216 = vpow2.f32 %v2579_v52  ;;  %v4196_v50 = vsub.f32 %v9578_v34, %v4179_v11  ;;  %v4197_v49 = vsub.f32 %v9585_v45, %v4183_v39  ;;  %v4198_v24 = vsub.f32 %v9582_v33, %v4187_v22 }
0x5147   :  { %8218 = vpow2.f32 %v3393_v9 }
0x5148   :  { %8220 = vpow2.f32 %v2581_v46  ;;  %v4200_v26 = vmul.f32 1.442695, %v4196_v50  ;;  %v4202_v8 = vmul.f32 1.442695, %v4197_v49  ;;  %v4204_v1 = vmul.f32 1.442695, %v4198_v24 }
0x5149   :  { %8222 = vpow2.f32 %v3395_v14 }
0x514a   :  { %8224 = vpow2.f32 %v4200_v26 }
0x514b   :  { %8226 = vpow2.f32 %v4202_v8 }
0x514c   :  { %8228 = vpow2.f32 %v4204_v1 }
0x514d   :  { %v4988_v51 = vpop.xlane.xlu1 %4987 }
0x514e   :  { %v4997_v27 = vrot.slane %v4988_v51, %v9165_v56  ;;  %v5001_v61 = vrot.slane %v4988_v51, %v9176_v28  ;;  %v4993_v38 = vrot.slane %v4988_v51, %v9043_v16  ;;  %v5005_v45 = vrot.slane %v4988_v51, %v9183_v62 }
0x5150   :  { %v5011_v34 = vsub.f32 %v9601_v35, %v4997_v27  ;;  %v5012_v33 = vsub.f32 %v9607_v13, %v5001_v61  ;;  %v5010_v0 = vsub.f32 %v9605_v40, %v4993_v38  ;;  %v5013_v60 = vsub.f32 %v9615_v4, %v5005_v45 }
0x5151   :  { %v9657_v63 = vpop.eup %8212  ;;  %v4199_v13 = vsub.f32 %v9588_v19, %v4191_v57  ;;  %v5461_v19 = vadd.f32 %v9358_v20, %v9623_v6 }
0x5152   :  { %v9661_v15 = vpop.eup %8214  ;;  %v5016_v53 = vmul.f32 1.442695, %v5011_v34  ;;  %3402 = vperm.xlu0 %7933, %v9657_v63   ;;  %v5018_v47 = vmul.f32 1.442695, %v5012_v33  ;;  %v5014_v41 = vmul.f32 1.442695, %v5010_v0 }
0x5153   :  { %3405 = vperm.xlu1 %7934, %v9661_v15   ;;  %v9667_v35 = vpop.eup %8216  ;;  %v5020_v3 = vmul.f32 1.442695, %v5013_v60  ;;  %v4206_v4 = vmul.f32 1.442695, %v4199_v13  ;;  %v5465_v9 = vrot.slane %v5461_v19, 4 }
0x5154   :  { %8230 = vpow2.f32 %v5016_v53  ;;  %v9670_v12 = vpop.eup %8218 }
0x5155   :  { %v9675_v17 = vpop.eup %8220  ;;  %8232 = vpow2.f32 %v5018_v47  ;;  %v5467_v6 = vadd.f32 %v5465_v9, %v9367_v42 }
0x5156   :  { %2594 = vperm.xlu0 %7933, %v9667_v35   ;;  %v9677_v40 = vpop.eup %8222  ;;  %8234 = vpow2.f32 %v5014_v41 }
0x5157   :  { %3408 = vperm.xlu1 %7934, %v9670_v12   ;;  %v9681_v30 = vpop.eup %8224  ;;  %8236 = vpow2.f32 %v5020_v3  ;;  %v7397_v50 = vmul.f32 -1.442695, %v5467_v6 }
0x5158   :  { %v9683_v52 = vpop.eup %8226  ;;  %8238 = vpow2.f32 %v4206_v4 }
0x5159   :  { %v9689_v11 = vpop.eup %8228  ;;  %8240 = vpow2.f32 %v7397_v50 }
0x515a   :  { %2597 = vperm.xlu0 %7933, %v9675_v17  }
0x515b   :  { %3411 = vperm.xlu1 %7934, %v9677_v40  }
0x515e   :  { %4213 = vperm.xlu0 %7933, %v9681_v30  }
0x515f   :  { %4216 = vperm.xlu1 %7934, %v9683_v52  }
0x5161   :  { %v9691_v31 = vpop.eup %8230 }
0x5162   :  { %4219 = vperm.xlu0 %7933, %v9689_v11   ;;  %v9695_v39 = vpop.eup %8232 }
0x5163   :  { %5030 = vperm.xlu1 %7934, %v9691_v31   ;;  %v9699_v46 = vpop.eup %8234 }
0x5164   :  { %v9701_v22 = vpop.eup %8236 }
0x5165   :  { %v9705_v20 = vpop.eup %8238 }
0x5166   :  { %5474 = vrot.lane.b32.xlu0 %v5465_v9, %s8420_s1  ;;  %v8241_v24 = vpop.eup %8240 }
0x5167   :  { %5033 = vperm.xlu1 %7934, %v9695_v39   ;;  %v5471_v51 = vadd.f32 1.0, %v8241_v24 }
0x5169   :  { %8242 = vrcp.f32 %v5471_v51 }
0x516a   :  { %5027 = vperm.xlu0 %7933, %v9699_v46  }
0x516b   :  { %5036 = vperm.xlu1 %7934, %v9701_v22  }
0x516e   :  { %4222 = vperm.xlu0 %7933, %v9705_v20  }
0x5176   :  { %v9717_v19 = vpop.eup %8242 }
0x5192   :  { %v2589_v14 = vpop.permute.xlu1 %2588 }
0x5193   :  { %v2602_v34 = vrot.slane %v2589_v14, %v9134_v37 }
0x5196   :  { %v2592_v49 = vpop.permute.xlu1 %2591 }
0x5197   :  { %v2606_v61 = vrot.slane %v2592_v49, %v9134_v37 }
0x5199   :  { %v2615_v33 = vsel %vm914_vm3, %v2606_v61, %v2602_v34 }
0x51cd   :  { %v3403_v26 = vpop.permute.xlu0 %3402 }
0x51ce   :  { %v3406_v8 = vpop.permute.xlu1 %3405 }
0x51d1   :  { %v2595_v27 = vpop.permute.xlu0 %2594 }
0x51d2   :  { %v3409_v1 = vpop.permute.xlu1 %3408  ;;  %v2610_v38 = vrot.slane %v2595_v27, %v9134_v37 }
0x51d4   :  { %v2616_v0 = vsel %vm916_vm4, %v2610_v38, %v2615_v33 }
0x51d5   :  { %v2598_v45 = vpop.permute.xlu0 %2597 }
0x51d6   :  { %v3412_v53 = vpop.permute.xlu1 %3411  ;;  %v2614_v57 = vrot.slane %v2598_v45, %v9134_v37 }
0x51d8   :  { %v2617_v60 = vsel %vm918_vm5, %v2614_v57, %v2616_v0  ;;  %v3420_v57 = vrot.slane %v3406_v8, %v9134_v37  ;;  %v3416_v0 = vrot.slane %v3403_v26, %v9134_v37 }
0x51d9   :  { %v4214_v47 = vpop.permute.xlu0 %4213  ;;  %v2619_v13 = vsel %vm921_vm6, %v2617_v60, 0.0  ;;  %v3424_v60 = vrot.slane %v3409_v1, %v9134_v37 }
0x51da   :  { %v4217_v41 = vpop.permute.xlu1 %4216  ;;  %2620 = vadd.xlane.f32.xlu1 %v2619_v13  ;;  %v3428_v13 = vrot.slane %v3412_v53, %v9134_v37 }
0x51dd   :  { %v4220_v3 = vpop.permute.xlu0 %4219 }
0x51de   :  { %v5031_v4 = vpop.permute.xlu1 %5030 }
0x51df   :  { %v5045_v49 = vrot.slane %v5031_v4, %v9134_v37 }
0x51e1   :  { %v5475_v9 = vpop.permute.xlu0 %5474 }
0x51e2   :  { %v5034_v6 = vpop.permute.xlu1 %5033  ;;  %v5477_v50 = vmul.f32 %v9717_v19, %v5475_v9  ;;  %v3429_v9 = vsel %vm914_vm3, %v3420_v57, %v3416_v0 }
0x51e3   :  { %v5049_v27 = vrot.slane %v5034_v6, %v9134_v37  ;;  %v4231_v6 = vrot.slane %v4217_v41, %v9134_v37 }
0x51e4   :  { %5479 = vrot.lane.b32.xlu0 %v5477_v50, %s8421_s4  ;;  %v4227_v50 = vrot.slane %v4214_v47, %v9134_v37 }
0x51e5   :  { %v5028_v14 = vpop.permute.xlu0 %5027 }
0x51e6   :  { %v5037_v24 = vpop.permute.xlu1 %5036  ;;  %v5041_v51 = vrot.slane %v5028_v14, %v9134_v37  ;;  %v4235_v14 = vrot.slane %v4220_v3, %v9134_v37  ;;  %v4240_v26 = vsel %vm914_vm3, %v4231_v6, %v4227_v50 }
0x51e7   :  { %v5053_v61 = vrot.slane %v5037_v24, %v9134_v37 }
0x51e8   :  { %v5054_v38 = vsel %vm914_vm3, %v5045_v49, %v5041_v51  ;;  %v3430_v49 = vsel %vm916_vm4, %v3424_v60, %v3429_v9  ;;  %v4241_v53 = vsel %vm916_vm4, %v4235_v14, %v4240_v26 }
0x51e9   :  { %v5055_v34 = vsel %vm916_vm4, %v5049_v27, %v5054_v38  ;;  %v4223_v4 = vpop.permute.xlu0 %4222  ;;  %v3431_v8 = vsel %vm918_vm5, %v3428_v13, %v3430_v49 }
0x51ea   :  { %v5056_v45 = vsel %vm918_vm5, %v5053_v61, %v5055_v34  ;;  %v4239_v24 = vrot.slane %v4223_v4, %v9134_v37  ;;  %v3433_v1 = vsel %vm921_vm6, %v3431_v8, 0.0 }
0x51eb   :  { %v5058_v33 = vsel %vm921_vm6, %v5056_v45, 0.0 }
0x51ec   :  { %5059 = vadd.xlane.f32.xlu1 %v5058_v33  ;;  %v4242_v51 = vsel %vm918_vm5, %v4239_v24, %v4241_v53 }
0x51ed   :  { %v4244_v41 = vsel %vm921_vm6, %v4242_v51, 0.0 }
0x5203   :  { %3434 = vadd.xlane.f32.xlu0 %v3433_v1 }
0x5207   :  { %4245 = vadd.xlane.f32.xlu0 %v4244_v41 }
0x5256   :  { %v5480_v47 = vpop.permute.xlu0 %5479 }
0x5257   :  { %v5482_v3 = vadd.f32 %v5480_v47, %v9367_v42 }
0x5259   :  { %8244 = vtanh.f32 %v5482_v3 }
0x5263   :  { %v2621_v27 = vpop.xlane.xlu1 %2620 }
0x5264   :  { %v2626_v61 = vrot.slane %v2621_v27, %v9043_v16  ;;  %v2630_v38 = vrot.slane %v2621_v27, %v9165_v56  ;;  %v2634_v60 = vrot.slane %v2621_v27, %v9176_v28  ;;  %v2638_v6 = vrot.slane %v2621_v27, %v9183_v62 }
0x5266   :  { %v8245_v34 = vpop.eup %8244  ;;  %8246 = vrcp.f32 %v2626_v61 }
0x5267   :  { %5486 = vrot.lane.b32.xlu0 %v8245_v34, %s8422_s19  ;;  %8248 = vrcp.f32 %v2630_v38 }
0x5273   :  { %v8247_v45 = vpop.eup %8246 }
0x5274   :  { %v2644_v33 = vmul.f32 %v8247_v45, %v9629_v59  ;;  %v8249_v57 = vpop.eup %8248 }
0x5275   :  { %v2646_v0 = vmul.f32 %v8249_v57, %v9632_v29  ;;  %v5060_v49 = vpop.xlane.xlu1 %5059 }
0x5276   :  { %2656 = vperm.xlu1 %7934, %v2644_v33   ;;  %v5069_v8 = vrot.slane %v5060_v49, %v9165_v56  ;;  %v5065_v53 = vrot.slane %v5060_v49, %v9043_v16  ;;  %v5073_v47 = vrot.slane %v5060_v49, %v9176_v28 }
0x527a   :  { %2659 = vperm.xlu1 %7934, %v2646_v0  }
0x528c   :  { %v3435_v42 = vpop.xlane.xlu0 %3434 }
0x528d   :  { %v3440_v13 = vrot.slane %v3435_v42, %v9043_v16  ;;  %v3444_v4 = vrot.slane %v3435_v42, %v9165_v56  ;;  %v3448_v9 = vrot.slane %v3435_v42, %v9176_v28  ;;  %v3452_v59 = vrot.slane %v3435_v42, %v9183_v62 }
0x528f   :  { %8250 = vrcp.f32 %v3440_v13 }
0x5290   :  { %8252 = vrcp.f32 %v3444_v4  ;;  %v4246_v50 = vpop.xlane.xlu0 %4245 }
0x5291   :  { %8254 = vrcp.f32 %v2634_v60  ;;  %v4251_v29 = vrot.slane %v4246_v50, %v9043_v16  ;;  %v4255_v14 = vrot.slane %v4246_v50, %v9165_v56  ;;  %v4259_v24 = vrot.slane %v4246_v50, %v9176_v28 }
0x5292   :  { %8256 = vrcp.f32 %v3448_v9  ;;  %v4263_v56 = vrot.slane %v4246_v50, %v9183_v62  ;;  %v5077_v16 = vrot.slane %v5060_v49, %v9183_v62 }
0x5293   :  { %8258 = vrcp.f32 %v2638_v6 }
0x5294   :  { %8260 = vrcp.f32 %v3452_v59 }
0x5295   :  { %8262 = vrcp.f32 %v4251_v29 }
0x5296   :  { %8264 = vrcp.f32 %v4255_v14 }
0x5297   :  { %8266 = vrcp.f32 %v4259_v24 }
0x5298   :  { %8268 = vrcp.f32 %v5069_v8 }
0x5299   :  { %8270 = vrcp.f32 %v5065_v53 }
0x529a   :  { %8272 = vrcp.f32 %v5073_v47 }
0x529b   :  { %8274 = vrcp.f32 %v4263_v56 }
0x529c   :  { %v8251_v26 = vpop.eup %8250  ;;  %8276 = vrcp.f32 %v5077_v16 }
0x529d   :  { %v8253_v1 = vpop.eup %8252  ;;  %v3458_v51 = vmul.f32 %v8251_v26, %v9657_v63 }
0x529e   :  { %v8255_v41 = vpop.eup %8254  ;;  %v3460_v3 = vmul.f32 %v8253_v1, %v9661_v15 }
0x529f   :  { %v8257_v27 = vpop.eup %8256  ;;  %3470 = vperm.xlu0 %7933, %v3458_v51   ;;  %v2648_v61 = vmul.f32 %v8255_v41, %v9667_v35 }
0x52a0   :  { %3473 = vperm.xlu1 %7934, %v3460_v3   ;;  %v8259_v38 = vpop.eup %8258  ;;  %v3462_v63 = vmul.f32 %v8257_v27, %v9670_v12 }
0x52a1   :  { %v8261_v34 = vpop.eup %8260  ;;  %v2650_v28 = vmul.f32 %v8259_v38, %v9675_v17 }
0x52a2   :  { %v8263_v15 = vpop.eup %8262  ;;  %v3464_v45 = vmul.f32 %v8261_v34, %v9677_v40 }
0x52a3   :  { %2662 = vperm.xlu0 %7933, %v2648_v61   ;;  %v8265_v33 = vpop.eup %8264  ;;  %v4269_v35 = vmul.f32 %v8263_v15, %v9681_v30 }
0x52a4   :  { %3476 = vperm.xlu1 %7934, %v3462_v63   ;;  %v8267_v57 = vpop.eup %8266  ;;  %v4271_v62 = vmul.f32 %v8265_v33, %v9683_v52 }
0x52a5   :  { %v8269_v0 = vpop.eup %8268  ;;  %v4273_v12 = vmul.f32 %v8267_v57, %v9689_v11  ;;  %v5490_v11 = vrot.slane %v9408_v23, 4 }
0x52a6   :  { %v8271_v42 = vpop.eup %8270  ;;  %v5085_v17 = vmul.f32 %v8269_v0, %v9691_v31  ;;  %v5484_v31 = vsub.f32 1.0, %v9717_v19 }
0x52a7   :  { %2665 = vperm.xlu0 %7933, %v2650_v28   ;;  %v8273_v60 = vpop.eup %8272  ;;  %v5083_v40 = vmul.f32 %v8271_v42, %v9699_v46  ;;  %v5492_v59 = vmul.f32 %v9717_v19, %v5490_v11 }
0x52a8   :  { %3479 = vperm.xlu1 %7934, %v3464_v45   ;;  %v8275_v13 = vpop.eup %8274  ;;  %v5087_v4 = vmul.f32 %v8273_v60, %v9695_v39 }
0x52a9   :  { %v8277_v30 = vpop.eup %8276  ;;  %v4275_v52 = vmul.f32 %v8275_v13, %v9705_v20 }
0x52aa   :  { %v5089_v9 = vmul.f32 %v8277_v30, %v9701_v22 }
0x52ab   :  { %4281 = vperm.xlu0 %7933, %v4269_v35  }
0x52ac   :  { %4284 = vperm.xlu1 %7934, %v4271_v62  }
0x52af   :  { %4287 = vperm.xlu0 %7933, %v4273_v12  }
0x52b0   :  { %5098 = vperm.xlu1 %7934, %v5085_v17  }
0x52b3   :  { %5095 = vperm.xlu0 %7933, %v5083_v40  }
0x52b4   :  { %5101 = vperm.xlu1 %7934, %v5087_v4  }
0x52b7   :  { %4290 = vperm.xlu0 %7933, %v4275_v52  }
0x52b8   :  { %5104 = vperm.xlu1 %7934, %v5089_v9  }
0x52d9   :  { %v5487_v6 = vpop.permute.xlu0 %5486 }
0x52da   :  { %v5489_v46 = vmul.f32 %v5487_v6, %v5484_v31 }
0x52dc   :  { %v9782_v50 = vadd.f32 %v5492_v59, %v5489_v46 }
0x52de   :  { %v5500_v39 = vrot.slane %v9782_v50, 4 }
0x52e0   :  { %5501 = vrot.lane.b32.xlu0 %v5500_v39, %s8422_s19 }
0x52f1   :  { %v2657_v20 = vpop.permute.xlu1 %2656 }
0x52f2   :  { %v2693_v23 = vmul.f32 %v9432_v5, %v2657_v20  ;;  %v2670_v47 = vrot.slane %v2657_v20, %v9134_v37 }
0x52f4   :  { %v2697_v49 = vsel %vm871_vm2, %v2693_v23, 0.0 }
0x52f5   :  { %v2660_v22 = vpop.permute.xlu1 %2659  ;;  %v2698_v24 = vrot.slane %v2697_v49, 4 }
0x52f6   :  { %v2694_v29 = vmul.f32 %v9443_v44, %v2660_v22  ;;  %v2674_v26 = vrot.slane %v2660_v22, %v9134_v37 }
0x52f7   :  { %v2699_v53 = vadd.f32 %v2698_v24, %v2697_v49 }
0x52f8   :  { %v2704_v14 = vsel %vm871_vm2, %v2694_v29, 0.0  ;;  %v2683_v61 = vsel %vm914_vm3, %v2674_v26, %v2670_v47 }
0x52f9   :  { %v2705_v19 = vrot.slane %v2704_v14, 4  ;;  %v2700_v34 = vrot.slane %v2699_v53, 2 }
0x52fb   :  { %v2706_v8 = vadd.f32 %v2705_v19, %v2704_v14  ;;  %v2701_v23 = vadd.f32 %v2700_v34, %v2699_v53 }
0x52fd   :  { %v2707_v3 = vrot.slane %v2706_v8, 2 }
0x531a   :  { %v3471_v1 = vpop.permute.xlu0 %3470 }
0x531b   :  { %v3474_v51 = vpop.permute.xlu1 %3473  ;;  %v3507_v41 = vmul.f32 %v9456_v48, %v3471_v1  ;;  %v3484_v27 = vrot.slane %v3471_v1, %v9134_v37 }
0x531c   :  { %v3508_v44 = vmul.f32 %v9438_v43, %v3474_v51  ;;  %v3488_v5 = vrot.slane %v3474_v51, %v9134_v37  ;;  %v2708_v43 = vadd.f32 %v2707_v3, %v2706_v8 }
0x531d   :  { %v3511_v56 = vsel %vm871_vm2, %v3507_v41, 0.0 }
0x531e   :  { %v3518_v38 = vsel %vm871_vm2, %v3508_v44, 0.0  ;;  %v3512_v16 = vrot.slane %v3511_v56, 4  ;;  %v2663_v63 = vpop.permute.xlu0 %2662  ;;  %v3497_v0 = vsel %vm914_vm3, %v3488_v5, %v3484_v27  ;;  %v2702_v27 = vrot.slane %v2701_v23, 1 }
0x531f   :  { %v3519_v28 = vrot.slane %v3518_v38, 4  ;;  %v3477_v48 = vpop.permute.xlu1 %3476  ;;  %v2678_v15 = vrot.slane %v2663_v63, %v9134_v37  ;;  %v2695_v45 = vmul.f32 %v9465_v58, %v2663_v63 }
0x5320   :  { %v3513_v33 = vadd.f32 %v3512_v16, %v3511_v56  ;;  %v3492_v35 = vrot.slane %v3477_v48, %v9134_v37  ;;  %v3509_v57 = vmul.f32 %v9450_v54, %v3477_v48 }
0x5321   :  { %v3520_v62 = vadd.f32 %v3519_v28, %v3518_v38  ;;  %v2684_v12 = vsel %vm916_vm4, %v2678_v15, %v2683_v61  ;;  %v2711_v42 = vsel %vm871_vm2, %v2695_v45, 0.0 }
0x5322   :  { %v3514_v17 = vrot.slane %v3513_v33, 2  ;;  %v3498_v60 = vsel %vm916_vm4, %v3492_v35, %v3497_v0  ;;  %v3525_v40 = vsel %vm871_vm2, %v3509_v57, 0.0  ;;  %v2712_v13 = vrot.slane %v2711_v42, 4  ;;  %v2666_v58 = vpop.permute.xlu0 %2665 }
0x5323   :  { %v3521_v4 = vrot.slane %v3520_v62, 2  ;;  %v3526_v30 = vrot.slane %v3525_v40, 4  ;;  %v3480_v52 = vpop.permute.xlu1 %3479  ;;  %v2682_v9 = vrot.slane %v2666_v58, %v9134_v37  ;;  %v2696_v54 = vmul.f32 %v9473_v10, %v2666_v58 }
0x5324   :  { %v3515_v11 = vadd.f32 %v3514_v17, %v3513_v33  ;;  %v2713_v31 = vadd.f32 %v2712_v13, %v2711_v42  ;;  %v3496_v6 = vrot.slane %v3480_v52, %v9134_v37  ;;  %v3510_v59 = vmul.f32 %v9494_v25, %v3480_v52 }
0x5325   :  { %v3522_v46 = vadd.f32 %v3521_v4, %v3520_v62  ;;  %v3527_v20 = vadd.f32 %v3526_v30, %v3525_v40  ;;  %v2685_v22 = vsel %vm918_vm5, %v2682_v9, %v2684_v12  ;;  %v2718_v29 = vsel %vm871_vm2, %v2696_v54, 0.0  ;;  %v8383_v30 = vld [vmem:[%s10302_s9 + $0x90] sm:$0x1f] }
0x5326   :  { %v2714_v14 = vrot.slane %v2713_v31, 2  ;;  %v3499_v49 = vsel %vm918_vm5, %v3496_v6, %v3498_v60  ;;  %v3532_v19 = vsel %vm871_vm2, %v3510_v59, 0.0  ;;  %7342 = vst.msk [vmem:[%s10276_s24 + $0x8] sm:$0xf] %vm921_vm6, %v2685_v22  ;;  %v9822_v10 = vpop.permute.xlu0 %4281  ;;  %v2709_v25 = vrot.slane %v2708_v43, 1 }
0x5327   :  { %v3528_v24 = vrot.slane %v3527_v20, 2  ;;  %7357 = vst.msk [vmem:[%s10276_s24 + $0xc] sm:$0xf] %vm921_vm6, %v3499_v49  ;;  %v3533_v8 = vrot.slane %v3532_v19, 4  ;;  %v2719_v26 = vrot.slane %v2718_v29, 4  ;;  %v9828_v1 = vpop.permute.xlu1 %4284  ;;  %v3523_v53 = vrot.slane %v3522_v46, 1 }
0x5328   :  { %v3516_v51 = vrot.slane %v3515_v11, 1  ;;  %v2715_v41 = vadd.f32 %v2714_v14, %v2713_v31  ;;  %v4319_v47 = vmul.f32 %v9510_v36, %v9828_v1  ;;  %v4318_v61 = vmul.f32 %v9480_v18, %v9822_v10 }
0x5329   :  { %v3529_v3 = vadd.f32 %v3528_v24, %v3527_v20  ;;  %v3534_v44 = vadd.f32 %v3533_v8, %v3532_v19  ;;  %v2720_v5 = vadd.f32 %v2719_v26, %v2718_v29  ;;  %v2710_v15 = vadd.f32 %v2709_v25, %v2708_v43 }
0x532a   :  { %v2716_v56 = vrot.slane %v2715_v41, 1  ;;  %v4329_v34 = vsel %vm871_vm2, %v4319_v47, 0.0  ;;  %v9835_v48 = vpop.permute.xlu0 %4287  ;;  %v3524_v45 = vadd.f32 %v3523_v53, %v3522_v46  ;;  %v3517_v33 = vadd.f32 %v3516_v51, %v3515_v11  ;;  %v8384_v51 = vld [vmem:[%s10302_s9 + $0xa0] sm:$0x1f] }
0x532b   :  { %v3530_v38 = vrot.slane %v3529_v3, 1  ;;  %v3535_v16 = vrot.slane %v3534_v44, 2  ;;  %v2721_v63 = vrot.slane %v2720_v5, 2  ;;  %v5099_v28 = vpop.permute.xlu1 %5098  ;;  %v4322_v36 = vsel %vm871_vm2, %v4318_v61, 0.0 }
0x532c   :  { %v2717_v35 = vadd.f32 %v2716_v56, %v2715_v41  ;;  %v2703_v0 = vadd.f32 %v2702_v27, %v2701_v23  ;;  %v4330_v42 = vrot.slane %v4329_v34, 4  ;;  %v5133_v18 = vmul.f32 %v9523_v32, %v5099_v28 }
0x532d   :  { %v3536_v57 = vadd.f32 %v3535_v16, %v3534_v44  ;;  %v2722_v62 = vadd.f32 %v2721_v63, %v2720_v5  ;;  %v3531_v12 = vadd.f32 %v3530_v38, %v3529_v3  ;;  %v4323_v40 = vrot.slane %v4322_v36, 4 }
0x532e   :  { %v2729_v58 = vsel %vm914_vm3, %v2710_v15, %v2703_v0  ;;  %v3543_v43 = vsel %vm914_vm3, %v3524_v45, %v3517_v33  ;;  %v5143_v4 = vsel %vm871_vm2, %v5133_v18, 0.0  ;;  %v4320_v52 = vmul.f32 %v8383_v30, %v9835_v48  ;;  %v5096_v31 = vpop.permute.xlu0 %5095 }
0x532f   :  { %v3537_v17 = vrot.slane %v3536_v57, 1  ;;  %v2723_v60 = vrot.slane %v2722_v62, 1  ;;  %v5102_v13 = vpop.permute.xlu1 %5101  ;;  %v2730_v9 = vsel %vm916_vm4, %v2717_v35, %v2729_v58  ;;  %v5144_v11 = vrot.slane %v5143_v4, 4 }
0x5330   :  { %v3544_v6 = vsel %vm916_vm4, %v3531_v12, %v3543_v43  ;;  %v4331_v59 = vadd.f32 %v4330_v42, %v4329_v34  ;;  %v5113_v46 = vrot.slane %v5099_v28, %v9134_v37  ;;  %v4336_v20 = vsel %vm871_vm2, %v4320_v52, 0.0  ;;  %v8385_v12 = vld [vmem:[%s10302_s9 + $0x98] sm:$0x1f] }
0x5331   :  { %v3538_v54 = vadd.f32 %v3537_v17, %v3536_v57  ;;  %v2724_v32 = vadd.f32 %v2723_v60, %v2722_v62  ;;  %v4324_v23 = vadd.f32 %v4323_v40, %v4322_v36  ;;  %v5145_v14 = vadd.f32 %v5144_v11, %v5143_v4 }
0x5332   :  { %v4337_v19 = vrot.slane %v4336_v20, 4  ;;  %v5117_v25 = vrot.slane %v5102_v13, %v9134_v37  ;;  %v5134_v24 = vmul.f32 %v9531_v55, %v5102_v13  ;;  %v5109_v8 = vrot.slane %v5096_v31, %v9134_v37  ;;  %v4291_v61 = vpop.permute.xlu0 %4290 }
0x5333   :  { %v3545_v22 = vsel %vm918_vm5, %v3538_v54, %v3544_v6  ;;  %v2731_v29 = vsel %vm918_vm5, %v2724_v32, %v2730_v9  ;;  %v5105_v49 = vpop.permute.xlu1 %5104  ;;  %v4299_v26 = vrot.slane %v9828_v1, %v9134_v37  ;;  %v4295_v53 = vrot.slane %v9822_v10, %v9134_v37 }
0x5334   :  { %3547 = vst.msk [vmem:[#allocation2 + $0xc] sm:$0xf] %vm1107_vm8, %v3545_v22  ;;  %2733 = vst.msk [vmem:[#allocation2 + $0x8] sm:$0xf] %vm1107_vm8, %v2731_v29  ;;  %v5132_v41 = vmul.f32 %v8384_v51, %v5096_v31  ;;  %v5121_v47 = vrot.slane %v5105_v49, %v9134_v37  ;;  %v5146_v3 = vrot.slane %v5145_v14, 2  ;;  %v4338_v44 = vadd.f32 %v4337_v19, %v4336_v20 }
0x5335   :  { %v5150_v5 = vsel %vm871_vm2, %v5134_v24, 0.0  ;;  %v5122_v55 = vsel %vm914_vm3, %v5113_v46, %v5109_v8  ;;  %v4332_v27 = vrot.slane %v4331_v59, 2  ;;  %v4303_v1 = vrot.slane %v9835_v48, %v9134_v37 }
0x5336   :  { %v5151_v56 = vrot.slane %v5150_v5, 4  ;;  %v5136_v10 = vsel %vm871_vm2, %v5132_v41, 0.0  ;;  %v4325_v38 = vrot.slane %v4324_v23, 2  ;;  %v5123_v63 = vsel %vm916_vm4, %v5117_v25, %v5122_v55 }
0x5337   :  { %v5137_v16 = vrot.slane %v5136_v10, 4  ;;  %v5135_v34 = vmul.f32 %v9538_v7, %v5105_v49  ;;  %v4308_v28 = vsel %vm914_vm3, %v4299_v26, %v4295_v53  ;;  %v4339_v15 = vrot.slane %v4338_v44, 2 }
0x5338   :  { %v5152_v45 = vadd.f32 %v5151_v56, %v5150_v5  ;;  %v5124_v33 = vsel %vm918_vm5, %v5121_v47, %v5123_v63  ;;  %v5147_v36 = vadd.f32 %v5146_v3, %v5145_v14  ;;  %v4307_v57 = vrot.slane %v4291_v61, %v9134_v37  ;;  %v8386_v56 = vld [vmem:[%s10304_s6 + $0x10] sm:$0xf] }
0x5339   :  { %v5138_v35 = vadd.f32 %v5137_v16, %v5136_v10  ;;  %7387 = vst.msk [vmem:[%s10276_s24 + $0x14] sm:$0xf] %vm921_vm6, %v5124_v33  ;;  %v5157_v48 = vsel %vm871_vm2, %v5135_v34, 0.0  ;;  %v4309_v62 = vsel %vm916_vm4, %v4303_v1, %v4308_v28  ;;  %v4321_v42 = vmul.f32 %v8385_v12, %v4291_v61  ;;  %v8387_v10 = vld [vmem:[%s10304_s6 + $0x8] sm:$0xff]  ;;  %v8388_v61 = vld [vmem:[%s10304_s6] sm:$0xff] }
0x533a   :  { %v5153_v7 = vrot.slane %v5152_v45, 2  ;;  %v5158_v0 = vrot.slane %v5157_v48, 4  ;;  %v4333_v17 = vadd.f32 %v4332_v27, %v4331_v59  ;;  %v4326_v60 = vadd.f32 %v4325_v38, %v4324_v23 }
0x533b   :  { %v5178_v18 = vld [vmem:[#allocation2 + $0x8] sm:$0xff]  ;;  %v5139_v40 = vrot.slane %v5138_v35, 2  ;;  %v4310_v13 = vsel %vm918_vm5, %v4307_v57, %v4309_v62  ;;  %v4340_v58 = vadd.f32 %v4339_v15, %v4338_v44  ;;  %v4343_v4 = vsel %vm871_vm2, %v4321_v42, 0.0  ;;  %v9925_v15 = vld [vmem:[%s10305_s5] ss:$0 sm:$0xff] }
0x533c   :  { %7780 = vmatmul.mubr.msk.f32.gmra.mxu1 %vm103_vm0, %v5178_v18  ;;  %v5154_v43 = vadd.f32 %v5153_v7, %v5152_v45  ;;  %v5159_v37 = vadd.f32 %v5158_v0, %v5157_v48  ;;  %7372 = vst.msk [vmem:[%s10276_s24 + $0x10] sm:$0xf] %vm921_vm6, %v4310_v13  ;;  %v5148_v30 = vrot.slane %v5147_v36, 1  ;;  %v4344_v9 = vrot.slane %v4343_v4, 4 }
0x533d   :  { %7782 = vmatprep.mubr.msk.f32.mxu1 %vm8414_vm1, %v8413_v2  ;;  %v5140_v52 = vadd.f32 %v5139_v40, %v5138_v35  ;;  %v4334_v11 = vrot.slane %v4333_v17, 1  ;;  %v4327_v31 = vrot.slane %v4326_v60, 1  ;;  %v4341_v46 = vrot.slane %v4340_v58, 1 }
0x533e   :  { %v5155_v54 = vrot.slane %v5154_v43, 1  ;;  %v5160_v32 = vrot.slane %v5159_v37, 2  ;;  %v4345_v59 = vadd.f32 %v4344_v9, %v4343_v4  ;;  %v5149_v22 = vadd.f32 %v5148_v30, %v5147_v36  ;;  %v9932_v36 = vld [vmem:[%s10306_s3] ss:$0 sm:$0xff] }
0x533f   :  { %v5141_v6 = vrot.slane %v5140_v52, 1  ;;  %v4335_v19 = vadd.f32 %v4334_v11, %v4333_v17  ;;  %v4328_v25 = vadd.f32 %v4327_v31, %v4326_v60  ;;  %v4342_v26 = vadd.f32 %v4341_v46, %v4340_v58 }
0x5340   :  { %v5161_v20 = vadd.f32 %v5160_v32, %v5159_v37  ;;  %v5156_v29 = vadd.f32 %v5155_v54, %v5154_v43  ;;  %v4346_v14 = vrot.slane %v4345_v59, 2  ;;  %vm6244_vm2 = vcmask 35872  }
0x5341   :  { %v5142_v23 = vadd.f32 %v5141_v6, %v5140_v52  ;;  %v4354_v3 = vsel %vm914_vm3, %v4335_v19, %v4328_v25  ;;  %v9958_v25 = vld [vmem:[%s10267_s15] ss:$0 sm:$0xff]  ;;  %s7271_s15 = sshll.u32 %s8434_s30, 4  ;;  %s7272_s15 = int_to_ptr.vmem [resolvable:$true] %s7271_s15 }
0x5342   :  { %v5162_v49 = vrot.slane %v5161_v20, 1  ;;  %v4347_v8 = vadd.f32 %v4346_v14, %v4345_v59  ;;  %v4355_v5 = vsel %vm916_vm4, %v4342_v26, %v4354_v3  ;;  %v6041_v26 = vmul.f32 0.0, %v9958_v25  ;;  %p8396_p1 = scmp.lt.s32.totalorder %s7272_s15, %s7272_s15 }
0x5343   :  { %v5168_v24 = vsel %vm914_vm3, %v5149_v22, %v5142_v23  ;;  %vm6286_vm3 = vcmask 48172  }
0x5344   :  { %v5163_v53 = vadd.f32 %v5162_v49, %v5161_v20  ;;  %v5169_v51 = vsel %vm916_vm4, %v5156_v29, %v5168_v24  ;;  %v4348_v41 = vrot.slane %v4347_v8, 1  ;;  %vm6289_vm4 = vcmask 44032  }
0x5346   :  { %v5170_v47 = vsel %vm918_vm5, %v5163_v53, %v5169_v51  ;;  %v4349_v44 = vadd.f32 %v4348_v41, %v4347_v8 }
0x5347   :  { %5172 = vst.msk [vmem:[#allocation2 + $0x14] sm:$0xf] %vm1107_vm8, %v5170_v47  ;;  %v5933_v47 = vld [vmem:[%s10266_s14 + $0x10] sm:$0xf] }
0x5348   :  { %v4356_v55 = vsel %vm918_vm5, %v4349_v44, %v4355_v5  ;;  %v5932_v44 = vld [vmem:[%s10266_s14 + $0x8] sm:$0xff]  ;;  %v5931_v5 = vld [vmem:[%s10266_s14] sm:$0xff]  ;;  %s8424_s14 = smov 2   ;;  %vm7263_vm5 = vcmask 27648  }
0x5349   :  { %4358 = vst.msk [vmem:[#allocation2 + $0x10] sm:$0xf] %vm1107_vm8, %v4356_v55 }
0x5350   :  { %v5179_v27 = vld [vmem:[#allocation2 + $0x10] sm:$0xff] }
0x5351   :  { %7783 = vmatmul.mubr.msk.f32.gmra.mxu1 %vm103_vm0, %v5179_v27 }
0x5352   :  { %7809 = vmatprep.mubr.msk.f32.mxu1 %vm8414_vm1, %v8413_v2  ;;  %v5502_v1 = vpop.permute.xlu0 %5501 }
0x5355   :  { %7810 = vmatmul.mubr.msk.f32.vlgmr.msra.gmra.mxu1 %vm5283_vm10, %v5502_v1 }
0x5356   :  { %7822 = vmatpush3.msk.msra.mxu1 %vm5286_vm7, %v8386_v56  ;;  %7827 = vmatprep.mubr.msk.f32.mxu1 %vm8414_vm1, %v8413_v2 }
0x5357   :  { %7823 = vmatprep.subr.mxu1 %v8413_v2 }
0x5358   :  { %7824 = vmatpush3.msra.mxu1 %v8387_v10 }
0x5359   :  { %7825 = vmatprep.subr.mxu1 %v8413_v2 }
0x535a   :  { %7826 = vmatpush3.msra.mxu1 %v8388_v61 }
0x535b   :  { %7839 = vmatprep.subr.mxu1 %v8413_v2 }
0x53fc   :  { %v5268_v38 = vpop.f32.mrf.mxu1 }
0x53fd   :  { %v5269_v35 = vadd.f32 %v9932_v36, %v5268_v38 }
0x53fe   :  { %v7781_v16 = vpop.f32.mrf.mxu1 }
0x5411   :  { %v9920_v63 = vpop.f32.mrf.mxu1 }
0x5413   :  { %v7784_v34 = vpop.f32.mrf.mxu1 }
0x5415   :  { %v5571_v28 = vpop.f32.mrf.mxu1 }
0x5416   :  { %v5572_v45 = vadd.f32 %v9925_v15, %v5571_v28 }
0x5417   :  { %v7811_v33 = vpop.f32.mrf.mxu1 }
0x5418   :  { %5583 = vrot.lane.b32.xlu1 %v5572_v45, %s8420_s1  ;;  %v5575_v48 = vadd.f32 %v5572_v45, %v5269_v35 }
0x541a   :  { %v7400_v57 = vmul.f32 -1.442695, %v5575_v48 }
0x541c   :  { %8278 = vpow2.f32 %v7400_v57 }
0x5429   :  { %v8279_v62 = vpop.eup %8278 }
0x542a   :  { %v5579_v7 = vadd.f32 1.0, %v8279_v62  ;;  %v10010_v62 = vadd.f32 %v9932_v36, %v9920_v63 }
0x542c   :  { %8280 = vrcp.f32 %v5579_v7 }
0x5439   :  { %v8281_v0 = vpop.eup %8280 }
0x543a   :  { %v5593_v40 = vsub.f32 1.0, %v8281_v0  ;;  %v5600_v58 = vmul.f32 %v8281_v0, %v5500_v39 }
0x548a   :  { %v5584_v12 = vpop.permute.xlu1 %5583 }
0x548b   :  { %v5586_v42 = vmul.f32 %v8281_v0, %v5584_v12 }
0x548d   :  { %5588 = vrot.lane.b32.xlu0 %v5586_v42, %s8421_s4 }
0x54ff   :  { %v5589_v18 = vpop.permute.xlu0 %5588 }
0x5500   :  { %v5591_v17 = vadd.f32 %v5589_v18, %v5269_v35 }
0x5502   :  { %8282 = vtanh.f32 %v5591_v17 }
0x550f   :  { %v8283_v60 = vpop.eup %8282 }
0x5510   :  { %5595 = vrot.lane.b32.xlu1 %v8283_v60, %s8422_s19 }
0x5582   :  { %v5596_v13 = vpop.permute.xlu1 %5595 }
0x5583   :  { %v5598_v43 = vmul.f32 %v5596_v13, %v5593_v40 }
0x5585   :  { %v5601_v37 = vadd.f32 %v5600_v58, %v5598_v43  ;;  %v8425_v58 = vmov 1  }
0x5586   :  { %7935 = vset.pattern.permute.xlu0 %v8425_v58  ;;  %7936 = vset.pattern.permute.xlu1 %v8425_v58 }
0x5587   :  { %5603 = vrot.lane.b32.xlu0 %v5601_v37, %s8422_s19  ;;  %v5705_v14 = vrot.slane %v5601_v37, 4 }
0x55f9   :  { %v5604_v4 = vpop.permute.xlu0 %5603 }
0x55fa   :  { %5606 = vst.msk [vmem:[#allocation3 + $0x8] sm:$0xf] %vm5390_vm9, %v5604_v4  ;;  %7819 = vmatmul.mubr.msk.f32.vlgmr.msra.gmra.mxu0 %vm5283_vm10, %v5604_v4 }
0x55fb   :  { %7831 = vmatpush3.msk.msra.mxu0 %vm5286_vm7, %v8386_v56  ;;  %7836 = vmatprep.mubr.msk.f32.mxu0 %vm8414_vm1, %v8413_v2  ;;  %v9999_v56 = vld [vmem:[%s10268_s16] ss:$0 sm:$0xff]  ;;  %s8426_s16 = smov 127  }
0x55fc   :  { %7832 = vmatprep.subr.mxu0 %v8413_v2 }
0x55fd   :  { %7833 = vmatpush3.msra.mxu0 %v8387_v10 }
0x55fe   :  { %7834 = vmatprep.subr.mxu0 %v8413_v2 }
0x55ff   :  { %7835 = vmatpush3.msra.mxu0 %v8388_v61 }
0x5600   :  { %7854 = vmatprep.subr.mxu0 %v8413_v2 }
0x56ba   :  { %v5675_v39 = vpop.f32.mrf.mxu0 }
0x56bb   :  { %v5676_v30 = vadd.f32 %v9925_v15, %v5675_v39 }
0x56bc   :  { %v7820_v52 = vpop.f32.mrf.mxu0 }
0x56bd   :  { %v5680_v9 = vrot.slane %v5676_v30, 4 }
0x56bf   :  { %5689 = vrot.lane.b32.xlu1 %v5680_v9, %s8420_s1  ;;  %v5682_v54 = vadd.f32 %v5680_v9, %v5269_v35 }
0x56c1   :  { %v7403_v32 = vmul.f32 -1.442695, %v5682_v54 }
0x56c3   :  { %8284 = vpow2.f32 %v7403_v32 }
0x56d0   :  { %v8285_v11 = vpop.eup %8284 }
0x56d1   :  { %v5686_v31 = vadd.f32 1.0, %v8285_v11 }
0x56d3   :  { %8286 = vrcp.f32 %v5686_v31 }
0x56e0   :  { %v8287_v6 = vpop.eup %8286 }
0x56e1   :  { %v5699_v49 = vsub.f32 1.0, %v8287_v6  ;;  %v5707_v8 = vmul.f32 %v8287_v6, %v5705_v14 }
0x5731   :  { %v5690_v59 = vpop.permute.xlu1 %5689 }
0x5732   :  { %v5692_v46 = vmul.f32 %v8287_v6, %v5690_v59 }
0x5734   :  { %5694 = vrot.lane.b32.xlu0 %v5692_v46, %s8421_s4 }
0x5738   :  { %5495 = vrot.lane.b32.xlu0 %v9782_v50, %s8422_s19  ;;  %v9963_v50 = vld [vmem:[%s10269_s17] ss:$0 sm:$0xff] }
0x5739   :  { %v6048_v51 = vadd.f32 %v9963_v50, %v6041_v26 }
0x573c   :  { %6057 = vrot.lane.b32.xlu0 %v6048_v51, %s8423_s7 }
0x57a6   :  { %v5695_v20 = vpop.permute.xlu0 %5694 }
0x57a7   :  { %v5697_v22 = vadd.f32 %v5695_v20, %v5269_v35 }
0x57a9   :  { %8288 = vtanh.f32 %v5697_v22 }
0x57aa   :  { %v5496_v29 = vpop.permute.xlu0 %5495 }
0x57ab   :  { %5499 = vst.msk [vmem:[#allocation3] sm:$0xf0] %vm5498_vm11, %v5496_v29 }
0x57ae   :  { %v6058_v33 = vpop.permute.xlu0 %6057 }
0x57b2   :  { %v9989_v55 = vld [vmem:[#allocation3] sm:$0xff] }
0x57b6   :  { %v8289_v23 = vpop.eup %8288 }
0x57b7   :  { %5701 = vrot.lane.b32.xlu1 %v8289_v23, %s8422_s19 }
0x5829   :  { %v5702_v19 = vpop.permute.xlu1 %5701 }
0x582a   :  { %v5704_v24 = vmul.f32 %v5702_v19, %v5699_v49 }
0x582c   :  { %v9966_v53 = vadd.f32 %v5707_v8, %v5704_v24 }
0x582e   :  { %v5714_v41 = vrot.slane %v9966_v53, 4 }
0x5830   :  { %5715 = vrot.lane.b32.xlu1 %v5714_v41, %s8422_s19 }
0x58a2   :  { %v5716_v3 = vpop.permute.xlu1 %5715 }
0x58a3   :  { %7828 = vmatmul.mubr.msk.f32.vlgmr.msra.gmra.mxu1 %vm5283_vm10, %v5716_v3 }
0x58a4   :  { %7840 = vmatpush3.msk.msra.mxu1 %vm5286_vm7, %v5933_v47  ;;  %7845 = vmatprep.mubr.msk.f32.mxu1 %vm8414_vm1, %v8413_v2 }
0x58a5   :  { %7841 = vmatprep.subr.mxu1 %v8413_v2 }
0x58a6   :  { %7842 = vmatpush3.msra.mxu1 %v5932_v44 }
0x58a7   :  { %7843 = vmatprep.subr.mxu1 %v8413_v2 }
0x58a8   :  { %7844 = vmatpush3.msra.mxu1 %v5931_v5  ;;  %v6340_v5 = vld [vmem:[%s10262_s10 + $0x10] sm:$0xf] }
0x58a9   :  { %7846 = vmatmul.mubr.msk.f32.vlgmr.msra.gmra.mxu1 %vm5283_vm10, %v9989_v55  ;;  %7869 = vmatprep.subr.mxu1 %v8413_v2 }
0x58aa   :  { %7848 = vmatprep.mubr.msk.f32.mxu1 %vm8414_vm1, %v8413_v2 }
0x5963   :  { %v5785_v27 = vpop.f32.mrf.mxu1 }
0x5964   :  { %v5786_v57 = vadd.f32 %v9925_v15, %v5785_v27 }
0x5965   :  { %v7829_v1 = vpop.f32.mrf.mxu1 }
0x5966   :  { %v5789_v7 = vadd.f32 %v5786_v57, %v10010_v62 }
0x5968   :  { %v7406_v0 = vmul.f32 -1.442695, %v5789_v7 }
0x5969   :  { %v6019_v10 = vpop.f32.mrf.mxu1 }
0x596a   :  { %v10002_v61 = vadd.f32 %v9999_v56, %v6019_v10 }
0x596b   :  { %v7847_v38 = vpop.f32.mrf.mxu1 }
0x596c   :  { %v6049_v16 = vadd.f32 %v6048_v51, %v10002_v61 }
0x596e   :  { %v7417_v34 = vmul.f32 -1.442695, %v6049_v16 }
0x5970   :  { %8290 = vpow2.f32 %v7417_v34 }
0x597d   :  { %v8291_v28 = vpop.eup %8290 }
0x597e   :  { %v6053_v45 = vadd.f32 1.0, %v8291_v28 }
0x5980   :  { %8292 = vrcp.f32 %v6053_v45 }
0x5981   :  { %8294 = vpow2.f32 %v7406_v0 }
0x598d   :  { %v8293_v35 = vpop.eup %8292 }
0x598e   :  { %v6060_v48 = vmul.f32 %v8293_v35, %v6058_v33  ;;  %v8295_v12 = vpop.eup %8294  ;;  %v6067_v36 = vsub.f32 1.0, %v8293_v35  ;;  %v6073_v37 = vmul.f32 0.0, %v8293_v35 }
0x598f   :  { %v5793_v42 = vadd.f32 1.0, %v8295_v12 }
0x5990   :  { %6062 = vrot.lane.b32.xlu1 %v6060_v48, %s8424_s14 }
0x5991   :  { %8296 = vrcp.f32 %v5793_v42 }
0x5994   :  { %5797 = vrot.lane.b32.xlu1 %v5786_v57, %s8420_s1 }
0x599e   :  { %v8297_v60 = vpop.eup %8296 }
0x599f   :  { %v5807_v49 = vsub.f32 1.0, %v8297_v60  ;;  %v5814_v24 = vmul.f32 %v8297_v60, %v5714_v41  ;;  %v6338_v41 = vld [vmem:[%s10262_s10] sm:$0xff] }
0x5a02   :  { %v6063_v18 = vpop.permute.xlu1 %6062 }
0x5a03   :  { %v6065_v17 = vadd.f32 %v6063_v18, %v10002_v61 }
0x5a05   :  { %8298 = vtanh.f32 %v6065_v17 }
0x5a06   :  { %v5798_v40 = vpop.permute.xlu1 %5797 }
0x5a07   :  { %v5800_v13 = vmul.f32 %v8297_v60, %v5798_v40 }
0x5a09   :  { %5802 = vrot.lane.b32.xlu1 %v5800_v13, %s8421_s4 }
0x5a12   :  { %v8299_v63 = vpop.eup %8298 }
0x5a13   :  { %6069 = vrot.lane.b32.xlu0 %v8299_v63, %s8426_s16 }
0x5a7b   :  { %v5803_v30 = vpop.permute.xlu1 %5802 }
0x5a7c   :  { %v5805_v52 = vadd.f32 %v5803_v30, %v10010_v62 }
0x5a7e   :  { %8300 = vtanh.f32 %v5805_v52 }
0x5a85   :  { %v6070_v43 = vpop.permute.xlu0 %6069 }
0x5a86   :  { %v6072_v4 = vmul.f32 %v6070_v43, %v6067_v36 }
0x5a88   :  { %v10016_v39 = vadd.f32 %v6073_v37, %v6072_v4 }
0x5a8a   :  { %6082 = vperm.xlu0 %7935, %v10016_v39  }
0x5a8b   :  { %v8301_v6 = vpop.eup %8300 }
0x5a8e   :  { %5710 = vrot.lane.b32.xlu0 %v9966_v53, %s8422_s19  ;;  %v6339_v53 = vld [vmem:[%s10262_s10 + $0x8] sm:$0xff]  ;;  %s8427_s10 = smov 1  }
0x5a8f   :  { %7937 = vset.pattern.permute.xlu0 %v8419_v21 }
0x5b05   :  { %v6083_v9 = vpop.permute.xlu0 %6082 }
0x5b06   :  { %v6085_v54 = vmul.f32 %v9958_v25, %v6083_v9 }
0x5b08   :  { %v6086_v32 = vadd.f32 %v9963_v50, %v6085_v54 }
0x5b09   :  { %v5711_v11 = vpop.permute.xlu0 %5710 }
0x5b0a   :  { %v6088_v31 = vrot.slane %v6086_v32, 4  ;;  %5713 = vst.msk [vmem:[#allocation3 + $0x8] sm:$0xf0] %vm5498_vm11, %v5711_v11 }
0x5b0c   :  { %6097 = vrot.lane.b32.xlu1 %v6088_v31, %s8423_s7  ;;  %v6090_v21 = vadd.f32 %v6088_v31, %v10002_v61 }
0x5b0e   :  { %v7418_v46 = vmul.f32 -1.442695, %v6090_v21 }
0x5b10   :  { %5809 = vrot.lane.b32.xlu1 %v8301_v6, %s8422_s19  ;;  %8302 = vpow2.f32 %v7418_v46 }
0x5b11   :  { %v5929_v59 = vld [vmem:[#allocation3 + $0x8] sm:$0xff] }
0x5b12   :  { %7849 = vmatmul.mubr.msk.f32.gmra.mxu1 %vm5283_vm10, %v5929_v59 }
0x5b13   :  { %7851 = vmatprep.mubr.msk.f32.mxu1 %vm8414_vm1, %v8413_v2 }
0x5b1d   :  { %v8303_v20 = vpop.eup %8302 }
0x5b1e   :  { %v6094_v22 = vadd.f32 1.0, %v8303_v20 }
0x5b20   :  { %8304 = vrcp.f32 %v6094_v22 }
0x5b2d   :  { %v8305_v29 = vpop.eup %8304 }
0x5b2e   :  { %v6107_v10 = vsub.f32 1.0, %v8305_v29 }
0x5b7e   :  { %v6098_v23 = vpop.permute.xlu1 %6097 }
0x5b7f   :  { %v6100_v14 = vmul.f32 %v8305_v29, %v6098_v23 }
0x5b81   :  { %6102 = vrot.lane.b32.xlu0 %v6100_v14, %s8424_s14 }
0x5b82   :  { %v5810_v19 = vpop.permute.xlu1 %5809 }
0x5b83   :  { %v5812_v8 = vmul.f32 %v5810_v19, %v5807_v49 }
0x5b85   :  { %v10035_v26 = vadd.f32 %v5814_v24, %v5812_v8 }
0x5b87   :  { %5817 = vrot.lane.b32.xlu1 %v10035_v26, %s8422_s19  ;;  %v5919_v49 = vrot.slane %v10035_v26, 4 }
0x5bd2   :  { %v6024_v51 = vpop.f32.mrf.mxu1 }
0x5bd3   :  { %v10079_v60 = vadd.f32 %v9999_v56, %v6024_v51 }
0x5bd4   :  { %v7850_v47 = vpop.f32.mrf.mxu1 }
0x5bf3   :  { %v6103_v3 = vpop.permute.xlu0 %6102 }
0x5bf4   :  { %v6105_v44 = vadd.f32 %v6103_v3, %v10002_v61  ;;  %v6113_v61 = vrot.slane %v10016_v39, 4 }
0x5bf6   :  { %8306 = vtanh.f32 %v6105_v44  ;;  %v6115_v16 = vmul.f32 %v8305_v29, %v6113_v61 }
0x5bf9   :  { %v5818_v27 = vpop.permute.xlu1 %5817 }
0x5bfa   :  { %5820 = vst.msk [vmem:[#allocation3 + $0x10] sm:$0xf] %vm5390_vm9, %v5818_v27  ;;  %7837 = vmatmul.mubr.msk.f32.vlgmr.msra.gmra.mxu0 %vm5283_vm10, %v5818_v27 }
0x5bfb   :  { %7855 = vmatpush3.msk.msra.mxu0 %vm5286_vm7, %v6340_v5  ;;  %7860 = vmatprep.mubr.msk.f32.mxu0 %vm8414_vm1, %v8413_v2 }
0x5bfc   :  { %7856 = vmatprep.subr.mxu0 %v8413_v2 }
0x5bfd   :  { %7857 = vmatpush3.msra.mxu0 %v6339_v53 }
0x5bfe   :  { %7858 = vmatprep.subr.mxu0 %v8413_v2 }
0x5bff   :  { %7859 = vmatpush3.msra.mxu0 %v6338_v41 }
0x5c00   :  { %7861 = vmatmul.mubr.msk.f32.vlgmr.msra.gmra.mxu0 %vm5283_vm10, %v9989_v55  ;;  %7879 = vmatprep.subr.mxu0 %v8413_v2 }
0x5c01   :  { %7863 = vmatprep.mubr.msk.f32.mxu0 %vm8414_vm1, %v8413_v2 }
0x5c03   :  { %v8307_v1 = vpop.eup %8306 }
0x5c04   :  { %7864 = vmatmul.mubr.msk.f32.gmra.mxu0 %vm5283_vm10, %v5929_v59  ;;  %6109 = vrot.lane.b32.xlu0 %v8307_v1, %s8426_s16 }
0x5c05   :  { %7866 = vmatprep.mubr.msk.f32.mxu0 %vm8414_vm1, %v8413_v2 }
0x5c76   :  { %v6110_v38 = vpop.permute.xlu0 %6109 }
0x5c77   :  { %v6112_v34 = vmul.f32 %v6110_v38, %v6107_v10 }
0x5c79   :  { %v10066_v55 = vadd.f32 %v6115_v16, %v6112_v34 }
0x5c7b   :  { %6121 = vperm.xlu1 %7936, %v10066_v55   ;;  %v6152_v22 = vrot.slane %v10066_v55, 4 }
0x5cba   :  { %v5889_v28 = vpop.f32.mrf.mxu0 }
0x5cbb   :  { %v5890_v42 = vadd.f32 %v9925_v15, %v5889_v28 }
0x5cbc   :  { %v7838_v45 = vpop.f32.mrf.mxu0 }
0x5cbd   :  { %v5894_v17 = vrot.slane %v5890_v42, 4 }
0x5cbf   :  { %v5896_v13 = vadd.f32 %v5894_v17, %v10010_v62 }
0x5cc0   :  { %v10069_v33 = vpop.f32.mrf.mxu0 }
0x5cc1   :  { %v7409_v63 = vmul.f32 -1.442695, %v5896_v13 }
0x5cc2   :  { %v7862_v35 = vpop.f32.mrf.mxu0 }
0x5cc4   :  { %v10071_v48 = vpop.f32.mrf.mxu0 }
0x5cc6   :  { %v7865_v57 = vpop.f32.mrf.mxu0 }
0x5cf6   :  { %v6122_v7 = vpop.permute.xlu1 %6121 }
0x5cf7   :  { %v6124_v0 = vmul.f32 %v9958_v25, %v6122_v7 }
0x5cf9   :  { %v6125_v12 = vadd.f32 %v9963_v50, %v6124_v0 }
0x5cfb   :  { %v6127_v18 = vrot.slane %v6125_v12, 4 }
0x5cfd   :  { %6136 = vrot.lane.b32.xlu0 %v6127_v18, %s8423_s7  ;;  %v6129_v40 = vadd.f32 %v6127_v18, %v10079_v60 }
0x5cff   :  { %v7419_v58 = vmul.f32 -1.442695, %v6129_v40 }
0x5d01   :  { %5903 = vrot.lane.b32.xlu0 %v5894_v17, %s8420_s1  ;;  %8308 = vpow2.f32 %v7419_v58  ;;  %s8428_s1 = smov 3  }
0x5d02   :  { %8310 = vpow2.f32 %v7409_v63 }
0x5d0e   :  { %v8309_v36 = vpop.eup %8308 }
0x5d0f   :  { %v6133_v43 = vadd.f32 1.0, %v8309_v36  ;;  %v8311_v15 = vpop.eup %8310 }
0x5d10   :  { %v5900_v37 = vadd.f32 1.0, %v8311_v15 }
0x5d11   :  { %8312 = vrcp.f32 %v6133_v43 }
0x5d12   :  { %8314 = vrcp.f32 %v5900_v37 }
0x5d1e   :  { %v8313_v4 = vpop.eup %8312 }
0x5d1f   :  { %v8315_v9 = vpop.eup %8314  ;;  %v6146_v20 = vsub.f32 1.0, %v8313_v4  ;;  %v6154_v23 = vmul.f32 %v8313_v4, %v6152_v22 }
0x5d20   :  { %v5913_v24 = vsub.f32 1.0, %v8315_v9  ;;  %v5921_v51 = vmul.f32 %v8315_v9, %v5919_v49 }
0x5d6f   :  { %v6137_v30 = vpop.permute.xlu0 %6136 }
0x5d70   :  { %v6139_v52 = vmul.f32 %v8313_v4, %v6137_v30 }
0x5d72   :  { %6141 = vrot.lane.b32.xlu1 %v6139_v52, %s8424_s14 }
0x5d73   :  { %v5904_v54 = vpop.permute.xlu0 %5903 }
0x5d74   :  { %v5906_v32 = vmul.f32 %v8315_v9, %v5904_v54 }
0x5d76   :  { %5908 = vrot.lane.b32.xlu0 %v5906_v32, %s8421_s4  ;;  %s8429_s4 = smov 4  }
0x5de4   :  { %v6142_v11 = vpop.permute.xlu1 %6141 }
0x5de5   :  { %v6144_v31 = vadd.f32 %v6142_v11, %v10079_v60 }
0x5de7   :  { %8316 = vtanh.f32 %v6144_v31 }
0x5de8   :  { %v5909_v6 = vpop.permute.xlu0 %5908 }
0x5de9   :  { %v5911_v59 = vadd.f32 %v5909_v6, %v10010_v62 }
0x5deb   :  { %8318 = vtanh.f32 %v5911_v59 }
0x5df4   :  { %v8317_v21 = vpop.eup %8316 }
0x5df5   :  { %6148 = vrot.lane.b32.xlu1 %v8317_v21, %s8426_s16 }
0x5df8   :  { %v8319_v46 = vpop.eup %8318 }
0x5df9   :  { %5915 = vrot.lane.b32.xlu0 %v8319_v46, %s8422_s19 }
0x5e67   :  { %v6149_v29 = vpop.permute.xlu1 %6148 }
0x5e68   :  { %v6151_v14 = vmul.f32 %v6149_v29, %v6146_v20 }
0x5e6a   :  { %v10091_v19 = vadd.f32 %v6154_v23, %v6151_v14 }
0x5e6b   :  { %v5916_v8 = vpop.permute.xlu0 %5915 }
0x5e6c   :  { %v5918_v62 = vmul.f32 %v5916_v8, %v5913_v24  ;;  %6163 = vperm.xlu1 %7936, %v10091_v19   ;;  %v6194_v18 = vrot.slane %v10091_v19, 4 }
0x5e6e   :  { %v5922_v47 = vadd.f32 %v5921_v51, %v5918_v62 }
0x5e70   :  { %5924 = vrot.lane.b32.xlu0 %v5922_v47, %s8422_s19 }
0x5ee2   :  { %v5925_v3 = vpop.permute.xlu0 %5924 }
0x5ee3   :  { %5927 = vst.msk [vmem:[#allocation3 + $0x10] sm:$0xf0] %vm5498_vm11, %v5925_v3 }
0x5ee7   :  { %v6164_v44 = vpop.permute.xlu1 %6163 }
0x5ee8   :  { %v6166_v5 = vmul.f32 %v9958_v25, %v6164_v44 }
0x5eea   :  { %v6167_v27 = vadd.f32 %v9963_v50, %v6166_v5  ;;  %v5930_v26 = vld [vmem:[#allocation3 + $0x10] sm:$0xff] }
0x5eeb   :  { %7852 = vmatmul.mubr.msk.f32.gmra.mxu1 %vm5283_vm10, %v5930_v26  ;;  %7867 = vmatmul.mubr.msk.f32.gmra.mxu0 %vm5283_vm10, %v5930_v26 }
0x5eec   :  { %v6169_v53 = vrot.slane %v6167_v27, 4  ;;  %7871 = vmatprep.mubr.msk.f32.mxu1 %vm8414_vm1, %v8413_v2  ;;  %7881 = vmatprep.mubr.msk.f32.mxu0 %vm8414_vm1, %v8413_v2 }
0x5eee   :  { %6178 = vrot.lane.b32.xlu1 %v6169_v53, %s8423_s7  ;;  %v6171_v41 = vadd.f32 %v6169_v53, %v10079_v60 }
0x5ef0   :  { %v7420_v1 = vmul.f32 -1.442695, %v6171_v41 }
0x5ef2   :  { %8320 = vpow2.f32 %v7420_v1 }
0x5eff   :  { %v8321_v10 = vpop.eup %8320 }
0x5f00   :  { %v6175_v61 = vadd.f32 1.0, %v8321_v10 }
0x5f02   :  { %8322 = vrcp.f32 %v6175_v61 }
0x5f0f   :  { %v8323_v38 = vpop.eup %8322 }
0x5f10   :  { %v6188_v42 = vsub.f32 1.0, %v8323_v38  ;;  %v6196_v13 = vmul.f32 %v8323_v38, %v6194_v18 }
0x5f60   :  { %v6179_v16 = vpop.permute.xlu1 %6178 }
0x5f61   :  { %v6181_v34 = vmul.f32 %v8323_v38, %v6179_v16 }
0x5f63   :  { %6183 = vrot.lane.b32.xlu1 %v6181_v34, %s8424_s14 }
0x5fab   :  { %v6029_v28 = vpop.f32.mrf.mxu1  ;;  %v10107_v45 = vpop.f32.mrf.mxu0 }
0x5fad   :  { %v7853_v35 = vpop.f32.mrf.mxu1  ;;  %v7868_v57 = vpop.f32.mrf.mxu0 }
0x5fd5   :  { %v6184_v7 = vpop.permute.xlu1 %6183 }
0x5fd6   :  { %v6186_v0 = vadd.f32 %v6184_v7, %v10079_v60  ;;  %v6030_v60 = vadd.f32 %v9999_v56, %v6029_v28  ;;  %v10132_v28 = vld [vmem:[%s10263_s11] sm:$0xff] }
0x5fd7   :  { %7870 = vmatpush3.msra.mxu1 %v10132_v28  ;;  %7880 = vmatpush3.msra.mxu0 %v10132_v28 }
0x5fd8   :  { %8324 = vtanh.f32 %v6186_v0  ;;  %7872 = vmatmul.mubr.f32.vlgmr.msra.gmra.mxu1 %v8413_v2  ;;  %7874 = vmatprep.subr.mxu1 %v8413_v2 }
0x5fd9   :  { %7875 = vmatpush3.msra.mxu1 %v10132_v28  ;;  %7876 = vmatprep.mubr.msk.f32.mxu1 %vm8414_vm1, %v8413_v2 }
0x5fda   :  { %7884 = vmatprep.subr.mxu1 %v8413_v2  ;;  %7889 = vmatprep.subr.mxu0 %v8413_v2 }
0x5fe5   :  { %v8325_v12 = vpop.eup %8324 }
0x5fe6   :  { %6190 = vrot.lane.b32.xlu0 %v8325_v12, %s8426_s16 }
0x6058   :  { %v6191_v17 = vpop.permute.xlu0 %6190 }
0x6059   :  { %v6193_v40 = vmul.f32 %v6191_v17, %v6188_v42  ;;  %v10147_v42 = vld [vmem:[%s10265_s13] ss:$0 sm:$0xff] }
0x605b   :  { %v6197_v58 = vadd.f32 %v6196_v13, %v6193_v40 }
0x605d   :  { %6205 = vperm.xlu1 %7936, %v6197_v58   ;;  %v6236_v21 = vrot.slane %v6197_v58, 4 }
0x6098   :  { %v6509_v18 = vpop.f32.mrf.mxu1 }
0x6099   :  { %v6510_v17 = vadd.f32 %v10147_v42, %v6509_v18 }
0x609a   :  { %v7873_v40 = vpop.f32.mrf.mxu1 }
0x60d8   :  { %v6206_v63 = vpop.permute.xlu1 %6205 }
0x60d9   :  { %v6208_v36 = vmul.f32 %v9958_v25, %v6206_v63 }
0x60db   :  { %v6209_v43 = vadd.f32 %v9963_v50, %v6208_v36  ;;  %v10157_v36 = vld [vmem:[%s10264_s12] ss:$0 sm:$0xff] }
0x60dd   :  { %v6211_v15 = vrot.slane %v6209_v43, 4 }
0x60df   :  { %6220 = vrot.lane.b32.xlu0 %v6211_v15, %s8423_s7  ;;  %v6213_v37 = vadd.f32 %v6211_v15, %v6030_v60 }
0x60e1   :  { %v7421_v4 = vmul.f32 -1.442695, %v6213_v37 }
0x60e3   :  { %8326 = vpow2.f32 %v7421_v4 }
0x60f0   :  { %v8327_v30 = vpop.eup %8326 }
0x60f1   :  { %v6217_v52 = vadd.f32 1.0, %v8327_v30 }
0x60f3   :  { %8328 = vrcp.f32 %v6217_v52 }
0x6100   :  { %v8329_v9 = vpop.eup %8328 }
0x6101   :  { %v6230_v59 = vsub.f32 1.0, %v8329_v9  ;;  %v6238_v46 = vmul.f32 %v8329_v9, %v6236_v21 }
0x6151   :  { %v6221_v54 = vpop.permute.xlu0 %6220 }
0x6152   :  { %v6223_v32 = vmul.f32 %v8329_v9, %v6221_v54 }
0x6154   :  { %6225 = vrot.lane.b32.xlu1 %v6223_v32, %s8424_s14 }
0x61c6   :  { %v6226_v11 = vpop.permute.xlu1 %6225 }
0x61c7   :  { %v6228_v31 = vadd.f32 %v6226_v11, %v6030_v60 }
0x61c9   :  { %8330 = vtanh.f32 %v6228_v31 }
0x61d6   :  { %v8331_v6 = vpop.eup %8330 }
0x61d7   :  { %6232 = vrot.lane.b32.xlu0 %v8331_v6, %s8426_s16 }
0x6249   :  { %v6233_v56 = vpop.permute.xlu0 %6232 }
0x624a   :  { %v6235_v20 = vmul.f32 %v6233_v56, %v6230_v59 }
0x624c   :  { %v6239_v22 = vadd.f32 %v6238_v46, %v6235_v20 }
0x624e   :  { %6247 = vperm.xlu1 %7936, %v6239_v22   ;;  %v6278_v26 = vrot.slane %v6239_v22, 4 }
0x62c9   :  { %v6248_v29 = vpop.permute.xlu1 %6247 }
0x62ca   :  { %v6250_v23 = vmul.f32 %v9958_v25, %v6248_v29 }
0x62cc   :  { %v6251_v14 = vadd.f32 %v9963_v50, %v6250_v23 }
0x62ce   :  { %v6253_v49 = vrot.slane %v6251_v14, 4 }
0x62d0   :  { %6262 = vrot.lane.b32.xlu0 %v6253_v49, %s8423_s7  ;;  %v6255_v24 = vadd.f32 %v6253_v49, %v6030_v60 }
0x62d2   :  { %v7422_v8 = vmul.f32 -1.442695, %v6255_v24 }
0x62d4   :  { %8332 = vpow2.f32 %v7422_v8 }
0x62e1   :  { %v8333_v62 = vpop.eup %8332 }
0x62e2   :  { %v6259_v51 = vadd.f32 1.0, %v8333_v62 }
0x62e4   :  { %8334 = vrcp.f32 %v6259_v51 }
0x62f1   :  { %v8335_v47 = vpop.eup %8334 }
0x62f2   :  { %v6280_v1 = vmul.f32 %v8335_v47, %v6278_v26 }
0x6342   :  { %v6263_v3 = vpop.permute.xlu0 %6262 }
0x6343   :  { %v6265_v44 = vmul.f32 %v8335_v47, %v6263_v3 }
0x6345   :  { %6267 = vrot.lane.b32.xlu1 %v6265_v44, %s8424_s14 }
0x6349   :  { %6076 = vrot.lane.b32.xlu1 %v10016_v39, %s8426_s16  ;;  %v6272_v39 = vsub.f32 1.0, %v8335_v47 }
0x634d   :  { %6199 = vrot.lane.b32.xlu1 %v6197_v58, %s8424_s14  ;;  %s10307_s14 = sld [smem:[#allocation18_spill]] }
0x63b7   :  { %v6268_v25 = vpop.permute.xlu1 %6267 }
0x63b8   :  { %v6270_v50 = vadd.f32 %v6268_v25, %v6030_v60 }
0x63ba   :  { %8336 = vtanh.f32 %v6270_v50 }
0x63bb   :  { %v6077_v5 = vpop.permute.xlu1 %6076 }
0x63bc   :  { %6080 = vst.msk [vmem:[#allocation4] sm:$0xf] %vm6079_vm12, %v6077_v5 }
0x63bd   :  { %6118 = vst.msk [vmem:[#allocation4 - $0x4] sm:$0xf0] %vm6117_vm13, %v10066_v55 }
0x63bf   :  { %v6200_v38 = vpop.permute.xlu1 %6199 }
0x63c7   :  { %v8337_v27 = vpop.eup %8336 }
0x63c8   :  { %6274 = vrot.lane.b32.xlu0 %v8337_v27, %s8426_s16 }
0x63cc   :  { %6157 = vrot.lane.b32.xlu0 %v10091_v19, %s8427_s10 }
0x63d0   :  { %6241 = vrot.lane.b32.xlu0 %v6239_v22, %s8428_s1 }
0x643a   :  { %v6275_v53 = vpop.permute.xlu0 %6274 }
0x643b   :  { %v6277_v41 = vmul.f32 %v6275_v53, %v6272_v39  ;;  %v8430_v39 = vmov 2  }
0x643d   :  { %v6281_v10 = vadd.f32 %v6280_v1, %v6277_v41 }
0x643e   :  { %v6158_v61 = vpop.permute.xlu0 %6157 }
0x643f   :  { %6161 = vst.msk [vmem:[#allocation4] sm:$0xf] %vm6160_vm14, %v6158_v61  ;;  %6283 = vrot.lane.b32.xlu1 %v6281_v10, %s8429_s4 }
0x6440   :  { %6203 = vst.msk [vmem:[#allocation4 - $0x4] sm:$0xf0] %vm6202_vm15, %v6200_v38 }
0x6442   :  { %v6242_v55 = vpop.permute.xlu0 %6241 }
0x6443   :  { %6245 = vst.msk [vmem:[#allocation4] sm:$0xf] %vm6244_vm2, %v6242_v55 }
0x64b1   :  { %v6284_v19 = vpop.permute.xlu1 %6283 }
0x64b2   :  { %6287 = vst.msk [vmem:[#allocation4 - $0x4] sm:$0xf0] %vm6286_vm3, %v6284_v19 }
0x64b9   :  { %v6288_v16 = vld [vmem:[#allocation4] sm:$0xf] }
0x64ba   :  { %v6290_v34 = vsel %vm6289_vm4, %v6288_v16, -inf }
0x64bb   :  { %6291 = vmax.xlane.f32.xlu0 %v6290_v34 }
0x6544   :  { %v6292_v35 = vpop.xlane.xlu0 %6291 }
0x6545   :  { %v6293_v57 = vsub.f32 %v6288_v16, %v6292_v35 }
0x6547   :  { %v6294_v7 = vmul.f32 1.442695, %v6293_v57 }
0x6549   :  { %8338 = vpow2.f32 %v6294_v7 }
0x6556   :  { %v8339_v0 = vpop.eup %8338 }
0x6557   :  { %v6296_v12 = vsel %vm6289_vm4, %v8339_v0, 0.0 }
0x6558   :  { %6297 = vadd.xlane.f32.xlu1 %v6296_v12 }
0x6569   :  { %6521 = vrot.lane.b32.xlu1 %v6510_v17, %s8415_s28 }
0x65e1   :  { %v6298_v13 = vpop.xlane.xlu1 %6297 }
0x65e2   :  { %8340 = vrcp.f32 %v6298_v13 }
0x65e5   :  { %v6522_v9 = vpop.permute.xlu1 %6521 }
0x65ef   :  { %v8341_v58 = vpop.eup %8340 }
0x65f0   :  { %v10151_v63 = vmul.f32 %v8341_v58, %v8339_v0 }
0x65f2   :  { %6426 = vperm.xlu0 %7937, %v10151_v63  }
0x666d   :  { %v6427_v43 = vpop.permute.xlu0 %6426 }
0x666e   :  { %v6429_v15 = vmul.f32 %v6427_v43, %v10069_v33 }
0x6670   :  { %v6436_v60 = vadd.f32 %v10157_v36, %v6429_v15 }
0x6672   :  { %v6513_v37 = vadd.f32 %v6510_v17, %v6436_v60 }
0x6674   :  { %v7429_v4 = vmul.f32 -1.442695, %v6513_v37 }
0x6676   :  { %8342 = vpow2.f32 %v7429_v4 }
0x6683   :  { %v8343_v30 = vpop.eup %8342 }
0x6684   :  { %v6517_v52 = vadd.f32 1.0, %v8343_v30 }
0x6686   :  { %8344 = vrcp.f32 %v6517_v52 }
0x6693   :  { %v8345_v54 = vpop.eup %8344 }
0x6694   :  { %v6524_v32 = vmul.f32 %v8345_v54, %v6522_v9  ;;  %v6531_v59 = vsub.f32 1.0, %v8345_v54  ;;  %v6537_v56 = vmul.f32 0.0, %v8345_v54 }
0x6696   :  { %6526 = vrot.lane.b32.xlu1 %v6524_v32, %s8416_s29 }
0x6708   :  { %v6527_v11 = vpop.permute.xlu1 %6526 }
0x6709   :  { %v6529_v31 = vadd.f32 %v6527_v11, %v6436_v60  ;;  %v8431_v60 = vmov 3  }
0x670a   :  { %7939 = vset.pattern.permute.xlu0 %v8431_v60 }
0x670b   :  { %8346 = vtanh.f32 %v6529_v31 }
0x6718   :  { %v8347_v6 = vpop.eup %8346 }
0x6719   :  { %6533 = vrot.lane.b32.xlu1 %v8347_v6, %s8417_s2 }
0x678b   :  { %v6534_v21 = vpop.permute.xlu1 %6533 }
0x678c   :  { %v6536_v46 = vmul.f32 %v6534_v21, %v6531_v59 }
0x678e   :  { %v6538_v20 = vadd.f32 %v6537_v56, %v6536_v46 }
0x6790   :  { %6547 = vrot.lane.b32.xlu1 %v6538_v20, %s8417_s2 }
0x6794   :  { %6540 = vperm.xlu1 %7936, %v10151_v63  }
0x6798   :  { %7938 = vset.pattern.permute.xlu1 %v8430_v39 }
0x6802   :  { %v6548_v22 = vpop.permute.xlu1 %6547 }
0x6803   :  { %7877 = vmatmul.mubr.msk.f32.vlgmr.msra.gmra.mxu1 %vm103_vm0, %v6548_v22 }
0x6804   :  { %7885 = vmatpush3.msra.mxu1 %v10132_v28  ;;  %7886 = vmatprep.mubr.msk.f32.mxu1 %vm8414_vm1, %v8413_v2 }
0x6805   :  { %7894 = vmatprep.subr.mxu1 %v8413_v2 }
0x680f   :  { %v6541_v24 = vpop.permute.xlu1 %6540 }
0x6810   :  { %v6542_v8 = vrot.slane %v6541_v24, 4 }
0x6812   :  { %v6544_v62 = vmul.f32 %v6542_v8, %v10069_v33  ;;  %v6647_v33 = vrot.slane %v6538_v20, 4 }
0x6814   :  { %v6545_v51 = vadd.f32 %v10157_v36, %v6544_v62 }
0x68c3   :  { %v6617_v29 = vpop.f32.mrf.mxu1 }
0x68c4   :  { %v6618_v23 = vadd.f32 %v10147_v42, %v6617_v29 }
0x68c5   :  { %v7878_v14 = vpop.f32.mrf.mxu1 }
0x68c6   :  { %v6622_v49 = vrot.slane %v6618_v23, 4 }
0x68c8   :  { %6631 = vrot.lane.b32.xlu1 %v6622_v49, %s8415_s28  ;;  %v6624_v47 = vadd.f32 %v6622_v49, %v6545_v51 }
0x68ca   :  { %v7431_v3 = vmul.f32 -1.442695, %v6624_v47 }
0x68cc   :  { %8348 = vpow2.f32 %v7431_v3 }
0x68d9   :  { %v8349_v44 = vpop.eup %8348 }
0x68da   :  { %v6628_v25 = vadd.f32 1.0, %v8349_v44 }
0x68dc   :  { %8350 = vrcp.f32 %v6628_v25 }
0x68e9   :  { %v8351_v50 = vpop.eup %8350 }
0x68ea   :  { %v6641_v1 = vsub.f32 1.0, %v8351_v50  ;;  %v6649_v61 = vmul.f32 %v8351_v50, %v6647_v33 }
0x693a   :  { %v6632_v5 = vpop.permute.xlu1 %6631 }
0x693b   :  { %v6634_v27 = vmul.f32 %v8351_v50, %v6632_v5 }
0x693d   :  { %6636 = vrot.lane.b32.xlu0 %v6634_v27, %s8416_s29 }
0x69af   :  { %v6637_v26 = vpop.permute.xlu0 %6636 }
0x69b0   :  { %v6639_v53 = vadd.f32 %v6637_v26, %v6545_v51  ;;  %v8432_v51 = vmov 4  }
0x69b2   :  { %8352 = vtanh.f32 %v6639_v53 }
0x69bf   :  { %v8353_v41 = vpop.eup %8352 }
0x69c0   :  { %6643 = vrot.lane.b32.xlu1 %v8353_v41, %s8417_s2 }
0x69c4   :  { %6652 = vperm.xlu1 %7938, %v10151_v63  }
0x6a32   :  { %v6644_v10 = vpop.permute.xlu1 %6643 }
0x6a33   :  { %v6646_v38 = vmul.f32 %v6644_v10, %v6641_v1 }
0x6a35   :  { %v6650_v55 = vadd.f32 %v6649_v61, %v6646_v38 }
0x6a37   :  { %v6658_v19 = vrot.slane %v6650_v55, 4 }
0x6a39   :  { %6659 = vrot.lane.b32.xlu0 %v6658_v19, %s8417_s2 }
0x6a3f   :  { %v6653_v7 = vpop.permute.xlu1 %6652 }
0x6a40   :  { %v6655_v0 = vmul.f32 %v6653_v7, %v10071_v48 }
0x6a42   :  { %v6656_v12 = vadd.f32 %v10157_v36, %v6655_v0  ;;  %v8433_v0 = vmov 5  }
0x6aab   :  { %v6660_v16 = vpop.permute.xlu0 %6659 }
0x6aac   :  { %7882 = vmatmul.mubr.msk.f32.vlgmr.msra.gmra.mxu0 %vm103_vm0, %v6660_v16 }
0x6aad   :  { %7890 = vmatpush3.msra.mxu0 %v10132_v28  ;;  %7891 = vmatprep.mubr.msk.f32.mxu0 %vm8414_vm1, %v8413_v2 }
0x6aae   :  { %7899 = vmatprep.subr.mxu0 %v8413_v2 }
0x6b6c   :  { %v6729_v34 = vpop.f32.mrf.mxu0 }
0x6b6d   :  { %v6730_v35 = vadd.f32 %v10147_v42, %v6729_v34 }
0x6b6e   :  { %v7883_v57 = vpop.f32.mrf.mxu0 }
0x6b6f   :  { %6741 = vrot.lane.b32.xlu0 %v6730_v35, %s8415_s28  ;;  %v6733_v18 = vadd.f32 %v6730_v35, %v6656_v12 }
0x6b71   :  { %v7433_v17 = vmul.f32 -1.442695, %v6733_v18 }
0x6b73   :  { %8354 = vpow2.f32 %v7433_v17 }
0x6b80   :  { %v8355_v40 = vpop.eup %8354 }
0x6b81   :  { %v6737_v13 = vadd.f32 1.0, %v8355_v40 }
0x6b83   :  { %8356 = vrcp.f32 %v6737_v13 }
0x6b90   :  { %v8357_v58 = vpop.eup %8356 }
0x6b91   :  { %v6751_v52 = vsub.f32 1.0, %v8357_v58  ;;  %v6758_v54 = vmul.f32 %v8357_v58, %v6658_v19 }
0x6be1   :  { %v6742_v43 = vpop.permute.xlu0 %6741 }
0x6be2   :  { %v6744_v15 = vmul.f32 %v8357_v58, %v6742_v43 }
0x6be4   :  { %6746 = vrot.lane.b32.xlu1 %v6744_v15, %s8416_s29 }
0x6c56   :  { %v6747_v37 = vpop.permute.xlu1 %6746 }
0x6c57   :  { %v6749_v4 = vadd.f32 %v6747_v37, %v6656_v12 }
0x6c59   :  { %8358 = vtanh.f32 %v6749_v4 }
0x6c66   :  { %v8359_v30 = vpop.eup %8358 }
0x6c67   :  { %6753 = vrot.lane.b32.xlu0 %v8359_v30, %s8417_s2 }
0x6c6b   :  { %6761 = vperm.xlu0 %7939, %v10151_v63  }
0x6c6f   :  { %7940 = vset.pattern.permute.xlu0 %v8432_v51  ;;  %v7181_v51 = vld [vmem:[%s10272_s20 + $0x8] sm:$0xff] }
0x6cd9   :  { %v6754_v9 = vpop.permute.xlu0 %6753 }
0x6cda   :  { %v6756_v32 = vmul.f32 %v6754_v9, %v6751_v52 }
0x6cdc   :  { %v6759_v11 = vadd.f32 %v6758_v54, %v6756_v32 }
0x6cde   :  { %6768 = vrot.lane.b32.xlu1 %v6759_v11, %s8417_s2 }
0x6ce6   :  { %v6762_v46 = vpop.permute.xlu0 %6761 }
0x6ce7   :  { %v6763_v20 = vrot.slane %v6762_v46, 4 }
0x6ce9   :  { %v6765_v22 = vmul.f32 %v6763_v20, %v10071_v48  ;;  %v6868_v48 = vrot.slane %v6759_v11, 4 }
0x6ceb   :  { %v6766_v29 = vadd.f32 %v10157_v36, %v6765_v22 }
0x6d50   :  { %v6769_v31 = vpop.permute.xlu1 %6768 }
0x6d51   :  { %7887 = vmatmul.mubr.msk.f32.vlgmr.msra.gmra.mxu1 %vm103_vm0, %v6769_v31 }
0x6d52   :  { %7895 = vmatpush3.msra.mxu1 %v10132_v28  ;;  %7896 = vmatprep.mubr.msk.f32.mxu1 %vm8414_vm1, %v8413_v2 }
0x6d53   :  { %7904 = vmatprep.subr.mxu1 %v8413_v2 }
0x6e11   :  { %v6838_v6 = vpop.f32.mrf.mxu1 }
0x6e12   :  { %v6839_v59 = vadd.f32 %v10147_v42, %v6838_v6 }
0x6e13   :  { %v7888_v21 = vpop.f32.mrf.mxu1 }
0x6e14   :  { %v6843_v56 = vrot.slane %v6839_v59, 4 }
0x6e16   :  { %6852 = vrot.lane.b32.xlu1 %v6843_v56, %s8415_s28  ;;  %v6845_v23 = vadd.f32 %v6843_v56, %v6766_v29 }
0x6e18   :  { %v7435_v28 = vmul.f32 -1.442695, %v6845_v23 }
0x6e1a   :  { %8360 = vpow2.f32 %v7435_v28 }
0x6e27   :  { %v8361_v14 = vpop.eup %8360 }
0x6e28   :  { %v6849_v49 = vadd.f32 1.0, %v8361_v14 }
0x6e2a   :  { %8362 = vrcp.f32 %v6849_v49 }
0x6e37   :  { %v8363_v24 = vpop.eup %8362 }
0x6e38   :  { %v6862_v25 = vsub.f32 1.0, %v8363_v24  ;;  %v6870_v5 = vmul.f32 %v8363_v24, %v6868_v48 }
0x6e88   :  { %v6853_v8 = vpop.permute.xlu1 %6852 }
0x6e89   :  { %v6855_v62 = vmul.f32 %v8363_v24, %v6853_v8 }
0x6e8b   :  { %6857 = vrot.lane.b32.xlu1 %v6855_v62, %s8416_s29 }
0x6efd   :  { %v6858_v47 = vpop.permute.xlu1 %6857 }
0x6efe   :  { %v6860_v3 = vadd.f32 %v6858_v47, %v6766_v29  ;;  %v7440_v47 = vld [vmem:[%s10307_s14] ss:$0 sm:$0xff] }
0x6f00   :  { %8364 = vtanh.f32 %v6860_v3 }
0x6f0d   :  { %v8365_v44 = vpop.eup %8364 }
0x6f0e   :  { %6864 = vrot.lane.b32.xlu0 %v8365_v44, %s8417_s2  ;;  %v7177_v44 = vld [vmem:[%s10274_s22] sm:$0xf]  ;;  %s8391_s22 = scalar_lea.vmem %s7272_s15, 64 }
0x6f0f   :  { %p8392_p0 = scmp.ne.s32.totalorder %s7272_s15, %s8391_s22  ;;  %p8397_p2 = scmp.lt.s32.totalorder %s8391_s22, %s8391_s22 }
0x6f11   :  { %p8398_p3 = por %p8397_p2, %p8396_p1 }
0x6f12   :  { %6873 = vperm.xlu0 %7940, %v10151_v63  }
0x6f13   :  { %p8399_p4 = pnand %p8398_p3, %p8392_p0 }
0x6f16   :  { %7941 = vset.pattern.permute.xlu0 %v8433_v0 }
0x6f80   :  { %v6865_v50 = vpop.permute.xlu0 %6864 }
0x6f81   :  { %v6867_v27 = vmul.f32 %v6865_v50, %v6862_v25 }
0x6f83   :  { %v6871_v39 = vadd.f32 %v6870_v5, %v6867_v27 }
0x6f85   :  { %v6879_v26 = vrot.slane %v6871_v39, 4 }
0x6f87   :  { %6880 = vrot.lane.b32.xlu1 %v6879_v26, %s8417_s2 }
0x6f8d   :  { %v6874_v10 = vpop.permute.xlu0 %6873 }
0x6f8e   :  { %v6876_v61 = vmul.f32 %v6874_v10, %v10107_v45 }
0x6f90   :  { %v6877_v38 = vadd.f32 %v10157_v36, %v6876_v61 }
0x6ff9   :  { %v6881_v53 = vpop.permute.xlu1 %6880 }
0x6ffa   :  { %7892 = vmatmul.mubr.msk.f32.vlgmr.msra.gmra.mxu0 %vm103_vm0, %v6881_v53 }
0x6ffb   :  { %7901 = vmatprep.mubr.msk.f32.mxu0 %vm8414_vm1, %v8413_v2 }
0x70ba   :  { %v6950_v41 = vpop.f32.mrf.mxu0 }
0x70bb   :  { %v6951_v33 = vadd.f32 %v10147_v42, %v6950_v41 }
0x70bc   :  { %v7893_v1 = vpop.f32.mrf.mxu0 }
0x70bd   :  { %6962 = vrot.lane.b32.xlu1 %v6951_v33, %s8415_s28  ;;  %v6954_v55 = vadd.f32 %v6951_v33, %v6877_v38 }
0x70bf   :  { %v7437_v19 = vmul.f32 -1.442695, %v6954_v55 }
0x70c1   :  { %8366 = vpow2.f32 %v7437_v19 }
0x70ce   :  { %v8367_v16 = vpop.eup %8366 }
0x70cf   :  { %v6958_v34 = vadd.f32 1.0, %v8367_v16 }
0x70d1   :  { %8368 = vrcp.f32 %v6958_v34 }
0x70de   :  { %v8369_v35 = vpop.eup %8368 }
0x70df   :  { %v6972_v40 = vsub.f32 1.0, %v8369_v35  ;;  %v6979_v58 = vmul.f32 %v8369_v35, %v6879_v26 }
0x712f   :  { %v6963_v57 = vpop.permute.xlu1 %6962 }
0x7130   :  { %v6965_v7 = vmul.f32 %v8369_v35, %v6963_v57 }
0x7132   :  { %6967 = vrot.lane.b32.xlu1 %v6965_v7, %s8416_s29 }
0x71a4   :  { %v6968_v12 = vpop.permute.xlu1 %6967 }
0x71a5   :  { %v6970_v18 = vadd.f32 %v6968_v12, %v6877_v38 }
0x71a7   :  { %8370 = vtanh.f32 %v6970_v18 }
0x71b4   :  { %v8371_v17 = vpop.eup %8370 }
0x71b5   :  { %6974 = vrot.lane.b32.xlu0 %v8371_v17, %s8417_s2 }
0x71b9   :  { %6982 = vperm.xlu0 %7941, %v10151_v63  }
0x7227   :  { %v6975_v13 = vpop.permute.xlu0 %6974 }
0x7228   :  { %v6977_v43 = vmul.f32 %v6975_v13, %v6972_v40 }
0x722a   :  { %v6980_v15 = vadd.f32 %v6979_v58, %v6977_v43 }
0x722c   :  { %6989 = vrot.lane.b32.xlu1 %v6980_v15, %s8417_s2  ;;  %v7089_v29 = vrot.slane %v6980_v15, 4 }
0x7234   :  { %v6983_v9 = vpop.permute.xlu0 %6982 }
0x7235   :  { %v6984_v54 = vrot.slane %v6983_v9, 4 }
0x7237   :  { %v6986_v32 = vmul.f32 %v6984_v54, %v10107_v45  ;;  %v7093_v45 = vld [vmem:[%s10270_s18] sm:$0xff] }
0x7238   :  { %7900 = vmatpush3.msra.mxu0 %v7093_v45 }
0x7239   :  { %v6987_v11 = vadd.f32 %v10157_v36, %v6986_v32 }
0x729e   :  { %v6990_v60 = vpop.permute.xlu1 %6989 }
0x729f   :  { %7897 = vmatmul.mubr.msk.f32.vlgmr.msra.gmra.mxu1 %vm103_vm0, %v6990_v60 }
0x72a0   :  { %7908 = vmatprep.mubr.msk.f32.mxu1 %vm8414_vm1, %v8413_v2  ;;  %7905 = vmatpush3.msra.mxu1 %v7181_v51  ;;  %vm6333_vm1 = vcmask 29696  }
0x72a1   :  { %7906 = vmatprep.subr.mxu1 %v8413_v2  ;;  %v7442_v2 = vld [vmem:[%s10273_s21] ss:$0 sm:$0xff] }
0x735f   :  { %v7059_v37 = vpop.f32.mrf.mxu1 }
0x7360   :  { %v7060_v4 = vadd.f32 %v10147_v42, %v7059_v37 }
0x7361   :  { %v7898_v30 = vpop.f32.mrf.mxu1 }
0x7362   :  { %v7064_v52 = vrot.slane %v7060_v4, 4 }
0x7364   :  { %7073 = vrot.lane.b32.xlu1 %v7064_v52, %s8415_s28  ;;  %v7066_v31 = vadd.f32 %v7064_v52, %v6987_v11 }
0x7366   :  { %v7439_v6 = vmul.f32 -1.442695, %v7066_v31 }
0x7368   :  { %8372 = vpow2.f32 %v7439_v6 }
0x7375   :  { %v8373_v59 = vpop.eup %8372 }
0x7376   :  { %v7070_v21 = vadd.f32 1.0, %v8373_v59 }
0x7378   :  { %8374 = vrcp.f32 %v7070_v21 }
0x7385   :  { %v8375_v56 = vpop.eup %8374 }
0x7386   :  { %v7083_v23 = vsub.f32 1.0, %v8375_v56  ;;  %v7091_v14 = vmul.f32 %v8375_v56, %v7089_v29 }
0x73d6   :  { %v7074_v46 = vpop.permute.xlu1 %7073 }
0x73d7   :  { %v7076_v20 = vmul.f32 %v8375_v56, %v7074_v46 }
0x73d9   :  { %7078 = vrot.lane.b32.xlu1 %v7076_v20, %s8416_s29 }
0x744b   :  { %v7079_v42 = vpop.permute.xlu1 %7078 }
0x744c   :  { %v7081_v22 = vadd.f32 %v7079_v42, %v6987_v11 }
0x744e   :  { %8376 = vtanh.f32 %v7081_v22 }
0x745b   :  { %v8377_v36 = vpop.eup %8376 }
0x745c   :  { %7085 = vrot.lane.b32.xlu0 %v8377_v36, %s8417_s2 }
0x747a   :  { %6301 = vxpose.xlu0.b32.start.end [1/1] (short) (narrow) %v10151_v63, 8  ;;  %v7180_v63 = vld [vmem:[%s10272_s20] sm:$0xff] }
0x747b   :  { %7907 = vmatpush3.msra.mxu1 %v7180_v63 }
0x74ce   :  { %v7086_v28 = vpop.permute.xlu0 %7085 }
0x74cf   :  { %v7088_v49 = vmul.f32 %v7086_v28, %v7083_v23 }
0x74d1   :  { %v7092_v24 = vadd.f32 %v7091_v14, %v7088_v49 }
0x74d3   :  { %v7102_v8 = vrot.slane %v7092_v24, 4 }
0x74d5   :  { %7103 = vrot.lane.b32.xlu1 %v7102_v8, %s8417_s2 }
0x74f6   :  { %v6317_v27 = vpop.trf.xlu0 }
0x74f7   :  { %6334 = vst.msk [vmem:[%s10277_s25] sm:$0x3f] %vm6333_vm1, %v6317_v27 }
0x7547   :  { %v7104_v62 = vpop.permute.xlu1 %7103 }
0x7548   :  { %7902 = vmatmul.mubr.msk.f32.vlgmr.msra.gmra.mxu0 %vm103_vm0, %v7104_v62  ;;  %vm7189_vm0 = vcmask 130048  }
0x7608   :  { %v7173_v3 = vpop.f32.mrf.mxu0 }
0x7609   :  { %v7174_v48 = vadd.f32 %v7440_v47, %v7173_v3 }
0x760a   :  { %v7903_v25 = vpop.f32.mrf.mxu0 }
0x760b   :  { %v7178_v50 = vmul.f32 %v7177_v44, %v7174_v48 }
0x760d   :  { %v7179_v5 = vmax.f32 %v7178_v50, 0.0 }
0x760f   :  { %7909 = vmatmul.mubr.msk.f32.vlgmr.msra.gmra.mxu1 %vm7189_vm0, %v7179_v5 }
0x76cf   :  { %v7259_v39 = vpop.f32.mrf.mxu1 }
0x76d0   :  { %v7260_v26 = vadd.f32 %v7442_v2, %v7259_v39 }
0x76d1   :  { %v7910_v53 = vpop.f32.mrf.mxu1 }
0x76d2   :  { %7264 = vst.msk [vmem:[#allocation5] sm:$0xf] %vm7263_vm5, %v7260_v26 }
0x76d3   :  { %8402 = shalt.err (!%p8399_p4)
}
0x76d4   :  { %7274 = dma.vmem_to_hbm [thread:$0]  %s7272_s15, 64, %s10275_s23, [#allocation6]  }
0x76d5   :  { %8411 = dma.done.wait [#allocation6], 64  }
0x76d6   :  { %8412 = vsyncadd [#allocation6], 4294967232 }
0x76d7   :  { %7286 = vsyncpa [#allocation6], 1 }

</bundles_post_ra>
